<compile_context>
chip_gen: v6e
topology: v6e:2x2x1
jax: 0.10.0
libtpu: 0.0.40
codegen_flags: <defaults>
</compile_context>

<pallas_src>
import jax
import jax.numpy as jnp
from jax.experimental import pallas as pl
from jax.experimental.pallas import tpu as pltpu


# ----------------------------- Pallas kernel --------------------------------

def rnn_decoder_kernel(mask_ref, xemb_ref, z_ref,
                       wz_ref, bz_ref,            # fused [decoder_lat | z-part of W_ih0 (+bih0)]
                       wih0e_ref,                 # emb-part of W_ih0 (d_emb, 3*Hp)
                       whh0_ref, bhh0_ref,        # (Hp, 3*Hp), (1, 3*Hp)
                       w1_ref, b1_ref,            # fused layer-1 (2*Hp, 4*Hp), (1, 4*Hp)
                       wfc_ref, bfc_ref,          # (Hp, Vp), (1, Vp)
                       y_ref,
                       gi0_scr, out_scr):
    TB = xemb_ref.shape[0]             # T * B_pad
    B = z_ref.shape[0]                 # padded batch (sublane-aligned)
    Hp = whh0_ref.shape[0]             # padded hidden (lane-aligned, 128)
    T = TB // B

    # One fused z matmul: h_0 = decoder_lat(z) and the time-invariant z-contribution
    # (+ bih0) to the layer-0 input projection.
    zproj = jnp.dot(z_ref[...], wz_ref[...],
                    preferred_element_type=jnp.float32) + bz_ref[...]
    h0 = zproj[:, :Hp]                 # shared initial state of both GRU layers
    h1 = h0
    gi0z = zproj[:, Hp:]               # (B, 3*Hp), includes bih0

    # Layer-0 embedding projection for all timesteps at once (off the critical path):
    # one (T*B, d_emb) x (d_emb, 3*Hp) matmul instead of T per-step matmuls.
    gi0_scr[...] = jnp.dot(xemb_ref[...], wih0e_ref[...],
                           preferred_element_type=jnp.float32)

    # T is small & static: fully unrolled loop keeps h0/h1 in vregs.  Weight reads stay
    # at the dot call sites (not hoisted) so the RHS streams from VMEM without spills.
    for t in range(T):
        # ---- layer 0 ----
        gi0 = gi0_scr[pl.ds(t * B, B), :] + gi0z            # static, sublane-aligned slice
        gh0 = jnp.dot(h0, whh0_ref[...],
                      preferred_element_type=jnp.float32) + bhh0_ref[...]
        r0 = jax.nn.sigmoid(gi0[:, 0 * Hp:1 * Hp] + gh0[:, 0 * Hp:1 * Hp])
        u0 = jax.nn.sigmoid(gi0[:, 1 * Hp:2 * Hp] + gh0[:, 1 * Hp:2 * Hp])
        n0 = jnp.tanh(gi0[:, 2 * Hp:3 * Hp] + r0 * gh0[:, 2 * Hp:3 * Hp])
        h0 = (1.0 - u0) * n0 + u0 * h0

        # ---- layer 1: single fused K-concat matmul, N = 4*Hp ----
        # columns: [r_in+hid | z_in+hid | n_input | n_hidden]
        hcat = jnp.concatenate([h0, h1], axis=1)            # (B, 2*Hp)
        g1 = jnp.dot(hcat, w1_ref[...],
                     preferred_element_type=jnp.float32) + b1_ref[...]
        r1 = jax.nn.sigmoid(g1[:, 0 * Hp:1 * Hp])
        u1 = jax.nn.sigmoid(g1[:, 1 * Hp:2 * Hp])
        n1 = jnp.tanh(g1[:, 2 * Hp:3 * Hp] + r1 * g1[:, 3 * Hp:4 * Hp])
        h1 = (1.0 - u1) * n1 + u1 * h1

        # Unmasked store; pack/pad_packed masking is applied once before the fc matmul.
        out_scr[pl.ds(t * B, B), :] = h1

    # Apply the (T*B, 1) validity mask once, then decoder_fc over all timesteps in one
    # lane-dense matmul (vocab padded to 128 -> unmasked full-lane stores).
    y_ref[...] = jnp.dot(out_scr[...] * mask_ref[...], wfc_ref[...],
                         preferred_element_type=jnp.float32) + bfc_ref[...]


# ------------------------------- wrapper -------------------------------------

def _round_up(x, m):
    return ((x + m - 1) // m) * m


def prepare_decoder_params(params):
    """One-time weight padding / transposition / gate fusion.  Call once and cache;
    this is intentionally NOT part of the per-forward path."""
    f32 = jnp.float32
    d_emb = params["emb"].shape[1]
    d_z = params["wlat"].shape[1]
    H = params["whh0"].shape[1]
    V = params["wfc"].shape[0]

    Hp = _round_up(max(H, 128), 128)   # lane
    Vp = _round_up(max(V, 128), 128)   # lane

    wih0 = params["wih0"].astype(f32)              # (3H, d_emb + d_z)
    wih0_emb = wih0[:, :d_emb]
    wih0_z = wih0[:, d_emb:]
    bih0 = params["bih0"].reshape(-1).astype(f32)

    # Fused z projection: [decoder_lat | z-part of W_ih0], bias [blat | bih0].
    wz = jnp.zeros((d_z, 4 * Hp), f32)
    bz = jnp.zeros((1, 4 * Hp), f32)
    wz = wz.at[:, :H].set(params["wlat"].astype(f32).T)
    bz = bz.at[0, :H].set(params["blat"].reshape(-1).astype(f32))
    for g in range(3):
        col = Hp + g * Hp
        wz = wz.at[:, col:col + H].set(wih0_z[g * H:(g + 1) * H, :].T)
        bz = bz.at[0, col:col + H].set(bih0[g * H:(g + 1) * H])

    # Emb-part of W_ih0 (hoisted projection; its bias already lives in bz).
    wih0e = jnp.zeros((d_emb, 3 * Hp), f32)
    for g in range(3):
        wih0e = wih0e.at[:, g * Hp:g * Hp + H].set(wih0_emb[g * H:(g + 1) * H, :].T)

    # Layer-0 hidden weights, gate-block lane-aligned.
    whh0_src = params["whh0"].astype(f32)
    bhh0_src = params["bhh0"].reshape(-1).astype(f32)
    whh0 = jnp.zeros((Hp, 3 * Hp), f32)
    bhh0 = jnp.zeros((1, 3 * Hp), f32)
    for g in range(3):
        whh0 = whh0.at[:H, g * Hp:g * Hp + H].set(whh0_src[g * H:(g + 1) * H, :].T)
        bhh0 = bhh0.at[0, g * Hp:g * Hp + H].set(bhh0_src[g * H:(g + 1) * H])

    # Layer-1 fused K-concat weight (2*Hp, 4*Hp): rows [h0 | h1], columns
    # [r_in+hid | z_in+hid | n_input | n_hidden]; r/z biases pre-summed.
    wih1 = params["wih1"].astype(f32)
    whh1 = params["whh1"].astype(f32)
    bih1 = params["bih1"].reshape(-1).astype(f32)
    bhh1 = params["bhh1"].reshape(-1).astype(f32)
    w1 = jnp.zeros((2 * Hp, 4 * Hp), f32)
    b1 = jnp.zeros((1, 4 * Hp), f32)
    for g in range(2):  # r, z gates: input + hidden contributions sum directly
        w1 = w1.at[:H, g * Hp:g * Hp + H].set(wih1[g * H:(g + 1) * H, :].T)
        w1 = w1.at[Hp:Hp + H, g * Hp:g * Hp + H].set(whh1[g * H:(g + 1) * H, :].T)
        b1 = b1.at[0, g * Hp:g * Hp + H].set(bih1[g * H:(g + 1) * H]
                                             + bhh1[g * H:(g + 1) * H])
    # n gate: keep input / hidden parts separate (n = tanh(n_in + r * n_hid))
    w1 = w1.at[:H, 2 * Hp:2 * Hp + H].set(wih1[2 * H:3 * H, :].T)
    b1 = b1.at[0, 2 * Hp:2 * Hp + H].set(bih1[2 * H:3 * H])
    w1 = w1.at[Hp:Hp + H, 3 * Hp:3 * Hp + H].set(whh1[2 * H:3 * H, :].T)
    b1 = b1.at[0, 3 * Hp:3 * Hp + H].set(bhh1[2 * H:3 * H])

    # decoder_fc
    wfc = jnp.zeros((Hp, Vp), f32)
    bfc = jnp.zeros((1, Vp), f32)
    wfc = wfc.at[:H, :V].set(params["wfc"].astype(f32).T)
    bfc = bfc.at[0, :V].set(params["bfc"].reshape(-1).astype(f32))

    return dict(emb=params["emb"].astype(f32),
                wz=wz, bz=bz, wih0e=wih0e, whh0=whh0, bhh0=bhh0,
                w1=w1, b1=b1, wfc=wfc, bfc=bfc,
                dims=dict(d_emb=d_emb, d_z=d_z, H=H, V=V, Hp=Hp, Vp=Vp))


def rnn_decoder_forward(x_pad, lengths, z, prep):
    dims = prep["dims"]
    Hp, Vp, V, d_emb = dims["Hp"], dims["Vp"], dims["V"], dims["d_emb"]
    B, T = x_pad.shape
    B_pad = _round_up(max(B, 8), 8)       # sublane

    # Glue: embedding lookup only -- z is NOT tiled T times (its projection is fused
    # inside the kernel).  Pad batch to sublane multiple, time-major flatten.
    x_emb = jnp.take(prep["emb"], x_pad, axis=0).astype(jnp.float32)   # (B, T, d_emb)
    x_emb = jnp.transpose(x_emb, (1, 0, 2))                            # (T, B, d_emb)
    x_emb = jnp.pad(x_emb, ((0, 0), (0, B_pad - B), (0, 0)))
    x_emb = x_emb.reshape(T * B_pad, d_emb)                            # row = t*B_pad + b

    z_p = jnp.pad(z.astype(jnp.float32), ((0, B_pad - B), (0, 0)))     # (B_pad, d_z)

    # pack_padded / pad_packed validity mask (padded batch rows -> length 0 -> masked).
    len_p = jnp.pad(lengths.astype(jnp.int32), (0, B_pad - B))         # (B_pad,)
    mask = (jnp.arange(T, dtype=jnp.int32)[:, None] < len_p[None, :])
    mask = mask.astype(jnp.float32).reshape(T * B_pad, 1)

    args = [mask, x_emb, z_p,
            prep["wz"], prep["bz"], prep["wih0e"],
            prep["whh0"], prep["bhh0"],
            prep["w1"], prep["b1"],
            prep["wfc"], prep["bfc"]]

    vmem = pl.BlockSpec(memory_space=pltpu.MemorySpace.VMEM)
    y_flat = pl.pallas_call(
        rnn_decoder_kernel,
        out_shape=jax.ShapeDtypeStruct((T * B_pad, Vp), jnp.float32),
        in_specs=[vmem] * len(args),
        out_specs=vmem,
        scratch_shapes=[
            pltpu.VMEM((T * B_pad, 3 * Hp), jnp.float32),   # hoisted layer-0 emb projection
            pltpu.VMEM((T * B_pad, Hp), jnp.float32),       # GRU layer-1 outputs (pre-fc)
        ],
        compiler_params=pltpu.CompilerParams(vmem_limit_bytes=32 * 1024 * 1024),
    )(*args)

    # (T*B_pad, Vp) -> (B, T, V)
    y = y_flat.reshape(T, B_pad, Vp)[:, :B, :V]
    return jnp.transpose(y, (1, 0, 2))


# ----------------------------- pure-JAX reference ----------------------------

def rnn_decoder_reference(x_pad, lengths, z, params):
    B, T = x_pad.shape
    H = params["whh0"].shape[1]
    x_emb = jnp.take(params["emb"], x_pad, axis=0)
    z0 = jnp.broadcast_to(z[:, None, :], (B, T, z.shape[1]))
    x_in = jnp.concatenate([x_emb, z0], axis=-1)
    h0 = z @ params["wlat"].T + params["blat"]
    h = [h0, h0]

    def cell(x, hp, wih, whh, bih, bhh):
        gi = x @ wih.T + bih
        gh = hp @ whh.T + bhh
        r = jax.nn.sigmoid(gi[:, :H] + gh[:, :H])
        u = jax.nn.sigmoid(gi[:, H:2 * H] + gh[:, H:2 * H])
        n = jnp.tanh(gi[:, 2 * H:] + r * gh[:, 2 * H:])
        return (1.0 - u) * n + u * hp

    outs = []
    for t in range(T):
        x_t = x_in[:, t, :]
        h[0] = cell(x_t, h[0], params["wih0"], params["whh0"],
                    params["bih0"], params["bhh0"])
        h[1] = cell(h[0], h[1], params["wih1"], params["whh1"],
                    params["bih1"], params["bhh1"])
        valid = (t < lengths)[:, None]
        outs.append(jnp.where(valid, h[1], 0.0))
    out = jnp.stack(outs, axis=1)                                  # (B, T, H)
    y = out @ params["wfc"].T + params["bfc"]
    return y


# ---------------------------------- main --------------------------------------

if __name__ == "__main__":
    # config (small, but consistent with the module): d_emb, d_z, d_d_h, d_n_layers=2
    vocab = list(range(10))
    vocab_len = len(vocab) + 2
    ridx_bos = len(vocab)       # 10
    ridx_pad = len(vocab) + 1   # 11
    d_emb, d_z, d_d_h = 16, 16, 32
    B, T = 2, 8

    key = jax.random.PRNGKey(0)
    ks = jax.random.split(key, 16)

    def init(k, shape, scale=0.1):
        return (scale * jax.random.normal(k, shape)).astype(jnp.float32)

    emb = init(ks[0], (vocab_len, d_emb))
    emb = emb.at[ridx_pad].set(0.0)  # nn.Embedding padding_idx row

    params = {
        "emb": emb,
        "wlat": init(ks[1], (d_d_h, d_z)),
        "blat": init(ks[2], (1, d_d_h)),
        "wih0": init(ks[3], (3 * d_d_h, d_emb + d_z)),
        "whh0": init(ks[4], (3 * d_d_h, d_d_h)),
        "bih0": init(ks[5], (1, 3 * d_d_h)),
        "bhh0": init(ks[6], (1, 3 * d_d_h)),
        "wih1": init(ks[7], (3 * d_d_h, d_d_h)),
        "whh1": init(ks[8], (3 * d_d_h, d_d_h)),
        "bih1": init(ks[9], (1, 3 * d_d_h)),
        "bhh1": init(ks[10], (1, 3 * d_d_h)),
        "wfc": init(ks[11], (vocab_len, d_d_h)),
        "bfc": init(ks[12], (1, vocab_len)),
    }

    # sequences (pad_sequence equivalent, lengths descending as pack_padded requires)
    lengths = jnp.array([8, 6], dtype=jnp.int32)
    tokens = jax.random.randint(ks[13], (B, T), 0, len(vocab), dtype=jnp.int32)
    pos = jnp.arange(T)[None, :]
    x_pad = jnp.where(pos < lengths[:, None], tokens, ridx_pad)

    z = init(ks[14], (B, d_z), scale=1.0)

    # Weight prep done ONCE (cache this across decode steps / calls).
    prep = prepare_decoder_params(params)
    prep = jax.tree_util.tree_map(
        lambda a: jax.block_until_ready(a) if isinstance(a, jnp.ndarray) else a, prep)

    y = rnn_decoder_forward(x_pad, lengths, z, prep)
    y = jax.block_until_ready(y)

    y_ref = rnn_decoder_reference(x_pad, lengths, z, params)
    assert y.shape == (B, T, vocab_len)
    assert jnp.allclose(y, y_ref, atol=1e-5, rtol=1e-5), (
        "mismatch vs reference: max abs diff "
        f"{float(jnp.max(jnp.abs(y - y_ref)))}")

    print("KERNEL_OK")
</pallas_src>

<mosaic_0001>
module attributes {stable_mosaic.version = 11 : i64} {
  func.func @rnn_decoder_kernel(%arg0: memref<64x1xf32, #tpu.memory_space<vmem>>, %arg1: memref<64x16xf32, #tpu.memory_space<vmem>>, %arg2: memref<8x16xf32, #tpu.memory_space<vmem>>, %arg3: memref<16x512xf32, #tpu.memory_space<vmem>>, %arg4: memref<1x512xf32, #tpu.memory_space<vmem>>, %arg5: memref<16x384xf32, #tpu.memory_space<vmem>>, %arg6: memref<128x384xf32, #tpu.memory_space<vmem>>, %arg7: memref<1x384xf32, #tpu.memory_space<vmem>>, %arg8: memref<256x512xf32, #tpu.memory_space<vmem>>, %arg9: memref<1x512xf32, #tpu.memory_space<vmem>>, %arg10: memref<128x128xf32, #tpu.memory_space<vmem>>, %arg11: memref<1x128xf32, #tpu.memory_space<vmem>>, %arg12: memref<64x128xf32, #tpu.memory_space<vmem>>, %arg13: memref<64x384xf32, #tpu.memory_space<vmem>>, %arg14: memref<64x128xf32, #tpu.memory_space<vmem>>) attributes {dimension_semantics = [], scalar_prefetch = 0 : i64, scratch_operands = 2 : i64, tpu.core_type = #tpu.core_type<tc>} {
    %c0 = arith.constant 0 : index
    %c0_0 = arith.constant 0 : index
    %0 = vector.load %arg2[%c0, %c0_0] : memref<8x16xf32, #tpu.memory_space<vmem>>, vector<8x16xf32>
    %c0_1 = arith.constant 0 : index
    %c0_2 = arith.constant 0 : index
    %1 = vector.load %arg3[%c0_1, %c0_2] : memref<16x512xf32, #tpu.memory_space<vmem>>, vector<16x512xf32>
    %cst = arith.constant dense<0.000000e+00> : vector<8x512xf32>
    %2 = tpu.matmul %0, %1, %cst {dimension_numbers = #tpu.dot_dimension_numbers<[1], [0], [0], [1], [0, 0, 1, 1], [], []>} : vector<8x16xf32>, vector<16x512xf32>, vector<8x512xf32> -> vector<8x512xf32>
    %c0_3 = arith.constant 0 : index
    %c0_4 = arith.constant 0 : index
    %3 = vector.load %arg4[%c0_3, %c0_4] : memref<1x512xf32, #tpu.memory_space<vmem>>, vector<1x512xf32>
    %4 = vector.broadcast %3 : vector<1x512xf32> to vector<8x512xf32>
    %5 = arith.addf %2, %4 : vector<8x512xf32>
    %6 = vector.extract_strided_slice %5 {offsets = [0, 0], sizes = [8, 128], strides = [1, 1]} : vector<8x512xf32> to vector<8x128xf32>
    %7 = vector.extract_strided_slice %5 {offsets = [0, 128], sizes = [8, 384], strides = [1, 1]} : vector<8x512xf32> to vector<8x384xf32>
    %c0_5 = arith.constant 0 : index
    %c0_6 = arith.constant 0 : index
    %8 = vector.load %arg1[%c0_5, %c0_6] : memref<64x16xf32, #tpu.memory_space<vmem>>, vector<64x16xf32>
    %c0_7 = arith.constant 0 : index
    %c0_8 = arith.constant 0 : index
    %9 = vector.load %arg5[%c0_7, %c0_8] : memref<16x384xf32, #tpu.memory_space<vmem>>, vector<16x384xf32>
    %cst_9 = arith.constant dense<0.000000e+00> : vector<64x384xf32>
    %10 = tpu.matmul %8, %9, %cst_9 {dimension_numbers = #tpu.dot_dimension_numbers<[1], [0], [0], [1], [0, 0, 1, 1], [], []>} : vector<64x16xf32>, vector<16x384xf32>, vector<64x384xf32> -> vector<64x384xf32>
    %c0_10 = arith.constant 0 : index
    %c0_11 = arith.constant 0 : index
    %11 = vector.load %arg13[%c0_10, %c0_11] : memref<64x384xf32, #tpu.memory_space<vmem>>, vector<64x384xf32>
    tpu.vector_store %arg13[%c0_10, %c0_11], %10 {strides = array<i32>} : memref<64x384xf32, #tpu.memory_space<vmem>>, vector<64x384xf32>,
    %c0_12 = arith.constant 0 : index
    %c0_13 = arith.constant 0 : index
    %12 = vector.load %arg13[%c0_12, %c0_13] : memref<64x384xf32, #tpu.memory_space<vmem>>, vector<8x384xf32>
    %13 = arith.addf %12, %7 : vector<8x384xf32>
    %c0_14 = arith.constant 0 : index
    %c0_15 = arith.constant 0 : index
    %14 = vector.load %arg6[%c0_14, %c0_15] : memref<128x384xf32, #tpu.memory_space<vmem>>, vector<128x384xf32>
    %cst_16 = arith.constant dense<0.000000e+00> : vector<8x384xf32>
    %15 = tpu.matmul %6, %14, %cst_16 {dimension_numbers = #tpu.dot_dimension_numbers<[1], [0], [0], [1], [0, 0, 1, 1], [], []>} : vector<8x128xf32>, vector<128x384xf32>, vector<8x384xf32> -> vector<8x384xf32>
    %c0_17 = arith.constant 0 : index
    %c0_18 = arith.constant 0 : index
    %16 = vector.load %arg7[%c0_17, %c0_18] : memref<1x384xf32, #tpu.memory_space<vmem>>, vector<1x384xf32>
    %17 = vector.broadcast %16 : vector<1x384xf32> to vector<8x384xf32>
    %18 = arith.addf %15, %17 : vector<8x384xf32>
    %19 = vector.extract_strided_slice %13 {offsets = [0, 0], sizes = [8, 128], strides = [1, 1]} : vector<8x384xf32> to vector<8x128xf32>
    %20 = vector.extract_strided_slice %18 {offsets = [0, 0], sizes = [8, 128], strides = [1, 1]} : vector<8x384xf32> to vector<8x128xf32>
    %21 = arith.addf %19, %20 : vector<8x128xf32>
    %22 = arith.negf %21 : vector<8x128xf32>
    %23 = math.exp %22 : vector<8x128xf32>
    %cst_19 = arith.constant 1.000000e+00 : f32
    %24 = vector.broadcast %cst_19 : f32 to vector<8x128xf32>
    %25 = arith.addf %24, %23 : vector<8x128xf32>
    %26 = arith.divf %24, %25 : vector<8x128xf32>
    %27 = vector.extract_strided_slice %13 {offsets = [0, 128], sizes = [8, 128], strides = [1, 1]} : vector<8x384xf32> to vector<8x128xf32>
    %28 = vector.extract_strided_slice %18 {offsets = [0, 128], sizes = [8, 128], strides = [1, 1]} : vector<8x384xf32> to vector<8x128xf32>
    %29 = arith.addf %27, %28 : vector<8x128xf32>
    %30 = arith.negf %29 : vector<8x128xf32>
    %31 = math.exp %30 : vector<8x128xf32>
    %cst_20 = arith.constant 1.000000e+00 : f32
    %32 = vector.broadcast %cst_20 : f32 to vector<8x128xf32>
    %33 = arith.addf %32, %31 : vector<8x128xf32>
    %34 = arith.divf %32, %33 : vector<8x128xf32>
    %35 = vector.extract_strided_slice %13 {offsets = [0, 256], sizes = [8, 128], strides = [1, 1]} : vector<8x384xf32> to vector<8x128xf32>
    %36 = vector.extract_strided_slice %18 {offsets = [0, 256], sizes = [8, 128], strides = [1, 1]} : vector<8x384xf32> to vector<8x128xf32>
    %37 = arith.mulf %26, %36 : vector<8x128xf32>
    %38 = arith.addf %35, %37 : vector<8x128xf32>
    %39 = math.tanh %38 : vector<8x128xf32>
    %cst_21 = arith.constant 1.000000e+00 : f32
    %40 = vector.broadcast %cst_21 : f32 to vector<8x128xf32>
    %41 = arith.subf %40, %34 : vector<8x128xf32>
    %42 = arith.mulf %41, %39 : vector<8x128xf32>
    %43 = arith.mulf %34, %6 : vector<8x128xf32>
    %44 = arith.addf %42, %43 : vector<8x128xf32>
    %45 = tpu.concatenate %44, %6 in 1 : vector<8x128xf32>, vector<8x128xf32> -> vector<8x256xf32>
    %c0_22 = arith.constant 0 : index
    %c0_23 = arith.constant 0 : index
    %46 = vector.load %arg8[%c0_22, %c0_23] : memref<256x512xf32, #tpu.memory_space<vmem>>, vector<256x512xf32>
    %cst_24 = arith.constant dense<0.000000e+00> : vector<8x512xf32>
    %47 = tpu.matmul %45, %46, %cst_24 {dimension_numbers = #tpu.dot_dimension_numbers<[1], [0], [0], [1], [0, 0, 1, 1], [], []>} : vector<8x256xf32>, vector<256x512xf32>, vector<8x512xf32> -> vector<8x512xf32>
    %c0_25 = arith.constant 0 : index
    %c0_26 = arith.constant 0 : index
    %48 = vector.load %arg9[%c0_25, %c0_26] : memref<1x512xf32, #tpu.memory_space<vmem>>, vector<1x512xf32>
    %49 = vector.broadcast %48 : vector<1x512xf32> to vector<8x512xf32>
    %50 = arith.addf %47, %49 : vector<8x512xf32>
    %51 = vector.extract_strided_slice %50 {offsets = [0, 0], sizes = [8, 128], strides = [1, 1]} : vector<8x512xf32> to vector<8x128xf32>
    %52 = arith.negf %51 : vector<8x128xf32>
    %53 = math.exp %52 : vector<8x128xf32>
    %cst_27 = arith.constant 1.000000e+00 : f32
    %54 = vector.broadcast %cst_27 : f32 to vector<8x128xf32>
    %55 = arith.addf %54, %53 : vector<8x128xf32>
    %56 = arith.divf %54, %55 : vector<8x128xf32>
    %57 = vector.extract_strided_slice %50 {offsets = [0, 128], sizes = [8, 128], strides = [1, 1]} : vector<8x512xf32> to vector<8x128xf32>
    %58 = arith.negf %57 : vector<8x128xf32>
    %59 = math.exp %58 : vector<8x128xf32>
    %cst_28 = arith.constant 1.000000e+00 : f32
    %60 = vector.broadcast %cst_28 : f32 to vector<8x128xf32>
    %61 = arith.addf %60, %59 : vector<8x128xf32>
    %62 = arith.divf %60, %61 : vector<8x128xf32>
    %63 = vector.extract_strided_slice %50 {offsets = [0, 256], sizes = [8, 128], strides = [1, 1]} : vector<8x512xf32> to vector<8x128xf32>
    %64 = vector.extract_strided_slice %50 {offsets = [0, 384], sizes = [8, 128], strides = [1, 1]} : vector<8x512xf32> to vector<8x128xf32>
    %65 = arith.mulf %56, %64 : vector<8x128xf32>
    %66 = arith.addf %63, %65 : vector<8x128xf32>
    %67 = math.tanh %66 : vector<8x128xf32>
    %cst_29 = arith.constant 1.000000e+00 : f32
    %68 = vector.broadcast %cst_29 : f32 to vector<8x128xf32>
    %69 = arith.subf %68, %62 : vector<8x128xf32>
    %70 = arith.mulf %69, %67 : vector<8x128xf32>
    %71 = arith.mulf %62, %6 : vector<8x128xf32>
    %72 = arith.addf %70, %71 : vector<8x128xf32>
    %c0_30 = arith.constant 0 : index
    %c0_31 = arith.constant 0 : index
    %73 = vector.load %arg14[%c0_30, %c0_31] : memref<64x128xf32, #tpu.memory_space<vmem>>, vector<8x128xf32>
    tpu.vector_store %arg14[%c0_30, %c0_31], %72 {strides = array<i32>} : memref<64x128xf32, #tpu.memory_space<vmem>>, vector<8x128xf32>,
    %c8 = arith.constant 8 : index
    %c0_32 = arith.constant 0 : index
    %74 = vector.load %arg13[%c8, %c0_32] : memref<64x384xf32, #tpu.memory_space<vmem>>, vector<8x384xf32>
    %75 = arith.addf %74, %7 : vector<8x384xf32>
    %c0_33 = arith.constant 0 : index
    %c0_34 = arith.constant 0 : index
    %76 = vector.load %arg6[%c0_33, %c0_34] : memref<128x384xf32, #tpu.memory_space<vmem>>, vector<128x384xf32>
    %cst_35 = arith.constant dense<0.000000e+00> : vector<8x384xf32>
    %77 = tpu.matmul %44, %76, %cst_35 {dimension_numbers = #tpu.dot_dimension_numbers<[1], [0], [0], [1], [0, 0, 1, 1], [], []>} : vector<8x128xf32>, vector<128x384xf32>, vector<8x384xf32> -> vector<8x384xf32>
    %c0_36 = arith.constant 0 : index
    %c0_37 = arith.constant 0 : index
    %78 = vector.load %arg7[%c0_36, %c0_37] : memref<1x384xf32, #tpu.memory_space<vmem>>, vector<1x384xf32>
    %79 = vector.broadcast %78 : vector<1x384xf32> to vector<8x384xf32>
    %80 = arith.addf %77, %79 : vector<8x384xf32>
    %81 = vector.extract_strided_slice %75 {offsets = [0, 0], sizes = [8, 128], strides = [1, 1]} : vector<8x384xf32> to vector<8x128xf32>
    %82 = vector.extract_strided_slice %80 {offsets = [0, 0], sizes = [8, 128], strides = [1, 1]} : vector<8x384xf32> to vector<8x128xf32>
    %83 = arith.addf %81, %82 : vector<8x128xf32>
    %84 = arith.negf %83 : vector<8x128xf32>
    %85 = math.exp %84 : vector<8x128xf32>
    %cst_38 = arith.constant 1.000000e+00 : f32
    %86 = vector.broadcast %cst_38 : f32 to vector<8x128xf32>
    %87 = arith.addf %86, %85 : vector<8x128xf32>
    %88 = arith.divf %86, %87 : vector<8x128xf32>
    %89 = vector.extract_strided_slice %75 {offsets = [0, 128], sizes = [8, 128], strides = [1, 1]} : vector<8x384xf32> to vector<8x128xf32>
    %90 = vector.extract_strided_slice %80 {offsets = [0, 128], sizes = [8, 128], strides = [1, 1]} : vector<8x384xf32> to vector<8x128xf32>
    %91 = arith.addf %89, %90 : vector<8x128xf32>
    %92 = arith.negf %91 : vector<8x128xf32>
    %93 = math.exp %92 : vector<8x128xf32>
    %cst_39 = arith.constant 1.000000e+00 : f32
    %94 = vector.broadcast %cst_39 : f32 to vector<8x128xf32>
    %95 = arith.addf %94, %93 : vector<8x128xf32>
    %96 = arith.divf %94, %95 : vector<8x128xf32>
    %97 = vector.extract_strided_slice %75 {offsets = [0, 256], sizes = [8, 128], strides = [1, 1]} : vector<8x384xf32> to vector<8x128xf32>
    %98 = vector.extract_strided_slice %80 {offsets = [0, 256], sizes = [8, 128], strides = [1, 1]} : vector<8x384xf32> to vector<8x128xf32>
    %99 = arith.mulf %88, %98 : vector<8x128xf32>
    %100 = arith.addf %97, %99 : vector<8x128xf32>
    %101 = math.tanh %100 : vector<8x128xf32>
    %cst_40 = arith.constant 1.000000e+00 : f32
    %102 = vector.broadcast %cst_40 : f32 to vector<8x128xf32>
    %103 = arith.subf %102, %96 : vector<8x128xf32>
    %104 = arith.mulf %103, %101 : vector<8x128xf32>
    %105 = arith.mulf %96, %44 : vector<8x128xf32>
    %106 = arith.addf %104, %105 : vector<8x128xf32>
    %107 = tpu.concatenate %106, %72 in 1 : vector<8x128xf32>, vector<8x128xf32> -> vector<8x256xf32>
    %c0_41 = arith.constant 0 : index
    %c0_42 = arith.constant 0 : index
    %108 = vector.load %arg8[%c0_41, %c0_42] : memref<256x512xf32, #tpu.memory_space<vmem>>, vector<256x512xf32>
    %cst_43 = arith.constant dense<0.000000e+00> : vector<8x512xf32>
    %109 = tpu.matmul %107, %108, %cst_43 {dimension_numbers = #tpu.dot_dimension_numbers<[1], [0], [0], [1], [0, 0, 1, 1], [], []>} : vector<8x256xf32>, vector<256x512xf32>, vector<8x512xf32> -> vector<8x512xf32>
    %c0_44 = arith.constant 0 : index
    %c0_45 = arith.constant 0 : index
    %110 = vector.load %arg9[%c0_44, %c0_45] : memref<1x512xf32, #tpu.memory_space<vmem>>, vector<1x512xf32>
    %111 = vector.broadcast %110 : vector<1x512xf32> to vector<8x512xf32>
    %112 = arith.addf %109, %111 : vector<8x512xf32>
    %113 = vector.extract_strided_slice %112 {offsets = [0, 0], sizes = [8, 128], strides = [1, 1]} : vector<8x512xf32> to vector<8x128xf32>
    %114 = arith.negf %113 : vector<8x128xf32>
    %115 = math.exp %114 : vector<8x128xf32>
    %cst_46 = arith.constant 1.000000e+00 : f32
    %116 = vector.broadcast %cst_46 : f32 to vector<8x128xf32>
    %117 = arith.addf %116, %115 : vector<8x128xf32>
    %118 = arith.divf %116, %117 : vector<8x128xf32>
    %119 = vector.extract_strided_slice %112 {offsets = [0, 128], sizes = [8, 128], strides = [1, 1]} : vector<8x512xf32> to vector<8x128xf32>
    %120 = arith.negf %119 : vector<8x128xf32>
    %121 = math.exp %120 : vector<8x128xf32>
    %cst_47 = arith.constant 1.000000e+00 : f32
    %122 = vector.broadcast %cst_47 : f32 to vector<8x128xf32>
    %123 = arith.addf %122, %121 : vector<8x128xf32>
    %124 = arith.divf %122, %123 : vector<8x128xf32>
    %125 = vector.extract_strided_slice %112 {offsets = [0, 256], sizes = [8, 128], strides = [1, 1]} : vector<8x512xf32> to vector<8x128xf32>
    %126 = vector.extract_strided_slice %112 {offsets = [0, 384], sizes = [8, 128], strides = [1, 1]} : vector<8x512xf32> to vector<8x128xf32>
    %127 = arith.mulf %118, %126 : vector<8x128xf32>
    %128 = arith.addf %125, %127 : vector<8x128xf32>
    %129 = math.tanh %128 : vector<8x128xf32>
    %cst_48 = arith.constant 1.000000e+00 : f32
    %130 = vector.broadcast %cst_48 : f32 to vector<8x128xf32>
    %131 = arith.subf %130, %124 : vector<8x128xf32>
    %132 = arith.mulf %131, %129 : vector<8x128xf32>
    %133 = arith.mulf %124, %72 : vector<8x128xf32>
    %134 = arith.addf %132, %133 : vector<8x128xf32>
    %c8_49 = arith.constant 8 : index
    %c0_50 = arith.constant 0 : index
    %135 = vector.load %arg14[%c8_49, %c0_50] : memref<64x128xf32, #tpu.memory_space<vmem>>, vector<8x128xf32>
    tpu.vector_store %arg14[%c8_49, %c0_50], %134 {strides = array<i32>} : memref<64x128xf32, #tpu.memory_space<vmem>>, vector<8x128xf32>,
    %c16 = arith.constant 16 : index
    %c0_51 = arith.constant 0 : index
    %136 = vector.load %arg13[%c16, %c0_51] : memref<64x384xf32, #tpu.memory_space<vmem>>, vector<8x384xf32>
    %137 = arith.addf %136, %7 : vector<8x384xf32>
    %c0_52 = arith.constant 0 : index
    %c0_53 = arith.constant 0 : index
    %138 = vector.load %arg6[%c0_52, %c0_53] : memref<128x384xf32, #tpu.memory_space<vmem>>, vector<128x384xf32>
    %cst_54 = arith.constant dense<0.000000e+00> : vector<8x384xf32>
    %139 = tpu.matmul %106, %138, %cst_54 {dimension_numbers = #tpu.dot_dimension_numbers<[1], [0], [0], [1], [0, 0, 1, 1], [], []>} : vector<8x128xf32>, vector<128x384xf32>, vector<8x384xf32> -> vector<8x384xf32>
    %c0_55 = arith.constant 0 : index
    %c0_56 = arith.constant 0 : index
    %140 = vector.load %arg7[%c0_55, %c0_56] : memref<1x384xf32, #tpu.memory_space<vmem>>, vector<1x384xf32>
    %141 = vector.broadcast %140 : vector<1x384xf32> to vector<8x384xf32>
    %142 = arith.addf %139, %141 : vector<8x384xf32>
    %143 = vector.extract_strided_slice %137 {offsets = [0, 0], sizes = [8, 128], strides = [1, 1]} : vector<8x384xf32> to vector<8x128xf32>
    %144 = vector.extract_strided_slice %142 {offsets = [0, 0], sizes = [8, 128], strides = [1, 1]} : vector<8x384xf32> to vector<8x128xf32>
    %145 = arith.addf %143, %144 : vector<8x128xf32>
    %146 = arith.negf %145 : vector<8x128xf32>
    %147 = math.exp %146 : vector<8x128xf32>
    %cst_57 = arith.constant 1.000000e+00 : f32
    %148 = vector.broadcast %cst_57 : f32 to vector<8x128xf32>
    %149 = arith.addf %148, %147 : vector<8x128xf32>
    %150 = arith.divf %148, %149 : vector<8x128xf32>
    %151 = vector.extract_strided_slice %137 {offsets = [0, 128], sizes = [8, 128], strides = [1, 1]} : vector<8x384xf32> to vector<8x128xf32>
    %152 = vector.extract_strided_slice %142 {offsets = [0, 128], sizes = [8, 128], strides = [1, 1]} : vector<8x384xf32> to vector<8x128xf32>
    %153 = arith.addf %151, %152 : vector<8x128xf32>
    %154 = arith.negf %153 : vector<8x128xf32>
    %155 = math.exp %154 : vector<8x128xf32>
    %cst_58 = arith.constant 1.000000e+00 : f32
    %156 = vector.broadcast %cst_58 : f32 to vector<8x128xf32>
    %157 = arith.addf %156, %155 : vector<8x128xf32>
    %158 = arith.divf %156, %157 : vector<8x128xf32>
    %159 = vector.extract_strided_slice %137 {offsets = [0, 256], sizes = [8, 128], strides = [1, 1]} : vector<8x384xf32> to vector<8x128xf32>
    %160 = vector.extract_strided_slice %142 {offsets = [0, 256], sizes = [8, 128], strides = [1, 1]} : vector<8x384xf32> to vector<8x128xf32>
    %161 = arith.mulf %150, %160 : vector<8x128xf32>
    %162 = arith.addf %159, %161 : vector<8x128xf32>
    %163 = math.tanh %162 : vector<8x128xf32>
    %cst_59 = arith.constant 1.000000e+00 : f32
    %164 = vector.broadcast %cst_59 : f32 to vector<8x128xf32>
    %165 = arith.subf %164, %158 : vector<8x128xf32>
    %166 = arith.mulf %165, %163 : vector<8x128xf32>
    %167 = arith.mulf %158, %106 : vector<8x128xf32>
    %168 = arith.addf %166, %167 : vector<8x128xf32>
    %169 = tpu.concatenate %168, %134 in 1 : vector<8x128xf32>, vector<8x128xf32> -> vector<8x256xf32>
    %c0_60 = arith.constant 0 : index
    %c0_61 = arith.constant 0 : index
    %170 = vector.load %arg8[%c0_60, %c0_61] : memref<256x512xf32, #tpu.memory_space<vmem>>, vector<256x512xf32>
    %cst_62 = arith.constant dense<0.000000e+00> : vector<8x512xf32>
    %171 = tpu.matmul %169, %170, %cst_62 {dimension_numbers = #tpu.dot_dimension_numbers<[1], [0], [0], [1], [0, 0, 1, 1], [], []>} : vector<8x256xf32>, vector<256x512xf32>, vector<8x512xf32> -> vector<8x512xf32>
    %c0_63 = arith.constant 0 : index
    %c0_64 = arith.constant 0 : index
    %172 = vector.load %arg9[%c0_63, %c0_64] : memref<1x512xf32, #tpu.memory_space<vmem>>, vector<1x512xf32>
    %173 = vector.broadcast %172 : vector<1x512xf32> to vector<8x512xf32>
    %174 = arith.addf %171, %173 : vector<8x512xf32>
    %175 = vector.extract_strided_slice %174 {offsets = [0, 0], sizes = [8, 128], strides = [1, 1]} : vector<8x512xf32> to vector<8x128xf32>
    %176 = arith.negf %175 : vector<8x128xf32>
    %177 = math.exp %176 : vector<8x128xf32>
    %cst_65 = arith.constant 1.000000e+00 : f32
    %178 = vector.broadcast %cst_65 : f32 to vector<8x128xf32>
    %179 = arith.addf %178, %177 : vector<8x128xf32>
    %180 = arith.divf %178, %179 : vector<8x128xf32>
    %181 = vector.extract_strided_slice %174 {offsets = [0, 128], sizes = [8, 128], strides = [1, 1]} : vector<8x512xf32> to vector<8x128xf32>
    %182 = arith.negf %181 : vector<8x128xf32>
    %183 = math.exp %182 : vector<8x128xf32>
    %cst_66 = arith.constant 1.000000e+00 : f32
    %184 = vector.broadcast %cst_66 : f32 to vector<8x128xf32>
    %185 = arith.addf %184, %183 : vector<8x128xf32>
    %186 = arith.divf %184, %185 : vector<8x128xf32>
    %187 = vector.extract_strided_slice %174 {offsets = [0, 256], sizes = [8, 128], strides = [1, 1]} : vector<8x512xf32> to vector<8x128xf32>
    %188 = vector.extract_strided_slice %174 {offsets = [0, 384], sizes = [8, 128], strides = [1, 1]} : vector<8x512xf32> to vector<8x128xf32>
    %189 = arith.mulf %180, %188 : vector<8x128xf32>
    %190 = arith.addf %187, %189 : vector<8x128xf32>
    %191 = math.tanh %190 : vector<8x128xf32>
    %cst_67 = arith.constant 1.000000e+00 : f32
    %192 = vector.broadcast %cst_67 : f32 to vector<8x128xf32>
    %193 = arith.subf %192, %186 : vector<8x128xf32>
    %194 = arith.mulf %193, %191 : vector<8x128xf32>
    %195 = arith.mulf %186, %134 : vector<8x128xf32>
    %196 = arith.addf %194, %195 : vector<8x128xf32>
    %c16_68 = arith.constant 16 : index
    %c0_69 = arith.constant 0 : index
    %197 = vector.load %arg14[%c16_68, %c0_69] : memref<64x128xf32, #tpu.memory_space<vmem>>, vector<8x128xf32>
    tpu.vector_store %arg14[%c16_68, %c0_69], %196 {strides = array<i32>} : memref<64x128xf32, #tpu.memory_space<vmem>>, vector<8x128xf32>,
    %c24 = arith.constant 24 : index
    %c0_70 = arith.constant 0 : index
    %198 = vector.load %arg13[%c24, %c0_70] : memref<64x384xf32, #tpu.memory_space<vmem>>, vector<8x384xf32>
    %199 = arith.addf %198, %7 : vector<8x384xf32>
    %c0_71 = arith.constant 0 : index
    %c0_72 = arith.constant 0 : index
    %200 = vector.load %arg6[%c0_71, %c0_72] : memref<128x384xf32, #tpu.memory_space<vmem>>, vector<128x384xf32>
    %cst_73 = arith.constant dense<0.000000e+00> : vector<8x384xf32>
    %201 = tpu.matmul %168, %200, %cst_73 {dimension_numbers = #tpu.dot_dimension_numbers<[1], [0], [0], [1], [0, 0, 1, 1], [], []>} : vector<8x128xf32>, vector<128x384xf32>, vector<8x384xf32> -> vector<8x384xf32>
    %c0_74 = arith.constant 0 : index
    %c0_75 = arith.constant 0 : index
    %202 = vector.load %arg7[%c0_74, %c0_75] : memref<1x384xf32, #tpu.memory_space<vmem>>, vector<1x384xf32>
    %203 = vector.broadcast %202 : vector<1x384xf32> to vector<8x384xf32>
    %204 = arith.addf %201, %203 : vector<8x384xf32>
    %205 = vector.extract_strided_slice %199 {offsets = [0, 0], sizes = [8, 128], strides = [1, 1]} : vector<8x384xf32> to vector<8x128xf32>
    %206 = vector.extract_strided_slice %204 {offsets = [0, 0], sizes = [8, 128], strides = [1, 1]} : vector<8x384xf32> to vector<8x128xf32>
    %207 = arith.addf %205, %206 : vector<8x128xf32>
    %208 = arith.negf %207 : vector<8x128xf32>
    %209 = math.exp %208 : vector<8x128xf32>
    %cst_76 = arith.constant 1.000000e+00 : f32
    %210 = vector.broadcast %cst_76 : f32 to vector<8x128xf32>
    %211 = arith.addf %210, %209 : vector<8x128xf32>
    %212 = arith.divf %210, %211 : vector<8x128xf32>
    %213 = vector.extract_strided_slice %199 {offsets = [0, 128], sizes = [8, 128], strides = [1, 1]} : vector<8x384xf32> to vector<8x128xf32>
    %214 = vector.extract_strided_slice %204 {offsets = [0, 128], sizes = [8, 128], strides = [1, 1]} : vector<8x384xf32> to vector<8x128xf32>
    %215 = arith.addf %213, %214 : vector<8x128xf32>
    %216 = arith.negf %215 : vector<8x128xf32>
    %217 = math.exp %216 : vector<8x128xf32>
    %cst_77 = arith.constant 1.000000e+00 : f32
    %218 = vector.broadcast %cst_77 : f32 to vector<8x128xf32>
    %219 = arith.addf %218, %217 : vector<8x128xf32>
    %220 = arith.divf %218, %219 : vector<8x128xf32>
    %221 = vector.extract_strided_slice %199 {offsets = [0, 256], sizes = [8, 128], strides = [1, 1]} : vector<8x384xf32> to vector<8x128xf32>
    %222 = vector.extract_strided_slice %204 {offsets = [0, 256], sizes = [8, 128], strides = [1, 1]} : vector<8x384xf32> to vector<8x128xf32>
    %223 = arith.mulf %212, %222 : vector<8x128xf32>
    %224 = arith.addf %221, %223 : vector<8x128xf32>
    %225 = math.tanh %224 : vector<8x128xf32>
    %cst_78 = arith.constant 1.000000e+00 : f32
    %226 = vector.broadcast %cst_78 : f32 to vector<8x128xf32>
    %227 = arith.subf %226, %220 : vector<8x128xf32>
    %228 = arith.mulf %227, %225 : vector<8x128xf32>
    %229 = arith.mulf %220, %168 : vector<8x128xf32>
    %230 = arith.addf %228, %229 : vector<8x128xf32>
    %231 = tpu.concatenate %230, %196 in 1 : vector<8x128xf32>, vector<8x128xf32> -> vector<8x256xf32>
    %c0_79 = arith.constant 0 : index
    %c0_80 = arith.constant 0 : index
    %232 = vector.load %arg8[%c0_79, %c0_80] : memref<256x512xf32, #tpu.memory_space<vmem>>, vector<256x512xf32>
    %cst_81 = arith.constant dense<0.000000e+00> : vector<8x512xf32>
    %233 = tpu.matmul %231, %232, %cst_81 {dimension_numbers = #tpu.dot_dimension_numbers<[1], [0], [0], [1], [0, 0, 1, 1], [], []>} : vector<8x256xf32>, vector<256x512xf32>, vector<8x512xf32> -> vector<8x512xf32>
    %c0_82 = arith.constant 0 : index
    %c0_83 = arith.constant 0 : index
    %234 = vector.load %arg9[%c0_82, %c0_83] : memref<1x512xf32, #tpu.memory_space<vmem>>, vector<1x512xf32>
    %235 = vector.broadcast %234 : vector<1x512xf32> to vector<8x512xf32>
    %236 = arith.addf %233, %235 : vector<8x512xf32>
    %237 = vector.extract_strided_slice %236 {offsets = [0, 0], sizes = [8, 128], strides = [1, 1]} : vector<8x512xf32> to vector<8x128xf32>
    %238 = arith.negf %237 : vector<8x128xf32>
    %239 = math.exp %238 : vector<8x128xf32>
    %cst_84 = arith.constant 1.000000e+00 : f32
    %240 = vector.broadcast %cst_84 : f32 to vector<8x128xf32>
    %241 = arith.addf %240, %239 : vector<8x128xf32>
    %242 = arith.divf %240, %241 : vector<8x128xf32>
    %243 = vector.extract_strided_slice %236 {offsets = [0, 128], sizes = [8, 128], strides = [1, 1]} : vector<8x512xf32> to vector<8x128xf32>
    %244 = arith.negf %243 : vector<8x128xf32>
    %245 = math.exp %244 : vector<8x128xf32>
    %cst_85 = arith.constant 1.000000e+00 : f32
    %246 = vector.broadcast %cst_85 : f32 to vector<8x128xf32>
    %247 = arith.addf %246, %245 : vector<8x128xf32>
    %248 = arith.divf %246, %247 : vector<8x128xf32>
    %249 = vector.extract_strided_slice %236 {offsets = [0, 256], sizes = [8, 128], strides = [1, 1]} : vector<8x512xf32> to vector<8x128xf32>
    %250 = vector.extract_strided_slice %236 {offsets = [0, 384], sizes = [8, 128], strides = [1, 1]} : vector<8x512xf32> to vector<8x128xf32>
    %251 = arith.mulf %242, %250 : vector<8x128xf32>
    %252 = arith.addf %249, %251 : vector<8x128xf32>
    %253 = math.tanh %252 : vector<8x128xf32>
    %cst_86 = arith.constant 1.000000e+00 : f32
    %254 = vector.broadcast %cst_86 : f32 to vector<8x128xf32>
    %255 = arith.subf %254, %248 : vector<8x128xf32>
    %256 = arith.mulf %255, %253 : vector<8x128xf32>
    %257 = arith.mulf %248, %196 : vector<8x128xf32>
    %258 = arith.addf %256, %257 : vector<8x128xf32>
    %c24_87 = arith.constant 24 : index
    %c0_88 = arith.constant 0 : index
    %259 = vector.load %arg14[%c24_87, %c0_88] : memref<64x128xf32, #tpu.memory_space<vmem>>, vector<8x128xf32>
    tpu.vector_store %arg14[%c24_87, %c0_88], %258 {strides = array<i32>} : memref<64x128xf32, #tpu.memory_space<vmem>>, vector<8x128xf32>,
    %c32 = arith.constant 32 : index
    %c0_89 = arith.constant 0 : index
    %260 = vector.load %arg13[%c32, %c0_89] : memref<64x384xf32, #tpu.memory_space<vmem>>, vector<8x384xf32>
    %261 = arith.addf %260, %7 : vector<8x384xf32>
    %c0_90 = arith.constant 0 : index
    %c0_91 = arith.constant 0 : index
    %262 = vector.load %arg6[%c0_90, %c0_91] : memref<128x384xf32, #tpu.memory_space<vmem>>, vector<128x384xf32>
    %cst_92 = arith.constant dense<0.000000e+00> : vector<8x384xf32>
    %263 = tpu.matmul %230, %262, %cst_92 {dimension_numbers = #tpu.dot_dimension_numbers<[1], [0], [0], [1], [0, 0, 1, 1], [], []>} : vector<8x128xf32>, vector<128x384xf32>, vector<8x384xf32> -> vector<8x384xf32>
    %c0_93 = arith.constant 0 : index
    %c0_94 = arith.constant 0 : index
    %264 = vector.load %arg7[%c0_93, %c0_94] : memref<1x384xf32, #tpu.memory_space<vmem>>, vector<1x384xf32>
    %265 = vector.broadcast %264 : vector<1x384xf32> to vector<8x384xf32>
    %266 = arith.addf %263, %265 : vector<8x384xf32>
    %267 = vector.extract_strided_slice %261 {offsets = [0, 0], sizes = [8, 128], strides = [1, 1]} : vector<8x384xf32> to vector<8x128xf32>
    %268 = vector.extract_strided_slice %266 {offsets = [0, 0], sizes = [8, 128], strides = [1, 1]} : vector<8x384xf32> to vector<8x128xf32>
    %269 = arith.addf %267, %268 : vector<8x128xf32>
    %270 = arith.negf %269 : vector<8x128xf32>
    %271 = math.exp %270 : vector<8x128xf32>
    %cst_95 = arith.constant 1.000000e+00 : f32
    %272 = vector.broadcast %cst_95 : f32 to vector<8x128xf32>
    %273 = arith.addf %272, %271 : vector<8x128xf32>
    %274 = arith.divf %272, %273 : vector<8x128xf32>
    %275 = vector.extract_strided_slice %261 {offsets = [0, 128], sizes = [8, 128], strides = [1, 1]} : vector<8x384xf32> to vector<8x128xf32>
    %276 = vector.extract_strided_slice %266 {offsets = [0, 128], sizes = [8, 128], strides = [1, 1]} : vector<8x384xf32> to vector<8x128xf32>
    %277 = arith.addf %275, %276 : vector<8x128xf32>
    %278 = arith.negf %277 : vector<8x128xf32>
    %279 = math.exp %278 : vector<8x128xf32>
    %cst_96 = arith.constant 1.000000e+00 : f32
    %280 = vector.broadcast %cst_96 : f32 to vector<8x128xf32>
    %281 = arith.addf %280, %279 : vector<8x128xf32>
    %282 = arith.divf %280, %281 : vector<8x128xf32>
    %283 = vector.extract_strided_slice %261 {offsets = [0, 256], sizes = [8, 128], strides = [1, 1]} : vector<8x384xf32> to vector<8x128xf32>
    %284 = vector.extract_strided_slice %266 {offsets = [0, 256], sizes = [8, 128], strides = [1, 1]} : vector<8x384xf32> to vector<8x128xf32>
    %285 = arith.mulf %274, %284 : vector<8x128xf32>
    %286 = arith.addf %283, %285 : vector<8x128xf32>
    %287 = math.tanh %286 : vector<8x128xf32>
    %cst_97 = arith.constant 1.000000e+00 : f32
    %288 = vector.broadcast %cst_97 : f32 to vector<8x128xf32>
    %289 = arith.subf %288, %282 : vector<8x128xf32>
    %290 = arith.mulf %289, %287 : vector<8x128xf32>
    %291 = arith.mulf %282, %230 : vector<8x128xf32>
    %292 = arith.addf %290, %291 : vector<8x128xf32>
    %293 = tpu.concatenate %292, %258 in 1 : vector<8x128xf32>, vector<8x128xf32> -> vector<8x256xf32>
    %c0_98 = arith.constant 0 : index
    %c0_99 = arith.constant 0 : index
    %294 = vector.load %arg8[%c0_98, %c0_99] : memref<256x512xf32, #tpu.memory_space<vmem>>, vector<256x512xf32>
    %cst_100 = arith.constant dense<0.000000e+00> : vector<8x512xf32>
    %295 = tpu.matmul %293, %294, %cst_100 {dimension_numbers = #tpu.dot_dimension_numbers<[1], [0], [0], [1], [0, 0, 1, 1], [], []>} : vector<8x256xf32>, vector<256x512xf32>, vector<8x512xf32> -> vector<8x512xf32>
    %c0_101 = arith.constant 0 : index
    %c0_102 = arith.constant 0 : index
    %296 = vector.load %arg9[%c0_101, %c0_102] : memref<1x512xf32, #tpu.memory_space<vmem>>, vector<1x512xf32>
    %297 = vector.broadcast %296 : vector<1x512xf32> to vector<8x512xf32>
    %298 = arith.addf %295, %297 : vector<8x512xf32>
    %299 = vector.extract_strided_slice %298 {offsets = [0, 0], sizes = [8, 128], strides = [1, 1]} : vector<8x512xf32> to vector<8x128xf32>
    %300 = arith.negf %299 : vector<8x128xf32>
    %301 = math.exp %300 : vector<8x128xf32>
    %cst_103 = arith.constant 1.000000e+00 : f32
    %302 = vector.broadcast %cst_103 : f32 to vector<8x128xf32>
    %303 = arith.addf %302, %301 : vector<8x128xf32>
    %304 = arith.divf %302, %303 : vector<8x128xf32>
    %305 = vector.extract_strided_slice %298 {offsets = [0, 128], sizes = [8, 128], strides = [1, 1]} : vector<8x512xf32> to vector<8x128xf32>
    %306 = arith.negf %305 : vector<8x128xf32>
    %307 = math.exp %306 : vector<8x128xf32>
    %cst_104 = arith.constant 1.000000e+00 : f32
    %308 = vector.broadcast %cst_104 : f32 to vector<8x128xf32>
    %309 = arith.addf %308, %307 : vector<8x128xf32>
    %310 = arith.divf %308, %309 : vector<8x128xf32>
    %311 = vector.extract_strided_slice %298 {offsets = [0, 256], sizes = [8, 128], strides = [1, 1]} : vector<8x512xf32> to vector<8x128xf32>
    %312 = vector.extract_strided_slice %298 {offsets = [0, 384], sizes = [8, 128], strides = [1, 1]} : vector<8x512xf32> to vector<8x128xf32>
    %313 = arith.mulf %304, %312 : vector<8x128xf32>
    %314 = arith.addf %311, %313 : vector<8x128xf32>
    %315 = math.tanh %314 : vector<8x128xf32>
    %cst_105 = arith.constant 1.000000e+00 : f32
    %316 = vector.broadcast %cst_105 : f32 to vector<8x128xf32>
    %317 = arith.subf %316, %310 : vector<8x128xf32>
    %318 = arith.mulf %317, %315 : vector<8x128xf32>
    %319 = arith.mulf %310, %258 : vector<8x128xf32>
    %320 = arith.addf %318, %319 : vector<8x128xf32>
    %c32_106 = arith.constant 32 : index
    %c0_107 = arith.constant 0 : index
    %321 = vector.load %arg14[%c32_106, %c0_107] : memref<64x128xf32, #tpu.memory_space<vmem>>, vector<8x128xf32>
    tpu.vector_store %arg14[%c32_106, %c0_107], %320 {strides = array<i32>} : memref<64x128xf32, #tpu.memory_space<vmem>>, vector<8x128xf32>,
    %c40 = arith.constant 40 : index
    %c0_108 = arith.constant 0 : index
    %322 = vector.load %arg13[%c40, %c0_108] : memref<64x384xf32, #tpu.memory_space<vmem>>, vector<8x384xf32>
    %323 = arith.addf %322, %7 : vector<8x384xf32>
    %c0_109 = arith.constant 0 : index
    %c0_110 = arith.constant 0 : index
    %324 = vector.load %arg6[%c0_109, %c0_110] : memref<128x384xf32, #tpu.memory_space<vmem>>, vector<128x384xf32>
    %cst_111 = arith.constant dense<0.000000e+00> : vector<8x384xf32>
    %325 = tpu.matmul %292, %324, %cst_111 {dimension_numbers = #tpu.dot_dimension_numbers<[1], [0], [0], [1], [0, 0, 1, 1], [], []>} : vector<8x128xf32>, vector<128x384xf32>, vector<8x384xf32> -> vector<8x384xf32>
    %c0_112 = arith.constant 0 : index
    %c0_113 = arith.constant 0 : index
    %326 = vector.load %arg7[%c0_112, %c0_113] : memref<1x384xf32, #tpu.memory_space<vmem>>, vector<1x384xf32>
    %327 = vector.broadcast %326 : vector<1x384xf32> to vector<8x384xf32>
    %328 = arith.addf %325, %327 : vector<8x384xf32>
    %329 = vector.extract_strided_slice %323 {offsets = [0, 0], sizes = [8, 128], strides = [1, 1]} : vector<8x384xf32> to vector<8x128xf32>
    %330 = vector.extract_strided_slice %328 {offsets = [0, 0], sizes = [8, 128], strides = [1, 1]} : vector<8x384xf32> to vector<8x128xf32>
    %331 = arith.addf %329, %330 : vector<8x128xf32>
    %332 = arith.negf %331 : vector<8x128xf32>
    %333 = math.exp %332 : vector<8x128xf32>
    %cst_114 = arith.constant 1.000000e+00 : f32
    %334 = vector.broadcast %cst_114 : f32 to vector<8x128xf32>
    %335 = arith.addf %334, %333 : vector<8x128xf32>
    %336 = arith.divf %334, %335 : vector<8x128xf32>
    %337 = vector.extract_strided_slice %323 {offsets = [0, 128], sizes = [8, 128], strides = [1, 1]} : vector<8x384xf32> to vector<8x128xf32>
    %338 = vector.extract_strided_slice %328 {offsets = [0, 128], sizes = [8, 128], strides = [1, 1]} : vector<8x384xf32> to vector<8x128xf32>
    %339 = arith.addf %337, %338 : vector<8x128xf32>
    %340 = arith.negf %339 : vector<8x128xf32>
    %341 = math.exp %340 : vector<8x128xf32>
    %cst_115 = arith.constant 1.000000e+00 : f32
    %342 = vector.broadcast %cst_115 : f32 to vector<8x128xf32>
    %343 = arith.addf %342, %341 : vector<8x128xf32>
    %344 = arith.divf %342, %343 : vector<8x128xf32>
    %345 = vector.extract_strided_slice %323 {offsets = [0, 256], sizes = [8, 128], strides = [1, 1]} : vector<8x384xf32> to vector<8x128xf32>
    %346 = vector.extract_strided_slice %328 {offsets = [0, 256], sizes = [8, 128], strides = [1, 1]} : vector<8x384xf32> to vector<8x128xf32>
    %347 = arith.mulf %336, %346 : vector<8x128xf32>
    %348 = arith.addf %345, %347 : vector<8x128xf32>
    %349 = math.tanh %348 : vector<8x128xf32>
    %cst_116 = arith.constant 1.000000e+00 : f32
    %350 = vector.broadcast %cst_116 : f32 to vector<8x128xf32>
    %351 = arith.subf %350, %344 : vector<8x128xf32>
    %352 = arith.mulf %351, %349 : vector<8x128xf32>
    %353 = arith.mulf %344, %292 : vector<8x128xf32>
    %354 = arith.addf %352, %353 : vector<8x128xf32>
    %355 = tpu.concatenate %354, %320 in 1 : vector<8x128xf32>, vector<8x128xf32> -> vector<8x256xf32>
    %c0_117 = arith.constant 0 : index
    %c0_118 = arith.constant 0 : index
    %356 = vector.load %arg8[%c0_117, %c0_118] : memref<256x512xf32, #tpu.memory_space<vmem>>, vector<256x512xf32>
    %cst_119 = arith.constant dense<0.000000e+00> : vector<8x512xf32>
    %357 = tpu.matmul %355, %356, %cst_119 {dimension_numbers = #tpu.dot_dimension_numbers<[1], [0], [0], [1], [0, 0, 1, 1], [], []>} : vector<8x256xf32>, vector<256x512xf32>, vector<8x512xf32> -> vector<8x512xf32>
    %c0_120 = arith.constant 0 : index
    %c0_121 = arith.constant 0 : index
    %358 = vector.load %arg9[%c0_120, %c0_121] : memref<1x512xf32, #tpu.memory_space<vmem>>, vector<1x512xf32>
    %359 = vector.broadcast %358 : vector<1x512xf32> to vector<8x512xf32>
    %360 = arith.addf %357, %359 : vector<8x512xf32>
    %361 = vector.extract_strided_slice %360 {offsets = [0, 0], sizes = [8, 128], strides = [1, 1]} : vector<8x512xf32> to vector<8x128xf32>
    %362 = arith.negf %361 : vector<8x128xf32>
    %363 = math.exp %362 : vector<8x128xf32>
    %cst_122 = arith.constant 1.000000e+00 : f32
    %364 = vector.broadcast %cst_122 : f32 to vector<8x128xf32>
    %365 = arith.addf %364, %363 : vector<8x128xf32>
    %366 = arith.divf %364, %365 : vector<8x128xf32>
    %367 = vector.extract_strided_slice %360 {offsets = [0, 128], sizes = [8, 128], strides = [1, 1]} : vector<8x512xf32> to vector<8x128xf32>
    %368 = arith.negf %367 : vector<8x128xf32>
    %369 = math.exp %368 : vector<8x128xf32>
    %cst_123 = arith.constant 1.000000e+00 : f32
    %370 = vector.broadcast %cst_123 : f32 to vector<8x128xf32>
    %371 = arith.addf %370, %369 : vector<8x128xf32>
    %372 = arith.divf %370, %371 : vector<8x128xf32>
    %373 = vector.extract_strided_slice %360 {offsets = [0, 256], sizes = [8, 128], strides = [1, 1]} : vector<8x512xf32> to vector<8x128xf32>
    %374 = vector.extract_strided_slice %360 {offsets = [0, 384], sizes = [8, 128], strides = [1, 1]} : vector<8x512xf32> to vector<8x128xf32>
    %375 = arith.mulf %366, %374 : vector<8x128xf32>
    %376 = arith.addf %373, %375 : vector<8x128xf32>
    %377 = math.tanh %376 : vector<8x128xf32>
    %cst_124 = arith.constant 1.000000e+00 : f32
    %378 = vector.broadcast %cst_124 : f32 to vector<8x128xf32>
    %379 = arith.subf %378, %372 : vector<8x128xf32>
    %380 = arith.mulf %379, %377 : vector<8x128xf32>
    %381 = arith.mulf %372, %320 : vector<8x128xf32>
    %382 = arith.addf %380, %381 : vector<8x128xf32>
    %c40_125 = arith.constant 40 : index
    %c0_126 = arith.constant 0 : index
    %383 = vector.load %arg14[%c40_125, %c0_126] : memref<64x128xf32, #tpu.memory_space<vmem>>, vector<8x128xf32>
    tpu.vector_store %arg14[%c40_125, %c0_126], %382 {strides = array<i32>} : memref<64x128xf32, #tpu.memory_space<vmem>>, vector<8x128xf32>,
    %c48 = arith.constant 48 : index
    %c0_127 = arith.constant 0 : index
    %384 = vector.load %arg13[%c48, %c0_127] : memref<64x384xf32, #tpu.memory_space<vmem>>, vector<8x384xf32>
    %385 = arith.addf %384, %7 : vector<8x384xf32>
    %c0_128 = arith.constant 0 : index
    %c0_129 = arith.constant 0 : index
    %386 = vector.load %arg6[%c0_128, %c0_129] : memref<128x384xf32, #tpu.memory_space<vmem>>, vector<128x384xf32>
    %cst_130 = arith.constant dense<0.000000e+00> : vector<8x384xf32>
    %387 = tpu.matmul %354, %386, %cst_130 {dimension_numbers = #tpu.dot_dimension_numbers<[1], [0], [0], [1], [0, 0, 1, 1], [], []>} : vector<8x128xf32>, vector<128x384xf32>, vector<8x384xf32> -> vector<8x384xf32>
    %c0_131 = arith.constant 0 : index
    %c0_132 = arith.constant 0 : index
    %388 = vector.load %arg7[%c0_131, %c0_132] : memref<1x384xf32, #tpu.memory_space<vmem>>, vector<1x384xf32>
    %389 = vector.broadcast %388 : vector<1x384xf32> to vector<8x384xf32>
    %390 = arith.addf %387, %389 : vector<8x384xf32>
    %391 = vector.extract_strided_slice %385 {offsets = [0, 0], sizes = [8, 128], strides = [1, 1]} : vector<8x384xf32> to vector<8x128xf32>
    %392 = vector.extract_strided_slice %390 {offsets = [0, 0], sizes = [8, 128], strides = [1, 1]} : vector<8x384xf32> to vector<8x128xf32>
    %393 = arith.addf %391, %392 : vector<8x128xf32>
    %394 = arith.negf %393 : vector<8x128xf32>
    %395 = math.exp %394 : vector<8x128xf32>
    %cst_133 = arith.constant 1.000000e+00 : f32
    %396 = vector.broadcast %cst_133 : f32 to vector<8x128xf32>
    %397 = arith.addf %396, %395 : vector<8x128xf32>
    %398 = arith.divf %396, %397 : vector<8x128xf32>
    %399 = vector.extract_strided_slice %385 {offsets = [0, 128], sizes = [8, 128], strides = [1, 1]} : vector<8x384xf32> to vector<8x128xf32>
    %400 = vector.extract_strided_slice %390 {offsets = [0, 128], sizes = [8, 128], strides = [1, 1]} : vector<8x384xf32> to vector<8x128xf32>
    %401 = arith.addf %399, %400 : vector<8x128xf32>
    %402 = arith.negf %401 : vector<8x128xf32>
    %403 = math.exp %402 : vector<8x128xf32>
    %cst_134 = arith.constant 1.000000e+00 : f32
    %404 = vector.broadcast %cst_134 : f32 to vector<8x128xf32>
    %405 = arith.addf %404, %403 : vector<8x128xf32>
    %406 = arith.divf %404, %405 : vector<8x128xf32>
    %407 = vector.extract_strided_slice %385 {offsets = [0, 256], sizes = [8, 128], strides = [1, 1]} : vector<8x384xf32> to vector<8x128xf32>
    %408 = vector.extract_strided_slice %390 {offsets = [0, 256], sizes = [8, 128], strides = [1, 1]} : vector<8x384xf32> to vector<8x128xf32>
    %409 = arith.mulf %398, %408 : vector<8x128xf32>
    %410 = arith.addf %407, %409 : vector<8x128xf32>
    %411 = math.tanh %410 : vector<8x128xf32>
    %cst_135 = arith.constant 1.000000e+00 : f32
    %412 = vector.broadcast %cst_135 : f32 to vector<8x128xf32>
    %413 = arith.subf %412, %406 : vector<8x128xf32>
    %414 = arith.mulf %413, %411 : vector<8x128xf32>
    %415 = arith.mulf %406, %354 : vector<8x128xf32>
    %416 = arith.addf %414, %415 : vector<8x128xf32>
    %417 = tpu.concatenate %416, %382 in 1 : vector<8x128xf32>, vector<8x128xf32> -> vector<8x256xf32>
    %c0_136 = arith.constant 0 : index
    %c0_137 = arith.constant 0 : index
    %418 = vector.load %arg8[%c0_136, %c0_137] : memref<256x512xf32, #tpu.memory_space<vmem>>, vector<256x512xf32>
    %cst_138 = arith.constant dense<0.000000e+00> : vector<8x512xf32>
    %419 = tpu.matmul %417, %418, %cst_138 {dimension_numbers = #tpu.dot_dimension_numbers<[1], [0], [0], [1], [0, 0, 1, 1], [], []>} : vector<8x256xf32>, vector<256x512xf32>, vector<8x512xf32> -> vector<8x512xf32>
    %c0_139 = arith.constant 0 : index
    %c0_140 = arith.constant 0 : index
    %420 = vector.load %arg9[%c0_139, %c0_140] : memref<1x512xf32, #tpu.memory_space<vmem>>, vector<1x512xf32>
    %421 = vector.broadcast %420 : vector<1x512xf32> to vector<8x512xf32>
    %422 = arith.addf %419, %421 : vector<8x512xf32>
    %423 = vector.extract_strided_slice %422 {offsets = [0, 0], sizes = [8, 128], strides = [1, 1]} : vector<8x512xf32> to vector<8x128xf32>
    %424 = arith.negf %423 : vector<8x128xf32>
    %425 = math.exp %424 : vector<8x128xf32>
    %cst_141 = arith.constant 1.000000e+00 : f32
    %426 = vector.broadcast %cst_141 : f32 to vector<8x128xf32>
    %427 = arith.addf %426, %425 : vector<8x128xf32>
    %428 = arith.divf %426, %427 : vector<8x128xf32>
    %429 = vector.extract_strided_slice %422 {offsets = [0, 128], sizes = [8, 128], strides = [1, 1]} : vector<8x512xf32> to vector<8x128xf32>
    %430 = arith.negf %429 : vector<8x128xf32>
    %431 = math.exp %430 : vector<8x128xf32>
    %cst_142 = arith.constant 1.000000e+00 : f32
    %432 = vector.broadcast %cst_142 : f32 to vector<8x128xf32>
    %433 = arith.addf %432, %431 : vector<8x128xf32>
    %434 = arith.divf %432, %433 : vector<8x128xf32>
    %435 = vector.extract_strided_slice %422 {offsets = [0, 256], sizes = [8, 128], strides = [1, 1]} : vector<8x512xf32> to vector<8x128xf32>
    %436 = vector.extract_strided_slice %422 {offsets = [0, 384], sizes = [8, 128], strides = [1, 1]} : vector<8x512xf32> to vector<8x128xf32>
    %437 = arith.mulf %428, %436 : vector<8x128xf32>
    %438 = arith.addf %435, %437 : vector<8x128xf32>
    %439 = math.tanh %438 : vector<8x128xf32>
    %cst_143 = arith.constant 1.000000e+00 : f32
    %440 = vector.broadcast %cst_143 : f32 to vector<8x128xf32>
    %441 = arith.subf %440, %434 : vector<8x128xf32>
    %442 = arith.mulf %441, %439 : vector<8x128xf32>
    %443 = arith.mulf %434, %382 : vector<8x128xf32>
    %444 = arith.addf %442, %443 : vector<8x128xf32>
    %c48_144 = arith.constant 48 : index
    %c0_145 = arith.constant 0 : index
    %445 = vector.load %arg14[%c48_144, %c0_145] : memref<64x128xf32, #tpu.memory_space<vmem>>, vector<8x128xf32>
    tpu.vector_store %arg14[%c48_144, %c0_145], %444 {strides = array<i32>} : memref<64x128xf32, #tpu.memory_space<vmem>>, vector<8x128xf32>,
    %c56 = arith.constant 56 : index
    %c0_146 = arith.constant 0 : index
    %446 = vector.load %arg13[%c56, %c0_146] : memref<64x384xf32, #tpu.memory_space<vmem>>, vector<8x384xf32>
    %447 = arith.addf %446, %7 : vector<8x384xf32>
    %c0_147 = arith.constant 0 : index
    %c0_148 = arith.constant 0 : index
    %448 = vector.load %arg6[%c0_147, %c0_148] : memref<128x384xf32, #tpu.memory_space<vmem>>, vector<128x384xf32>
    %cst_149 = arith.constant dense<0.000000e+00> : vector<8x384xf32>
    %449 = tpu.matmul %416, %448, %cst_149 {dimension_numbers = #tpu.dot_dimension_numbers<[1], [0], [0], [1], [0, 0, 1, 1], [], []>} : vector<8x128xf32>, vector<128x384xf32>, vector<8x384xf32> -> vector<8x384xf32>
    %c0_150 = arith.constant 0 : index
    %c0_151 = arith.constant 0 : index
    %450 = vector.load %arg7[%c0_150, %c0_151] : memref<1x384xf32, #tpu.memory_space<vmem>>, vector<1x384xf32>
    %451 = vector.broadcast %450 : vector<1x384xf32> to vector<8x384xf32>
    %452 = arith.addf %449, %451 : vector<8x384xf32>
    %453 = vector.extract_strided_slice %447 {offsets = [0, 0], sizes = [8, 128], strides = [1, 1]} : vector<8x384xf32> to vector<8x128xf32>
    %454 = vector.extract_strided_slice %452 {offsets = [0, 0], sizes = [8, 128], strides = [1, 1]} : vector<8x384xf32> to vector<8x128xf32>
    %455 = arith.addf %453, %454 : vector<8x128xf32>
    %456 = arith.negf %455 : vector<8x128xf32>
    %457 = math.exp %456 : vector<8x128xf32>
    %cst_152 = arith.constant 1.000000e+00 : f32
    %458 = vector.broadcast %cst_152 : f32 to vector<8x128xf32>
    %459 = arith.addf %458, %457 : vector<8x128xf32>
    %460 = arith.divf %458, %459 : vector<8x128xf32>
    %461 = vector.extract_strided_slice %447 {offsets = [0, 128], sizes = [8, 128], strides = [1, 1]} : vector<8x384xf32> to vector<8x128xf32>
    %462 = vector.extract_strided_slice %452 {offsets = [0, 128], sizes = [8, 128], strides = [1, 1]} : vector<8x384xf32> to vector<8x128xf32>
    %463 = arith.addf %461, %462 : vector<8x128xf32>
    %464 = arith.negf %463 : vector<8x128xf32>
    %465 = math.exp %464 : vector<8x128xf32>
    %cst_153 = arith.constant 1.000000e+00 : f32
    %466 = vector.broadcast %cst_153 : f32 to vector<8x128xf32>
    %467 = arith.addf %466, %465 : vector<8x128xf32>
    %468 = arith.divf %466, %467 : vector<8x128xf32>
    %469 = vector.extract_strided_slice %447 {offsets = [0, 256], sizes = [8, 128], strides = [1, 1]} : vector<8x384xf32> to vector<8x128xf32>
    %470 = vector.extract_strided_slice %452 {offsets = [0, 256], sizes = [8, 128], strides = [1, 1]} : vector<8x384xf32> to vector<8x128xf32>
    %471 = arith.mulf %460, %470 : vector<8x128xf32>
    %472 = arith.addf %469, %471 : vector<8x128xf32>
    %473 = math.tanh %472 : vector<8x128xf32>
    %cst_154 = arith.constant 1.000000e+00 : f32
    %474 = vector.broadcast %cst_154 : f32 to vector<8x128xf32>
    %475 = arith.subf %474, %468 : vector<8x128xf32>
    %476 = arith.mulf %475, %473 : vector<8x128xf32>
    %477 = arith.mulf %468, %416 : vector<8x128xf32>
    %478 = arith.addf %476, %477 : vector<8x128xf32>
    %479 = tpu.concatenate %478, %444 in 1 : vector<8x128xf32>, vector<8x128xf32> -> vector<8x256xf32>
    %c0_155 = arith.constant 0 : index
    %c0_156 = arith.constant 0 : index
    %480 = vector.load %arg8[%c0_155, %c0_156] : memref<256x512xf32, #tpu.memory_space<vmem>>, vector<256x512xf32>
    %cst_157 = arith.constant dense<0.000000e+00> : vector<8x512xf32>
    %481 = tpu.matmul %479, %480, %cst_157 {dimension_numbers = #tpu.dot_dimension_numbers<[1], [0], [0], [1], [0, 0, 1, 1], [], []>} : vector<8x256xf32>, vector<256x512xf32>, vector<8x512xf32> -> vector<8x512xf32>
    %c0_158 = arith.constant 0 : index
    %c0_159 = arith.constant 0 : index
    %482 = vector.load %arg9[%c0_158, %c0_159] : memref<1x512xf32, #tpu.memory_space<vmem>>, vector<1x512xf32>
    %483 = vector.broadcast %482 : vector<1x512xf32> to vector<8x512xf32>
    %484 = arith.addf %481, %483 : vector<8x512xf32>
    %485 = vector.extract_strided_slice %484 {offsets = [0, 0], sizes = [8, 128], strides = [1, 1]} : vector<8x512xf32> to vector<8x128xf32>
    %486 = arith.negf %485 : vector<8x128xf32>
    %487 = math.exp %486 : vector<8x128xf32>
    %cst_160 = arith.constant 1.000000e+00 : f32
    %488 = vector.broadcast %cst_160 : f32 to vector<8x128xf32>
    %489 = arith.addf %488, %487 : vector<8x128xf32>
    %490 = arith.divf %488, %489 : vector<8x128xf32>
    %491 = vector.extract_strided_slice %484 {offsets = [0, 128], sizes = [8, 128], strides = [1, 1]} : vector<8x512xf32> to vector<8x128xf32>
    %492 = arith.negf %491 : vector<8x128xf32>
    %493 = math.exp %492 : vector<8x128xf32>
    %cst_161 = arith.constant 1.000000e+00 : f32
    %494 = vector.broadcast %cst_161 : f32 to vector<8x128xf32>
    %495 = arith.addf %494, %493 : vector<8x128xf32>
    %496 = arith.divf %494, %495 : vector<8x128xf32>
    %497 = vector.extract_strided_slice %484 {offsets = [0, 256], sizes = [8, 128], strides = [1, 1]} : vector<8x512xf32> to vector<8x128xf32>
    %498 = vector.extract_strided_slice %484 {offsets = [0, 384], sizes = [8, 128], strides = [1, 1]} : vector<8x512xf32> to vector<8x128xf32>
    %499 = arith.mulf %490, %498 : vector<8x128xf32>
    %500 = arith.addf %497, %499 : vector<8x128xf32>
    %501 = math.tanh %500 : vector<8x128xf32>
    %cst_162 = arith.constant 1.000000e+00 : f32
    %502 = vector.broadcast %cst_162 : f32 to vector<8x128xf32>
    %503 = arith.subf %502, %496 : vector<8x128xf32>
    %504 = arith.mulf %503, %501 : vector<8x128xf32>
    %505 = arith.mulf %496, %444 : vector<8x128xf32>
    %506 = arith.addf %504, %505 : vector<8x128xf32>
    %c56_163 = arith.constant 56 : index
    %c0_164 = arith.constant 0 : index
    %507 = vector.load %arg14[%c56_163, %c0_164] : memref<64x128xf32, #tpu.memory_space<vmem>>, vector<8x128xf32>
    tpu.vector_store %arg14[%c56_163, %c0_164], %506 {strides = array<i32>} : memref<64x128xf32, #tpu.memory_space<vmem>>, vector<8x128xf32>,
    %c0_165 = arith.constant 0 : index
    %c0_166 = arith.constant 0 : index
    %508 = vector.load %arg14[%c0_165, %c0_166] : memref<64x128xf32, #tpu.memory_space<vmem>>, vector<64x128xf32>
    %c0_167 = arith.constant 0 : index
    %c0_168 = arith.constant 0 : index
    %509 = vector.load %arg0[%c0_167, %c0_168] : memref<64x1xf32, #tpu.memory_space<vmem>>, vector<64x1xf32>
    %510 = vector.broadcast %509 : vector<64x1xf32> to vector<64x128xf32>
    %511 = arith.mulf %508, %510 : vector<64x128xf32>
    %c0_169 = arith.constant 0 : index
    %c0_170 = arith.constant 0 : index
    %512 = vector.load %arg10[%c0_169, %c0_170] : memref<128x128xf32, #tpu.memory_space<vmem>>, vector<128x128xf32>
    %cst_171 = arith.constant dense<0.000000e+00> : vector<64x128xf32>
    %513 = tpu.matmul %511, %512, %cst_171 {dimension_numbers = #tpu.dot_dimension_numbers<[1], [0], [0], [1], [0, 0, 1, 1], [], []>} : vector<64x128xf32>, vector<128x128xf32>, vector<64x128xf32> -> vector<64x128xf32>
    %c0_172 = arith.constant 0 : index
    %c0_173 = arith.constant 0 : index
    %514 = vector.load %arg11[%c0_172, %c0_173] : memref<1x128xf32, #tpu.memory_space<vmem>>, vector<1x128xf32>
    %515 = vector.broadcast %514 : vector<1x128xf32> to vector<64x128xf32>
    %516 = arith.addf %513, %515 : vector<64x128xf32>
    %c0_174 = arith.constant 0 : index
    %c0_175 = arith.constant 0 : index
    %517 = vector.load %arg12[%c0_174, %c0_175] : memref<64x128xf32, #tpu.memory_space<vmem>>, vector<64x128xf32>
    tpu.vector_store %arg12[%c0_174, %c0_175], %516 {strides = array<i32>} : memref<64x128xf32, #tpu.memory_space<vmem>>, vector<64x128xf32>,
    return
  }
}

</mosaic_0001>

<bundles_post_ra>
// kernel: tpu_custom_call.1
= control target key start
LH: loop header
LB: loop body
LE: loop exit
PB: predicated region body
PF: predicated region fallthrough
CT: control target
= control target key end

     0   :  { %17 = vsyncpa [#allocation5], 0  ;;  %s9492_s0 = inlined_call_operand.vmem [shape: f32[64,1], index: 0, kind: input, shape index: {}]   ;;  %s9493_s1 = inlined_call_operand.vmem [shape: f32[64,16], index: 1, kind: input, shape index: {}]   ;;  %s9494_s2 = inlined_call_operand.vmem [shape: f32[8,16], index: 2, kind: input, shape index: {}]   ;;  %s9495_s3 = inlined_call_operand.hbm [shape: f32[16,512], index: 3, kind: input, shape index: {}]   ;;  %s9496_s4 = inlined_call_operand.vmem [shape: f32[1,512], index: 4, kind: input, shape index: {}]   ;;  %s9497_s5 = inlined_call_operand.hbm [shape: f32[16,384], index: 5, kind: input, shape index: {}]   ;;  %s9498_s6 = inlined_call_operand.hbm [shape: f32[128,384], index: 6, kind: input, shape index: {}]   ;;  %s9499_s7 = inlined_call_operand.vmem [shape: f32[1,384], index: 7, kind: input, shape index: {}]   ;;  %s9500_s8 = inlined_call_operand.hbm [shape: f32[256,512], index: 8, kind: input, shape index: {}]   ;;  %s9501_s9 = inlined_call_operand.vmem [shape: f32[1,512], index: 9, kind: input, shape index: {}]   ;;  %s9502_s10 = inlined_call_operand.vmem [shape: f32[128,128], index: 10, kind: input, shape index: {}]   ;;  %s9503_s11 = inlined_call_operand.vmem [shape: f32[1,128], index: 11, kind: input, shape index: {}]   ;;  %s9504_s12 = inlined_call_operand.hbm [shape: f32[64,128], index: 12, kind: output, shape index: {}]  }
   0x1   :  { %18 = vsyncpa [#allocation8], 0 }
   0x2   :  { %19 = vsyncpa [#allocation11], 0 }
   0x3   :  { %20 = vsyncpa [#allocation6], 0  ;;  %s5978_s21 = smov [#allocation7]  }
   0x4   :  { %s46_s22 = sshll.u32 %s5978_s21, 4  ;;  %s47_s22 = int_to_ptr.vmem [resolvable:$true] %s46_s22 }
   0x5   :  { %s5878_s23 = scalar_lea.vmem %s47_s22, 768  ;;  %p5883_p1 = scmp.lt.s32.totalorder %s47_s22, %s47_s22 }
   0x6   :  { %p5879_p0 = scmp.ne.s32.totalorder %s47_s22, %s5878_s23  ;;  %p5884_p2 = scmp.lt.s32.totalorder %s5878_s23, %s5878_s23 }
   0x8   :  { %p5885_p3 = por %p5884_p2, %p5883_p1 }
   0xa   :  { %p5886_p4 = pnand %p5885_p3, %p5879_p0 }
   0xc   :  { %5889 = shalt.err (!%p5886_p4)
}
   0xd   :  { %s5979_s24 = smov 384   ;;  %s5980_s25 = smov 24  }
   0xe   :  { %52 = dma.hbm_to_vmem [thread:$0]  %s9497_s5, 768, %s47_s22, [#allocation8], %s5979_s24, %s5979_s24, %s5980_s25  }
   0xf   :  { %s5981_s28 = smov [#allocation4]  }
  0x10   :  { %s32_s29 = sshll.u32 %s5981_s28, 4  ;;  %s33_s29 = int_to_ptr.vmem [resolvable:$true] %s32_s29 }
  0x11   :  { %s5898_s30 = scalar_lea.vmem %s33_s29, 1024  ;;  %p5903_p6 = scmp.lt.s32.totalorder %s33_s29, %s33_s29 }
  0x12   :  { %p5899_p5 = scmp.ne.s32.totalorder %s33_s29, %s5898_s30  ;;  %p5904_p7 = scmp.lt.s32.totalorder %s5898_s30, %s5898_s30 }
  0x14   :  { %p5905_p8 = por %p5904_p7, %p5903_p6 }
  0x16   :  { %p5906_p9 = pnand %p5905_p8, %p5899_p5 }
  0x18   :  { %5909 = shalt.err (!%p5906_p9)
}
  0x19   :  { %s5982_s13 = smov 512   ;;  %s5983_s14 = smov 32  }
  0x1a   :  { %38 = dma.hbm_to_vmem [thread:$0]  %s9495_s3, 1024, %s33_s29, [#allocation5], %s5982_s13, %s5982_s13, %s5983_s14  }
  0x1b   :  { %s5984_s17 = smov [#allocation9]   ;;  %s5985_s19 = smov [#allocation10]  }
  0x1c   :  { %s58_s18 = sshll.u32 %s5984_s17, 4  ;;  %s72_s5 = sshll.u32 %s5985_s19, 4  ;;  %s59_s18 = int_to_ptr.vmem [resolvable:$true] %s58_s18  ;;  %s73_s5 = int_to_ptr.vmem [resolvable:$true] %s72_s5 }
  0x1d   :  { %s5918_s20 = scalar_lea.vmem %s59_s18, 6144  ;;  %p5923_p11 = scmp.lt.s32.totalorder %s59_s18, %s59_s18 }
  0x1e   :  { %p5919_p10 = scmp.ne.s32.totalorder %s59_s18, %s5918_s20  ;;  %p5924_p12 = scmp.lt.s32.totalorder %s5918_s20, %s5918_s20 }
  0x20   :  { %p5925_p13 = por %p5924_p12, %p5923_p11 }
  0x22   :  { %p5926_p0 = pnand %p5925_p13, %p5919_p10 }
  0x24   :  { %5929 = shalt.err (!%p5926_p0)
}
  0x25   :  { %64 = dma.hbm_to_vmem [thread:$0]  %s9498_s6, 6144, %s59_s18, [#allocation8], %s5979_s24, %s5979_s24, %s5980_s25  }
  0x26   :  { %s5938_s3 = scalar_lea.vmem %s73_s5, 16384  ;;  %p5943_p2 = scmp.lt.s32.totalorder %s73_s5, %s73_s5 }
  0x27   :  { %p5939_p1 = scmp.ne.s32.totalorder %s73_s5, %s5938_s3  ;;  %p5944_p3 = scmp.lt.s32.totalorder %s5938_s3, %s5938_s3 }
  0x29   :  { %p5945_p4 = por %p5944_p3, %p5943_p2 }
  0x2b   :  { %p5946_p5 = pnand %p5945_p4, %p5939_p1 }
  0x2d   :  { %5949 = shalt.err (!%p5946_p5)
}
  0x2e   :  { %78 = dma.hbm_to_vmem [thread:$0]  %s9500_s8, 16384, %s73_s5, [#allocation11], %s5982_s13, %s5982_s13, %s5983_s14  }
  0x2f   :  { %5970 = dma.done.wait [#allocation5], 1024  }
  0x30   :  { %5971 = vsyncadd [#allocation5], 4294966272 }
  0x31   :  { %5972 = dma.done.wait [#allocation8], 6912  }
  0x32   :  { %5973 = vsyncadd [#allocation8], 4294960384 }
  0x33   :  { %5974 = dma.done.wait [#allocation11], 16384  }
  0x34   :  { %5975 = vsyncadd [#allocation11], 4294950912  ;;  %v9514_v0 = vmov 0.0   ;;  %v103_v1 = vld [vmem:[#allocation4 + $0x28] sm:$0xff]  ;;  %v102_v2 = vld [vmem:[#allocation4 + $0x20] sm:$0xff]  ;;  %vm128_vm0 = vcmask 130048   ;;  %v108_v62 = vlaneseq }
  0x35   :  { %196 = vmatprep.mubr.f32.mxu0 %v9514_v0  ;;  %v99_v3 = vld [vmem:[#allocation4 + $0x8] sm:$0xff]  ;;  %160 = vmatprep.subr.mxu0 %v103_v1  ;;  %v98_v4 = vld [vmem:[#allocation4] sm:$0xff]  ;;  %v105_v6 = vld [vmem:[#allocation4 + $0x38] sm:$0xff]  ;;  %vm5987_vm1 = vmmov 0  }
  0x36   :  { %161 = vmatpush1.msra.mxu0 %v102_v2  ;;  %v97_v5 = vld [vmem:[%s9494_s2] sm:$0xff]  ;;  %v104_v7 = vld [vmem:[#allocation4 + $0x30] sm:$0xff]  ;;  %v101_v8 = vld [vmem:[#allocation4 + $0x18] sm:$0xff]  ;;  %v109_v63 = vshrl.u32 %v108_v62, 7 }
  0x37   :  { %162 = vmatprep.subr.mxu0 %v99_v3  ;;  %v100_v9 = vld [vmem:[#allocation4 + $0x10] sm:$0xff]  ;;  %v286_v10 = vld [vmem:[#allocation7 + $0x20] sm:$0xff]  ;;  %v285_v12 = vld [vmem:[#allocation7 + $0x18] sm:$0xff] }
  0x38   :  { %163 = vmatpush1.msra.mxu0 %v98_v4  ;;  %v274_v11 = vld [vmem:[%s9493_s1] sm:$0xff]  ;;  %v287_v13 = vld [vmem:[#allocation7 + $0x28] sm:$0xff]  ;;  %v284_v16 = vld [vmem:[#allocation7 + $0x10] sm:$0xff]  ;;  %v6240_v1 = vsub.s32 0, %v109_v63  ;;  %v6246_v4 = vsub.s32 3, %v109_v63 }
  0x39   :  { %5133 = vmatmul.mubr.msk.f32.vlgmr.msra.gmra.mxu0 %vm128_vm0, %v97_v5  ;;  %231 = vmatprep.subr.mxu0 %v105_v6  ;;  %v283_v14 = vld [vmem:[#allocation7 + $0x8] sm:$0xff]  ;;  %v282_v15 = vld [vmem:[#allocation7] sm:$0xff]  ;;  %v6093_v19 = vld [vmem:[#allocation9 + $0x168] sm:$0xff] }
  0x3a   :  { %232 = vmatpush1.msra.mxu0 %v104_v7  ;;  %267 = vmatprep.mubr.f32.mxu0 %v9514_v0  ;;  %v6087_v17 = vld [vmem:[#allocation9 + $0x170] sm:$0xff]  ;;  %v275_v18 = vld [vmem:[%s9493_s1 + $0x8] sm:$0xff]  ;;  %v276_v20 = vld [vmem:[%s9493_s1 + $0x10] sm:$0xff]  ;;  %10088 = vst [vmem:[#allocation27_spill] sm:$0xff] %v6240_v1 }
  0x3b   :  { %233 = vmatprep.subr.mxu0 %v101_v8  ;;  %5358 = vmatprep.mubr.msk.f32.mxu1 %vm128_vm0, %v274_v11  ;;  %v6100_v21 = vld [vmem:[#allocation9 + $0x158] sm:$0xff]  ;;  %v6103_v22 = vld [vmem:[#allocation9 + $0x150] sm:$0xff]  ;;  %v6107_v23 = vld [vmem:[#allocation9 + $0x140] sm:$0xff]  ;;  %10089 = vst [vmem:[#allocation28_spill] sm:$0xff] %v6246_v4 }
  0x3c   :  { %234 = vmatpush1.msra.mxu0 %v100_v9  ;;  %5354 = vmatprep.subr.mxu1 %v287_v13  ;;  %v6111_v24 = vld [vmem:[#allocation9 + $0x138] sm:$0xff]  ;;  %v277_v25 = vld [vmem:[%s9493_s1 + $0x18] sm:$0xff]  ;;  %v278_v27 = vld [vmem:[%s9493_s1 + $0x20] sm:$0xff]  ;;  %v6254_v9 = vsub.s32 2, %v109_v63 }
  0x3d   :  { %5134 = vmatmul.mubr.msk.f32.vlgmr.msra.gmra.mxu0 %vm128_vm0, %v97_v5  ;;  %340 = vmatprep.subr.mxu0 %v286_v10  ;;  %v6118_v26 = vld [vmem:[#allocation9 + $0x128] sm:$0xff]  ;;  %v6124_v28 = vld [vmem:[#allocation9 + $0x120] sm:$0xff]  ;;  %v6128_v29 = vld [vmem:[#allocation9 + $0x110] sm:$0xff] }
  0x3e   :  { %341 = vmatpush1.msra.mxu0 %v285_v12  ;;  %376 = vmatprep.mubr.f32.mxu0 %v9514_v0  ;;  %v6133_v30 = vld [vmem:[#allocation9 + $0x108] sm:$0xff]  ;;  %v279_v31 = vld [vmem:[%s9493_s1 + $0x28] sm:$0xff]  ;;  %v280_v33 = vld [vmem:[%s9493_s1 + $0x30] sm:$0xff] }
  0x3f   :  { %342 = vmatprep.subr.mxu0 %v283_v14  ;;  %5355 = vmatpush3.msra.mxu1 %v287_v13  ;;  %v6140_v32 = vld [vmem:[#allocation9 + $0xf8] sm:$0xff]  ;;  %v6146_v34 = vld [vmem:[#allocation9 + $0xf0] sm:$0xff]  ;;  %v6150_v35 = vld [vmem:[#allocation9 + $0xe0] sm:$0xff] }
  0x40   :  { %343 = vmatpush1.msra.mxu0 %v282_v15  ;;  %5356 = vmatprep.subr.mxu1 %v284_v16  ;;  %v6155_v36 = vld [vmem:[#allocation9 + $0xd8] sm:$0xff]  ;;  %v281_v37 = vld [vmem:[%s9493_s1 + $0x38] sm:$0xff]  ;;  %v6165_v39 = vld [vmem:[#allocation9 + $0xc0] sm:$0xff]  ;;  %v6266_v15 = vsub.s32 1, %v109_v63 }
  0x41   :  { %5135 = vmatmul.mubr.msk.f32.vlgmr.msra.gmra.mxu0 %vm128_vm0, %v274_v11  ;;  %5357 = vmatpush3.msra.mxu1 %v284_v16  ;;  %v6162_v38 = vld [vmem:[#allocation9 + $0xc8] sm:$0xff]  ;;  %v6169_v40 = vld [vmem:[#allocation9 + $0xb0] sm:$0xff]  ;;  %v6178_v42 = vld [vmem:[#allocation9 + $0x98] sm:$0xff] }
  0x42   :  { %382 = vmatprep.mubr.f32.mxu0 %v9514_v0  ;;  %5359 = vmatmul.mubr.msk.f32.vlgmr.msra.gmra.mxu1 %vm128_vm0, %v275_v18  ;;  %v6174_v41 = vld [vmem:[#allocation9 + $0xa8] sm:$0xff]  ;;  %v6181_v43 = vld [vmem:[#allocation9 + $0x90] sm:$0xff]  ;;  %v6184_v44 = vld [vmem:[#allocation9 + $0x80] sm:$0xff]  ;;  %10090 = vst [vmem:[#allocation29_spill] sm:$0xff] %v6266_v15 }
  0x43   :  { %625 = vmatprep.subr.mxu1 %v6087_v17  ;;  %5361 = vmatprep.mubr.msk.f32.mxu1 %vm128_vm0, %v276_v20  ;;  %v6188_v45 = vld [vmem:[#allocation9 + $0x78] sm:$0xff]  ;;  %v6192_v46 = vld [vmem:[#allocation9 + $0x68] sm:$0xff]  ;;  %v6195_v47 = vld [vmem:[#allocation9 + $0x60] sm:$0xff] }
  0x44   :  { %626 = vmatpush1.msra.mxu1 %v6093_v19  ;;  %v6198_v48 = vld [vmem:[#allocation9 + $0x50] sm:$0xff]  ;;  %v6202_v49 = vld [vmem:[#allocation9 + $0x48] sm:$0xff]  ;;  %v6206_v50 = vld [vmem:[#allocation9 + $0x38] sm:$0xff] }
  0x45   :  { %5136 = vmatmul.mubr.msk.f32.gmra.mxu0 %vm128_vm0, %v275_v18  ;;  %627 = vmatprep.subr.mxu1 %v6100_v21  ;;  %10078 = vst [vmem:[#allocation17_spill] sm:$0xff] %v6206_v50  ;;  %v6209_v51 = vld [vmem:[#allocation9 + $0x30] sm:$0xff]  ;;  %v564_v52 = vld [vmem:[#allocation9 + $0x20] sm:$0xff]  ;;  %v563_v53 = vld [vmem:[#allocation9 + $0x18] sm:$0xff] }
  0x46   :  { %388 = vmatprep.mubr.f32.mxu0 %v9514_v0  ;;  %628 = vmatpush1.msra.mxu1 %v6103_v22  ;;  %10079 = vst [vmem:[#allocation18_spill] sm:$0xff] %v6209_v51  ;;  %v6215_v54 = vld [vmem:[#allocation9 + $0x8] sm:$0xff]  ;;  %v6218_v55 = vld [vmem:[#allocation9] sm:$0xff]  ;;  %v106_v2 = vld [vmem:[%s9496_s4] sm:$0xf] }
  0x47   :  { %629 = vmatprep.subr.mxu1 %v6107_v23  ;;  %5362 = vmatmul.mubr.msk.f32.gmra.mxu1 %vm128_vm0, %v277_v25  ;;  %10080 = vst [vmem:[#allocation19_spill] sm:$0xff] %v6215_v54  ;;  %10081 = vst [vmem:[#allocation20_spill] sm:$0xff] %v6218_v55  ;;  %v6222_v56 = vld [vmem:[#allocation10 + $0x1e8] sm:$0xff]  ;;  %v6224_v57 = vld [vmem:[#allocation10 + $0x1e0] sm:$0xff]  ;;  %v111_v3 = vrot.slane %v106_v2, %v6240_v1  ;;  %v123_v11 = vrot.slane %v106_v2, %v6246_v4 }
  0x48   :  { %630 = vmatpush1.msra.mxu1 %v6111_v24  ;;  %5364 = vmatprep.mubr.msk.f32.mxu1 %vm128_vm0, %v278_v27  ;;  %10082 = vst [vmem:[#allocation21_spill] sm:$0xff] %v6222_v56  ;;  %10083 = vst [vmem:[#allocation22_spill] sm:$0xff] %v6224_v57  ;;  %v6227_v58 = vld [vmem:[#allocation10 + $0x1c8] sm:$0xff]  ;;  %v6230_v59 = vld [vmem:[#allocation10 + $0x1c0] sm:$0xff]  ;;  %v119_v16 = vrot.slane %v106_v2, %v6254_v9 }
  0x49   :  { %5137 = vmatmul.mubr.msk.f32.gmra.mxu0 %vm128_vm0, %v276_v20  ;;  %631 = vmatprep.subr.mxu1 %v6118_v26  ;;  %10084 = vst [vmem:[#allocation23_spill] sm:$0xff] %v6227_v58  ;;  %10085 = vst [vmem:[#allocation24_spill] sm:$0xff] %v6230_v59  ;;  %v6232_v60 = vld [vmem:[#allocation10 + $0x1a8] sm:$0xff]  ;;  %v6235_v61 = vld [vmem:[#allocation10 + $0x1a0] sm:$0xff] }
  0x4a   :  { %394 = vmatprep.mubr.f32.mxu0 %v9514_v0  ;;  %632 = vmatpush1.msra.mxu1 %v6124_v28  ;;  %10086 = vst [vmem:[#allocation25_spill] sm:$0xff] %v6232_v60  ;;  %10087 = vst [vmem:[#allocation26_spill] sm:$0xff] %v6235_v61  ;;  %v6250_v7 = vld [vmem:[#allocation9 + $0x178] sm:$0xff]  ;;  %v6256_v10 = vld [vmem:[#allocation9 + $0x160] sm:$0xff] }
  0x4b   :  { %633 = vmatprep.subr.mxu1 %v6128_v29  ;;  %5365 = vmatmul.mubr.msk.f32.gmra.mxu1 %vm128_vm0, %v279_v31  ;;  %v6263_v13 = vld [vmem:[#allocation9 + $0x148] sm:$0xff]  ;;  %v6272_v20 = vld [vmem:[#allocation9 + $0x130] sm:$0xff]  ;;  %v6290_v62 = vld [vmem:[#allocation9 + $0x100] sm:$0xff] }
  0x4c   :  { %634 = vmatpush1.msra.mxu1 %v6133_v30  ;;  %5367 = vmatprep.mubr.msk.f32.mxu1 %vm128_vm0, %v280_v33 }
  0x4d   :  { %5138 = vmatmul.mubr.msk.f32.gmra.mxu0 %vm128_vm0, %v277_v25  ;;  %635 = vmatprep.subr.mxu1 %v6140_v32 }
  0x4e   :  { %400 = vmatprep.mubr.f32.mxu0 %v9514_v0  ;;  %636 = vmatpush1.msra.mxu1 %v6146_v34 }
  0x4f   :  { %637 = vmatprep.subr.mxu1 %v6150_v35  ;;  %5368 = vmatmul.mubr.msk.f32.gmra.mxu1 %vm128_vm0, %v281_v37 }
  0x50   :  { %638 = vmatpush1.msra.mxu1 %v6155_v36  ;;  %689 = vmatprep.mubr.f32.mxu1 %v9514_v0 }
  0x51   :  { %5139 = vmatmul.mubr.msk.f32.gmra.mxu0 %vm128_vm0, %v278_v27  ;;  %639 = vmatprep.subr.mxu1 %v6162_v38  ;;  %v6278_v27 = vld [vmem:[#allocation9 + $0x118] sm:$0xff] }
  0x52   :  { %406 = vmatprep.mubr.f32.mxu0 %v9514_v0  ;;  %640 = vmatpush1.msra.mxu1 %v6165_v39 }
  0x53   :  { %641 = vmatprep.subr.mxu1 %v6169_v40  ;;  %937 = vmatprep.subr.mxu0 %v6222_v56 }
  0x54   :  { %642 = vmatpush1.msra.mxu1 %v6174_v41  ;;  %938 = vmatpush1.msra.mxu0 %v6224_v57  ;;  %v6381_v57 = vld [vmem:[#allocation10 + $0x1f8] sm:$0xff] }
  0x55   :  { %5140 = vmatmul.mubr.msk.f32.gmra.mxu0 %vm128_vm0, %v279_v31  ;;  %643 = vmatprep.subr.mxu1 %v6178_v42  ;;  %10113 = vst [vmem:[#allocation52_spill] sm:$0xff] %v6381_v57 }
  0x56   :  { %412 = vmatprep.mubr.f32.mxu0 %v9514_v0  ;;  %644 = vmatpush1.msra.mxu1 %v6181_v43 }
  0x57   :  { %645 = vmatprep.subr.mxu1 %v6184_v44  ;;  %939 = vmatprep.subr.mxu0 %v6227_v58 }
  0x58   :  { %646 = vmatpush1.msra.mxu1 %v6188_v45  ;;  %940 = vmatpush1.msra.mxu0 %v6230_v59 }
  0x59   :  { %5141 = vmatmul.mubr.msk.f32.gmra.mxu0 %vm128_vm0, %v280_v33  ;;  %647 = vmatprep.subr.mxu1 %v6192_v46 }
  0x5a   :  { %418 = vmatprep.mubr.f32.mxu0 %v9514_v0  ;;  %648 = vmatpush1.msra.mxu1 %v6195_v47 }
  0x5b   :  { %649 = vmatprep.subr.mxu1 %v6198_v48  ;;  %941 = vmatprep.subr.mxu0 %v6232_v60 }
  0x5c   :  { %650 = vmatpush1.msra.mxu1 %v6202_v49  ;;  %942 = vmatpush1.msra.mxu0 %v6235_v61 }
  0x5d   :  { %5142 = vmatmul.mubr.msk.f32.gmra.mxu0 %vm128_vm0, %v281_v37  ;;  %651 = vmatprep.subr.mxu1 %v6206_v50 }
  0x5e   :  { %652 = vmatpush1.msra.mxu1 %v6209_v51 }
  0x5f   :  { %653 = vmatprep.subr.mxu1 %v564_v52  ;;  %v115_v52 = vrot.slane %v106_v2, %v6266_v15 }
  0x60   :  { %654 = vmatpush1.msra.mxu1 %v563_v53 }
  0x61   :  { %655 = vmatprep.subr.mxu1 %v6215_v54  ;;  %v6702_v54 = vld [vmem:[#allocation10 + $0x280] sm:$0xff] }
  0x62   :  { %656 = vmatpush1.msra.mxu1 %v6218_v55  ;;  %v6397_v55 = vld [vmem:[#allocation10 + $0x1d0] sm:$0xff]  ;;  %10220 = vst [vmem:[#allocation159_spill] sm:$0xff] %v6702_v54 }
  0x63   :  { %5370 = vmatprep.subr.mxu1 %v9514_v0  ;;  %10118 = vst [vmem:[#allocation57_spill] sm:$0xff] %v6397_v55 }
  0xf9   :  { %v198_v5 = vpop.f32.mrf.mxu0 }
  0xfa   :  { %v6248_v6 = vadd.f32 %v198_v5, %v111_v3  ;;  %v6298_v5 = vld [vmem:[#allocation9 + $0xe8] sm:$0xff] }
  0xfb   :  { %v200_v8 = vpop.f32.mrf.mxu0 }
  0xfc   :  { %690 = vmatmul.mubr.f32.vlgmr.msra.gmra.mxu1 %v6248_v6  ;;  %1001 = vmatprep.mubr.f32.mxu0 %v6248_v6 }
  0xfd   :  { %5371 = vmatpush3.msra.mxu1 %v6250_v7  ;;  %v269_v12 = vpop.f32.mrf.mxu0  ;;  %5402 = vmatprep.mubr.msk.f32.mxu1 %vm5987_vm1, %v9514_v0 }
  0xfe   :  { %5372 = vmatprep.subr.mxu1 %v9514_v0  ;;  %v6287_v53 = vadd.f32 %v269_v12, %v119_v16  ;;  %v6301_v12 = vadd.f32 %v200_v8, %v115_v52  ;;  %v6307_v16 = vld [vmem:[#allocation9 + $0xd0] sm:$0xff]  ;;  %v6317_v8 = vld [vmem:[#allocation9 + $0xb8] sm:$0xff] }
  0xff   :  { %5373 = vmatpush3.msra.mxu1 %v6256_v10  ;;  %v271_v14 = vpop.f32.mrf.mxu0 }
 0x100   :  { %v6269_v18 = vadd.f32 %v271_v14, %v123_v11  ;;  %5374 = vmatprep.subr.mxu1 %v9514_v0  ;;  %10093 = vst [vmem:[#allocation32_spill] sm:$0xff] %v6287_v53  ;;  %10095 = vst [vmem:[#allocation34_spill] sm:$0xff] %v6301_v12 }
 0x101   :  { %5375 = vmatpush3.msra.mxu1 %v6263_v13  ;;  %v6275_v25 = vpop.f32.mrf.mxu0 }
 0x102   :  { %10091 = vst [vmem:[#allocation30_spill] sm:$0xff] %v6269_v18  ;;  %5376 = vmatprep.subr.mxu1 %v9514_v0  ;;  %v5360_v31 = vpop.f32.mrf.mxu1 }
 0x103   :  { %5377 = vmatpush3.msra.mxu1 %v6272_v20  ;;  %v6281_v33 = vpop.f32.mrf.mxu0  ;;  %v6284_v37 = vadd.f32 %v5360_v31, %v6269_v18 }
 0x104   :  { %5378 = vmatprep.subr.mxu1 %v9514_v0  ;;  %v6295_v3 = vpop.f32.mrf.mxu1 }
 0x105   :  { %10092 = vst [vmem:[#allocation31_spill] sm:$0xff] %v6284_v37  ;;  %5379 = vmatpush3.msra.mxu1 %v6278_v27  ;;  %v6293_v63 = vpop.f32.mrf.mxu0 }
 0x106   :  { %10094 = vst [vmem:[#allocation33_spill] sm:$0xff] %v6293_v63  ;;  %5380 = vmatprep.subr.mxu1 %v9514_v0 }
 0x107   :  { %5381 = vmatpush3.msra.mxu1 %v6290_v62  ;;  %v386_v11 = vpop.f32.mrf.mxu0  ;;  %v5363_v2 = vpop.f32.mrf.mxu1 }
 0x108   :  { %v6304_v14 = vadd.f32 %v386_v11, %v6287_v53  ;;  %5382 = vmatprep.subr.mxu1 %v9514_v0  ;;  %v6310_v31 = vadd.f32 %v5363_v2, %v6269_v18 }
 0x109   :  { %5383 = vmatpush3.msra.mxu1 %v6298_v5  ;;  %v390_v37 = vpop.f32.mrf.mxu0  ;;  %v501_v63 = vpop.f32.mrf.mxu1 }
 0x10a   :  { %10096 = vst [vmem:[#allocation35_spill] sm:$0xff] %v6304_v14  ;;  %10097 = vst [vmem:[#allocation36_spill] sm:$0xff] %v6310_v31  ;;  %v6314_v4 = vadd.f32 %v390_v37, %v6301_v12  ;;  %5384 = vmatprep.subr.mxu1 %v9514_v0  ;;  %v6320_v52 = vadd.f32 %v501_v63, %v6269_v18  ;;  %v6327_v31 = vld [vmem:[#allocation9 + $0xa0] sm:$0xff] }
 0x10b   :  { %5385 = vmatpush3.msra.mxu1 %v6307_v16  ;;  %v392_v11 = vpop.f32.mrf.mxu0  ;;  %v5366_v14 = vpop.f32.mrf.mxu1 }
 0x10c   :  { %10098 = vst [vmem:[#allocation37_spill] sm:$0xff] %v6314_v4  ;;  %10099 = vst [vmem:[#allocation38_spill] sm:$0xff] %v6320_v52  ;;  %v6324_v2 = vadd.f32 %v392_v11, %v6287_v53  ;;  %5386 = vmatprep.subr.mxu1 %v9514_v0  ;;  %v6330_v37 = vadd.f32 %v5366_v14, %v6269_v18  ;;  %v6337_v52 = vld [vmem:[#allocation9 + $0x88] sm:$0xff] }
 0x10d   :  { %5387 = vmatpush3.msra.mxu1 %v6317_v8  ;;  %v396_v4 = vpop.f32.mrf.mxu0  ;;  %v511_v61 = vpop.f32.mrf.mxu1 }
 0x10e   :  { %10100 = vst [vmem:[#allocation39_spill] sm:$0xff] %v6324_v2  ;;  %10101 = vst [vmem:[#allocation40_spill] sm:$0xff] %v6330_v37  ;;  %v6334_v63 = vadd.f32 %v396_v4, %v6301_v12  ;;  %5388 = vmatprep.subr.mxu1 %v9514_v0  ;;  %v6340_v11 = vadd.f32 %v511_v61, %v6269_v18  ;;  %v6347_v37 = vld [vmem:[#allocation9 + $0x70] sm:$0xff] }
 0x10f   :  { %5389 = vmatpush3.msra.mxu1 %v6327_v31  ;;  %v398_v2 = vpop.f32.mrf.mxu0  ;;  %v5369_v60 = vpop.f32.mrf.mxu1 }
 0x110   :  { %10102 = vst [vmem:[#allocation41_spill] sm:$0xff] %v6334_v63  ;;  %10103 = vst [vmem:[#allocation42_spill] sm:$0xff] %v6340_v11  ;;  %v6344_v14 = vadd.f32 %v398_v2, %v6287_v53  ;;  %5390 = vmatprep.subr.mxu1 %v9514_v0  ;;  %v6350_v4 = vadd.f32 %v5369_v60, %v6269_v18  ;;  %v6357_v11 = vld [vmem:[#allocation9 + $0x58] sm:$0xff]  ;;  %v6364_v60 = vld [vmem:[#allocation9 + $0x40] sm:$0xff] }
 0x111   :  { %5391 = vmatpush3.msra.mxu1 %v6337_v52  ;;  %v402_v63 = vpop.f32.mrf.mxu0  ;;  %10108 = vst [vmem:[#allocation47_spill] sm:$0xff] %v6364_v60 }
 0x112   :  { %10104 = vst [vmem:[#allocation43_spill] sm:$0xff] %v6344_v14  ;;  %10105 = vst [vmem:[#allocation44_spill] sm:$0xff] %v6350_v4  ;;  %v6354_v61 = vadd.f32 %v402_v63, %v6301_v12  ;;  %5392 = vmatprep.subr.mxu1 %v9514_v0 }
 0x113   :  { %5393 = vmatpush3.msra.mxu1 %v6347_v37  ;;  %v404_v2 = vpop.f32.mrf.mxu0 }
 0x114   :  { %10106 = vst [vmem:[#allocation45_spill] sm:$0xff] %v6354_v61  ;;  %v6361_v14 = vadd.f32 %v404_v2, %v6287_v53  ;;  %5394 = vmatprep.subr.mxu1 %v9514_v0  ;;  %v6371_v61 = vld [vmem:[#allocation9 + $0x28] sm:$0xff] }
 0x115   :  { %5395 = vmatpush3.msra.mxu1 %v6357_v11  ;;  %v408_v4 = vpop.f32.mrf.mxu0  ;;  %10110 = vst [vmem:[#allocation49_spill] sm:$0xff] %v6371_v61 }
 0x116   :  { %10107 = vst [vmem:[#allocation46_spill] sm:$0xff] %v6361_v14  ;;  %v6368_v63 = vadd.f32 %v408_v4, %v6301_v12  ;;  %5396 = vmatprep.subr.mxu1 %v9514_v0  ;;  %v6378_v14 = vld [vmem:[#allocation9 + $0x10] sm:$0xff] }
 0x117   :  { %5397 = vmatpush3.msra.mxu1 %v6364_v60  ;;  %v410_v59 = vpop.f32.mrf.mxu0  ;;  %10112 = vst [vmem:[#allocation51_spill] sm:$0xff] %v6378_v14 }
 0x118   :  { %10109 = vst [vmem:[#allocation48_spill] sm:$0xff] %v6368_v63  ;;  %v6375_v2 = vadd.f32 %v410_v59, %v6287_v53  ;;  %5398 = vmatprep.subr.mxu1 %v9514_v0  ;;  %v6387_v63 = vld [vmem:[#allocation10 + $0x1f0] sm:$0xff] }
 0x119   :  { %5399 = vmatpush3.msra.mxu1 %v6371_v61  ;;  %v414_v58 = vpop.f32.mrf.mxu0  ;;  %10115 = vst [vmem:[#allocation54_spill] sm:$0xff] %v6387_v63 }
 0x11a   :  { %10111 = vst [vmem:[#allocation50_spill] sm:$0xff] %v6375_v2  ;;  %v6384_v4 = vadd.f32 %v414_v58, %v6301_v12  ;;  %5400 = vmatprep.subr.mxu1 %v9514_v0  ;;  %v6390_v2 = vld [vmem:[#allocation10 + $0x1d8] sm:$0xff] }
 0x11b   :  { %5401 = vmatpush3.msra.mxu1 %v6378_v14  ;;  %v416_v59 = vpop.f32.mrf.mxu0  ;;  %10116 = vst [vmem:[#allocation55_spill] sm:$0xff] %v6390_v2  ;;  %v6401_v0 = vld [vmem:[#allocation10 + $0x1b8] sm:$0xff] }
 0x11c   :  { %10114 = vst [vmem:[#allocation53_spill] sm:$0xff] %v6384_v4  ;;  %v6393_v56 = vadd.f32 %v416_v59, %v6287_v53  ;;  %5403 = vmatmul.mubr.f32.vlgmr.msra.gmra.mxu1 %v6248_v6  ;;  %1008 = vmatprep.subr.mxu1 %v6381_v57  ;;  %10119 = vst [vmem:[#allocation58_spill] sm:$0xff] %v6401_v0  ;;  %v6407_v59 = vld [vmem:[#allocation10 + $0x1b0] sm:$0xff]  ;;  %v6414_v57 = vld [vmem:[#allocation10 + $0x198] sm:$0xff] }
 0x11d   :  { %1072 = vmatprep.mubr.f32.mxu1 %v6248_v6  ;;  %v420_v58 = vpop.f32.mrf.mxu0  ;;  %1009 = vmatpush1.msra.mxu1 %v6387_v63  ;;  %10121 = vst [vmem:[#allocation60_spill] sm:$0xff] %v6407_v59  ;;  %10123 = vst [vmem:[#allocation62_spill] sm:$0xff] %v6414_v57  ;;  %v6582_v63 = vld [vmem:[#allocation10 + $0x3c0] sm:$0xff]  ;;  %v6590_v14 = vld [vmem:[#allocation10 + $0x3b8] sm:$0xff] }
 0x11e   :  { %10117 = vst [vmem:[#allocation56_spill] sm:$0xff] %v6393_v56  ;;  %v6404_v4 = vadd.f32 %v420_v58, %v6301_v12  ;;  %1010 = vmatprep.subr.mxu1 %v6390_v2  ;;  %v6412_v56 = vld [vmem:[#allocation10 + $0x188] sm:$0xff]  ;;  %v6418_v58 = vld [vmem:[#allocation10 + $0x180] sm:$0xff]  ;;  %v6574_v2 = vld [vmem:[#allocation10 + $0x3f0] sm:$0xff] }
 0x11f   :  { %1011 = vmatpush1.msra.mxu1 %v6397_v55  ;;  %10122 = vst [vmem:[#allocation61_spill] sm:$0xff] %v6412_v56  ;;  %943 = vmatprep.subr.mxu0 %v6412_v56  ;;  %10124 = vst [vmem:[#allocation63_spill] sm:$0xff] %v6418_v58  ;;  %v6424_v55 = vld [vmem:[#allocation10 + $0x168] sm:$0xff]  ;;  %v6432_v56 = vld [vmem:[#allocation10 + $0x170] sm:$0xff] }
 0x120   :  { %10120 = vst [vmem:[#allocation59_spill] sm:$0xff] %v6404_v4  ;;  %1012 = vmatprep.subr.mxu1 %v6401_v0  ;;  %v6420_v4 = vld [vmem:[#allocation10 + $0x190] sm:$0xff]  ;;  %944 = vmatpush1.msra.mxu0 %v6418_v58  ;;  %10126 = vst [vmem:[#allocation65_spill] sm:$0xff] %v6424_v55  ;;  %v6426_v0 = vld [vmem:[#allocation10 + $0x178] sm:$0xff] }
 0x121   :  { %1013 = vmatpush1.msra.mxu1 %v6407_v59  ;;  %10125 = vst [vmem:[#allocation64_spill] sm:$0xff] %v6420_v4  ;;  %10127 = vst [vmem:[#allocation66_spill] sm:$0xff] %v6426_v0  ;;  %945 = vmatprep.subr.mxu0 %v6424_v55  ;;  %v6430_v59 = vld [vmem:[#allocation10 + $0x160] sm:$0xff]  ;;  %v6438_v58 = vld [vmem:[#allocation10 + $0x158] sm:$0xff] }
 0x122   :  { %1014 = vmatprep.subr.mxu1 %v6414_v57  ;;  %10128 = vst [vmem:[#allocation67_spill] sm:$0xff] %v6430_v59  ;;  %10129 = vst [vmem:[#allocation68_spill] sm:$0xff] %v6432_v56  ;;  %946 = vmatpush1.msra.mxu0 %v6430_v59  ;;  %v6436_v57 = vld [vmem:[#allocation10 + $0x148] sm:$0xff]  ;;  %v6444_v55 = vld [vmem:[#allocation10 + $0x150] sm:$0xff] }
 0x123   :  { %1015 = vmatpush1.msra.mxu1 %v6420_v4  ;;  %10130 = vst [vmem:[#allocation69_spill] sm:$0xff] %v6436_v57  ;;  %10131 = vst [vmem:[#allocation70_spill] sm:$0xff] %v6438_v58  ;;  %947 = vmatprep.subr.mxu0 %v6436_v57  ;;  %v6442_v4 = vld [vmem:[#allocation10 + $0x140] sm:$0xff]  ;;  %v6450_v59 = vld [vmem:[#allocation10 + $0x138] sm:$0xff] }
 0x124   :  { %1016 = vmatprep.subr.mxu1 %v6426_v0  ;;  %10132 = vst [vmem:[#allocation71_spill] sm:$0xff] %v6442_v4  ;;  %10133 = vst [vmem:[#allocation72_spill] sm:$0xff] %v6444_v55  ;;  %948 = vmatpush1.msra.mxu0 %v6442_v4  ;;  %v6448_v0 = vld [vmem:[#allocation10 + $0x128] sm:$0xff]  ;;  %v6456_v57 = vld [vmem:[#allocation10 + $0x130] sm:$0xff] }
 0x125   :  { %1017 = vmatpush1.msra.mxu1 %v6432_v56  ;;  %10134 = vst [vmem:[#allocation73_spill] sm:$0xff] %v6448_v0  ;;  %10135 = vst [vmem:[#allocation74_spill] sm:$0xff] %v6450_v59  ;;  %949 = vmatprep.subr.mxu0 %v6448_v0  ;;  %v6454_v56 = vld [vmem:[#allocation10 + $0x120] sm:$0xff]  ;;  %v6462_v4 = vld [vmem:[#allocation10 + $0x118] sm:$0xff] }
 0x126   :  { %1018 = vmatprep.subr.mxu1 %v6438_v58  ;;  %10136 = vst [vmem:[#allocation75_spill] sm:$0xff] %v6454_v56  ;;  %10137 = vst [vmem:[#allocation76_spill] sm:$0xff] %v6456_v57  ;;  %950 = vmatpush1.msra.mxu0 %v6454_v56  ;;  %v6460_v58 = vld [vmem:[#allocation10 + $0x108] sm:$0xff]  ;;  %v6468_v0 = vld [vmem:[#allocation10 + $0x110] sm:$0xff] }
 0x127   :  { %1019 = vmatpush1.msra.mxu1 %v6444_v55  ;;  %10138 = vst [vmem:[#allocation77_spill] sm:$0xff] %v6460_v58  ;;  %10139 = vst [vmem:[#allocation78_spill] sm:$0xff] %v6462_v4  ;;  %951 = vmatprep.subr.mxu0 %v6460_v58  ;;  %v6466_v55 = vld [vmem:[#allocation10 + $0x100] sm:$0xff]  ;;  %v6474_v56 = vld [vmem:[#allocation10 + $0xf8] sm:$0xff] }
 0x128   :  { %1020 = vmatprep.subr.mxu1 %v6450_v59  ;;  %10140 = vst [vmem:[#allocation79_spill] sm:$0xff] %v6466_v55  ;;  %10141 = vst [vmem:[#allocation80_spill] sm:$0xff] %v6468_v0  ;;  %952 = vmatpush1.msra.mxu0 %v6466_v55  ;;  %v6472_v59 = vld [vmem:[#allocation10 + $0xe8] sm:$0xff]  ;;  %v6480_v58 = vld [vmem:[#allocation10 + $0xf0] sm:$0xff] }
 0x129   :  { %1021 = vmatpush1.msra.mxu1 %v6456_v57  ;;  %10142 = vst [vmem:[#allocation81_spill] sm:$0xff] %v6472_v59  ;;  %10143 = vst [vmem:[#allocation82_spill] sm:$0xff] %v6474_v56  ;;  %953 = vmatprep.subr.mxu0 %v6472_v59  ;;  %v6478_v57 = vld [vmem:[#allocation10 + $0xe0] sm:$0xff]  ;;  %v6486_v55 = vld [vmem:[#allocation10 + $0xd8] sm:$0xff] }
 0x12a   :  { %1022 = vmatprep.subr.mxu1 %v6462_v4  ;;  %10144 = vst [vmem:[#allocation83_spill] sm:$0xff] %v6478_v57  ;;  %10145 = vst [vmem:[#allocation84_spill] sm:$0xff] %v6480_v58  ;;  %954 = vmatpush1.msra.mxu0 %v6478_v57  ;;  %v6484_v4 = vld [vmem:[#allocation10 + $0xc8] sm:$0xff]  ;;  %v6492_v59 = vld [vmem:[#allocation10 + $0xd0] sm:$0xff] }
 0x12b   :  { %1023 = vmatpush1.msra.mxu1 %v6468_v0  ;;  %10146 = vst [vmem:[#allocation85_spill] sm:$0xff] %v6484_v4  ;;  %10147 = vst [vmem:[#allocation86_spill] sm:$0xff] %v6486_v55  ;;  %955 = vmatprep.subr.mxu0 %v6484_v4  ;;  %v6490_v0 = vld [vmem:[#allocation10 + $0xc0] sm:$0xff]  ;;  %v6498_v57 = vld [vmem:[#allocation10 + $0xb8] sm:$0xff] }
 0x12c   :  { %1024 = vmatprep.subr.mxu1 %v6474_v56  ;;  %10148 = vst [vmem:[#allocation87_spill] sm:$0xff] %v6490_v0  ;;  %10149 = vst [vmem:[#allocation88_spill] sm:$0xff] %v6492_v59  ;;  %956 = vmatpush1.msra.mxu0 %v6490_v0  ;;  %v6496_v56 = vld [vmem:[#allocation10 + $0xa8] sm:$0xff]  ;;  %v6504_v4 = vld [vmem:[#allocation10 + $0xb0] sm:$0xff] }
 0x12d   :  { %1025 = vmatpush1.msra.mxu1 %v6480_v58  ;;  %10150 = vst [vmem:[#allocation89_spill] sm:$0xff] %v6496_v56  ;;  %10151 = vst [vmem:[#allocation90_spill] sm:$0xff] %v6498_v57  ;;  %957 = vmatprep.subr.mxu0 %v6496_v56  ;;  %v6502_v58 = vld [vmem:[#allocation10 + $0xa0] sm:$0xff]  ;;  %v6510_v0 = vld [vmem:[#allocation10 + $0x98] sm:$0xff] }
 0x12e   :  { %1026 = vmatprep.subr.mxu1 %v6486_v55  ;;  %10152 = vst [vmem:[#allocation91_spill] sm:$0xff] %v6502_v58  ;;  %10153 = vst [vmem:[#allocation92_spill] sm:$0xff] %v6504_v4  ;;  %958 = vmatpush1.msra.mxu0 %v6502_v58  ;;  %v6508_v55 = vld [vmem:[#allocation10 + $0x88] sm:$0xff]  ;;  %v6516_v56 = vld [vmem:[#allocation10 + $0x90] sm:$0xff] }
 0x12f   :  { %1027 = vmatpush1.msra.mxu1 %v6492_v59  ;;  %10154 = vst [vmem:[#allocation93_spill] sm:$0xff] %v6508_v55  ;;  %10155 = vst [vmem:[#allocation94_spill] sm:$0xff] %v6510_v0  ;;  %959 = vmatprep.subr.mxu0 %v6508_v55  ;;  %v6514_v59 = vld [vmem:[#allocation10 + $0x80] sm:$0xff]  ;;  %v6522_v58 = vld [vmem:[#allocation10 + $0x78] sm:$0xff] }
 0x130   :  { %1028 = vmatprep.subr.mxu1 %v6498_v57  ;;  %10156 = vst [vmem:[#allocation95_spill] sm:$0xff] %v6514_v59  ;;  %10157 = vst [vmem:[#allocation96_spill] sm:$0xff] %v6516_v56  ;;  %960 = vmatpush1.msra.mxu0 %v6514_v59  ;;  %v6520_v57 = vld [vmem:[#allocation10 + $0x68] sm:$0xff]  ;;  %v6528_v55 = vld [vmem:[#allocation10 + $0x70] sm:$0xff] }
 0x131   :  { %1029 = vmatpush1.msra.mxu1 %v6504_v4  ;;  %10158 = vst [vmem:[#allocation97_spill] sm:$0xff] %v6520_v57  ;;  %10159 = vst [vmem:[#allocation98_spill] sm:$0xff] %v6522_v58  ;;  %961 = vmatprep.subr.mxu0 %v6520_v57  ;;  %v6526_v4 = vld [vmem:[#allocation10 + $0x60] sm:$0xff]  ;;  %v6534_v59 = vld [vmem:[#allocation10 + $0x58] sm:$0xff] }
 0x132   :  { %1030 = vmatprep.subr.mxu1 %v6510_v0  ;;  %10160 = vst [vmem:[#allocation99_spill] sm:$0xff] %v6526_v4  ;;  %10161 = vst [vmem:[#allocation100_spill] sm:$0xff] %v6528_v55  ;;  %962 = vmatpush1.msra.mxu0 %v6526_v4  ;;  %v6532_v0 = vld [vmem:[#allocation10 + $0x48] sm:$0xff]  ;;  %v6540_v57 = vld [vmem:[#allocation10 + $0x50] sm:$0xff] }
 0x133   :  { %1031 = vmatpush1.msra.mxu1 %v6516_v56  ;;  %10162 = vst [vmem:[#allocation101_spill] sm:$0xff] %v6532_v0  ;;  %10163 = vst [vmem:[#allocation102_spill] sm:$0xff] %v6534_v59  ;;  %963 = vmatprep.subr.mxu0 %v6532_v0  ;;  %v6538_v56 = vld [vmem:[#allocation10 + $0x40] sm:$0xff]  ;;  %v6546_v4 = vld [vmem:[#allocation10 + $0x38] sm:$0xff] }
 0x134   :  { %1032 = vmatprep.subr.mxu1 %v6522_v58  ;;  %10164 = vst [vmem:[#allocation103_spill] sm:$0xff] %v6538_v56  ;;  %10165 = vst [vmem:[#allocation104_spill] sm:$0xff] %v6540_v57  ;;  %964 = vmatpush1.msra.mxu0 %v6538_v56  ;;  %v6544_v58 = vld [vmem:[#allocation10 + $0x28] sm:$0xff]  ;;  %v6552_v0 = vld [vmem:[#allocation10 + $0x30] sm:$0xff] }
 0x135   :  { %1033 = vmatpush1.msra.mxu1 %v6528_v55  ;;  %10166 = vst [vmem:[#allocation105_spill] sm:$0xff] %v6544_v58  ;;  %10167 = vst [vmem:[#allocation106_spill] sm:$0xff] %v6546_v4  ;;  %965 = vmatprep.subr.mxu0 %v6544_v58  ;;  %v6550_v55 = vld [vmem:[#allocation10 + $0x20] sm:$0xff]  ;;  %v6558_v56 = vld [vmem:[#allocation10 + $0x18] sm:$0xff] }
 0x136   :  { %1034 = vmatprep.subr.mxu1 %v6534_v59  ;;  %10168 = vst [vmem:[#allocation107_spill] sm:$0xff] %v6550_v55  ;;  %10169 = vst [vmem:[#allocation108_spill] sm:$0xff] %v6552_v0  ;;  %966 = vmatpush1.msra.mxu0 %v6550_v55  ;;  %v6556_v59 = vld [vmem:[#allocation10 + $0x8] sm:$0xff]  ;;  %v6564_v58 = vld [vmem:[#allocation10 + $0x10] sm:$0xff] }
 0x137   :  { %1035 = vmatpush1.msra.mxu1 %v6540_v57  ;;  %10170 = vst [vmem:[#allocation109_spill] sm:$0xff] %v6556_v59  ;;  %10171 = vst [vmem:[#allocation110_spill] sm:$0xff] %v6558_v56  ;;  %967 = vmatprep.subr.mxu0 %v6556_v59  ;;  %v6562_v57 = vld [vmem:[#allocation10] sm:$0xff]  ;;  %v6570_v55 = vld [vmem:[#allocation10 + $0x3f8] sm:$0xff] }
 0x138   :  { %1036 = vmatprep.subr.mxu1 %v6546_v4  ;;  %10172 = vst [vmem:[#allocation111_spill] sm:$0xff] %v6562_v57  ;;  %10173 = vst [vmem:[#allocation112_spill] sm:$0xff] %v6564_v58  ;;  %v6566_v4 = vld [vmem:[#allocation10 + $0x3e8] sm:$0xff]  ;;  %968 = vmatpush1.msra.mxu0 %v6562_v57  ;;  %v6580_v59 = vld [vmem:[#allocation10 + $0x3d8] sm:$0xff] }
 0x139   :  { %1037 = vmatpush1.msra.mxu1 %v6552_v0  ;;  %10174 = vst [vmem:[#allocation113_spill] sm:$0xff] %v6566_v4  ;;  %10175 = vst [vmem:[#allocation114_spill] sm:$0xff] %v6570_v55  ;;  %v6572_v0 = vld [vmem:[#allocation10 + $0x3e0] sm:$0xff]  ;;  %969 = vmatprep.subr.mxu0 %v6566_v4  ;;  %v6588_v57 = vld [vmem:[#allocation10 + $0x3a8] sm:$0xff] }
 0x13a   :  { %1038 = vmatprep.subr.mxu1 %v6558_v56  ;;  %10176 = vst [vmem:[#allocation115_spill] sm:$0xff] %v6572_v0  ;;  %10177 = vst [vmem:[#allocation116_spill] sm:$0xff] %v6574_v2  ;;  %v6578_v56 = vld [vmem:[#allocation10 + $0x3c8] sm:$0xff]  ;;  %970 = vmatpush2.msra.mxu0 %v6572_v0  ;;  %v6598_v0 = vld [vmem:[#allocation10 + $0x3a0] sm:$0xff] }
 0x13b   :  { %1039 = vmatpush1.msra.mxu1 %v6564_v58  ;;  %10178 = vst [vmem:[#allocation117_spill] sm:$0xff] %v6578_v56  ;;  %10179 = vst [vmem:[#allocation118_spill] sm:$0xff] %v6580_v59  ;;  %v6586_v58 = vld [vmem:[#allocation10 + $0x3d0] sm:$0xff]  ;;  %971 = vmatprep.subr.mxu0 %v6578_v56  ;;  %v6606_v56 = vld [vmem:[#allocation10 + $0x398] sm:$0xff] }
 0x13c   :  { %1040 = vmatprep.subr.mxu1 %v6570_v55  ;;  %10180 = vst [vmem:[#allocation119_spill] sm:$0xff] %v6582_v63  ;;  %10181 = vst [vmem:[#allocation120_spill] sm:$0xff] %v6586_v58  ;;  %972 = vmatpush2.msra.mxu0 %v6582_v63  ;;  %v6604_v55 = vld [vmem:[#allocation10 + $0x388] sm:$0xff]  ;;  %v6670_v63 = vld [vmem:[#allocation10 + $0x2f0] sm:$0xff] }
 0x13d   :  { %1041 = vmatpush2.msra.mxu1 %v6574_v2  ;;  %10182 = vst [vmem:[#allocation121_spill] sm:$0xff] %v6588_v57  ;;  %10183 = vst [vmem:[#allocation122_spill] sm:$0xff] %v6590_v14  ;;  %973 = vmatprep.subr.mxu0 %v6588_v57  ;;  %v6600_v2 = vld [vmem:[#allocation10 + $0x3b0] sm:$0xff]  ;;  %v6686_v4 = vld [vmem:[#allocation10 + $0x2b8] sm:$0xff] }
 0x13e   :  { %1042 = vmatprep.subr.mxu1 %v6580_v59  ;;  %10184 = vst [vmem:[#allocation123_spill] sm:$0xff] %v6598_v0  ;;  %10185 = vst [vmem:[#allocation124_spill] sm:$0xff] %v6600_v2  ;;  %974 = vmatpush2.msra.mxu0 %v6598_v0  ;;  %v6612_v57 = vld [vmem:[#allocation10 + $0x390] sm:$0xff]  ;;  %v6618_v0 = vld [vmem:[#allocation10 + $0x378] sm:$0xff] }
 0x13f   :  { %1043 = vmatpush2.msra.mxu1 %v6586_v58  ;;  %10186 = vst [vmem:[#allocation125_spill] sm:$0xff] %v6604_v55  ;;  %10187 = vst [vmem:[#allocation126_spill] sm:$0xff] %v6606_v56  ;;  %975 = vmatprep.subr.mxu0 %v6604_v55  ;;  %v6610_v58 = vld [vmem:[#allocation10 + $0x380] sm:$0xff]  ;;  %v6624_v55 = vld [vmem:[#allocation10 + $0x370] sm:$0xff] }
 0x140   :  { %1044 = vmatprep.subr.mxu1 %v6590_v14  ;;  %10188 = vst [vmem:[#allocation127_spill] sm:$0xff] %v6610_v58  ;;  %10189 = vst [vmem:[#allocation128_spill] sm:$0xff] %v6612_v57  ;;  %976 = vmatpush2.msra.mxu0 %v6610_v58  ;;  %v6616_v14 = vld [vmem:[#allocation10 + $0x368] sm:$0xff]  ;;  %v6630_v58 = vld [vmem:[#allocation10 + $0x358] sm:$0xff] }
 0x141   :  { %1045 = vmatpush2.msra.mxu1 %v6600_v2  ;;  %10190 = vst [vmem:[#allocation129_spill] sm:$0xff] %v6616_v14  ;;  %10191 = vst [vmem:[#allocation130_spill] sm:$0xff] %v6618_v0  ;;  %977 = vmatprep.subr.mxu0 %v6616_v14  ;;  %v6622_v2 = vld [vmem:[#allocation10 + $0x360] sm:$0xff]  ;;  %v6636_v14 = vld [vmem:[#allocation10 + $0x350] sm:$0xff] }
 0x142   :  { %1046 = vmatprep.subr.mxu1 %v6606_v56  ;;  %10192 = vst [vmem:[#allocation131_spill] sm:$0xff] %v6622_v2  ;;  %10193 = vst [vmem:[#allocation132_spill] sm:$0xff] %v6624_v55  ;;  %978 = vmatpush2.msra.mxu0 %v6622_v2  ;;  %v6628_v56 = vld [vmem:[#allocation10 + $0x348] sm:$0xff]  ;;  %v6642_v2 = vld [vmem:[#allocation10 + $0x338] sm:$0xff] }
 0x143   :  { %1047 = vmatpush2.msra.mxu1 %v6612_v57  ;;  %10194 = vst [vmem:[#allocation133_spill] sm:$0xff] %v6628_v56  ;;  %10195 = vst [vmem:[#allocation134_spill] sm:$0xff] %v6630_v58  ;;  %979 = vmatprep.subr.mxu0 %v6628_v56  ;;  %v6634_v57 = vld [vmem:[#allocation10 + $0x340] sm:$0xff]  ;;  %v6648_v56 = vld [vmem:[#allocation10 + $0x330] sm:$0xff] }
 0x144   :  { %1048 = vmatprep.subr.mxu1 %v6618_v0  ;;  %10196 = vst [vmem:[#allocation135_spill] sm:$0xff] %v6634_v57  ;;  %10197 = vst [vmem:[#allocation136_spill] sm:$0xff] %v6636_v14  ;;  %980 = vmatpush2.msra.mxu0 %v6634_v57  ;;  %v6640_v0 = vld [vmem:[#allocation10 + $0x328] sm:$0xff]  ;;  %v6654_v57 = vld [vmem:[#allocation10 + $0x318] sm:$0xff] }
 0x145   :  { %1049 = vmatpush2.msra.mxu1 %v6624_v55  ;;  %10198 = vst [vmem:[#allocation137_spill] sm:$0xff] %v6640_v0  ;;  %10199 = vst [vmem:[#allocation138_spill] sm:$0xff] %v6642_v2  ;;  %981 = vmatprep.subr.mxu0 %v6640_v0  ;;  %v6646_v55 = vld [vmem:[#allocation10 + $0x320] sm:$0xff]  ;;  %v6660_v0 = vld [vmem:[#allocation10 + $0x310] sm:$0xff] }
 0x146   :  { %1050 = vmatprep.subr.mxu1 %v6630_v58  ;;  %10200 = vst [vmem:[#allocation139_spill] sm:$0xff] %v6646_v55  ;;  %10201 = vst [vmem:[#allocation140_spill] sm:$0xff] %v6648_v56  ;;  %982 = vmatpush2.msra.mxu0 %v6646_v55  ;;  %v6652_v58 = vld [vmem:[#allocation10 + $0x308] sm:$0xff]  ;;  %v6666_v55 = vld [vmem:[#allocation10 + $0x2f8] sm:$0xff] }
 0x147   :  { %1051 = vmatpush2.msra.mxu1 %v6636_v14  ;;  %10202 = vst [vmem:[#allocation141_spill] sm:$0xff] %v6652_v58  ;;  %10203 = vst [vmem:[#allocation142_spill] sm:$0xff] %v6654_v57  ;;  %983 = vmatprep.subr.mxu0 %v6652_v58  ;;  %v6658_v14 = vld [vmem:[#allocation10 + $0x300] sm:$0xff]  ;;  %v6676_v58 = vld [vmem:[#allocation10 + $0x2d8] sm:$0xff] }
 0x148   :  { %1052 = vmatprep.subr.mxu1 %v6642_v2  ;;  %10204 = vst [vmem:[#allocation143_spill] sm:$0xff] %v6658_v14  ;;  %10205 = vst [vmem:[#allocation144_spill] sm:$0xff] %v6660_v0  ;;  %v6662_v2 = vld [vmem:[#allocation10 + $0x2e8] sm:$0xff]  ;;  %984 = vmatpush2.msra.mxu0 %v6658_v14  ;;  %v6678_v59 = vld [vmem:[#allocation10 + $0x2c0] sm:$0xff] }
 0x149   :  { %1053 = vmatpush2.msra.mxu1 %v6648_v56  ;;  %10206 = vst [vmem:[#allocation145_spill] sm:$0xff] %v6662_v2  ;;  %10207 = vst [vmem:[#allocation146_spill] sm:$0xff] %v6666_v55  ;;  %v6668_v56 = vld [vmem:[#allocation10 + $0x2e0] sm:$0xff]  ;;  %985 = vmatprep.subr.mxu0 %v6662_v2  ;;  %v6684_v14 = vld [vmem:[#allocation10 + $0x2a8] sm:$0xff] }
 0x14a   :  { %1054 = vmatprep.subr.mxu1 %v6654_v57  ;;  %10208 = vst [vmem:[#allocation147_spill] sm:$0xff] %v6668_v56  ;;  %10209 = vst [vmem:[#allocation148_spill] sm:$0xff] %v6670_v63  ;;  %v6674_v57 = vld [vmem:[#allocation10 + $0x2c8] sm:$0xff]  ;;  %986 = vmatpush2.msra.mxu0 %v6668_v56  ;;  %v6692_v2 = vld [vmem:[#allocation10 + $0x2b0] sm:$0xff] }
 0x14b   :  { %1055 = vmatpush2.msra.mxu1 %v6660_v0  ;;  %10210 = vst [vmem:[#allocation149_spill] sm:$0xff] %v6674_v57  ;;  %10211 = vst [vmem:[#allocation150_spill] sm:$0xff] %v6676_v58  ;;  %v6682_v0 = vld [vmem:[#allocation10 + $0x2d0] sm:$0xff]  ;;  %987 = vmatprep.subr.mxu0 %v6674_v57  ;;  %v6696_v56 = vld [vmem:[#allocation10 + $0x288] sm:$0xff] }
 0x14c   :  { %1056 = vmatprep.subr.mxu1 %v6666_v55  ;;  %10212 = vst [vmem:[#allocation151_spill] sm:$0xff] %v6678_v59  ;;  %10213 = vst [vmem:[#allocation152_spill] sm:$0xff] %v6682_v0  ;;  %v6690_v55 = vld [vmem:[#allocation10 + $0x2a0] sm:$0xff]  ;;  %988 = vmatpush2.msra.mxu0 %v6678_v59  ;;  %v6704_v57 = vld [vmem:[#allocation10 + $0x290] sm:$0xff] }
 0x14d   :  { %1057 = vmatpush2.msra.mxu1 %v6670_v63  ;;  %10214 = vst [vmem:[#allocation153_spill] sm:$0xff] %v6684_v14  ;;  %10215 = vst [vmem:[#allocation154_spill] sm:$0xff] %v6686_v4  ;;  %v6698_v63 = vld [vmem:[#allocation10 + $0x298] sm:$0xff]  ;;  %989 = vmatprep.subr.mxu0 %v6684_v14  ;;  %v6716_v14 = vld [vmem:[#allocation10 + $0x270] sm:$0xff] }
 0x14e   :  { %1058 = vmatprep.subr.mxu1 %v6676_v58  ;;  %10216 = vst [vmem:[#allocation155_spill] sm:$0xff] %v6690_v55  ;;  %10217 = vst [vmem:[#allocation156_spill] sm:$0xff] %v6692_v2  ;;  %990 = vmatpush2.msra.mxu0 %v6690_v55  ;;  %v6708_v58 = vld [vmem:[#allocation10 + $0x268] sm:$0xff]  ;;  %v6710_v59 = vld [vmem:[#allocation10 + $0x278] sm:$0xff] }
 0x14f   :  { %1059 = vmatpush2.msra.mxu1 %v6682_v0  ;;  %10218 = vst [vmem:[#allocation157_spill] sm:$0xff] %v6696_v56  ;;  %10219 = vst [vmem:[#allocation158_spill] sm:$0xff] %v6698_v63  ;;  %991 = vmatprep.subr.mxu0 %v6696_v56  ;;  %v6714_v0 = vld [vmem:[#allocation10 + $0x260] sm:$0xff]  ;;  %v6722_v55 = vld [vmem:[#allocation10 + $0x258] sm:$0xff] }
 0x150   :  { %1060 = vmatprep.subr.mxu1 %v6686_v4  ;;  %10221 = vst [vmem:[#allocation160_spill] sm:$0xff] %v6704_v57  ;;  %10222 = vst [vmem:[#allocation161_spill] sm:$0xff] %v6708_v58  ;;  %992 = vmatpush2.msra.mxu0 %v6702_v54  ;;  %v6720_v4 = vld [vmem:[#allocation10 + $0x248] sm:$0xff]  ;;  %v6728_v56 = vld [vmem:[#allocation10 + $0x250] sm:$0xff] }
 0x151   :  { %1061 = vmatpush2.msra.mxu1 %v6692_v2  ;;  %10223 = vst [vmem:[#allocation162_spill] sm:$0xff] %v6710_v59  ;;  %10224 = vst [vmem:[#allocation163_spill] sm:$0xff] %v6714_v0  ;;  %993 = vmatprep.subr.mxu0 %v6708_v58  ;;  %v6726_v2 = vld [vmem:[#allocation10 + $0x240] sm:$0xff]  ;;  %v6734_v54 = vld [vmem:[#allocation10 + $0x238] sm:$0xff] }
 0x152   :  { %1062 = vmatprep.subr.mxu1 %v6698_v63  ;;  %10225 = vst [vmem:[#allocation164_spill] sm:$0xff] %v6716_v14  ;;  %10226 = vst [vmem:[#allocation165_spill] sm:$0xff] %v6720_v4  ;;  %994 = vmatpush2.msra.mxu0 %v6714_v0  ;;  %v6732_v63 = vld [vmem:[#allocation10 + $0x228] sm:$0xff]  ;;  %v6740_v58 = vld [vmem:[#allocation10 + $0x230] sm:$0xff] }
 0x153   :  { %1063 = vmatpush2.msra.mxu1 %v6704_v57  ;;  %10227 = vst [vmem:[#allocation166_spill] sm:$0xff] %v6722_v55  ;;  %10228 = vst [vmem:[#allocation167_spill] sm:$0xff] %v6726_v2  ;;  %995 = vmatprep.subr.mxu0 %v6720_v4  ;;  %v6738_v57 = vld [vmem:[#allocation10 + $0x220] sm:$0xff]  ;;  %v6746_v0 = vld [vmem:[#allocation10 + $0x218] sm:$0xff] }
 0x154   :  { %1064 = vmatprep.subr.mxu1 %v6710_v59  ;;  %10229 = vst [vmem:[#allocation168_spill] sm:$0xff] %v6728_v56  ;;  %10230 = vst [vmem:[#allocation169_spill] sm:$0xff] %v6732_v63  ;;  %996 = vmatpush2.msra.mxu0 %v6726_v2  ;;  %v6744_v59 = vld [vmem:[#allocation10 + $0x208] sm:$0xff]  ;;  %v6752_v4 = vld [vmem:[#allocation10 + $0x210] sm:$0xff] }
 0x155   :  { %1065 = vmatpush2.msra.mxu1 %v6716_v14  ;;  %10231 = vst [vmem:[#allocation170_spill] sm:$0xff] %v6734_v54  ;;  %10232 = vst [vmem:[#allocation171_spill] sm:$0xff] %v6738_v57  ;;  %997 = vmatprep.subr.mxu0 %v6732_v63  ;;  %v6750_v14 = vld [vmem:[#allocation10 + $0x200] sm:$0xff]  ;;  %v10238_v63 = vmov 0.0  }
 0x156   :  { %1066 = vmatprep.subr.mxu1 %v6722_v55  ;;  %10233 = vst [vmem:[#allocation172_spill] sm:$0xff] %v6740_v58  ;;  %10234 = vst [vmem:[#allocation173_spill] sm:$0xff] %v6744_v59  ;;  %998 = vmatpush2.msra.mxu0 %v6738_v57 }
 0x157   :  { %1067 = vmatpush2.msra.mxu1 %v6728_v56  ;;  %10235 = vst [vmem:[#allocation174_spill] sm:$0xff] %v6746_v0  ;;  %10236 = vst [vmem:[#allocation175_spill] sm:$0xff] %v6750_v14  ;;  %999 = vmatprep.subr.mxu0 %v6744_v59  ;;  %v5988_v56 = vmov 0   ;;  %v6769_v59 = vpop.f32.mrf.mxu1 }
 0x158   :  { %1068 = vmatprep.subr.mxu1 %v6734_v54  ;;  %10237 = vst [vmem:[#allocation176_spill] sm:$0xff] %v6752_v4  ;;  %1000 = vmatpush2.msra.mxu0 %v6750_v14  ;;  %v4922_v54 = vld [vmem:[%s9492_s0] sm:$0xff]  ;;  %10239 = vst [vmem:[#allocation177_spill] sm:$0xff] %v6769_v59 }
 0x159   :  { %1069 = vmatpush2.msra.mxu1 %v6740_v58  ;;  %1170 = vmatprep.subr.mxu0 %v6087_v17  ;;  %v557_v17 = vadd.f32 %v6275_v25, %v6301_v12 }
 0x15a   :  { %1070 = vmatprep.subr.mxu1 %v6746_v0  ;;  %5708 = vset.pattern.permute.xlu0 %v5988_v56  ;;  %v608_v0 = vld [vmem:[%s9499_s7] sm:$0x7] }
 0x15b   :  { %1071 = vmatpush2.msra.mxu1 %v6752_v4  ;;  %5709 = vset.pattern.permute.xlu1 %v5988_v56  ;;  %v613_v14 = vrot.slane %v608_v0, %v6240_v1  ;;  %v617_v57 = vrot.slane %v608_v0, %v6266_v15  ;;  %v621_v25 = vrot.slane %v608_v0, %v6254_v9  ;;  %v6834_v0 = vld [vmem:[#allocation9 + $0x20] sm:$0xff] }
 0x15c   :  { %5405 = vmatprep.subr.mxu1 %v10238_v63  ;;  %4932 = vperm.xlu0 %5708, %v4922_v54   ;;  %v558_v54 = vadd.f32 %v6281_v33, %v6287_v53  ;;  %v7202_v53 = vld [vmem:[#allocation10 + $0x1b8] sm:$0xff] }
 0x1bc   :  { %v691_v4 = vpop.f32.mrf.mxu1 }
 0x1bd   :  { %v692_v58 = vadd.f32 %v691_v4, %v613_v14 }
 0x1be   :  { %v693_v2 = vpop.f32.mrf.mxu1 }
 0x1bf   :  { %v766_v55 = vadd.f32 %v692_v58, %v557_v17  ;;  %v694_v56 = vadd.f32 %v693_v2, %v617_v57  ;;  %v10281_v17 = vld [vmem:[#allocation83_spill] sm:$0xff] }
 0x1c1   :  { %v5151_v61 = vmul.f32 -1.442695, %v766_v55  ;;  %v773_v60 = vadd.f32 %v694_v56, %v558_v54  ;;  %v559_v55 = vadd.f32 %v6295_v3, %v6269_v18  ;;  %v10272_v3 = vld [vmem:[#allocation74_spill] sm:$0xff]  ;;  %v10282_v56 = vld [vmem:[#allocation84_spill] sm:$0xff]  ;;  %v10283_v54 = vld [vmem:[#allocation85_spill] sm:$0xff] }
 0x1c2   :  { %v7206_v18 = vld [vmem:[#allocation10 + $0x1a0] sm:$0xff] }
 0x1c3   :  { %5710 = vpow2.f32 %v5151_v61  ;;  %v5152_v51 = vmul.f32 -1.442695, %v773_v60 }
 0x1c5   :  { %5712 = vpow2.f32 %v5152_v51 }
 0x1d0   :  { %v5711_v1 = vpop.eup %5710 }
 0x1d1   :  { %v770_v59 = vadd.f32 1.0, %v5711_v1 }
 0x1d2   :  { %v5713_v50 = vpop.eup %5712 }
 0x1d3   :  { %5714 = vrcp.f32 %v770_v59  ;;  %v777_v4 = vadd.f32 1.0, %v5713_v50  ;;  %v10264_v50 = vld [vmem:[#allocation66_spill] sm:$0xff] }
 0x1d5   :  { %5716 = vrcp.f32 %v777_v4  ;;  %v10286_v4 = vld [vmem:[#allocation88_spill] sm:$0xff] }
 0x1dc   :  { %v762_v14 = vpop.f32.mrf.mxu1 }
 0x1dd   :  { %v763_v15 = vadd.f32 %v762_v14, %v621_v25  ;;  %v10284_v25 = vld [vmem:[#allocation86_spill] sm:$0xff]  ;;  %v10285_v14 = vld [vmem:[#allocation87_spill] sm:$0xff] }
 0x1de   :  { %v5404_v12 = vpop.f32.mrf.mxu1 }
 0x1df   :  { %v10274_v12 = vld [vmem:[#allocation76_spill] sm:$0xff] }
 0x1e0   :  { %v5715_v58 = vpop.eup %5714 }
 0x1e1   :  { %v780_v57 = vmul.f32 %v5715_v58, %v763_v15  ;;  %v10268_v15 = vld [vmem:[#allocation70_spill] sm:$0xff]  ;;  %v10287_v58 = vld [vmem:[#allocation89_spill] sm:$0xff] }
 0x1e2   :  { %v5717_v61 = vpop.eup %5716 }
 0x1e3   :  { %v781_v33 = vadd.f32 %v780_v57, %v559_v55  ;;  %v783_v51 = vsub.f32 1.0, %v5717_v61  ;;  %v785_v2 = vmul.f32 %v5717_v61, %v6248_v6  ;;  %v10288_v55 = vld [vmem:[#allocation90_spill] sm:$0xff]  ;;  %v10289_v57 = vld [vmem:[#allocation91_spill] sm:$0xff]  ;;  %v10291_v61 = vld [vmem:[#allocation93_spill] sm:$0xff] }
 0x1e5   :  { %5718 = vtanh.f32 %v781_v33  ;;  %v10290_v33 = vld [vmem:[#allocation92_spill] sm:$0xff] }
 0x1f2   :  { %v5719_v60 = vpop.eup %5718 }
 0x1f3   :  { %v784_v1 = vmul.f32 %v5719_v60, %v783_v51  ;;  %v10292_v51 = vld [vmem:[#allocation94_spill] sm:$0xff]  ;;  %v10293_v60 = vld [vmem:[#allocation95_spill] sm:$0xff] }
 0x1f5   :  { %v6780_v59 = vadd.f32 %v785_v2, %v784_v1  ;;  %v10294_v1 = vld [vmem:[#allocation96_spill] sm:$0xff]  ;;  %v10295_v2 = vld [vmem:[#allocation97_spill] sm:$0xff] }
 0x1f7   :  { %1002 = vmatmul.mubr.f32.vlgmr.msra.gmra.mxu0 %v6780_v59  ;;  %1073 = vmatmul.mubr.f32.vlgmr.msra.gmra.mxu1 %v6780_v59 }
 0x1f8   :  { %1171 = vmatpush1.msra.mxu0 %v6093_v19  ;;  %5406 = vmatpush3.msra.mxu1 %v6250_v7  ;;  %v10240_v19 = vld [vmem:[#allocation17_spill] sm:$0xff]  ;;  %v10265_v7 = vld [vmem:[#allocation67_spill] sm:$0xff] }
 0x1f9   :  { %1172 = vmatprep.subr.mxu0 %v6100_v21  ;;  %5407 = vmatprep.subr.mxu1 %v10238_v63  ;;  %v6838_v21 = vld [vmem:[#allocation9 + $0x18] sm:$0xff] }
 0x1fa   :  { %1173 = vmatpush1.msra.mxu0 %v6103_v22  ;;  %5408 = vmatpush3.msra.mxu1 %v6256_v10  ;;  %v10241_v22 = vld [vmem:[#allocation18_spill] sm:$0xff]  ;;  %v10266_v10 = vld [vmem:[#allocation68_spill] sm:$0xff] }
 0x1fb   :  { %1174 = vmatprep.subr.mxu0 %v6107_v23  ;;  %5409 = vmatprep.subr.mxu1 %v10238_v63  ;;  %v10242_v23 = vld [vmem:[#allocation47_spill] sm:$0xff] }
 0x1fc   :  { %1175 = vmatpush1.msra.mxu0 %v6111_v24  ;;  %5410 = vmatpush3.msra.mxu1 %v6263_v13  ;;  %v10243_v24 = vld [vmem:[#allocation49_spill] sm:$0xff] }
 0x1fd   :  { %1176 = vmatprep.subr.mxu0 %v6118_v26  ;;  %5411 = vmatprep.subr.mxu1 %v10238_v63  ;;  %v10244_v26 = vld [vmem:[#allocation19_spill] sm:$0xff]  ;;  %v10267_v13 = vld [vmem:[#allocation69_spill] sm:$0xff] }
 0x1fe   :  { %1177 = vmatpush1.msra.mxu0 %v6124_v28  ;;  %5412 = vmatpush3.msra.mxu1 %v6272_v20  ;;  %v10245_v28 = vld [vmem:[#allocation20_spill] sm:$0xff]  ;;  %v10269_v20 = vld [vmem:[#allocation71_spill] sm:$0xff] }
 0x1ff   :  { %1178 = vmatprep.subr.mxu0 %v6128_v29  ;;  %5413 = vmatprep.subr.mxu1 %v10238_v63  ;;  %v10246_v29 = vld [vmem:[#allocation51_spill] sm:$0xff] }
 0x200   :  { %1179 = vmatpush1.msra.mxu0 %v6133_v30  ;;  %5414 = vmatpush3.msra.mxu1 %v6278_v27  ;;  %v10247_v30 = vld [vmem:[#allocation21_spill] sm:$0xff]  ;;  %v10270_v27 = vld [vmem:[#allocation72_spill] sm:$0xff] }
 0x201   :  { %1180 = vmatprep.subr.mxu0 %v6140_v32  ;;  %5415 = vmatprep.subr.mxu1 %v10238_v63  ;;  %v10248_v32 = vld [vmem:[#allocation52_spill] sm:$0xff] }
 0x202   :  { %1181 = vmatpush1.msra.mxu0 %v6146_v34  ;;  %5416 = vmatpush3.msra.mxu1 %v6290_v62  ;;  %v10249_v34 = vld [vmem:[#allocation22_spill] sm:$0xff]  ;;  %v10271_v62 = vld [vmem:[#allocation73_spill] sm:$0xff] }
 0x203   :  { %1182 = vmatprep.subr.mxu0 %v6150_v35  ;;  %5417 = vmatprep.subr.mxu1 %v10238_v63  ;;  %v10250_v35 = vld [vmem:[#allocation54_spill] sm:$0xff] }
 0x204   :  { %1183 = vmatpush1.msra.mxu0 %v6155_v36  ;;  %5418 = vmatpush3.msra.mxu1 %v6298_v5  ;;  %v10251_v36 = vld [vmem:[#allocation23_spill] sm:$0xff] }
 0x205   :  { %1184 = vmatprep.subr.mxu0 %v6162_v38  ;;  %5419 = vmatprep.subr.mxu1 %v10238_v63  ;;  %v10252_v38 = vld [vmem:[#allocation55_spill] sm:$0xff] }
 0x206   :  { %1185 = vmatpush1.msra.mxu0 %v6165_v39  ;;  %5420 = vmatpush3.msra.mxu1 %v6307_v16  ;;  %v10253_v39 = vld [vmem:[#allocation24_spill] sm:$0xff]  ;;  %v10273_v5 = vld [vmem:[#allocation75_spill] sm:$0xff]  ;;  %v10275_v16 = vld [vmem:[#allocation77_spill] sm:$0xff] }
 0x207   :  { %1186 = vmatprep.subr.mxu0 %v6169_v40  ;;  %5421 = vmatprep.subr.mxu1 %v10238_v63  ;;  %v10254_v40 = vld [vmem:[#allocation57_spill] sm:$0xff] }
 0x208   :  { %1187 = vmatpush1.msra.mxu0 %v6174_v41  ;;  %5422 = vmatpush3.msra.mxu1 %v6317_v8  ;;  %v10255_v41 = vld [vmem:[#allocation25_spill] sm:$0xff]  ;;  %v10277_v8 = vld [vmem:[#allocation79_spill] sm:$0xff] }
 0x209   :  { %1188 = vmatprep.subr.mxu0 %v6178_v42  ;;  %5423 = vmatprep.subr.mxu1 %v10238_v63  ;;  %v10256_v42 = vld [vmem:[#allocation58_spill] sm:$0xff] }
 0x20a   :  { %1189 = vmatpush1.msra.mxu0 %v6181_v43  ;;  %5424 = vmatpush3.msra.mxu1 %v6327_v31  ;;  %v10257_v43 = vld [vmem:[#allocation26_spill] sm:$0xff] }
 0x20b   :  { %1190 = vmatprep.subr.mxu0 %v6184_v44  ;;  %5425 = vmatprep.subr.mxu1 %v10238_v63  ;;  %v10258_v44 = vld [vmem:[#allocation60_spill] sm:$0xff]  ;;  %v10276_v31 = vld [vmem:[#allocation78_spill] sm:$0xff] }
 0x20c   :  { %1191 = vmatpush1.msra.mxu0 %v6188_v45  ;;  %5426 = vmatpush3.msra.mxu1 %v6337_v52  ;;  %v10259_v45 = vld [vmem:[#allocation61_spill] sm:$0xff]  ;;  %v10278_v52 = vld [vmem:[#allocation80_spill] sm:$0xff] }
 0x20d   :  { %1192 = vmatprep.subr.mxu0 %v6192_v46  ;;  %5427 = vmatprep.subr.mxu1 %v10238_v63  ;;  %v10260_v46 = vld [vmem:[#allocation62_spill] sm:$0xff] }
 0x20e   :  { %1193 = vmatpush1.msra.mxu0 %v6195_v47  ;;  %5428 = vmatpush3.msra.mxu1 %v6347_v37  ;;  %v10261_v47 = vld [vmem:[#allocation63_spill] sm:$0xff]  ;;  %v10279_v37 = vld [vmem:[#allocation81_spill] sm:$0xff] }
 0x20f   :  { %1194 = vmatprep.subr.mxu0 %v6198_v48  ;;  %5429 = vmatprep.subr.mxu1 %v10238_v63  ;;  %v10262_v48 = vld [vmem:[#allocation64_spill] sm:$0xff]  ;;  %10403 = vst [vmem:[#allocation63_spill] sm:$0xff] %v7202_v53 }
 0x210   :  { %1195 = vmatpush1.msra.mxu0 %v6202_v49  ;;  %5430 = vmatpush3.msra.mxu1 %v6357_v11  ;;  %v10263_v49 = vld [vmem:[#allocation65_spill] sm:$0xff]  ;;  %v10280_v11 = vld [vmem:[#allocation82_spill] sm:$0xff]  ;;  %10404 = vst [vmem:[#allocation64_spill] sm:$0xff] %v7206_v18 }
 0x211   :  { %1196 = vmatprep.subr.mxu0 %v10240_v19  ;;  %5431 = vmatprep.subr.mxu1 %v10238_v63  ;;  %v10296_v19 = vld [vmem:[#allocation98_spill] sm:$0xff] }
 0x212   :  { %1197 = vmatpush1.msra.mxu0 %v10241_v22  ;;  %5432 = vmatpush3.msra.mxu1 %v10242_v23  ;;  %v10297_v22 = vld [vmem:[#allocation99_spill] sm:$0xff]  ;;  %v10298_v23 = vld [vmem:[#allocation100_spill] sm:$0xff] }
 0x213   :  { %1198 = vmatprep.subr.mxu0 %v6834_v0  ;;  %5433 = vmatprep.subr.mxu1 %v10238_v63 }
 0x214   :  { %1199 = vmatpush1.msra.mxu0 %v6838_v21  ;;  %5434 = vmatpush3.msra.mxu1 %v10243_v24  ;;  %v10299_v24 = vld [vmem:[#allocation101_spill] sm:$0xff] }
 0x215   :  { %1200 = vmatprep.subr.mxu0 %v10244_v26  ;;  %5435 = vmatprep.subr.mxu1 %v10238_v63  ;;  %v10300_v26 = vld [vmem:[#allocation102_spill] sm:$0xff] }
 0x216   :  { %1201 = vmatpush1.msra.mxu0 %v10245_v28  ;;  %1234 = vmatprep.mubr.f32.mxu0 %v10238_v63  ;;  %v10301_v28 = vld [vmem:[#allocation103_spill] sm:$0xff] }
 0x217   :  { %5436 = vmatpush3.msra.mxu1 %v10246_v29  ;;  %5437 = vmatprep.mubr.msk.f32.mxu1 %vm5987_vm1, %v10238_v63  ;;  %v10302_v29 = vld [vmem:[#allocation104_spill] sm:$0xff] }
 0x218   :  { %1235 = vmatmul.mubr.f32.vlgmr.msra.gmra.mxu0 %v6780_v59  ;;  %5438 = vmatmul.mubr.f32.vlgmr.msra.gmra.mxu1 %v6780_v59 }
 0x219   :  { %1482 = vmatprep.subr.mxu0 %v10247_v30  ;;  %1553 = vmatprep.subr.mxu1 %v10248_v32  ;;  %v10303_v30 = vld [vmem:[#allocation105_spill] sm:$0xff]  ;;  %v10304_v32 = vld [vmem:[#allocation106_spill] sm:$0xff] }
 0x21a   :  { %1483 = vmatpush1.msra.mxu0 %v10249_v34  ;;  %1554 = vmatpush1.msra.mxu1 %v10250_v35  ;;  %v10305_v34 = vld [vmem:[#allocation107_spill] sm:$0xff]  ;;  %v10306_v35 = vld [vmem:[#allocation108_spill] sm:$0xff] }
 0x21b   :  { %1484 = vmatprep.subr.mxu0 %v10251_v36  ;;  %1555 = vmatprep.subr.mxu1 %v10252_v38  ;;  %v10307_v36 = vld [vmem:[#allocation109_spill] sm:$0xff]  ;;  %v10308_v38 = vld [vmem:[#allocation110_spill] sm:$0xff] }
 0x21c   :  { %1485 = vmatpush1.msra.mxu0 %v10253_v39  ;;  %1556 = vmatpush1.msra.mxu1 %v10254_v40  ;;  %v10309_v39 = vld [vmem:[#allocation111_spill] sm:$0xff]  ;;  %v10310_v40 = vld [vmem:[#allocation112_spill] sm:$0xff] }
 0x21d   :  { %1486 = vmatprep.subr.mxu0 %v10255_v41  ;;  %1557 = vmatprep.subr.mxu1 %v10256_v42  ;;  %v10311_v41 = vld [vmem:[#allocation113_spill] sm:$0xff]  ;;  %v10312_v42 = vld [vmem:[#allocation114_spill] sm:$0xff] }
 0x21e   :  { %1487 = vmatpush1.msra.mxu0 %v10257_v43  ;;  %1558 = vmatpush1.msra.mxu1 %v10258_v44  ;;  %v10313_v43 = vld [vmem:[#allocation115_spill] sm:$0xff]  ;;  %v10314_v44 = vld [vmem:[#allocation116_spill] sm:$0xff] }
 0x21f   :  { %1488 = vmatprep.subr.mxu0 %v10259_v45  ;;  %1559 = vmatprep.subr.mxu1 %v10260_v46  ;;  %v10315_v45 = vld [vmem:[#allocation117_spill] sm:$0xff]  ;;  %v10316_v46 = vld [vmem:[#allocation118_spill] sm:$0xff] }
 0x220   :  { %1489 = vmatpush1.msra.mxu0 %v10261_v47  ;;  %1560 = vmatpush1.msra.mxu1 %v10262_v48  ;;  %v10317_v47 = vld [vmem:[#allocation119_spill] sm:$0xff]  ;;  %v10318_v48 = vld [vmem:[#allocation120_spill] sm:$0xff] }
 0x221   :  { %1490 = vmatprep.subr.mxu0 %v10263_v49  ;;  %1561 = vmatprep.subr.mxu1 %v10264_v50  ;;  %v10319_v49 = vld [vmem:[#allocation121_spill] sm:$0xff]  ;;  %v10320_v50 = vld [vmem:[#allocation122_spill] sm:$0xff] }
 0x222   :  { %1491 = vmatpush1.msra.mxu0 %v10265_v7  ;;  %1562 = vmatpush1.msra.mxu1 %v10266_v10  ;;  %v10321_v7 = vld [vmem:[#allocation123_spill] sm:$0xff]  ;;  %v10322_v10 = vld [vmem:[#allocation124_spill] sm:$0xff] }
 0x223   :  { %1492 = vmatprep.subr.mxu0 %v10267_v13  ;;  %1563 = vmatprep.subr.mxu1 %v10268_v15  ;;  %v10323_v13 = vld [vmem:[#allocation125_spill] sm:$0xff]  ;;  %v10324_v15 = vld [vmem:[#allocation126_spill] sm:$0xff] }
 0x224   :  { %1493 = vmatpush1.msra.mxu0 %v10269_v20  ;;  %1564 = vmatpush1.msra.mxu1 %v10270_v27  ;;  %v10325_v20 = vld [vmem:[#allocation127_spill] sm:$0xff]  ;;  %v10326_v27 = vld [vmem:[#allocation128_spill] sm:$0xff] }
 0x225   :  { %1494 = vmatprep.subr.mxu0 %v10271_v62  ;;  %1565 = vmatprep.subr.mxu1 %v10272_v3  ;;  %v10327_v62 = vld [vmem:[#allocation129_spill] sm:$0xff]  ;;  %v10328_v3 = vld [vmem:[#allocation130_spill] sm:$0xff] }
 0x226   :  { %1495 = vmatpush1.msra.mxu0 %v10273_v5  ;;  %1566 = vmatpush1.msra.mxu1 %v10274_v12  ;;  %v10329_v5 = vld [vmem:[#allocation131_spill] sm:$0xff]  ;;  %v10330_v12 = vld [vmem:[#allocation132_spill] sm:$0xff] }
 0x227   :  { %1496 = vmatprep.subr.mxu0 %v10275_v16  ;;  %1567 = vmatprep.subr.mxu1 %v10276_v31  ;;  %v10331_v16 = vld [vmem:[#allocation133_spill] sm:$0xff]  ;;  %v10332_v31 = vld [vmem:[#allocation134_spill] sm:$0xff] }
 0x228   :  { %1497 = vmatpush1.msra.mxu0 %v10277_v8  ;;  %1568 = vmatpush1.msra.mxu1 %v10278_v52  ;;  %v10333_v8 = vld [vmem:[#allocation135_spill] sm:$0xff]  ;;  %v10334_v52 = vld [vmem:[#allocation136_spill] sm:$0xff] }
 0x229   :  { %1498 = vmatprep.subr.mxu0 %v10279_v37  ;;  %1569 = vmatprep.subr.mxu1 %v10280_v11  ;;  %v10335_v37 = vld [vmem:[#allocation137_spill] sm:$0xff]  ;;  %v10336_v11 = vld [vmem:[#allocation138_spill] sm:$0xff] }
 0x22a   :  { %1499 = vmatpush1.msra.mxu0 %v10281_v17  ;;  %1570 = vmatpush1.msra.mxu1 %v10282_v56  ;;  %v10337_v17 = vld [vmem:[#allocation139_spill] sm:$0xff]  ;;  %v10338_v56 = vld [vmem:[#allocation140_spill] sm:$0xff] }
 0x22b   :  { %1500 = vmatprep.subr.mxu0 %v10283_v54  ;;  %1571 = vmatprep.subr.mxu1 %v10284_v25  ;;  %v10339_v54 = vld [vmem:[#allocation141_spill] sm:$0xff]  ;;  %v10340_v25 = vld [vmem:[#allocation142_spill] sm:$0xff] }
 0x22c   :  { %1501 = vmatpush1.msra.mxu0 %v10285_v14  ;;  %1572 = vmatpush1.msra.mxu1 %v10286_v4  ;;  %v10341_v14 = vld [vmem:[#allocation143_spill] sm:$0xff]  ;;  %v10342_v4 = vld [vmem:[#allocation144_spill] sm:$0xff] }
 0x22d   :  { %1502 = vmatprep.subr.mxu0 %v10287_v58  ;;  %1573 = vmatprep.subr.mxu1 %v10288_v55  ;;  %v10343_v58 = vld [vmem:[#allocation145_spill] sm:$0xff]  ;;  %v10344_v55 = vld [vmem:[#allocation146_spill] sm:$0xff] }
 0x22e   :  { %1503 = vmatpush1.msra.mxu0 %v10289_v57  ;;  %1574 = vmatpush1.msra.mxu1 %v10290_v33  ;;  %v10345_v57 = vld [vmem:[#allocation147_spill] sm:$0xff]  ;;  %v10346_v33 = vld [vmem:[#allocation148_spill] sm:$0xff] }
 0x22f   :  { %1504 = vmatprep.subr.mxu0 %v10291_v61  ;;  %1575 = vmatprep.subr.mxu1 %v10292_v51  ;;  %v10347_v61 = vld [vmem:[#allocation149_spill] sm:$0xff]  ;;  %v10348_v51 = vld [vmem:[#allocation150_spill] sm:$0xff] }
 0x230   :  { %1505 = vmatpush1.msra.mxu0 %v10293_v60  ;;  %1576 = vmatpush1.msra.mxu1 %v10294_v1  ;;  %v10349_v60 = vld [vmem:[#allocation151_spill] sm:$0xff]  ;;  %v10350_v1 = vld [vmem:[#allocation152_spill] sm:$0xff] }
 0x231   :  { %1506 = vmatprep.subr.mxu0 %v10295_v2  ;;  %1577 = vmatprep.subr.mxu1 %v10296_v19  ;;  %v10351_v2 = vld [vmem:[#allocation153_spill] sm:$0xff]  ;;  %v10352_v19 = vld [vmem:[#allocation154_spill] sm:$0xff] }
 0x232   :  { %1507 = vmatpush1.msra.mxu0 %v10297_v22  ;;  %1578 = vmatpush1.msra.mxu1 %v10298_v23  ;;  %v10353_v22 = vld [vmem:[#allocation155_spill] sm:$0xff]  ;;  %v10354_v23 = vld [vmem:[#allocation156_spill] sm:$0xff] }
 0x233   :  { %1508 = vmatprep.subr.mxu0 %v10299_v24  ;;  %1579 = vmatprep.subr.mxu1 %v10300_v26  ;;  %v10355_v24 = vld [vmem:[#allocation157_spill] sm:$0xff]  ;;  %v10356_v26 = vld [vmem:[#allocation158_spill] sm:$0xff] }
 0x234   :  { %1509 = vmatpush1.msra.mxu0 %v10301_v28  ;;  %1580 = vmatpush1.msra.mxu1 %v10302_v29  ;;  %v10357_v28 = vld [vmem:[#allocation159_spill] sm:$0xff]  ;;  %v10358_v29 = vld [vmem:[#allocation160_spill] sm:$0xff] }
 0x235   :  { %1510 = vmatprep.subr.mxu0 %v10303_v30  ;;  %1581 = vmatprep.subr.mxu1 %v10304_v32  ;;  %v10359_v30 = vld [vmem:[#allocation161_spill] sm:$0xff]  ;;  %v10360_v32 = vld [vmem:[#allocation162_spill] sm:$0xff] }
 0x236   :  { %1511 = vmatpush1.msra.mxu0 %v10305_v34  ;;  %1582 = vmatpush1.msra.mxu1 %v10306_v35  ;;  %v10361_v34 = vld [vmem:[#allocation163_spill] sm:$0xff]  ;;  %v10362_v35 = vld [vmem:[#allocation164_spill] sm:$0xff] }
 0x237   :  { %1512 = vmatprep.subr.mxu0 %v10307_v36  ;;  %1583 = vmatprep.subr.mxu1 %v10308_v38  ;;  %v10363_v36 = vld [vmem:[#allocation165_spill] sm:$0xff]  ;;  %v10364_v38 = vld [vmem:[#allocation166_spill] sm:$0xff] }
 0x238   :  { %1513 = vmatpush1.msra.mxu0 %v10309_v39  ;;  %1584 = vmatpush1.msra.mxu1 %v10310_v40  ;;  %v10365_v39 = vld [vmem:[#allocation167_spill] sm:$0xff]  ;;  %v10366_v40 = vld [vmem:[#allocation168_spill] sm:$0xff] }
 0x239   :  { %1514 = vmatprep.subr.mxu0 %v10311_v41  ;;  %1585 = vmatprep.subr.mxu1 %v10312_v42  ;;  %v10367_v41 = vld [vmem:[#allocation169_spill] sm:$0xff]  ;;  %v10368_v42 = vld [vmem:[#allocation170_spill] sm:$0xff] }
 0x23a   :  { %1515 = vmatpush2.msra.mxu0 %v10313_v43  ;;  %1586 = vmatpush2.msra.mxu1 %v10314_v44  ;;  %v10369_v43 = vld [vmem:[#allocation171_spill] sm:$0xff]  ;;  %v10370_v44 = vld [vmem:[#allocation172_spill] sm:$0xff] }
 0x23b   :  { %1516 = vmatprep.subr.mxu0 %v10315_v45  ;;  %1587 = vmatprep.subr.mxu1 %v10316_v46  ;;  %v10371_v45 = vld [vmem:[#allocation173_spill] sm:$0xff]  ;;  %v10372_v46 = vld [vmem:[#allocation174_spill] sm:$0xff] }
 0x23c   :  { %1517 = vmatpush2.msra.mxu0 %v10317_v47  ;;  %1588 = vmatpush2.msra.mxu1 %v10318_v48  ;;  %v10373_v47 = vld [vmem:[#allocation175_spill] sm:$0xff]  ;;  %v10374_v48 = vld [vmem:[#allocation176_spill] sm:$0xff] }
 0x23d   :  { %1518 = vmatprep.subr.mxu0 %v10319_v49  ;;  %1589 = vmatprep.subr.mxu1 %v10320_v50  ;;  %v6984_v49 = vld [vmem:[#allocation9 + $0x170] sm:$0xff] }
 0x23e   :  { %1519 = vmatpush2.msra.mxu0 %v10321_v7  ;;  %1590 = vmatpush2.msra.mxu1 %v10322_v10  ;;  %v915_v50 = vld [vmem:[%s9501_s9] sm:$0xf] }
 0x23f   :  { %1520 = vmatprep.subr.mxu0 %v10323_v13  ;;  %1591 = vmatprep.subr.mxu1 %v10324_v15  ;;  %v10375_v7 = vld [vmem:[#allocation27_spill] sm:$0xff]  ;;  %v4923_v13 = vld [vmem:[%s9492_s0 + $0x8] sm:$0xff]  ;;  %v6994_v15 = vpop.f32.mrf.mxu0 }
 0x240   :  { %1521 = vmatpush2.msra.mxu0 %v10325_v20  ;;  %1592 = vmatpush2.msra.mxu1 %v10326_v27  ;;  %v920_v10 = vrot.slane %v915_v50, %v10375_v7  ;;  %10376 = vst [vmem:[#allocation17_spill] sm:$0xff] %v6994_v15  ;;  %v7200_v15 = vld [vmem:[#allocation10 + $0x1a8] sm:$0xff] }
 0x241   :  { %1522 = vmatprep.subr.mxu0 %v10327_v62  ;;  %1593 = vmatprep.subr.mxu1 %v10328_v3  ;;  %v10377_v3 = vld [vmem:[#allocation29_spill] sm:$0xff]  ;;  %10402 = vst [vmem:[#allocation62_spill] sm:$0xff] %v7200_v15 }
 0x242   :  { %1523 = vmatpush2.msra.mxu0 %v10329_v5  ;;  %1594 = vmatpush2.msra.mxu1 %v10330_v12  ;;  %v924_v5 = vrot.slane %v915_v50, %v10377_v3 }
 0x243   :  { %1524 = vmatprep.subr.mxu0 %v10331_v16  ;;  %1595 = vmatprep.subr.mxu1 %v10332_v31 }
 0x244   :  { %1525 = vmatpush2.msra.mxu0 %v10333_v8  ;;  %1596 = vmatpush2.msra.mxu1 %v10334_v52 }
 0x245   :  { %1526 = vmatprep.subr.mxu0 %v10335_v37  ;;  %1597 = vmatprep.subr.mxu1 %v10336_v11  ;;  %v1153_v11 = vld [vmem:[%s9499_s7] sm:$0x7] }
 0x246   :  { %1527 = vmatpush2.msra.mxu0 %v10337_v17  ;;  %1598 = vmatpush2.msra.mxu1 %v10338_v56  ;;  %v10378_v56 = vld [vmem:[#allocation28_spill] sm:$0xff] }
 0x247   :  { %1528 = vmatprep.subr.mxu0 %v10339_v54  ;;  %1599 = vmatprep.subr.mxu1 %v10340_v25  ;;  %v932_v54 = vrot.slane %v915_v50, %v10378_v56 }
 0x248   :  { %1529 = vmatpush2.msra.mxu0 %v10341_v14  ;;  %1600 = vmatpush2.msra.mxu1 %v10342_v4  ;;  %v1158_v14 = vrot.slane %v1153_v11, %v10375_v7  ;;  %v928_v4 = vrot.slane %v915_v50, %v6254_v9 }
 0x249   :  { %1530 = vmatprep.subr.mxu0 %v10343_v58  ;;  %1601 = vmatprep.subr.mxu1 %v10344_v55 }
 0x24a   :  { %1531 = vmatpush2.msra.mxu0 %v10345_v57  ;;  %1602 = vmatpush2.msra.mxu1 %v10346_v33 }
 0x24b   :  { %1532 = vmatprep.subr.mxu0 %v10347_v61  ;;  %1603 = vmatprep.subr.mxu1 %v10348_v51  ;;  %v10379_v51 = vld [vmem:[#allocation34_spill] sm:$0xff] }
 0x24c   :  { %1533 = vmatpush2.msra.mxu0 %v10349_v60  ;;  %1604 = vmatpush2.msra.mxu1 %v10350_v1  ;;  %v10380_v60 = vld [vmem:[#allocation33_spill] sm:$0xff] }
 0x24d   :  { %1534 = vmatprep.subr.mxu0 %v10351_v2  ;;  %1605 = vmatprep.subr.mxu1 %v10352_v19  ;;  %v1102_v1 = vadd.f32 %v10380_v60, %v10379_v51  ;;  %v1162_v19 = vrot.slane %v1153_v11, %v10377_v3  ;;  %v7065_v51 = vld [vmem:[#allocation9 + $0xf0] sm:$0xff]  ;;  %v7067_v60 = vld [vmem:[#allocation9 + $0x100] sm:$0xff] }
 0x24e   :  { %1535 = vmatpush2.msra.mxu0 %v10353_v22  ;;  %1606 = vmatpush2.msra.mxu1 %v10354_v23 }
 0x24f   :  { %1536 = vmatprep.subr.mxu0 %v10355_v24  ;;  %1607 = vmatprep.subr.mxu1 %v10356_v26 }
 0x250   :  { %1537 = vmatpush2.msra.mxu0 %v10357_v28  ;;  %1608 = vmatpush2.msra.mxu1 %v10358_v29 }
 0x251   :  { %1538 = vmatprep.subr.mxu0 %v10359_v30  ;;  %1609 = vmatprep.subr.mxu1 %v10360_v32 }
 0x252   :  { %1539 = vmatpush2.msra.mxu0 %v10361_v34  ;;  %1610 = vmatpush2.msra.mxu1 %v10362_v35  ;;  %v10381_v34 = vld [vmem:[#allocation35_spill] sm:$0xff] }
 0x253   :  { %1540 = vmatprep.subr.mxu0 %v10363_v36  ;;  %1611 = vmatprep.subr.mxu1 %v10364_v38 }
 0x254   :  { %1541 = vmatpush2.msra.mxu0 %v10365_v39  ;;  %1612 = vmatpush2.msra.mxu1 %v10366_v40 }
 0x255   :  { %1542 = vmatprep.subr.mxu0 %v10367_v41  ;;  %1613 = vmatprep.subr.mxu1 %v10368_v42 }
 0x256   :  { %1543 = vmatpush2.msra.mxu0 %v10369_v43  ;;  %1614 = vmatpush2.msra.mxu1 %v10370_v44 }
 0x257   :  { %1544 = vmatprep.subr.mxu0 %v10371_v45  ;;  %1615 = vmatprep.subr.mxu1 %v10372_v46 }
 0x258   :  { %1545 = vmatpush2.msra.mxu0 %v10373_v47  ;;  %1616 = vmatpush2.msra.mxu1 %v10374_v48  ;;  %v1166_v47 = vrot.slane %v1153_v11, %v6254_v9  ;;  %v7025_v11 = vld [vmem:[#allocation9 + $0x150] sm:$0xff] }
 0x259   :  { %5440 = vmatprep.subr.mxu1 %v10238_v63  ;;  %1715 = vmatprep.subr.mxu0 %v6984_v49 }
 0x25a   :  { %4937 = vperm.xlu0 %5708, %v4923_v13  }
 0x2b7   :  { %v1003_v20 = vpop.f32.mrf.mxu0  ;;  %v1074_v37 = vpop.f32.mrf.mxu1 }
 0x2b8   :  { %v1004_v27 = vadd.f32 %v1003_v20, %v920_v10  ;;  %v1075_v22 = vadd.f32 %v1074_v37, %v928_v4  ;;  %v10383_v20 = vld [vmem:[#allocation31_spill] sm:$0xff]  ;;  %v7021_v37 = vld [vmem:[#allocation9 + $0x158] sm:$0xff]  ;;  %v7045_v4 = vld [vmem:[#allocation9 + $0x120] sm:$0xff] }
 0x2b9   :  { %v1005_v12 = vpop.f32.mrf.mxu0  ;;  %v1076_v25 = vpop.f32.mrf.mxu1 }
 0x2ba   :  { %v5153_v62 = vmul.f32 -1.442695, %v1004_v27  ;;  %v1006_v16 = vadd.f32 %v1005_v12, %v924_v5  ;;  %v1077_v55 = vadd.f32 %v1076_v25, %v932_v54  ;;  %v7035_v54 = vld [vmem:[#allocation9 + $0x138] sm:$0xff]  ;;  %v7037_v25 = vld [vmem:[#allocation9 + $0x148] sm:$0xff] }
 0x2bc   :  { %5720 = vpow2.f32 %v5153_v62  ;;  %v5154_v31 = vmul.f32 -1.442695, %v1006_v16 }
 0x2be   :  { %5722 = vpow2.f32 %v5154_v31 }
 0x2c9   :  { %v5721_v8 = vpop.eup %5720 }
 0x2ca   :  { %v1082_v52 = vadd.f32 1.0, %v5721_v8  ;;  %v7017_v8 = vld [vmem:[#allocation9 + $0x168] sm:$0xff] }
 0x2cb   :  { %v5723_v17 = vpop.eup %5722 }
 0x2cc   :  { %5724 = vrcp.f32 %v1082_v52  ;;  %v1088_v58 = vadd.f32 1.0, %v5723_v17  ;;  %v7019_v52 = vld [vmem:[#allocation9 + $0x178] sm:$0xff]  ;;  %v7027_v17 = vld [vmem:[#allocation9 + $0x160] sm:$0xff] }
 0x2ce   :  { %5726 = vrcp.f32 %v1088_v58  ;;  %v7047_v58 = vld [vmem:[#allocation9 + $0x130] sm:$0xff] }
 0x2d8   :  { %v1236_v57 = vpop.f32.mrf.mxu0  ;;  %v1307_v33 = vpop.f32.mrf.mxu1 }
 0x2d9   :  { %v5725_v61 = vpop.eup %5724  ;;  %v1237_v2 = vadd.f32 %v1236_v57, %v1158_v14  ;;  %v1308_v50 = vadd.f32 %v1307_v33, %v1166_v47  ;;  %v7041_v14 = vld [vmem:[#allocation9 + $0x128] sm:$0xff]  ;;  %v7057_v33 = vld [vmem:[#allocation9 + $0x118] sm:$0xff]  ;;  %v7145_v47 = vld [vmem:[#allocation9 + $0x30] sm:$0xff] }
 0x2da   :  { %v1091_v23 = vmul.f32 %v5725_v61, %v1077_v55  ;;  %v1238_v24 = vpop.f32.mrf.mxu0  ;;  %v5439_v26 = vpop.f32.mrf.mxu1  ;;  %v7051_v55 = vld [vmem:[#allocation9 + $0x110] sm:$0xff]  ;;  %v7055_v57 = vld [vmem:[#allocation9 + $0x108] sm:$0xff]  ;;  %v7061_v61 = vld [vmem:[#allocation9 + $0xf8] sm:$0xff]  ;;  %10388 = vst [vmem:[#allocation51_spill] sm:$0xff] %v7145_v47 }
 0x2db   :  { %v1311_v28 = vadd.f32 %v1237_v2, %v1102_v1  ;;  %v1239_v32 = vadd.f32 %v1238_v24, %v1162_v19  ;;  %v5727_v38 = vpop.eup %5726  ;;  %v7071_v1 = vld [vmem:[#allocation9 + $0xe0] sm:$0xff]  ;;  %v7075_v2 = vld [vmem:[#allocation9 + $0xd8] sm:$0xff]  ;;  %v7077_v19 = vld [vmem:[#allocation9 + $0xe8] sm:$0xff] }
 0x2dc   :  { %v1092_v29 = vadd.f32 %v1091_v23, %v1075_v22  ;;  %v1094_v39 = vsub.f32 1.0, %v5727_v38  ;;  %v1096_v43 = vmul.f32 %v5727_v38, %v6248_v6  ;;  %v7081_v22 = vld [vmem:[#allocation9 + $0xc8] sm:$0xff]  ;;  %v7085_v23 = vld [vmem:[#allocation9 + $0xc0] sm:$0xff]  ;;  %v7087_v24 = vld [vmem:[#allocation9 + $0xd0] sm:$0xff] }
 0x2dd   :  { %v5155_v30 = vmul.f32 -1.442695, %v1311_v28  ;;  %v1318_v35 = vadd.f32 %v1239_v32, %v10381_v34  ;;  %v7091_v26 = vld [vmem:[#allocation9 + $0xb0] sm:$0xff]  ;;  %v7095_v28 = vld [vmem:[#allocation9 + $0xa8] sm:$0xff]  ;;  %v7107_v34 = vld [vmem:[#allocation9 + $0xa0] sm:$0xff] }
 0x2de   :  { %5728 = vtanh.f32 %v1092_v29  ;;  %v7097_v29 = vld [vmem:[#allocation9 + $0xb8] sm:$0xff]  ;;  %v7105_v32 = vld [vmem:[#allocation9 + $0x90] sm:$0xff]  ;;  %v7117_v38 = vld [vmem:[#allocation9 + $0x88] sm:$0xff] }
 0x2df   :  { %5730 = vpow2.f32 %v5155_v30  ;;  %v5156_v36 = vmul.f32 -1.442695, %v1318_v35  ;;  %v7101_v30 = vld [vmem:[#allocation9 + $0x98] sm:$0xff]  ;;  %v7111_v35 = vld [vmem:[#allocation9 + $0x80] sm:$0xff] }
 0x2e1   :  { %5732 = vpow2.f32 %v5156_v36  ;;  %v7115_v36 = vld [vmem:[#allocation9 + $0x78] sm:$0xff] }
 0x2eb   :  { %v5729_v40 = vpop.eup %5728 }
 0x2ec   :  { %v5731_v41 = vpop.eup %5730  ;;  %v1095_v42 = vmul.f32 %v5729_v40, %v1094_v39  ;;  %v7121_v39 = vld [vmem:[#allocation9 + $0x68] sm:$0xff]  ;;  %v7125_v40 = vld [vmem:[#allocation9 + $0x60] sm:$0xff] }
 0x2ed   :  { %v1315_v44 = vadd.f32 1.0, %v5731_v41  ;;  %v7127_v41 = vld [vmem:[#allocation9 + $0x70] sm:$0xff] }
 0x2ee   :  { %v7008_v45 = vadd.f32 %v1096_v43, %v1095_v42  ;;  %v5733_v46 = vpop.eup %5732  ;;  %v7131_v42 = vld [vmem:[#allocation9 + $0x50] sm:$0xff]  ;;  %v7135_v43 = vld [vmem:[#allocation9 + $0x48] sm:$0xff] }
 0x2ef   :  { %5734 = vrcp.f32 %v1315_v44  ;;  %v1322_v48 = vadd.f32 1.0, %v5733_v46  ;;  %10384 = vst [vmem:[#allocation47_spill] sm:$0xff] %v7131_v42  ;;  %10385 = vst [vmem:[#allocation49_spill] sm:$0xff] %v7135_v43  ;;  %v7137_v44 = vld [vmem:[#allocation9 + $0x58] sm:$0xff] }
 0x2f0   :  { %10382 = vst [vmem:[#allocation18_spill] sm:$0xff] %v7008_v45  ;;  %1546 = vmatprep.mubr.f32.mxu0 %v7008_v45  ;;  %1617 = vmatprep.mubr.f32.mxu1 %v7008_v45  ;;  %10386 = vst [vmem:[#allocation19_spill] sm:$0xff] %v7137_v44  ;;  %v7141_v46 = vld [vmem:[#allocation9 + $0x38] sm:$0xff] }
 0x2f1   :  { %5736 = vrcp.f32 %v1322_v48  ;;  %10387 = vst [vmem:[#allocation20_spill] sm:$0xff] %v7141_v46  ;;  %v7147_v48 = vld [vmem:[#allocation9 + $0x40] sm:$0xff] }
 0x2f2   :  { %10389 = vst [vmem:[#allocation21_spill] sm:$0xff] %v7147_v48 }
 0x2fc   :  { %v5735_v10 = vpop.eup %5734 }
 0x2fd   :  { %v1325_v13 = vmul.f32 %v5735_v10, %v1308_v50  ;;  %v7153_v50 = vld [vmem:[#allocation9 + $0x28] sm:$0xff] }
 0x2fe   :  { %v5737_v6 = vpop.eup %5736  ;;  %10390 = vst [vmem:[#allocation52_spill] sm:$0xff] %v7153_v50  ;;  %v7157_v10 = vld [vmem:[#allocation9 + $0x8] sm:$0xff] }
 0x2ff   :  { %v1326_v27 = vadd.f32 %v1325_v13, %v10383_v20  ;;  %v1328_v62 = vsub.f32 1.0, %v5737_v6  ;;  %v1330_v16 = vmul.f32 %v5737_v6, %v6780_v59  ;;  %v7031_v59 = vld [vmem:[#allocation9 + $0x140] sm:$0xff]  ;;  %10391 = vst [vmem:[#allocation22_spill] sm:$0xff] %v7157_v10  ;;  %v7165_v20 = vld [vmem:[#allocation9 + $0x10] sm:$0xff] }
 0x300   :  { %v7161_v13 = vld [vmem:[#allocation9] sm:$0xff]  ;;  %10393 = vst [vmem:[#allocation23_spill] sm:$0xff] %v7165_v20  ;;  %v7184_v6 = vld [vmem:[#allocation10 + $0x1f0] sm:$0xff] }
 0x301   :  { %5738 = vtanh.f32 %v1326_v27  ;;  %10392 = vst [vmem:[#allocation54_spill] sm:$0xff] %v7161_v13  ;;  %v7182_v27 = vld [vmem:[#allocation10 + $0x1e0] sm:$0xff]  ;;  %10397 = vst [vmem:[#allocation25_spill] sm:$0xff] %v7184_v6 }
 0x302   :  { %10396 = vst [vmem:[#allocation57_spill] sm:$0xff] %v7182_v27 }
 0x30e   :  { %v5739_v5 = vpop.eup %5738 }
 0x30f   :  { %v1329_v12 = vmul.f32 %v5739_v5, %v1328_v62  ;;  %v7188_v62 = vld [vmem:[#allocation10 + $0x1c8] sm:$0xff]  ;;  %v7190_v5 = vld [vmem:[#allocation10 + $0x1d8] sm:$0xff] }
 0x310   :  { %10398 = vst [vmem:[#allocation58_spill] sm:$0xff] %v7188_v62  ;;  %10399 = vst [vmem:[#allocation26_spill] sm:$0xff] %v7190_v5 }
 0x311   :  { %v7015_v31 = vadd.f32 %v1330_v16, %v1329_v12  ;;  %v7194_v12 = vld [vmem:[#allocation10 + $0x1c0] sm:$0xff]  ;;  %v7196_v16 = vld [vmem:[#allocation10 + $0x1d0] sm:$0xff] }
 0x312   :  { %10400 = vst [vmem:[#allocation60_spill] sm:$0xff] %v7194_v12  ;;  %10401 = vst [vmem:[#allocation61_spill] sm:$0xff] %v7196_v16 }
 0x313   :  { %1547 = vmatmul.mubr.f32.vlgmr.msra.gmra.mxu0 %v7015_v31  ;;  %1618 = vmatmul.mubr.f32.vlgmr.msra.gmra.mxu1 %v7015_v31 }
 0x314   :  { %1716 = vmatpush1.msra.mxu0 %v7017_v8  ;;  %5441 = vmatpush3.msra.mxu1 %v7019_v52 }
 0x315   :  { %1717 = vmatprep.subr.mxu0 %v7021_v37  ;;  %5442 = vmatprep.subr.mxu1 %v10238_v63 }
 0x316   :  { %1718 = vmatpush1.msra.mxu0 %v7025_v11  ;;  %5443 = vmatpush3.msra.mxu1 %v7027_v17 }
 0x317   :  { %1719 = vmatprep.subr.mxu0 %v7031_v59  ;;  %5444 = vmatprep.subr.mxu1 %v10238_v63 }
 0x318   :  { %1720 = vmatpush1.msra.mxu0 %v7035_v54  ;;  %5445 = vmatpush3.msra.mxu1 %v7037_v25 }
 0x319   :  { %1721 = vmatprep.subr.mxu0 %v7041_v14  ;;  %5446 = vmatprep.subr.mxu1 %v10238_v63 }
 0x31a   :  { %1722 = vmatpush1.msra.mxu0 %v7045_v4  ;;  %5447 = vmatpush3.msra.mxu1 %v7047_v58 }
 0x31b   :  { %1723 = vmatprep.subr.mxu0 %v7051_v55  ;;  %5448 = vmatprep.subr.mxu1 %v10238_v63 }
 0x31c   :  { %1724 = vmatpush1.msra.mxu0 %v7055_v57  ;;  %5449 = vmatpush3.msra.mxu1 %v7057_v33 }
 0x31d   :  { %1725 = vmatprep.subr.mxu0 %v7061_v61  ;;  %5450 = vmatprep.subr.mxu1 %v10238_v63 }
 0x31e   :  { %1726 = vmatpush1.msra.mxu0 %v7065_v51  ;;  %5451 = vmatpush3.msra.mxu1 %v7067_v60 }
 0x31f   :  { %1727 = vmatprep.subr.mxu0 %v7071_v1  ;;  %5452 = vmatprep.subr.mxu1 %v10238_v63 }
 0x320   :  { %1728 = vmatpush1.msra.mxu0 %v7075_v2  ;;  %5453 = vmatpush3.msra.mxu1 %v7077_v19 }
 0x321   :  { %1729 = vmatprep.subr.mxu0 %v7081_v22  ;;  %5454 = vmatprep.subr.mxu1 %v10238_v63 }
 0x322   :  { %1730 = vmatpush1.msra.mxu0 %v7085_v23  ;;  %5455 = vmatpush3.msra.mxu1 %v7087_v24 }
 0x323   :  { %1731 = vmatprep.subr.mxu0 %v7091_v26  ;;  %5456 = vmatprep.subr.mxu1 %v10238_v63 }
 0x324   :  { %1732 = vmatpush1.msra.mxu0 %v7095_v28  ;;  %5457 = vmatpush3.msra.mxu1 %v7097_v29 }
 0x325   :  { %1733 = vmatprep.subr.mxu0 %v7101_v30  ;;  %5458 = vmatprep.subr.mxu1 %v10238_v63 }
 0x326   :  { %1734 = vmatpush1.msra.mxu0 %v7105_v32  ;;  %5459 = vmatpush3.msra.mxu1 %v7107_v34 }
 0x327   :  { %1735 = vmatprep.subr.mxu0 %v7111_v35  ;;  %5460 = vmatprep.subr.mxu1 %v10238_v63 }
 0x328   :  { %1736 = vmatpush1.msra.mxu0 %v7115_v36  ;;  %5461 = vmatpush3.msra.mxu1 %v7117_v38 }
 0x329   :  { %1737 = vmatprep.subr.mxu0 %v7121_v39  ;;  %5462 = vmatprep.subr.mxu1 %v10238_v63 }
 0x32a   :  { %1738 = vmatpush1.msra.mxu0 %v7125_v40  ;;  %5463 = vmatpush3.msra.mxu1 %v7127_v41 }
 0x32b   :  { %1739 = vmatprep.subr.mxu0 %v7131_v42  ;;  %5464 = vmatprep.subr.mxu1 %v10238_v63 }
 0x32c   :  { %1740 = vmatpush1.msra.mxu0 %v7135_v43  ;;  %5465 = vmatpush3.msra.mxu1 %v7137_v44  ;;  %v10522_v44 = vld [vmem:[#allocation37_spill] sm:$0xff] }
 0x32d   :  { %1741 = vmatprep.subr.mxu0 %v7141_v46  ;;  %5466 = vmatprep.subr.mxu1 %v10238_v63 }
 0x32e   :  { %1742 = vmatpush1.msra.mxu0 %v7145_v47  ;;  %5467 = vmatpush3.msra.mxu1 %v7147_v48 }
 0x32f   :  { %1743 = vmatprep.subr.mxu0 %v6834_v0  ;;  %5468 = vmatprep.subr.mxu1 %v10238_v63  ;;  %v7176_v0 = vld [vmem:[#allocation10 + $0x1e8] sm:$0xff] }
 0x330   :  { %1744 = vmatpush1.msra.mxu0 %v6838_v21  ;;  %5469 = vmatpush3.msra.mxu1 %v7153_v50  ;;  %10394 = vst [vmem:[#allocation55_spill] sm:$0xff] %v7176_v0  ;;  %v7178_v21 = vld [vmem:[#allocation10 + $0x1f8] sm:$0xff] }
 0x331   :  { %1745 = vmatprep.subr.mxu0 %v7157_v10  ;;  %5470 = vmatprep.subr.mxu1 %v10238_v63  ;;  %10395 = vst [vmem:[#allocation24_spill] sm:$0xff] %v7178_v21 }
 0x332   :  { %1746 = vmatpush1.msra.mxu0 %v7161_v13  ;;  %1779 = vmatprep.mubr.f32.mxu0 %v10238_v63  ;;  %v1698_v13 = vld [vmem:[%s9499_s7] sm:$0x7] }
 0x333   :  { %5471 = vmatpush3.msra.mxu1 %v7165_v20  ;;  %5472 = vmatprep.mubr.msk.f32.mxu1 %vm5987_vm1, %v10238_v63 }
 0x334   :  { %1780 = vmatmul.mubr.f32.vlgmr.msra.gmra.mxu0 %v7015_v31  ;;  %5473 = vmatmul.mubr.f32.vlgmr.msra.gmra.mxu1 %v7015_v31 }
 0x335   :  { %2027 = vmatprep.subr.mxu0 %v7176_v0  ;;  %2098 = vmatprep.subr.mxu1 %v7178_v21  ;;  %v7492_v21 = vld [vmem:[#allocation10 + $0x2b0] sm:$0xff]  ;;  %v7508_v0 = vld [vmem:[#allocation10 + $0x268] sm:$0xff] }
 0x336   :  { %2028 = vmatpush1.msra.mxu0 %v7182_v27  ;;  %2099 = vmatpush1.msra.mxu1 %v7184_v6  ;;  %v7476_v6 = vld [vmem:[#allocation10 + $0x2d8] sm:$0xff]  ;;  %v7484_v27 = vld [vmem:[#allocation10 + $0x2a8] sm:$0xff]  ;;  %10501 = vst [vmem:[#allocation161_spill] sm:$0xff] %v7492_v21  ;;  %10506 = vst [vmem:[#allocation166_spill] sm:$0xff] %v7508_v0 }
 0x337   :  { %2029 = vmatprep.subr.mxu0 %v7188_v62  ;;  %2100 = vmatprep.subr.mxu1 %v7190_v5  ;;  %v7208_v62 = vld [vmem:[#allocation10 + $0x1b0] sm:$0xff]  ;;  %v7212_v5 = vld [vmem:[#allocation10 + $0x188] sm:$0xff]  ;;  %10495 = vst [vmem:[#allocation155_spill] sm:$0xff] %v7476_v6  ;;  %10498 = vst [vmem:[#allocation158_spill] sm:$0xff] %v7484_v27 }
 0x338   :  { %2030 = vmatpush1.msra.mxu0 %v7194_v12  ;;  %2101 = vmatpush1.msra.mxu1 %v7196_v16  ;;  %10405 = vst [vmem:[#allocation65_spill] sm:$0xff] %v7208_v62  ;;  %10406 = vst [vmem:[#allocation66_spill] sm:$0xff] %v7212_v5  ;;  %v7214_v12 = vld [vmem:[#allocation10 + $0x198] sm:$0xff]  ;;  %v7218_v16 = vld [vmem:[#allocation10 + $0x180] sm:$0xff] }
 0x339   :  { %2031 = vmatprep.subr.mxu0 %v7200_v15  ;;  %2102 = vmatprep.subr.mxu1 %v7202_v53  ;;  %10407 = vst [vmem:[#allocation67_spill] sm:$0xff] %v7214_v12  ;;  %10408 = vst [vmem:[#allocation68_spill] sm:$0xff] %v7218_v16  ;;  %v7220_v15 = vld [vmem:[#allocation10 + $0x190] sm:$0xff]  ;;  %v7224_v53 = vld [vmem:[#allocation10 + $0x168] sm:$0xff] }
 0x33a   :  { %2032 = vmatpush1.msra.mxu0 %v7206_v18  ;;  %2103 = vmatpush1.msra.mxu1 %v7208_v62  ;;  %10409 = vst [vmem:[#allocation69_spill] sm:$0xff] %v7220_v15  ;;  %10410 = vst [vmem:[#allocation70_spill] sm:$0xff] %v7224_v53  ;;  %v7226_v18 = vld [vmem:[#allocation10 + $0x178] sm:$0xff]  ;;  %v7230_v62 = vld [vmem:[#allocation10 + $0x160] sm:$0xff] }
 0x33b   :  { %2033 = vmatprep.subr.mxu0 %v7212_v5  ;;  %2104 = vmatprep.subr.mxu1 %v7214_v12  ;;  %10411 = vst [vmem:[#allocation71_spill] sm:$0xff] %v7226_v18  ;;  %10412 = vst [vmem:[#allocation72_spill] sm:$0xff] %v7230_v62  ;;  %v7232_v5 = vld [vmem:[#allocation10 + $0x170] sm:$0xff]  ;;  %v7236_v12 = vld [vmem:[#allocation10 + $0x148] sm:$0xff] }
 0x33c   :  { %2034 = vmatpush1.msra.mxu0 %v7218_v16  ;;  %2105 = vmatpush1.msra.mxu1 %v7220_v15  ;;  %10413 = vst [vmem:[#allocation73_spill] sm:$0xff] %v7232_v5  ;;  %10414 = vst [vmem:[#allocation74_spill] sm:$0xff] %v7236_v12  ;;  %v7238_v16 = vld [vmem:[#allocation10 + $0x158] sm:$0xff]  ;;  %v7242_v15 = vld [vmem:[#allocation10 + $0x140] sm:$0xff] }
 0x33d   :  { %2035 = vmatprep.subr.mxu0 %v7224_v53  ;;  %2106 = vmatprep.subr.mxu1 %v7226_v18  ;;  %10415 = vst [vmem:[#allocation75_spill] sm:$0xff] %v7238_v16  ;;  %10416 = vst [vmem:[#allocation76_spill] sm:$0xff] %v7242_v15  ;;  %v7244_v53 = vld [vmem:[#allocation10 + $0x150] sm:$0xff]  ;;  %v7248_v18 = vld [vmem:[#allocation10 + $0x128] sm:$0xff] }
 0x33e   :  { %2036 = vmatpush1.msra.mxu0 %v7230_v62  ;;  %2107 = vmatpush1.msra.mxu1 %v7232_v5  ;;  %10417 = vst [vmem:[#allocation77_spill] sm:$0xff] %v7244_v53  ;;  %10418 = vst [vmem:[#allocation78_spill] sm:$0xff] %v7248_v18  ;;  %v7250_v62 = vld [vmem:[#allocation10 + $0x138] sm:$0xff]  ;;  %v7254_v5 = vld [vmem:[#allocation10 + $0x120] sm:$0xff] }
 0x33f   :  { %2037 = vmatprep.subr.mxu0 %v7236_v12  ;;  %2108 = vmatprep.subr.mxu1 %v7238_v16  ;;  %10419 = vst [vmem:[#allocation79_spill] sm:$0xff] %v7250_v62  ;;  %10420 = vst [vmem:[#allocation80_spill] sm:$0xff] %v7254_v5  ;;  %v7256_v12 = vld [vmem:[#allocation10 + $0x130] sm:$0xff]  ;;  %v7260_v16 = vld [vmem:[#allocation10 + $0x108] sm:$0xff] }
 0x340   :  { %2038 = vmatpush1.msra.mxu0 %v7242_v15  ;;  %2109 = vmatpush1.msra.mxu1 %v7244_v53  ;;  %10421 = vst [vmem:[#allocation81_spill] sm:$0xff] %v7256_v12  ;;  %10422 = vst [vmem:[#allocation82_spill] sm:$0xff] %v7260_v16  ;;  %v7262_v15 = vld [vmem:[#allocation10 + $0x118] sm:$0xff]  ;;  %v7266_v53 = vld [vmem:[#allocation10 + $0x100] sm:$0xff] }
 0x341   :  { %2039 = vmatprep.subr.mxu0 %v7248_v18  ;;  %2110 = vmatprep.subr.mxu1 %v7250_v62  ;;  %10423 = vst [vmem:[#allocation83_spill] sm:$0xff] %v7262_v15  ;;  %10424 = vst [vmem:[#allocation84_spill] sm:$0xff] %v7266_v53  ;;  %v7268_v18 = vld [vmem:[#allocation10 + $0x110] sm:$0xff]  ;;  %v7272_v62 = vld [vmem:[#allocation10 + $0xe8] sm:$0xff] }
 0x342   :  { %2040 = vmatpush1.msra.mxu0 %v7254_v5  ;;  %2111 = vmatpush1.msra.mxu1 %v7256_v12  ;;  %10425 = vst [vmem:[#allocation85_spill] sm:$0xff] %v7268_v18  ;;  %10426 = vst [vmem:[#allocation86_spill] sm:$0xff] %v7272_v62  ;;  %v7274_v5 = vld [vmem:[#allocation10 + $0xf8] sm:$0xff]  ;;  %v7278_v12 = vld [vmem:[#allocation10 + $0xe0] sm:$0xff] }
 0x343   :  { %2041 = vmatprep.subr.mxu0 %v7260_v16  ;;  %2112 = vmatprep.subr.mxu1 %v7262_v15  ;;  %10427 = vst [vmem:[#allocation87_spill] sm:$0xff] %v7274_v5  ;;  %10428 = vst [vmem:[#allocation88_spill] sm:$0xff] %v7278_v12  ;;  %v7280_v16 = vld [vmem:[#allocation10 + $0xf0] sm:$0xff]  ;;  %v7284_v15 = vld [vmem:[#allocation10 + $0xc8] sm:$0xff] }
 0x344   :  { %2042 = vmatpush1.msra.mxu0 %v7266_v53  ;;  %2113 = vmatpush1.msra.mxu1 %v7268_v18  ;;  %10429 = vst [vmem:[#allocation89_spill] sm:$0xff] %v7280_v16  ;;  %10430 = vst [vmem:[#allocation90_spill] sm:$0xff] %v7284_v15  ;;  %v7286_v53 = vld [vmem:[#allocation10 + $0xd8] sm:$0xff]  ;;  %v7290_v18 = vld [vmem:[#allocation10 + $0xc0] sm:$0xff] }
 0x345   :  { %2043 = vmatprep.subr.mxu0 %v7272_v62  ;;  %2114 = vmatprep.subr.mxu1 %v7274_v5  ;;  %10431 = vst [vmem:[#allocation91_spill] sm:$0xff] %v7286_v53  ;;  %10432 = vst [vmem:[#allocation92_spill] sm:$0xff] %v7290_v18  ;;  %v7292_v62 = vld [vmem:[#allocation10 + $0xd0] sm:$0xff]  ;;  %v7296_v5 = vld [vmem:[#allocation10 + $0xa8] sm:$0xff] }
 0x346   :  { %2044 = vmatpush1.msra.mxu0 %v7278_v12  ;;  %2115 = vmatpush1.msra.mxu1 %v7280_v16  ;;  %10433 = vst [vmem:[#allocation93_spill] sm:$0xff] %v7292_v62  ;;  %10434 = vst [vmem:[#allocation94_spill] sm:$0xff] %v7296_v5  ;;  %v7298_v12 = vld [vmem:[#allocation10 + $0xb8] sm:$0xff]  ;;  %v7302_v16 = vld [vmem:[#allocation10 + $0xa0] sm:$0xff] }
 0x347   :  { %2045 = vmatprep.subr.mxu0 %v7284_v15  ;;  %2116 = vmatprep.subr.mxu1 %v7286_v53  ;;  %10435 = vst [vmem:[#allocation95_spill] sm:$0xff] %v7298_v12  ;;  %10436 = vst [vmem:[#allocation96_spill] sm:$0xff] %v7302_v16  ;;  %v7304_v15 = vld [vmem:[#allocation10 + $0xb0] sm:$0xff]  ;;  %v7308_v53 = vld [vmem:[#allocation10 + $0x88] sm:$0xff] }
 0x348   :  { %2046 = vmatpush1.msra.mxu0 %v7290_v18  ;;  %2117 = vmatpush1.msra.mxu1 %v7292_v62  ;;  %10437 = vst [vmem:[#allocation97_spill] sm:$0xff] %v7304_v15  ;;  %10438 = vst [vmem:[#allocation98_spill] sm:$0xff] %v7308_v53  ;;  %v7310_v18 = vld [vmem:[#allocation10 + $0x98] sm:$0xff]  ;;  %v7314_v62 = vld [vmem:[#allocation10 + $0x80] sm:$0xff] }
 0x349   :  { %2047 = vmatprep.subr.mxu0 %v7296_v5  ;;  %2118 = vmatprep.subr.mxu1 %v7298_v12  ;;  %10439 = vst [vmem:[#allocation99_spill] sm:$0xff] %v7310_v18  ;;  %10440 = vst [vmem:[#allocation100_spill] sm:$0xff] %v7314_v62  ;;  %v7316_v5 = vld [vmem:[#allocation10 + $0x90] sm:$0xff]  ;;  %v7320_v12 = vld [vmem:[#allocation10 + $0x68] sm:$0xff] }
 0x34a   :  { %2048 = vmatpush1.msra.mxu0 %v7302_v16  ;;  %2119 = vmatpush1.msra.mxu1 %v7304_v15  ;;  %10441 = vst [vmem:[#allocation101_spill] sm:$0xff] %v7316_v5  ;;  %10442 = vst [vmem:[#allocation102_spill] sm:$0xff] %v7320_v12  ;;  %v7322_v16 = vld [vmem:[#allocation10 + $0x78] sm:$0xff]  ;;  %v7326_v15 = vld [vmem:[#allocation10 + $0x60] sm:$0xff] }
 0x34b   :  { %2049 = vmatprep.subr.mxu0 %v7308_v53  ;;  %2120 = vmatprep.subr.mxu1 %v7310_v18  ;;  %10443 = vst [vmem:[#allocation103_spill] sm:$0xff] %v7322_v16  ;;  %10444 = vst [vmem:[#allocation104_spill] sm:$0xff] %v7326_v15  ;;  %v7328_v53 = vld [vmem:[#allocation10 + $0x70] sm:$0xff]  ;;  %v7332_v18 = vld [vmem:[#allocation10 + $0x48] sm:$0xff] }
 0x34c   :  { %2050 = vmatpush1.msra.mxu0 %v7314_v62  ;;  %2121 = vmatpush1.msra.mxu1 %v7316_v5  ;;  %10445 = vst [vmem:[#allocation105_spill] sm:$0xff] %v7328_v53  ;;  %10446 = vst [vmem:[#allocation106_spill] sm:$0xff] %v7332_v18  ;;  %v7334_v62 = vld [vmem:[#allocation10 + $0x58] sm:$0xff]  ;;  %v7338_v5 = vld [vmem:[#allocation10 + $0x40] sm:$0xff] }
 0x34d   :  { %2051 = vmatprep.subr.mxu0 %v7320_v12  ;;  %2122 = vmatprep.subr.mxu1 %v7322_v16  ;;  %10447 = vst [vmem:[#allocation107_spill] sm:$0xff] %v7334_v62  ;;  %10448 = vst [vmem:[#allocation108_spill] sm:$0xff] %v7338_v5  ;;  %v7340_v12 = vld [vmem:[#allocation10 + $0x50] sm:$0xff]  ;;  %v7344_v16 = vld [vmem:[#allocation10 + $0x28] sm:$0xff] }
 0x34e   :  { %2052 = vmatpush1.msra.mxu0 %v7326_v15  ;;  %2123 = vmatpush1.msra.mxu1 %v7328_v53  ;;  %10449 = vst [vmem:[#allocation109_spill] sm:$0xff] %v7340_v12  ;;  %10450 = vst [vmem:[#allocation110_spill] sm:$0xff] %v7344_v16  ;;  %v7346_v15 = vld [vmem:[#allocation10 + $0x38] sm:$0xff]  ;;  %v7350_v53 = vld [vmem:[#allocation10 + $0x20] sm:$0xff] }
 0x34f   :  { %2053 = vmatprep.subr.mxu0 %v7332_v18  ;;  %2124 = vmatprep.subr.mxu1 %v7334_v62  ;;  %10451 = vst [vmem:[#allocation111_spill] sm:$0xff] %v7346_v15  ;;  %10452 = vst [vmem:[#allocation112_spill] sm:$0xff] %v7350_v53  ;;  %v7352_v18 = vld [vmem:[#allocation10 + $0x30] sm:$0xff]  ;;  %v7356_v62 = vld [vmem:[#allocation10 + $0x8] sm:$0xff] }
 0x350   :  { %2054 = vmatpush1.msra.mxu0 %v7338_v5  ;;  %2125 = vmatpush1.msra.mxu1 %v7340_v12  ;;  %10453 = vst [vmem:[#allocation113_spill] sm:$0xff] %v7352_v18  ;;  %10454 = vst [vmem:[#allocation114_spill] sm:$0xff] %v7356_v62  ;;  %v7358_v5 = vld [vmem:[#allocation10 + $0x18] sm:$0xff]  ;;  %v7362_v12 = vld [vmem:[#allocation10] sm:$0xff] }
 0x351   :  { %2055 = vmatprep.subr.mxu0 %v7344_v16  ;;  %2126 = vmatprep.subr.mxu1 %v7346_v15  ;;  %10455 = vst [vmem:[#allocation115_spill] sm:$0xff] %v7358_v5  ;;  %10456 = vst [vmem:[#allocation116_spill] sm:$0xff] %v7362_v12  ;;  %v7364_v16 = vld [vmem:[#allocation10 + $0x10] sm:$0xff]  ;;  %v7368_v15 = vld [vmem:[#allocation10 + $0x3e8] sm:$0xff] }
 0x352   :  { %2056 = vmatpush1.msra.mxu0 %v7350_v53  ;;  %2127 = vmatpush1.msra.mxu1 %v7352_v18  ;;  %10457 = vst [vmem:[#allocation117_spill] sm:$0xff] %v7364_v16  ;;  %10458 = vst [vmem:[#allocation118_spill] sm:$0xff] %v7368_v15  ;;  %v7370_v53 = vld [vmem:[#allocation10 + $0x3f8] sm:$0xff]  ;;  %v7374_v18 = vld [vmem:[#allocation10 + $0x3e0] sm:$0xff] }
 0x353   :  { %2057 = vmatprep.subr.mxu0 %v7356_v62  ;;  %2128 = vmatprep.subr.mxu1 %v7358_v5  ;;  %10459 = vst [vmem:[#allocation119_spill] sm:$0xff] %v7370_v53  ;;  %10460 = vst [vmem:[#allocation120_spill] sm:$0xff] %v7374_v18  ;;  %v7376_v62 = vld [vmem:[#allocation10 + $0x3f0] sm:$0xff]  ;;  %v7380_v5 = vld [vmem:[#allocation10 + $0x3c8] sm:$0xff] }
 0x354   :  { %2058 = vmatpush1.msra.mxu0 %v7362_v12  ;;  %2129 = vmatpush1.msra.mxu1 %v7364_v16  ;;  %10461 = vst [vmem:[#allocation121_spill] sm:$0xff] %v7376_v62  ;;  %10462 = vst [vmem:[#allocation122_spill] sm:$0xff] %v7380_v5  ;;  %v7382_v12 = vld [vmem:[#allocation10 + $0x3d8] sm:$0xff]  ;;  %v7386_v16 = vld [vmem:[#allocation10 + $0x3c0] sm:$0xff] }
 0x355   :  { %2059 = vmatprep.subr.mxu0 %v7368_v15  ;;  %2130 = vmatprep.subr.mxu1 %v7370_v53  ;;  %10463 = vst [vmem:[#allocation123_spill] sm:$0xff] %v7382_v12  ;;  %10464 = vst [vmem:[#allocation124_spill] sm:$0xff] %v7386_v16  ;;  %v7388_v15 = vld [vmem:[#allocation10 + $0x3d0] sm:$0xff]  ;;  %v7392_v53 = vld [vmem:[#allocation10 + $0x3a8] sm:$0xff] }
 0x356   :  { %2060 = vmatpush2.msra.mxu0 %v7374_v18  ;;  %2131 = vmatpush2.msra.mxu1 %v7376_v62  ;;  %10465 = vst [vmem:[#allocation125_spill] sm:$0xff] %v7388_v15  ;;  %10466 = vst [vmem:[#allocation126_spill] sm:$0xff] %v7392_v53  ;;  %v7394_v18 = vld [vmem:[#allocation10 + $0x3b8] sm:$0xff]  ;;  %v7398_v62 = vld [vmem:[#allocation10 + $0x3a0] sm:$0xff] }
 0x357   :  { %2061 = vmatprep.subr.mxu0 %v7380_v5  ;;  %2132 = vmatprep.subr.mxu1 %v7382_v12  ;;  %10467 = vst [vmem:[#allocation127_spill] sm:$0xff] %v7394_v18  ;;  %10468 = vst [vmem:[#allocation128_spill] sm:$0xff] %v7398_v62  ;;  %v7400_v5 = vld [vmem:[#allocation10 + $0x3b0] sm:$0xff]  ;;  %v7404_v12 = vld [vmem:[#allocation10 + $0x388] sm:$0xff] }
 0x358   :  { %2062 = vmatpush2.msra.mxu0 %v7386_v16  ;;  %2133 = vmatpush2.msra.mxu1 %v7388_v15  ;;  %10469 = vst [vmem:[#allocation129_spill] sm:$0xff] %v7400_v5  ;;  %10470 = vst [vmem:[#allocation130_spill] sm:$0xff] %v7404_v12  ;;  %v7406_v16 = vld [vmem:[#allocation10 + $0x398] sm:$0xff]  ;;  %v7410_v15 = vld [vmem:[#allocation10 + $0x380] sm:$0xff] }
 0x359   :  { %2063 = vmatprep.subr.mxu0 %v7392_v53  ;;  %2134 = vmatprep.subr.mxu1 %v7394_v18  ;;  %10471 = vst [vmem:[#allocation131_spill] sm:$0xff] %v7406_v16  ;;  %10472 = vst [vmem:[#allocation132_spill] sm:$0xff] %v7410_v15  ;;  %v7412_v53 = vld [vmem:[#allocation10 + $0x390] sm:$0xff]  ;;  %v7416_v18 = vld [vmem:[#allocation10 + $0x368] sm:$0xff] }
 0x35a   :  { %2064 = vmatpush2.msra.mxu0 %v7398_v62  ;;  %2135 = vmatpush2.msra.mxu1 %v7400_v5  ;;  %10473 = vst [vmem:[#allocation133_spill] sm:$0xff] %v7412_v53  ;;  %10474 = vst [vmem:[#allocation134_spill] sm:$0xff] %v7416_v18  ;;  %v7418_v62 = vld [vmem:[#allocation10 + $0x378] sm:$0xff]  ;;  %v7422_v5 = vld [vmem:[#allocation10 + $0x360] sm:$0xff] }
 0x35b   :  { %2065 = vmatprep.subr.mxu0 %v7404_v12  ;;  %2136 = vmatprep.subr.mxu1 %v7406_v16  ;;  %10475 = vst [vmem:[#allocation135_spill] sm:$0xff] %v7418_v62  ;;  %10476 = vst [vmem:[#allocation136_spill] sm:$0xff] %v7422_v5  ;;  %v7424_v12 = vld [vmem:[#allocation10 + $0x370] sm:$0xff]  ;;  %v7428_v16 = vld [vmem:[#allocation10 + $0x348] sm:$0xff] }
 0x35c   :  { %2066 = vmatpush2.msra.mxu0 %v7410_v15  ;;  %2137 = vmatpush2.msra.mxu1 %v7412_v53  ;;  %10477 = vst [vmem:[#allocation137_spill] sm:$0xff] %v7424_v12  ;;  %10478 = vst [vmem:[#allocation138_spill] sm:$0xff] %v7428_v16  ;;  %v7430_v15 = vld [vmem:[#allocation10 + $0x358] sm:$0xff]  ;;  %v7434_v53 = vld [vmem:[#allocation10 + $0x340] sm:$0xff] }
 0x35d   :  { %2067 = vmatprep.subr.mxu0 %v7416_v18  ;;  %2138 = vmatprep.subr.mxu1 %v7418_v62  ;;  %10479 = vst [vmem:[#allocation139_spill] sm:$0xff] %v7430_v15  ;;  %10480 = vst [vmem:[#allocation140_spill] sm:$0xff] %v7434_v53  ;;  %v7436_v18 = vld [vmem:[#allocation10 + $0x350] sm:$0xff]  ;;  %v7440_v62 = vld [vmem:[#allocation10 + $0x328] sm:$0xff] }
 0x35e   :  { %2068 = vmatpush2.msra.mxu0 %v7422_v5  ;;  %2139 = vmatpush2.msra.mxu1 %v7424_v12  ;;  %10481 = vst [vmem:[#allocation141_spill] sm:$0xff] %v7436_v18  ;;  %10482 = vst [vmem:[#allocation142_spill] sm:$0xff] %v7440_v62  ;;  %v7442_v5 = vld [vmem:[#allocation10 + $0x338] sm:$0xff]  ;;  %v7446_v12 = vld [vmem:[#allocation10 + $0x320] sm:$0xff] }
 0x35f   :  { %2069 = vmatprep.subr.mxu0 %v7428_v16  ;;  %2140 = vmatprep.subr.mxu1 %v7430_v15  ;;  %10483 = vst [vmem:[#allocation143_spill] sm:$0xff] %v7442_v5  ;;  %10484 = vst [vmem:[#allocation144_spill] sm:$0xff] %v7446_v12  ;;  %v7448_v16 = vld [vmem:[#allocation10 + $0x330] sm:$0xff]  ;;  %v7452_v15 = vld [vmem:[#allocation10 + $0x308] sm:$0xff] }
 0x360   :  { %2070 = vmatpush2.msra.mxu0 %v7434_v53  ;;  %2141 = vmatpush2.msra.mxu1 %v7436_v18  ;;  %10485 = vst [vmem:[#allocation145_spill] sm:$0xff] %v7448_v16  ;;  %10486 = vst [vmem:[#allocation146_spill] sm:$0xff] %v7452_v15  ;;  %v7454_v53 = vld [vmem:[#allocation10 + $0x318] sm:$0xff]  ;;  %v7458_v18 = vld [vmem:[#allocation10 + $0x300] sm:$0xff] }
 0x361   :  { %2071 = vmatprep.subr.mxu0 %v7440_v62  ;;  %2142 = vmatprep.subr.mxu1 %v7442_v5  ;;  %10487 = vst [vmem:[#allocation147_spill] sm:$0xff] %v7454_v53  ;;  %10488 = vst [vmem:[#allocation148_spill] sm:$0xff] %v7458_v18  ;;  %v7460_v62 = vld [vmem:[#allocation10 + $0x310] sm:$0xff]  ;;  %v7464_v5 = vld [vmem:[#allocation10 + $0x2e8] sm:$0xff] }
 0x362   :  { %2072 = vmatpush2.msra.mxu0 %v7446_v12  ;;  %2143 = vmatpush2.msra.mxu1 %v7448_v16  ;;  %10489 = vst [vmem:[#allocation149_spill] sm:$0xff] %v7460_v62  ;;  %10490 = vst [vmem:[#allocation150_spill] sm:$0xff] %v7464_v5  ;;  %v7466_v12 = vld [vmem:[#allocation10 + $0x2f8] sm:$0xff]  ;;  %v7468_v16 = vld [vmem:[#allocation10 + $0x2e0] sm:$0xff] }
 0x363   :  { %2073 = vmatprep.subr.mxu0 %v7452_v15  ;;  %2144 = vmatprep.subr.mxu1 %v7454_v53  ;;  %10491 = vst [vmem:[#allocation151_spill] sm:$0xff] %v7466_v12  ;;  %10492 = vst [vmem:[#allocation152_spill] sm:$0xff] %v7468_v16  ;;  %v7472_v15 = vld [vmem:[#allocation10 + $0x2f0] sm:$0xff]  ;;  %v7474_v53 = vld [vmem:[#allocation10 + $0x2c8] sm:$0xff] }
 0x364   :  { %2074 = vmatpush2.msra.mxu0 %v7458_v18  ;;  %2145 = vmatpush2.msra.mxu1 %v7460_v62  ;;  %10493 = vst [vmem:[#allocation153_spill] sm:$0xff] %v7472_v15  ;;  %10494 = vst [vmem:[#allocation154_spill] sm:$0xff] %v7474_v53  ;;  %v7480_v62 = vld [vmem:[#allocation10 + $0x2c0] sm:$0xff]  ;;  %v7482_v18 = vld [vmem:[#allocation10 + $0x2d0] sm:$0xff] }
 0x365   :  { %2075 = vmatprep.subr.mxu0 %v7464_v5  ;;  %2146 = vmatprep.subr.mxu1 %v7466_v12  ;;  %10496 = vst [vmem:[#allocation156_spill] sm:$0xff] %v7480_v62  ;;  %10497 = vst [vmem:[#allocation157_spill] sm:$0xff] %v7482_v18  ;;  %v7488_v12 = vld [vmem:[#allocation10 + $0x2b8] sm:$0xff]  ;;  %v7490_v5 = vld [vmem:[#allocation10 + $0x2a0] sm:$0xff] }
 0x366   :  { %2076 = vmatpush2.msra.mxu0 %v7468_v16  ;;  %2147 = vmatpush2.msra.mxu1 %v7472_v15  ;;  %10499 = vst [vmem:[#allocation159_spill] sm:$0xff] %v7488_v12  ;;  %10500 = vst [vmem:[#allocation160_spill] sm:$0xff] %v7490_v5  ;;  %v7496_v15 = vld [vmem:[#allocation10 + $0x288] sm:$0xff]  ;;  %v7498_v16 = vld [vmem:[#allocation10 + $0x298] sm:$0xff] }
 0x367   :  { %2077 = vmatprep.subr.mxu0 %v7474_v53  ;;  %2148 = vmatprep.subr.mxu1 %v7476_v6  ;;  %10502 = vst [vmem:[#allocation162_spill] sm:$0xff] %v7496_v15  ;;  %10503 = vst [vmem:[#allocation163_spill] sm:$0xff] %v7498_v16  ;;  %v7502_v53 = vld [vmem:[#allocation10 + $0x280] sm:$0xff]  ;;  %v7504_v6 = vld [vmem:[#allocation10 + $0x290] sm:$0xff] }
 0x368   :  { %2078 = vmatpush2.msra.mxu0 %v7480_v62  ;;  %2149 = vmatpush2.msra.mxu1 %v7482_v18  ;;  %10504 = vst [vmem:[#allocation164_spill] sm:$0xff] %v7502_v53  ;;  %10505 = vst [vmem:[#allocation165_spill] sm:$0xff] %v7504_v6  ;;  %v7510_v62 = vld [vmem:[#allocation10 + $0x278] sm:$0xff]  ;;  %v7514_v18 = vld [vmem:[#allocation10 + $0x260] sm:$0xff] }
 0x369   :  { %2079 = vmatprep.subr.mxu0 %v7484_v27  ;;  %2150 = vmatprep.subr.mxu1 %v7488_v12  ;;  %10507 = vst [vmem:[#allocation167_spill] sm:$0xff] %v7510_v62  ;;  %10508 = vst [vmem:[#allocation168_spill] sm:$0xff] %v7514_v18  ;;  %v7516_v27 = vld [vmem:[#allocation10 + $0x270] sm:$0xff]  ;;  %v7520_v12 = vld [vmem:[#allocation10 + $0x248] sm:$0xff] }
 0x36a   :  { %2080 = vmatpush2.msra.mxu0 %v7490_v5  ;;  %2151 = vmatpush2.msra.mxu1 %v7492_v21  ;;  %10509 = vst [vmem:[#allocation169_spill] sm:$0xff] %v7516_v27  ;;  %10510 = vst [vmem:[#allocation170_spill] sm:$0xff] %v7520_v12  ;;  %v7522_v5 = vld [vmem:[#allocation10 + $0x258] sm:$0xff]  ;;  %v7526_v21 = vld [vmem:[#allocation10 + $0x240] sm:$0xff] }
 0x36b   :  { %2081 = vmatprep.subr.mxu0 %v7496_v15  ;;  %2152 = vmatprep.subr.mxu1 %v7498_v16  ;;  %10511 = vst [vmem:[#allocation171_spill] sm:$0xff] %v7522_v5  ;;  %10512 = vst [vmem:[#allocation172_spill] sm:$0xff] %v7526_v21  ;;  %v7528_v15 = vld [vmem:[#allocation10 + $0x250] sm:$0xff]  ;;  %v7532_v16 = vld [vmem:[#allocation10 + $0x228] sm:$0xff] }
 0x36c   :  { %2082 = vmatpush2.msra.mxu0 %v7502_v53  ;;  %2153 = vmatpush2.msra.mxu1 %v7504_v6  ;;  %10513 = vst [vmem:[#allocation173_spill] sm:$0xff] %v7528_v15  ;;  %10514 = vst [vmem:[#allocation174_spill] sm:$0xff] %v7532_v16  ;;  %v7534_v53 = vld [vmem:[#allocation10 + $0x238] sm:$0xff]  ;;  %v7538_v6 = vld [vmem:[#allocation10 + $0x220] sm:$0xff] }
 0x36d   :  { %2083 = vmatprep.subr.mxu0 %v7508_v0  ;;  %2154 = vmatprep.subr.mxu1 %v7510_v62  ;;  %10515 = vst [vmem:[#allocation175_spill] sm:$0xff] %v7534_v53  ;;  %10516 = vst [vmem:[#allocation176_spill] sm:$0xff] %v7538_v6  ;;  %v7540_v0 = vld [vmem:[#allocation10 + $0x230] sm:$0xff]  ;;  %v7544_v62 = vld [vmem:[#allocation10 + $0x208] sm:$0xff] }
 0x36e   :  { %2084 = vmatpush2.msra.mxu0 %v7514_v18  ;;  %2155 = vmatpush2.msra.mxu1 %v7516_v27  ;;  %10517 = vst [vmem:[#allocation34_spill] sm:$0xff] %v7540_v0  ;;  %10518 = vst [vmem:[#allocation33_spill] sm:$0xff] %v7544_v62  ;;  %v7546_v18 = vld [vmem:[#allocation10 + $0x218] sm:$0xff]  ;;  %v7550_v27 = vld [vmem:[#allocation10 + $0x200] sm:$0xff] }
 0x36f   :  { %2085 = vmatprep.subr.mxu0 %v7520_v12  ;;  %2156 = vmatprep.subr.mxu1 %v7522_v5  ;;  %10519 = vst [vmem:[#allocation35_spill] sm:$0xff] %v7546_v18  ;;  %10520 = vst [vmem:[#allocation31_spill] sm:$0xff] %v7550_v27  ;;  %v7552_v12 = vld [vmem:[#allocation10 + $0x210] sm:$0xff] }
 0x370   :  { %2086 = vmatpush2.msra.mxu0 %v7526_v21  ;;  %2157 = vmatpush2.msra.mxu1 %v7528_v15  ;;  %10521 = vst [vmem:[#allocation178_spill] sm:$0xff] %v7552_v12 }
 0x371   :  { %2087 = vmatprep.subr.mxu0 %v7532_v16  ;;  %2158 = vmatprep.subr.mxu1 %v7534_v53  ;;  %v1460_v53 = vld [vmem:[%s9501_s9] sm:$0xf] }
 0x372   :  { %2088 = vmatpush2.msra.mxu0 %v7538_v6  ;;  %2159 = vmatpush2.msra.mxu1 %v7540_v0  ;;  %v1465_v6 = vrot.slane %v1460_v53, %v10375_v7 }
 0x373   :  { %2089 = vmatprep.subr.mxu0 %v7544_v62  ;;  %2160 = vmatprep.subr.mxu1 %v7546_v18  ;;  %v4924_v62 = vld [vmem:[%s9492_s0 + $0x10] sm:$0xff] }
 0x374   :  { %2090 = vmatpush2.msra.mxu0 %v7550_v27  ;;  %2161 = vmatpush2.msra.mxu1 %v7552_v12  ;;  %v1469_v12 = vrot.slane %v1460_v53, %v10377_v3 }
 0x375   :  { %2260 = vmatprep.subr.mxu0 %v6984_v49  ;;  %5475 = vmatprep.subr.mxu1 %v10238_v63 }
 0x376   :  { %4942 = vperm.xlu1 %5709, %v4924_v62   ;;  %v1477_v62 = vrot.slane %v1460_v53, %v10378_v56 }
 0x3d3   :  { %v1548_v18 = vpop.f32.mrf.mxu0  ;;  %v1619_v20 = vpop.f32.mrf.mxu1 }
 0x3d4   :  { %v1549_v0 = vadd.f32 %v1548_v18, %v1465_v6  ;;  %v1473_v6 = vrot.slane %v1460_v53, %v6254_v9  ;;  %v10523_v53 = vld [vmem:[#allocation39_spill] sm:$0xff] }
 0x3d5   :  { %v1550_v16 = vpop.f32.mrf.mxu0  ;;  %v1621_v18 = vpop.f32.mrf.mxu1 }
 0x3d6   :  { %v5157_v27 = vmul.f32 -1.442695, %v1549_v0  ;;  %v1551_v49 = vadd.f32 %v1550_v16, %v1469_v12  ;;  %v1703_v0 = vrot.slane %v1698_v13, %v10375_v7  ;;  %v1622_v12 = vadd.f32 %v1621_v18, %v1477_v62 }
 0x3d7   :  { %v1620_v50 = vadd.f32 %v1619_v20, %v1473_v6 }
 0x3d8   :  { %5740 = vpow2.f32 %v5157_v27  ;;  %v5158_v15 = vmul.f32 -1.442695, %v1551_v49 }
 0x3da   :  { %5742 = vpow2.f32 %v5158_v15 }
 0x3e5   :  { %v5741_v21 = vpop.eup %5740 }
 0x3e6   :  { %v1627_v5 = vadd.f32 1.0, %v5741_v21 }
 0x3e7   :  { %v5743_v10 = vpop.eup %5742 }
 0x3e8   :  { %5744 = vrcp.f32 %v1627_v5  ;;  %v1633_v27 = vadd.f32 1.0, %v5743_v10  ;;  %v1707_v5 = vrot.slane %v1698_v13, %v10377_v3 }
 0x3ea   :  { %5746 = vrcp.f32 %v1633_v27 }
 0x3f4   :  { %v1781_v16 = vpop.f32.mrf.mxu0  ;;  %v1852_v15 = vpop.f32.mrf.mxu1 }
 0x3f5   :  { %v5745_v49 = vpop.eup %5744  ;;  %v1782_v21 = vadd.f32 %v1781_v16, %v1703_v0 }
 0x3f6   :  { %v1636_v48 = vmul.f32 %v5745_v49, %v1622_v12  ;;  %v1783_v47 = vpop.f32.mrf.mxu0  ;;  %v5474_v46 = vpop.f32.mrf.mxu1 }
 0x3f7   :  { %v1856_v56 = vadd.f32 %v1782_v21, %v10522_v44  ;;  %v1784_v7 = vadd.f32 %v1783_v47, %v1707_v5  ;;  %v5747_v18 = vpop.eup %5746 }
 0x3f8   :  { %v1637_v43 = vadd.f32 %v1636_v48, %v1620_v50  ;;  %v1639_v0 = vsub.f32 1.0, %v5747_v18  ;;  %v1641_v6 = vmul.f32 %v5747_v18, %v7008_v45  ;;  %v10525_v48 = vld [vmem:[#allocation38_spill] sm:$0xff]  ;;  %v8010_v45 = vld [vmem:[#allocation10 + $0x1a0] sm:$0xff] }
 0x3f9   :  { %v5159_v42 = vmul.f32 -1.442695, %v1856_v56  ;;  %v1863_v10 = vadd.f32 %v1784_v7, %v10523_v53  ;;  %v1711_v7 = vrot.slane %v1698_v13, %v6254_v9  ;;  %v10560_v13 = vld [vmem:[#allocation78_spill] sm:$0xff] }
 0x3fa   :  { %5748 = vtanh.f32 %v1637_v43  ;;  %v10564_v18 = vld [vmem:[#allocation82_spill] sm:$0xff] }
 0x3fb   :  { %5750 = vpow2.f32 %v5159_v42  ;;  %v5160_v62 = vmul.f32 -1.442695, %v1863_v10  ;;  %v1853_v43 = vadd.f32 %v1852_v15, %v1711_v7  ;;  %v10561_v15 = vld [vmem:[#allocation79_spill] sm:$0xff]  ;;  %v10562_v10 = vld [vmem:[#allocation80_spill] sm:$0xff]  ;;  %v10571_v7 = vld [vmem:[#allocation89_spill] sm:$0xff] }
 0x3fd   :  { %5752 = vpow2.f32 %v5160_v62  ;;  %v10563_v62 = vld [vmem:[#allocation81_spill] sm:$0xff] }
 0x407   :  { %v5749_v16 = vpop.eup %5748 }
 0x408   :  { %v5751_v3 = vpop.eup %5750  ;;  %v1640_v20 = vmul.f32 %v5749_v16, %v1639_v0  ;;  %v10565_v0 = vld [vmem:[#allocation83_spill] sm:$0xff]  ;;  %v10566_v16 = vld [vmem:[#allocation84_spill] sm:$0xff] }
 0x409   :  { %v1860_v27 = vadd.f32 1.0, %v5751_v3 }
 0x40a   :  { %v7580_v46 = vadd.f32 %v1641_v6, %v1640_v20  ;;  %v5753_v56 = vpop.eup %5752  ;;  %v10567_v20 = vld [vmem:[#allocation85_spill] sm:$0xff]  ;;  %v10568_v6 = vld [vmem:[#allocation86_spill] sm:$0xff] }
 0x40b   :  { %5754 = vrcp.f32 %v1860_v27  ;;  %v1867_v42 = vadd.f32 1.0, %v5753_v56  ;;  %v10569_v27 = vld [vmem:[#allocation87_spill] sm:$0xff]  ;;  %v10570_v56 = vld [vmem:[#allocation88_spill] sm:$0xff] }
 0x40c   :  { %10524 = vst [vmem:[#allocation37_spill] sm:$0xff] %v7580_v46  ;;  %2091 = vmatprep.mubr.f32.mxu0 %v7580_v46  ;;  %2162 = vmatprep.mubr.f32.mxu1 %v7580_v46 }
 0x40d   :  { %5756 = vrcp.f32 %v1867_v42  ;;  %v10572_v42 = vld [vmem:[#allocation90_spill] sm:$0xff] }
 0x418   :  { %v5755_v44 = vpop.eup %5754 }
 0x419   :  { %v1870_v47 = vmul.f32 %v5755_v44, %v1853_v43  ;;  %v10573_v43 = vld [vmem:[#allocation91_spill] sm:$0xff]  ;;  %v10574_v44 = vld [vmem:[#allocation92_spill] sm:$0xff] }
 0x41a   :  { %v5757_v12 = vpop.eup %5756 }
 0x41b   :  { %v1871_v50 = vadd.f32 %v1870_v47, %v10525_v48  ;;  %v1873_v3 = vsub.f32 1.0, %v5757_v12  ;;  %v1875_v5 = vmul.f32 %v5757_v12, %v7015_v31  ;;  %v10526_v31 = vld [vmem:[#allocation47_spill] sm:$0xff]  ;;  %v10575_v47 = vld [vmem:[#allocation93_spill] sm:$0xff]  ;;  %v10576_v48 = vld [vmem:[#allocation94_spill] sm:$0xff] }
 0x41c   :  { %v10578_v12 = vld [vmem:[#allocation96_spill] sm:$0xff] }
 0x41d   :  { %5758 = vtanh.f32 %v1871_v50  ;;  %v10577_v50 = vld [vmem:[#allocation95_spill] sm:$0xff] }
 0x42a   :  { %v5759_v49 = vpop.eup %5758 }
 0x42b   :  { %v1874_v21 = vmul.f32 %v5759_v49, %v1873_v3  ;;  %v10579_v3 = vld [vmem:[#allocation97_spill] sm:$0xff]  ;;  %v10580_v49 = vld [vmem:[#allocation98_spill] sm:$0xff] }
 0x42d   :  { %v7587_v53 = vadd.f32 %v1875_v5, %v1874_v21  ;;  %v10581_v21 = vld [vmem:[#allocation99_spill] sm:$0xff]  ;;  %v10582_v5 = vld [vmem:[#allocation100_spill] sm:$0xff] }
 0x42f   :  { %2092 = vmatmul.mubr.f32.vlgmr.msra.gmra.mxu0 %v7587_v53  ;;  %2163 = vmatmul.mubr.f32.vlgmr.msra.gmra.mxu1 %v7587_v53 }
 0x430   :  { %2261 = vmatpush1.msra.mxu0 %v7017_v8  ;;  %5476 = vmatpush3.msra.mxu1 %v7019_v52  ;;  %v10527_v8 = vld [vmem:[#allocation49_spill] sm:$0xff]  ;;  %v10528_v52 = vld [vmem:[#allocation19_spill] sm:$0xff] }
 0x431   :  { %2262 = vmatprep.subr.mxu0 %v7021_v37  ;;  %5477 = vmatprep.subr.mxu1 %v10238_v63  ;;  %v7641_v37 = vld [vmem:[#allocation9 + $0x20] sm:$0xff] }
 0x432   :  { %2263 = vmatpush1.msra.mxu0 %v7025_v11  ;;  %5478 = vmatpush3.msra.mxu1 %v7027_v17  ;;  %v10529_v11 = vld [vmem:[#allocation20_spill] sm:$0xff] }
 0x433   :  { %2264 = vmatprep.subr.mxu0 %v7031_v59  ;;  %5479 = vmatprep.subr.mxu1 %v10238_v63  ;;  %v7645_v17 = vld [vmem:[#allocation9 + $0x18] sm:$0xff]  ;;  %v10530_v59 = vld [vmem:[#allocation51_spill] sm:$0xff] }
 0x434   :  { %2265 = vmatpush1.msra.mxu0 %v7035_v54  ;;  %5480 = vmatpush3.msra.mxu1 %v7037_v25  ;;  %v10531_v54 = vld [vmem:[#allocation21_spill] sm:$0xff]  ;;  %v10532_v25 = vld [vmem:[#allocation52_spill] sm:$0xff] }
 0x435   :  { %2266 = vmatprep.subr.mxu0 %v7041_v14  ;;  %5481 = vmatprep.subr.mxu1 %v10238_v63  ;;  %v10533_v14 = vld [vmem:[#allocation22_spill] sm:$0xff] }
 0x436   :  { %2267 = vmatpush1.msra.mxu0 %v7045_v4  ;;  %5482 = vmatpush3.msra.mxu1 %v7047_v58  ;;  %v10534_v4 = vld [vmem:[#allocation54_spill] sm:$0xff]  ;;  %v10535_v58 = vld [vmem:[#allocation23_spill] sm:$0xff] }
 0x437   :  { %2268 = vmatprep.subr.mxu0 %v7051_v55  ;;  %5483 = vmatprep.subr.mxu1 %v10238_v63  ;;  %v10536_v55 = vld [vmem:[#allocation55_spill] sm:$0xff] }
 0x438   :  { %2269 = vmatpush1.msra.mxu0 %v7055_v57  ;;  %5484 = vmatpush3.msra.mxu1 %v7057_v33  ;;  %v10537_v57 = vld [vmem:[#allocation24_spill] sm:$0xff]  ;;  %v10538_v33 = vld [vmem:[#allocation57_spill] sm:$0xff] }
 0x439   :  { %2270 = vmatprep.subr.mxu0 %v7061_v61  ;;  %5485 = vmatprep.subr.mxu1 %v10238_v63  ;;  %v10539_v61 = vld [vmem:[#allocation25_spill] sm:$0xff] }
 0x43a   :  { %2271 = vmatpush1.msra.mxu0 %v7065_v51  ;;  %5486 = vmatpush3.msra.mxu1 %v7067_v60  ;;  %v10540_v51 = vld [vmem:[#allocation58_spill] sm:$0xff] }
 0x43b   :  { %2272 = vmatprep.subr.mxu0 %v7071_v1  ;;  %5487 = vmatprep.subr.mxu1 %v10238_v63  ;;  %v10541_v60 = vld [vmem:[#allocation26_spill] sm:$0xff]  ;;  %v10542_v1 = vld [vmem:[#allocation60_spill] sm:$0xff] }
 0x43c   :  { %2273 = vmatpush1.msra.mxu0 %v7075_v2  ;;  %5488 = vmatpush3.msra.mxu1 %v7077_v19  ;;  %v10543_v2 = vld [vmem:[#allocation61_spill] sm:$0xff]  ;;  %v10544_v19 = vld [vmem:[#allocation62_spill] sm:$0xff] }
 0x43d   :  { %2274 = vmatprep.subr.mxu0 %v7081_v22  ;;  %5489 = vmatprep.subr.mxu1 %v10238_v63  ;;  %v10545_v22 = vld [vmem:[#allocation63_spill] sm:$0xff] }
 0x43e   :  { %2275 = vmatpush1.msra.mxu0 %v7085_v23  ;;  %5490 = vmatpush3.msra.mxu1 %v7087_v24  ;;  %v10546_v23 = vld [vmem:[#allocation64_spill] sm:$0xff]  ;;  %v10547_v24 = vld [vmem:[#allocation65_spill] sm:$0xff]  ;;  %10691 = vst [vmem:[#allocation63_spill] sm:$0xff] %v8010_v45 }
 0x43f   :  { %2276 = vmatprep.subr.mxu0 %v7091_v26  ;;  %5491 = vmatprep.subr.mxu1 %v10238_v63  ;;  %v10548_v26 = vld [vmem:[#allocation66_spill] sm:$0xff] }
 0x440   :  { %2277 = vmatpush1.msra.mxu0 %v7095_v28  ;;  %5492 = vmatpush3.msra.mxu1 %v7097_v29  ;;  %v10549_v28 = vld [vmem:[#allocation67_spill] sm:$0xff]  ;;  %v10550_v29 = vld [vmem:[#allocation68_spill] sm:$0xff] }
 0x441   :  { %2278 = vmatprep.subr.mxu0 %v7101_v30  ;;  %5493 = vmatprep.subr.mxu1 %v10238_v63  ;;  %v10551_v30 = vld [vmem:[#allocation69_spill] sm:$0xff] }
 0x442   :  { %2279 = vmatpush1.msra.mxu0 %v7105_v32  ;;  %5494 = vmatpush3.msra.mxu1 %v7107_v34  ;;  %v10552_v32 = vld [vmem:[#allocation70_spill] sm:$0xff]  ;;  %v10553_v34 = vld [vmem:[#allocation71_spill] sm:$0xff] }
 0x443   :  { %2280 = vmatprep.subr.mxu0 %v7111_v35  ;;  %5495 = vmatprep.subr.mxu1 %v10238_v63  ;;  %v10554_v35 = vld [vmem:[#allocation72_spill] sm:$0xff] }
 0x444   :  { %2281 = vmatpush1.msra.mxu0 %v7115_v36  ;;  %5496 = vmatpush3.msra.mxu1 %v7117_v38  ;;  %v10555_v36 = vld [vmem:[#allocation73_spill] sm:$0xff]  ;;  %v10556_v38 = vld [vmem:[#allocation74_spill] sm:$0xff] }
 0x445   :  { %2282 = vmatprep.subr.mxu0 %v7121_v39  ;;  %5497 = vmatprep.subr.mxu1 %v10238_v63  ;;  %v10557_v39 = vld [vmem:[#allocation75_spill] sm:$0xff] }
 0x446   :  { %2283 = vmatpush1.msra.mxu0 %v7125_v40  ;;  %5498 = vmatpush3.msra.mxu1 %v7127_v41  ;;  %v10558_v40 = vld [vmem:[#allocation76_spill] sm:$0xff]  ;;  %v10559_v41 = vld [vmem:[#allocation77_spill] sm:$0xff] }
 0x447   :  { %2284 = vmatprep.subr.mxu0 %v10526_v31  ;;  %5499 = vmatprep.subr.mxu1 %v10238_v63  ;;  %v10583_v31 = vld [vmem:[#allocation101_spill] sm:$0xff] }
 0x448   :  { %2285 = vmatpush1.msra.mxu0 %v10527_v8  ;;  %5500 = vmatpush3.msra.mxu1 %v10528_v52  ;;  %v10584_v8 = vld [vmem:[#allocation102_spill] sm:$0xff]  ;;  %v10585_v52 = vld [vmem:[#allocation103_spill] sm:$0xff] }
 0x449   :  { %2286 = vmatprep.subr.mxu0 %v10529_v11  ;;  %5501 = vmatprep.subr.mxu1 %v10238_v63  ;;  %v10586_v11 = vld [vmem:[#allocation104_spill] sm:$0xff] }
 0x44a   :  { %2287 = vmatpush1.msra.mxu0 %v10530_v59  ;;  %5502 = vmatpush3.msra.mxu1 %v10531_v54  ;;  %v10587_v59 = vld [vmem:[#allocation105_spill] sm:$0xff]  ;;  %v10588_v54 = vld [vmem:[#allocation106_spill] sm:$0xff] }
 0x44b   :  { %2288 = vmatprep.subr.mxu0 %v7641_v37  ;;  %5503 = vmatprep.subr.mxu1 %v10238_v63 }
 0x44c   :  { %2289 = vmatpush1.msra.mxu0 %v7645_v17  ;;  %5504 = vmatpush3.msra.mxu1 %v10532_v25  ;;  %v10589_v25 = vld [vmem:[#allocation107_spill] sm:$0xff] }
 0x44d   :  { %2290 = vmatprep.subr.mxu0 %v10533_v14  ;;  %5505 = vmatprep.subr.mxu1 %v10238_v63  ;;  %v10590_v14 = vld [vmem:[#allocation108_spill] sm:$0xff] }
 0x44e   :  { %2291 = vmatpush1.msra.mxu0 %v10534_v4  ;;  %2324 = vmatprep.mubr.f32.mxu0 %v10238_v63  ;;  %v10591_v4 = vld [vmem:[#allocation109_spill] sm:$0xff] }
 0x44f   :  { %5506 = vmatpush3.msra.mxu1 %v10535_v58  ;;  %5507 = vmatprep.mubr.msk.f32.mxu1 %vm5987_vm1, %v10238_v63  ;;  %v10592_v58 = vld [vmem:[#allocation110_spill] sm:$0xff] }
 0x450   :  { %2325 = vmatmul.mubr.f32.vlgmr.msra.gmra.mxu0 %v7587_v53  ;;  %5508 = vmatmul.mubr.f32.vlgmr.msra.gmra.mxu1 %v7587_v53 }
 0x451   :  { %2572 = vmatprep.subr.mxu0 %v10536_v55  ;;  %2643 = vmatprep.subr.mxu1 %v10537_v57  ;;  %v10593_v55 = vld [vmem:[#allocation111_spill] sm:$0xff]  ;;  %v10594_v57 = vld [vmem:[#allocation112_spill] sm:$0xff] }
 0x452   :  { %2573 = vmatpush1.msra.mxu0 %v10538_v33  ;;  %2644 = vmatpush1.msra.mxu1 %v10539_v61  ;;  %v10595_v33 = vld [vmem:[#allocation113_spill] sm:$0xff]  ;;  %v10596_v61 = vld [vmem:[#allocation114_spill] sm:$0xff] }
 0x453   :  { %2574 = vmatprep.subr.mxu0 %v10540_v51  ;;  %2645 = vmatprep.subr.mxu1 %v10541_v60  ;;  %v10597_v51 = vld [vmem:[#allocation115_spill] sm:$0xff]  ;;  %v10598_v60 = vld [vmem:[#allocation116_spill] sm:$0xff] }
 0x454   :  { %2575 = vmatpush1.msra.mxu0 %v10542_v1  ;;  %2646 = vmatpush1.msra.mxu1 %v10543_v2  ;;  %v10599_v1 = vld [vmem:[#allocation117_spill] sm:$0xff]  ;;  %v10600_v2 = vld [vmem:[#allocation118_spill] sm:$0xff] }
 0x455   :  { %2576 = vmatprep.subr.mxu0 %v10544_v19  ;;  %2647 = vmatprep.subr.mxu1 %v10545_v22  ;;  %v10601_v19 = vld [vmem:[#allocation119_spill] sm:$0xff]  ;;  %v10602_v22 = vld [vmem:[#allocation120_spill] sm:$0xff] }
 0x456   :  { %2577 = vmatpush1.msra.mxu0 %v10546_v23  ;;  %2648 = vmatpush1.msra.mxu1 %v10547_v24  ;;  %v10603_v23 = vld [vmem:[#allocation121_spill] sm:$0xff]  ;;  %v10604_v24 = vld [vmem:[#allocation122_spill] sm:$0xff] }
 0x457   :  { %2578 = vmatprep.subr.mxu0 %v10548_v26  ;;  %2649 = vmatprep.subr.mxu1 %v10549_v28  ;;  %v10605_v26 = vld [vmem:[#allocation123_spill] sm:$0xff]  ;;  %v10606_v28 = vld [vmem:[#allocation124_spill] sm:$0xff] }
 0x458   :  { %2579 = vmatpush1.msra.mxu0 %v10550_v29  ;;  %2650 = vmatpush1.msra.mxu1 %v10551_v30  ;;  %v10607_v29 = vld [vmem:[#allocation125_spill] sm:$0xff]  ;;  %v10608_v30 = vld [vmem:[#allocation126_spill] sm:$0xff] }
 0x459   :  { %2580 = vmatprep.subr.mxu0 %v10552_v32  ;;  %2651 = vmatprep.subr.mxu1 %v10553_v34  ;;  %v10609_v32 = vld [vmem:[#allocation127_spill] sm:$0xff]  ;;  %v10610_v34 = vld [vmem:[#allocation128_spill] sm:$0xff] }
 0x45a   :  { %2581 = vmatpush1.msra.mxu0 %v10554_v35  ;;  %2652 = vmatpush1.msra.mxu1 %v10555_v36  ;;  %v10611_v35 = vld [vmem:[#allocation129_spill] sm:$0xff]  ;;  %v10612_v36 = vld [vmem:[#allocation130_spill] sm:$0xff] }
 0x45b   :  { %2582 = vmatprep.subr.mxu0 %v10556_v38  ;;  %2653 = vmatprep.subr.mxu1 %v10557_v39  ;;  %v10613_v38 = vld [vmem:[#allocation131_spill] sm:$0xff]  ;;  %v10614_v39 = vld [vmem:[#allocation132_spill] sm:$0xff] }
 0x45c   :  { %2583 = vmatpush1.msra.mxu0 %v10558_v40  ;;  %2654 = vmatpush1.msra.mxu1 %v10559_v41  ;;  %v10615_v40 = vld [vmem:[#allocation133_spill] sm:$0xff]  ;;  %v10616_v41 = vld [vmem:[#allocation134_spill] sm:$0xff] }
 0x45d   :  { %2584 = vmatprep.subr.mxu0 %v10560_v13  ;;  %2655 = vmatprep.subr.mxu1 %v10561_v15  ;;  %v10617_v13 = vld [vmem:[#allocation135_spill] sm:$0xff]  ;;  %v10618_v15 = vld [vmem:[#allocation136_spill] sm:$0xff] }
 0x45e   :  { %2585 = vmatpush1.msra.mxu0 %v10562_v10  ;;  %2656 = vmatpush1.msra.mxu1 %v10563_v62  ;;  %v10619_v10 = vld [vmem:[#allocation137_spill] sm:$0xff]  ;;  %v10620_v62 = vld [vmem:[#allocation138_spill] sm:$0xff] }
 0x45f   :  { %2586 = vmatprep.subr.mxu0 %v10564_v18  ;;  %2657 = vmatprep.subr.mxu1 %v10565_v0  ;;  %v10621_v18 = vld [vmem:[#allocation139_spill] sm:$0xff]  ;;  %v10622_v0 = vld [vmem:[#allocation140_spill] sm:$0xff] }
 0x460   :  { %2587 = vmatpush1.msra.mxu0 %v10566_v16  ;;  %2658 = vmatpush1.msra.mxu1 %v10567_v20  ;;  %v10623_v16 = vld [vmem:[#allocation141_spill] sm:$0xff]  ;;  %v10624_v20 = vld [vmem:[#allocation142_spill] sm:$0xff] }
 0x461   :  { %2588 = vmatprep.subr.mxu0 %v10568_v6  ;;  %2659 = vmatprep.subr.mxu1 %v10569_v27  ;;  %v10625_v6 = vld [vmem:[#allocation143_spill] sm:$0xff]  ;;  %v10626_v27 = vld [vmem:[#allocation144_spill] sm:$0xff] }
 0x462   :  { %2589 = vmatpush1.msra.mxu0 %v10570_v56  ;;  %2660 = vmatpush1.msra.mxu1 %v10571_v7  ;;  %v10627_v56 = vld [vmem:[#allocation145_spill] sm:$0xff]  ;;  %v10628_v7 = vld [vmem:[#allocation146_spill] sm:$0xff] }
 0x463   :  { %2590 = vmatprep.subr.mxu0 %v10572_v42  ;;  %2661 = vmatprep.subr.mxu1 %v10573_v43  ;;  %v10629_v42 = vld [vmem:[#allocation147_spill] sm:$0xff]  ;;  %v10630_v43 = vld [vmem:[#allocation148_spill] sm:$0xff] }
 0x464   :  { %2591 = vmatpush1.msra.mxu0 %v10574_v44  ;;  %2662 = vmatpush1.msra.mxu1 %v10575_v47  ;;  %v10631_v44 = vld [vmem:[#allocation149_spill] sm:$0xff]  ;;  %v10632_v47 = vld [vmem:[#allocation150_spill] sm:$0xff] }
 0x465   :  { %2592 = vmatprep.subr.mxu0 %v10576_v48  ;;  %2663 = vmatprep.subr.mxu1 %v10577_v50  ;;  %v10633_v48 = vld [vmem:[#allocation151_spill] sm:$0xff]  ;;  %v10634_v50 = vld [vmem:[#allocation152_spill] sm:$0xff] }
 0x466   :  { %2593 = vmatpush1.msra.mxu0 %v10578_v12  ;;  %2664 = vmatpush1.msra.mxu1 %v10579_v3  ;;  %v10635_v12 = vld [vmem:[#allocation153_spill] sm:$0xff]  ;;  %v10636_v3 = vld [vmem:[#allocation154_spill] sm:$0xff] }
 0x467   :  { %2594 = vmatprep.subr.mxu0 %v10580_v49  ;;  %2665 = vmatprep.subr.mxu1 %v10581_v21  ;;  %v10637_v49 = vld [vmem:[#allocation155_spill] sm:$0xff]  ;;  %v10638_v21 = vld [vmem:[#allocation156_spill] sm:$0xff] }
 0x468   :  { %2595 = vmatpush1.msra.mxu0 %v10582_v5  ;;  %2666 = vmatpush1.msra.mxu1 %v10583_v31  ;;  %v10639_v5 = vld [vmem:[#allocation157_spill] sm:$0xff]  ;;  %v10640_v31 = vld [vmem:[#allocation158_spill] sm:$0xff] }
 0x469   :  { %2596 = vmatprep.subr.mxu0 %v10584_v8  ;;  %2667 = vmatprep.subr.mxu1 %v10585_v52  ;;  %v10641_v8 = vld [vmem:[#allocation159_spill] sm:$0xff]  ;;  %v10642_v52 = vld [vmem:[#allocation160_spill] sm:$0xff] }
 0x46a   :  { %2597 = vmatpush1.msra.mxu0 %v10586_v11  ;;  %2668 = vmatpush1.msra.mxu1 %v10587_v59  ;;  %v10643_v11 = vld [vmem:[#allocation161_spill] sm:$0xff]  ;;  %v10644_v59 = vld [vmem:[#allocation162_spill] sm:$0xff] }
 0x46b   :  { %2598 = vmatprep.subr.mxu0 %v10588_v54  ;;  %2669 = vmatprep.subr.mxu1 %v10589_v25  ;;  %v10645_v54 = vld [vmem:[#allocation163_spill] sm:$0xff]  ;;  %v10646_v25 = vld [vmem:[#allocation164_spill] sm:$0xff] }
 0x46c   :  { %2599 = vmatpush1.msra.mxu0 %v10590_v14  ;;  %2670 = vmatpush1.msra.mxu1 %v10591_v4  ;;  %v10647_v14 = vld [vmem:[#allocation165_spill] sm:$0xff]  ;;  %v10648_v4 = vld [vmem:[#allocation166_spill] sm:$0xff] }
 0x46d   :  { %2600 = vmatprep.subr.mxu0 %v10592_v58  ;;  %2671 = vmatprep.subr.mxu1 %v10593_v55  ;;  %v10649_v58 = vld [vmem:[#allocation167_spill] sm:$0xff]  ;;  %v10650_v55 = vld [vmem:[#allocation168_spill] sm:$0xff] }
 0x46e   :  { %2601 = vmatpush1.msra.mxu0 %v10594_v57  ;;  %2672 = vmatpush1.msra.mxu1 %v10595_v33  ;;  %v10651_v57 = vld [vmem:[#allocation169_spill] sm:$0xff]  ;;  %v10652_v33 = vld [vmem:[#allocation170_spill] sm:$0xff] }
 0x46f   :  { %2602 = vmatprep.subr.mxu0 %v10596_v61  ;;  %2673 = vmatprep.subr.mxu1 %v10597_v51  ;;  %v10653_v61 = vld [vmem:[#allocation171_spill] sm:$0xff]  ;;  %v10654_v51 = vld [vmem:[#allocation172_spill] sm:$0xff] }
 0x470   :  { %2603 = vmatpush1.msra.mxu0 %v10598_v60  ;;  %2674 = vmatpush1.msra.mxu1 %v10599_v1  ;;  %v10655_v60 = vld [vmem:[#allocation173_spill] sm:$0xff]  ;;  %v10656_v1 = vld [vmem:[#allocation174_spill] sm:$0xff] }
 0x471   :  { %2604 = vmatprep.subr.mxu0 %v10600_v2  ;;  %2675 = vmatprep.subr.mxu1 %v10601_v19  ;;  %v10657_v2 = vld [vmem:[#allocation175_spill] sm:$0xff]  ;;  %v10658_v19 = vld [vmem:[#allocation176_spill] sm:$0xff] }
 0x472   :  { %2605 = vmatpush2.msra.mxu0 %v10602_v22  ;;  %2676 = vmatpush2.msra.mxu1 %v10603_v23  ;;  %v10659_v22 = vld [vmem:[#allocation34_spill] sm:$0xff]  ;;  %v10660_v23 = vld [vmem:[#allocation33_spill] sm:$0xff] }
 0x473   :  { %2606 = vmatprep.subr.mxu0 %v10604_v24  ;;  %2677 = vmatprep.subr.mxu1 %v10605_v26  ;;  %v10661_v24 = vld [vmem:[#allocation35_spill] sm:$0xff] }
 0x474   :  { %2607 = vmatpush2.msra.mxu0 %v10606_v28  ;;  %2678 = vmatpush2.msra.mxu1 %v10607_v29  ;;  %v10662_v26 = vld [vmem:[#allocation31_spill] sm:$0xff]  ;;  %v10663_v28 = vld [vmem:[#allocation178_spill] sm:$0xff] }
 0x475   :  { %2608 = vmatprep.subr.mxu0 %v10608_v30  ;;  %2679 = vmatprep.subr.mxu1 %v10609_v32  ;;  %v7791_v29 = vld [vmem:[#allocation9 + $0x170] sm:$0xff] }
 0x476   :  { %2609 = vmatpush2.msra.mxu0 %v10610_v34  ;;  %2680 = vmatpush2.msra.mxu1 %v10611_v35  ;;  %v2005_v30 = vld [vmem:[%s9501_s9] sm:$0xf]  ;;  %v4925_v35 = vld [vmem:[%s9492_s0 + $0x18] sm:$0xff] }
 0x477   :  { %2610 = vmatprep.subr.mxu0 %v10612_v36  ;;  %2681 = vmatprep.subr.mxu1 %v10613_v38  ;;  %v10664_v32 = vld [vmem:[#allocation27_spill] sm:$0xff] }
 0x478   :  { %2611 = vmatpush2.msra.mxu0 %v10614_v39  ;;  %2682 = vmatpush2.msra.mxu1 %v10615_v40  ;;  %v2010_v34 = vrot.slane %v2005_v30, %v10664_v32  ;;  %v10665_v40 = vld [vmem:[#allocation29_spill] sm:$0xff] }
 0x479   :  { %2612 = vmatprep.subr.mxu0 %v10616_v41  ;;  %2683 = vmatprep.subr.mxu1 %v10617_v13  ;;  %v2014_v41 = vrot.slane %v2005_v30, %v10665_v40 }
 0x47a   :  { %2613 = vmatpush2.msra.mxu0 %v10618_v15  ;;  %2684 = vmatpush2.msra.mxu1 %v10619_v10 }
 0x47b   :  { %2614 = vmatprep.subr.mxu0 %v10620_v62  ;;  %2685 = vmatprep.subr.mxu1 %v10621_v18 }
 0x47c   :  { %2615 = vmatpush2.msra.mxu0 %v10622_v0  ;;  %2686 = vmatpush2.msra.mxu1 %v10623_v16  ;;  %v2243_v16 = vld [vmem:[%s9499_s7] sm:$0x7] }
 0x47d   :  { %2616 = vmatprep.subr.mxu0 %v10624_v20  ;;  %2687 = vmatprep.subr.mxu1 %v10625_v6  ;;  %v10666_v6 = vld [vmem:[#allocation28_spill] sm:$0xff] }
 0x47e   :  { %2617 = vmatpush2.msra.mxu0 %v10626_v27  ;;  %2688 = vmatpush2.msra.mxu1 %v10627_v56  ;;  %v2022_v27 = vrot.slane %v2005_v30, %v10666_v6 }
 0x47f   :  { %2618 = vmatprep.subr.mxu0 %v10628_v7  ;;  %2689 = vmatprep.subr.mxu1 %v10629_v42  ;;  %v2248_v7 = vrot.slane %v2243_v16, %v10664_v32  ;;  %v2018_v42 = vrot.slane %v2005_v30, %v6254_v9 }
 0x480   :  { %2619 = vmatpush2.msra.mxu0 %v10630_v43  ;;  %2690 = vmatpush2.msra.mxu1 %v10631_v44 }
 0x481   :  { %2620 = vmatprep.subr.mxu0 %v10632_v47  ;;  %2691 = vmatprep.subr.mxu1 %v10633_v48 }
 0x482   :  { %2621 = vmatpush2.msra.mxu0 %v10634_v50  ;;  %2692 = vmatpush2.msra.mxu1 %v10635_v12 }
 0x483   :  { %2622 = vmatprep.subr.mxu0 %v10636_v3  ;;  %2693 = vmatprep.subr.mxu1 %v10637_v49  ;;  %v2252_v3 = vrot.slane %v2243_v16, %v10665_v40 }
 0x484   :  { %2623 = vmatpush2.msra.mxu0 %v10638_v21  ;;  %2694 = vmatpush2.msra.mxu1 %v10639_v5 }
 0x485   :  { %2624 = vmatprep.subr.mxu0 %v10640_v31  ;;  %2695 = vmatprep.subr.mxu1 %v10641_v8  ;;  %v10667_v8 = vld [vmem:[#allocation41_spill] sm:$0xff] }
 0x486   :  { %2625 = vmatpush2.msra.mxu0 %v10642_v52  ;;  %2696 = vmatpush2.msra.mxu1 %v10643_v11 }
 0x487   :  { %2626 = vmatprep.subr.mxu0 %v10644_v59  ;;  %2697 = vmatprep.subr.mxu1 %v10645_v54 }
 0x488   :  { %2627 = vmatpush2.msra.mxu0 %v10646_v25  ;;  %2698 = vmatpush2.msra.mxu1 %v10647_v14  ;;  %v10668_v25 = vld [vmem:[#allocation43_spill] sm:$0xff] }
 0x489   :  { %2628 = vmatprep.subr.mxu0 %v10648_v4  ;;  %2699 = vmatprep.subr.mxu1 %v10649_v58 }
 0x48a   :  { %2629 = vmatpush2.msra.mxu0 %v10650_v55  ;;  %2700 = vmatpush2.msra.mxu1 %v10651_v57 }
 0x48b   :  { %2630 = vmatprep.subr.mxu0 %v10652_v33  ;;  %2701 = vmatprep.subr.mxu1 %v10653_v61 }
 0x48c   :  { %2631 = vmatpush2.msra.mxu0 %v10654_v51  ;;  %2702 = vmatpush2.msra.mxu1 %v10655_v60 }
 0x48d   :  { %2632 = vmatprep.subr.mxu0 %v10656_v1  ;;  %2703 = vmatprep.subr.mxu1 %v10657_v2 }
 0x48e   :  { %2633 = vmatpush2.msra.mxu0 %v10658_v19  ;;  %2704 = vmatpush2.msra.mxu1 %v10659_v22  ;;  %v2256_v19 = vrot.slane %v2243_v16, %v6254_v9  ;;  %v7841_v16 = vld [vmem:[#allocation9 + $0x148] sm:$0xff] }
 0x48f   :  { %2634 = vmatprep.subr.mxu0 %v10660_v23  ;;  %2705 = vmatprep.subr.mxu1 %v10661_v24 }
 0x490   :  { %2635 = vmatpush2.msra.mxu0 %v10662_v26  ;;  %2706 = vmatpush2.msra.mxu1 %v10663_v28  ;;  %v10670_v28 = vld [vmem:[#allocation36_spill] sm:$0xff] }
 0x491   :  { %5510 = vmatprep.subr.mxu1 %v10238_v63  ;;  %2805 = vmatprep.subr.mxu0 %v7791_v29 }
 0x492   :  { %4947 = vperm.xlu1 %5709, %v4925_v35  }
 0x4ef   :  { %v2093_v36 = vpop.f32.mrf.mxu0  ;;  %v2164_v0 = vpop.f32.mrf.mxu1 }
 0x4f0   :  { %v2094_v38 = vadd.f32 %v2093_v36, %v2010_v34  ;;  %v2165_v49 = vadd.f32 %v2164_v0, %v2018_v42  ;;  %v7839_v0 = vld [vmem:[#allocation9 + $0x138] sm:$0xff]  ;;  %v7859_v42 = vld [vmem:[#allocation9 + $0x108] sm:$0xff] }
 0x4f1   :  { %v2095_v13 = vpop.f32.mrf.mxu0  ;;  %v2166_v56 = vpop.f32.mrf.mxu1 }
 0x4f2   :  { %v5161_v39 = vmul.f32 -1.442695, %v2094_v38  ;;  %v2096_v15 = vadd.f32 %v2095_v13, %v2014_v41  ;;  %v2167_v44 = vadd.f32 %v2166_v56, %v2022_v27  ;;  %v7821_v13 = vld [vmem:[#allocation9 + $0x168] sm:$0xff]  ;;  %v7849_v27 = vld [vmem:[#allocation9 + $0x120] sm:$0xff]  ;;  %v7851_v56 = vld [vmem:[#allocation9 + $0x130] sm:$0xff] }
 0x4f4   :  { %5760 = vpow2.f32 %v5161_v39  ;;  %v5162_v10 = vmul.f32 -1.442695, %v2096_v15  ;;  %v7823_v15 = vld [vmem:[#allocation9 + $0x178] sm:$0xff] }
 0x4f6   :  { %5762 = vpow2.f32 %v5162_v10  ;;  %v7825_v10 = vld [vmem:[#allocation9 + $0x158] sm:$0xff] }
 0x501   :  { %v5761_v62 = vpop.eup %5760 }
 0x502   :  { %v2172_v18 = vadd.f32 1.0, %v5761_v62  ;;  %v7829_v62 = vld [vmem:[#allocation9 + $0x150] sm:$0xff] }
 0x503   :  { %v5763_v20 = vpop.eup %5762 }
 0x504   :  { %5764 = vrcp.f32 %v2172_v18  ;;  %v2178_v43 = vadd.f32 1.0, %v5763_v20  ;;  %v7831_v18 = vld [vmem:[#allocation9 + $0x160] sm:$0xff]  ;;  %v7845_v20 = vld [vmem:[#allocation9 + $0x128] sm:$0xff] }
 0x506   :  { %5766 = vrcp.f32 %v2178_v43  ;;  %v7861_v43 = vld [vmem:[#allocation9 + $0x118] sm:$0xff] }
 0x510   :  { %v2326_v47 = vpop.f32.mrf.mxu0  ;;  %v2397_v48 = vpop.f32.mrf.mxu1 }
 0x511   :  { %v5765_v50 = vpop.eup %5764  ;;  %v2327_v12 = vadd.f32 %v2326_v47, %v2248_v7  ;;  %v2398_v23 = vadd.f32 %v2397_v48, %v2256_v19  ;;  %v7855_v7 = vld [vmem:[#allocation9 + $0x110] sm:$0xff]  ;;  %v7871_v48 = vld [vmem:[#allocation9 + $0x100] sm:$0xff] }
 0x512   :  { %v2181_v21 = vmul.f32 %v5765_v50, %v2167_v44  ;;  %v2328_v5 = vpop.f32.mrf.mxu0  ;;  %v5509_v31 = vpop.f32.mrf.mxu1  ;;  %v7865_v44 = vld [vmem:[#allocation9 + $0xf8] sm:$0xff]  ;;  %v7869_v47 = vld [vmem:[#allocation9 + $0xf0] sm:$0xff]  ;;  %v7875_v50 = vld [vmem:[#allocation9 + $0xe0] sm:$0xff] }
 0x513   :  { %v2401_v52 = vadd.f32 %v2327_v12, %v10667_v8  ;;  %v2329_v54 = vadd.f32 %v2328_v5, %v2252_v3  ;;  %v5767_v58 = vpop.eup %5766  ;;  %v7879_v12 = vld [vmem:[#allocation9 + $0xd8] sm:$0xff]  ;;  %v7881_v3 = vld [vmem:[#allocation9 + $0xe8] sm:$0xff]  ;;  %v7891_v5 = vld [vmem:[#allocation9 + $0xd0] sm:$0xff] }
 0x514   :  { %v2182_v11 = vadd.f32 %v2181_v21, %v2165_v49  ;;  %v2184_v55 = vsub.f32 1.0, %v5767_v58  ;;  %v2186_v51 = vmul.f32 %v5767_v58, %v7580_v46  ;;  %v7885_v49 = vld [vmem:[#allocation9 + $0xc8] sm:$0xff]  ;;  %v7889_v21 = vld [vmem:[#allocation9 + $0xc0] sm:$0xff]  ;;  %v7895_v31 = vld [vmem:[#allocation9 + $0xb0] sm:$0xff] }
 0x515   :  { %v5163_v59 = vmul.f32 -1.442695, %v2401_v52  ;;  %v2408_v14 = vadd.f32 %v2329_v54, %v10668_v25  ;;  %v7899_v8 = vld [vmem:[#allocation9 + $0xa8] sm:$0xff]  ;;  %v7901_v52 = vld [vmem:[#allocation9 + $0xb8] sm:$0xff]  ;;  %v7911_v54 = vld [vmem:[#allocation9 + $0xa0] sm:$0xff] }
 0x516   :  { %5768 = vtanh.f32 %v2182_v11  ;;  %v7905_v11 = vld [vmem:[#allocation9 + $0x98] sm:$0xff]  ;;  %v7915_v25 = vld [vmem:[#allocation9 + $0x80] sm:$0xff]  ;;  %v7925_v58 = vld [vmem:[#allocation9 + $0x68] sm:$0xff] }
 0x517   :  { %5770 = vpow2.f32 %v5163_v59  ;;  %v5164_v4 = vmul.f32 -1.442695, %v2408_v14  ;;  %v7909_v59 = vld [vmem:[#allocation9 + $0x90] sm:$0xff]  ;;  %v7919_v14 = vld [vmem:[#allocation9 + $0x78] sm:$0xff]  ;;  %v7951_v19 = vld [vmem:[#allocation9 + $0x40] sm:$0xff] }
 0x518   :  { %10676 = vst [vmem:[#allocation51_spill] sm:$0xff] %v7951_v19  ;;  %v8006_v46 = vld [vmem:[#allocation10 + $0x1b8] sm:$0xff] }
 0x519   :  { %5772 = vpow2.f32 %v5164_v4  ;;  %v7921_v4 = vld [vmem:[#allocation9 + $0x88] sm:$0xff]  ;;  %10690 = vst [vmem:[#allocation62_spill] sm:$0xff] %v8006_v46 }
 0x523   :  { %v5769_v57 = vpop.eup %5768 }
 0x524   :  { %v5771_v33 = vpop.eup %5770  ;;  %v2185_v61 = vmul.f32 %v5769_v57, %v2184_v55  ;;  %v7929_v55 = vld [vmem:[#allocation9 + $0x60] sm:$0xff]  ;;  %v7931_v57 = vld [vmem:[#allocation9 + $0x70] sm:$0xff] }
 0x525   :  { %v2405_v60 = vadd.f32 1.0, %v5771_v33  ;;  %v7935_v33 = vld [vmem:[#allocation9 + $0x50] sm:$0xff] }
 0x526   :  { %v7812_v1 = vadd.f32 %v2186_v51, %v2185_v61  ;;  %v5773_v2 = vpop.eup %5772  ;;  %10671 = vst [vmem:[#allocation38_spill] sm:$0xff] %v7935_v33  ;;  %v7939_v61 = vld [vmem:[#allocation9 + $0x48] sm:$0xff]  ;;  %v7941_v51 = vld [vmem:[#allocation9 + $0x58] sm:$0xff] }
 0x527   :  { %5774 = vrcp.f32 %v2405_v60  ;;  %v2412_v22 = vadd.f32 1.0, %v5773_v2  ;;  %10672 = vst [vmem:[#allocation47_spill] sm:$0xff] %v7939_v61  ;;  %10673 = vst [vmem:[#allocation49_spill] sm:$0xff] %v7941_v51  ;;  %v7945_v60 = vld [vmem:[#allocation9 + $0x38] sm:$0xff]  ;;  %v7949_v2 = vld [vmem:[#allocation9 + $0x30] sm:$0xff] }
 0x528   :  { %10669 = vst [vmem:[#allocation39_spill] sm:$0xff] %v7812_v1  ;;  %2636 = vmatprep.mubr.f32.mxu0 %v7812_v1  ;;  %2707 = vmatprep.mubr.f32.mxu1 %v7812_v1  ;;  %10674 = vst [vmem:[#allocation19_spill] sm:$0xff] %v7945_v60 }
 0x529   :  { %5776 = vrcp.f32 %v2412_v22  ;;  %10675 = vst [vmem:[#allocation20_spill] sm:$0xff] %v7949_v2  ;;  %v7957_v22 = vld [vmem:[#allocation9 + $0x28] sm:$0xff] }
 0x52a   :  { %10677 = vst [vmem:[#allocation21_spill] sm:$0xff] %v7957_v22 }
 0x534   :  { %v5775_v24 = vpop.eup %5774 }
 0x535   :  { %v2415_v26 = vmul.f32 %v5775_v24, %v2398_v23  ;;  %v7961_v23 = vld [vmem:[#allocation9 + $0x8] sm:$0xff]  ;;  %v7965_v24 = vld [vmem:[#allocation9] sm:$0xff] }
 0x536   :  { %v5777_v34 = vpop.eup %5776  ;;  %10678 = vst [vmem:[#allocation52_spill] sm:$0xff] %v7961_v23  ;;  %10679 = vst [vmem:[#allocation22_spill] sm:$0xff] %v7965_v24 }
 0x537   :  { %v2416_v30 = vadd.f32 %v2415_v26, %v10670_v28  ;;  %v2418_v35 = vsub.f32 1.0, %v5777_v34  ;;  %v2420_v39 = vmul.f32 %v5777_v34, %v7587_v53  ;;  %v7835_v53 = vld [vmem:[#allocation9 + $0x140] sm:$0xff]  ;;  %v7969_v26 = vld [vmem:[#allocation9 + $0x10] sm:$0xff]  ;;  %v7992_v34 = vld [vmem:[#allocation10 + $0x1c8] sm:$0xff] }
 0x538   :  { %10680 = vst [vmem:[#allocation54_spill] sm:$0xff] %v7969_v26  ;;  %v7986_v28 = vld [vmem:[#allocation10 + $0x1e0] sm:$0xff]  ;;  %10685 = vst [vmem:[#allocation25_spill] sm:$0xff] %v7992_v34 }
 0x539   :  { %5778 = vtanh.f32 %v2416_v30  ;;  %10683 = vst [vmem:[#allocation24_spill] sm:$0xff] %v7986_v28  ;;  %v7988_v30 = vld [vmem:[#allocation10 + $0x1f0] sm:$0xff] }
 0x53a   :  { %10684 = vst [vmem:[#allocation57_spill] sm:$0xff] %v7988_v30 }
 0x546   :  { %v5779_v36 = vpop.eup %5778 }
 0x547   :  { %v2419_v38 = vmul.f32 %v5779_v36, %v2418_v35  ;;  %v7994_v35 = vld [vmem:[#allocation10 + $0x1d8] sm:$0xff]  ;;  %v7998_v36 = vld [vmem:[#allocation10 + $0x1c0] sm:$0xff] }
 0x548   :  { %10686 = vst [vmem:[#allocation58_spill] sm:$0xff] %v7994_v35  ;;  %10687 = vst [vmem:[#allocation26_spill] sm:$0xff] %v7998_v36 }
 0x549   :  { %v7819_v41 = vadd.f32 %v2420_v39, %v2419_v38  ;;  %v8000_v38 = vld [vmem:[#allocation10 + $0x1d0] sm:$0xff]  ;;  %v8004_v39 = vld [vmem:[#allocation10 + $0x1a8] sm:$0xff] }
 0x54a   :  { %10688 = vst [vmem:[#allocation60_spill] sm:$0xff] %v8000_v38  ;;  %10689 = vst [vmem:[#allocation61_spill] sm:$0xff] %v8004_v39 }
 0x54b   :  { %2637 = vmatmul.mubr.f32.vlgmr.msra.gmra.mxu0 %v7819_v41  ;;  %2708 = vmatmul.mubr.f32.vlgmr.msra.gmra.mxu1 %v7819_v41 }
 0x54c   :  { %2806 = vmatpush1.msra.mxu0 %v7821_v13  ;;  %5511 = vmatpush3.msra.mxu1 %v7823_v15 }
 0x54d   :  { %2807 = vmatprep.subr.mxu0 %v7825_v10  ;;  %5512 = vmatprep.subr.mxu1 %v10238_v63 }
 0x54e   :  { %2808 = vmatpush1.msra.mxu0 %v7829_v62  ;;  %5513 = vmatpush3.msra.mxu1 %v7831_v18 }
 0x54f   :  { %2809 = vmatprep.subr.mxu0 %v7835_v53  ;;  %5514 = vmatprep.subr.mxu1 %v10238_v63 }
 0x550   :  { %2810 = vmatpush1.msra.mxu0 %v7839_v0  ;;  %5515 = vmatpush3.msra.mxu1 %v7841_v16 }
 0x551   :  { %2811 = vmatprep.subr.mxu0 %v7845_v20  ;;  %5516 = vmatprep.subr.mxu1 %v10238_v63 }
 0x552   :  { %2812 = vmatpush1.msra.mxu0 %v7849_v27  ;;  %5517 = vmatpush3.msra.mxu1 %v7851_v56 }
 0x553   :  { %2813 = vmatprep.subr.mxu0 %v7855_v7  ;;  %5518 = vmatprep.subr.mxu1 %v10238_v63 }
 0x554   :  { %2814 = vmatpush1.msra.mxu0 %v7859_v42  ;;  %5519 = vmatpush3.msra.mxu1 %v7861_v43 }
 0x555   :  { %2815 = vmatprep.subr.mxu0 %v7865_v44  ;;  %5520 = vmatprep.subr.mxu1 %v10238_v63 }
 0x556   :  { %2816 = vmatpush1.msra.mxu0 %v7869_v47  ;;  %5521 = vmatpush3.msra.mxu1 %v7871_v48 }
 0x557   :  { %2817 = vmatprep.subr.mxu0 %v7875_v50  ;;  %5522 = vmatprep.subr.mxu1 %v10238_v63 }
 0x558   :  { %2818 = vmatpush1.msra.mxu0 %v7879_v12  ;;  %5523 = vmatpush3.msra.mxu1 %v7881_v3 }
 0x559   :  { %2819 = vmatprep.subr.mxu0 %v7885_v49  ;;  %5524 = vmatprep.subr.mxu1 %v10238_v63 }
 0x55a   :  { %2820 = vmatpush1.msra.mxu0 %v7889_v21  ;;  %5525 = vmatpush3.msra.mxu1 %v7891_v5 }
 0x55b   :  { %2821 = vmatprep.subr.mxu0 %v7895_v31  ;;  %5526 = vmatprep.subr.mxu1 %v10238_v63 }
 0x55c   :  { %2822 = vmatpush1.msra.mxu0 %v7899_v8  ;;  %5527 = vmatpush3.msra.mxu1 %v7901_v52 }
 0x55d   :  { %2823 = vmatprep.subr.mxu0 %v7905_v11  ;;  %5528 = vmatprep.subr.mxu1 %v10238_v63 }
 0x55e   :  { %2824 = vmatpush1.msra.mxu0 %v7909_v59  ;;  %5529 = vmatpush3.msra.mxu1 %v7911_v54 }
 0x55f   :  { %2825 = vmatprep.subr.mxu0 %v7915_v25  ;;  %5530 = vmatprep.subr.mxu1 %v10238_v63 }
 0x560   :  { %2826 = vmatpush1.msra.mxu0 %v7919_v14  ;;  %5531 = vmatpush3.msra.mxu1 %v7921_v4 }
 0x561   :  { %2827 = vmatprep.subr.mxu0 %v7925_v58  ;;  %5532 = vmatprep.subr.mxu1 %v10238_v63 }
 0x562   :  { %2828 = vmatpush1.msra.mxu0 %v7929_v55  ;;  %5533 = vmatpush3.msra.mxu1 %v7931_v57 }
 0x563   :  { %2829 = vmatprep.subr.mxu0 %v7935_v33  ;;  %5534 = vmatprep.subr.mxu1 %v10238_v63 }
 0x564   :  { %2830 = vmatpush1.msra.mxu0 %v7939_v61  ;;  %5535 = vmatpush3.msra.mxu1 %v7941_v51  ;;  %v10809_v51 = vld [vmem:[#allocation45_spill] sm:$0xff] }
 0x565   :  { %2831 = vmatprep.subr.mxu0 %v7945_v60  ;;  %5536 = vmatprep.subr.mxu1 %v10238_v63 }
 0x566   :  { %2832 = vmatpush1.msra.mxu0 %v7949_v2  ;;  %5537 = vmatpush3.msra.mxu1 %v7951_v19 }
 0x567   :  { %2833 = vmatprep.subr.mxu0 %v7641_v37  ;;  %5538 = vmatprep.subr.mxu1 %v10238_v63  ;;  %v7980_v37 = vld [vmem:[#allocation10 + $0x1e8] sm:$0xff] }
 0x568   :  { %2834 = vmatpush1.msra.mxu0 %v7645_v17  ;;  %5539 = vmatpush3.msra.mxu1 %v7957_v22  ;;  %10681 = vst [vmem:[#allocation23_spill] sm:$0xff] %v7980_v37  ;;  %v7982_v17 = vld [vmem:[#allocation10 + $0x1f8] sm:$0xff] }
 0x569   :  { %2835 = vmatprep.subr.mxu0 %v7961_v23  ;;  %5540 = vmatprep.subr.mxu1 %v10238_v63  ;;  %10682 = vst [vmem:[#allocation55_spill] sm:$0xff] %v7982_v17 }
 0x56a   :  { %2836 = vmatpush1.msra.mxu0 %v7965_v24  ;;  %2869 = vmatprep.mubr.f32.mxu0 %v10238_v63  ;;  %v2788_v24 = vld [vmem:[%s9499_s7] sm:$0x7] }
 0x56b   :  { %5541 = vmatpush3.msra.mxu1 %v7969_v26  ;;  %5542 = vmatprep.mubr.msk.f32.mxu1 %vm5987_vm1, %v10238_v63 }
 0x56c   :  { %2870 = vmatmul.mubr.f32.vlgmr.msra.gmra.mxu0 %v7819_v41  ;;  %5543 = vmatmul.mubr.f32.vlgmr.msra.gmra.mxu1 %v7819_v41 }
 0x56d   :  { %3117 = vmatprep.subr.mxu0 %v7980_v37  ;;  %3188 = vmatprep.subr.mxu1 %v7982_v17  ;;  %v8296_v17 = vld [vmem:[#allocation10 + $0x2b0] sm:$0xff]  ;;  %v8312_v37 = vld [vmem:[#allocation10 + $0x268] sm:$0xff] }
 0x56e   :  { %3118 = vmatpush1.msra.mxu0 %v7986_v28  ;;  %3189 = vmatpush1.msra.mxu1 %v7988_v30  ;;  %v8280_v30 = vld [vmem:[#allocation10 + $0x2d8] sm:$0xff]  ;;  %v8288_v28 = vld [vmem:[#allocation10 + $0x2a8] sm:$0xff]  ;;  %10788 = vst [vmem:[#allocation160_spill] sm:$0xff] %v8296_v17  ;;  %10793 = vst [vmem:[#allocation165_spill] sm:$0xff] %v8312_v37 }
 0x56f   :  { %3119 = vmatprep.subr.mxu0 %v7992_v34  ;;  %3190 = vmatprep.subr.mxu1 %v7994_v35  ;;  %v8012_v34 = vld [vmem:[#allocation10 + $0x1b0] sm:$0xff]  ;;  %v8016_v35 = vld [vmem:[#allocation10 + $0x188] sm:$0xff]  ;;  %10782 = vst [vmem:[#allocation154_spill] sm:$0xff] %v8280_v30  ;;  %10785 = vst [vmem:[#allocation157_spill] sm:$0xff] %v8288_v28 }
 0x570   :  { %3120 = vmatpush1.msra.mxu0 %v7998_v36  ;;  %3191 = vmatpush1.msra.mxu1 %v8000_v38  ;;  %10692 = vst [vmem:[#allocation64_spill] sm:$0xff] %v8012_v34  ;;  %10693 = vst [vmem:[#allocation65_spill] sm:$0xff] %v8016_v35  ;;  %v8018_v36 = vld [vmem:[#allocation10 + $0x198] sm:$0xff]  ;;  %v8022_v38 = vld [vmem:[#allocation10 + $0x180] sm:$0xff] }
 0x571   :  { %3121 = vmatprep.subr.mxu0 %v8004_v39  ;;  %3192 = vmatprep.subr.mxu1 %v8006_v46  ;;  %10694 = vst [vmem:[#allocation66_spill] sm:$0xff] %v8018_v36  ;;  %10695 = vst [vmem:[#allocation67_spill] sm:$0xff] %v8022_v38  ;;  %v8024_v39 = vld [vmem:[#allocation10 + $0x190] sm:$0xff]  ;;  %v8028_v46 = vld [vmem:[#allocation10 + $0x168] sm:$0xff] }
 0x572   :  { %3122 = vmatpush1.msra.mxu0 %v8010_v45  ;;  %3193 = vmatpush1.msra.mxu1 %v8012_v34  ;;  %10696 = vst [vmem:[#allocation68_spill] sm:$0xff] %v8024_v39  ;;  %10697 = vst [vmem:[#allocation69_spill] sm:$0xff] %v8028_v46  ;;  %v8030_v45 = vld [vmem:[#allocation10 + $0x178] sm:$0xff]  ;;  %v8034_v34 = vld [vmem:[#allocation10 + $0x160] sm:$0xff] }
 0x573   :  { %3123 = vmatprep.subr.mxu0 %v8016_v35  ;;  %3194 = vmatprep.subr.mxu1 %v8018_v36  ;;  %10698 = vst [vmem:[#allocation70_spill] sm:$0xff] %v8030_v45  ;;  %10699 = vst [vmem:[#allocation71_spill] sm:$0xff] %v8034_v34  ;;  %v8036_v35 = vld [vmem:[#allocation10 + $0x170] sm:$0xff]  ;;  %v8040_v36 = vld [vmem:[#allocation10 + $0x148] sm:$0xff] }
 0x574   :  { %3124 = vmatpush1.msra.mxu0 %v8022_v38  ;;  %3195 = vmatpush1.msra.mxu1 %v8024_v39  ;;  %10700 = vst [vmem:[#allocation72_spill] sm:$0xff] %v8036_v35  ;;  %10701 = vst [vmem:[#allocation73_spill] sm:$0xff] %v8040_v36  ;;  %v8042_v38 = vld [vmem:[#allocation10 + $0x158] sm:$0xff]  ;;  %v8046_v39 = vld [vmem:[#allocation10 + $0x140] sm:$0xff] }
 0x575   :  { %3125 = vmatprep.subr.mxu0 %v8028_v46  ;;  %3196 = vmatprep.subr.mxu1 %v8030_v45  ;;  %10702 = vst [vmem:[#allocation74_spill] sm:$0xff] %v8042_v38  ;;  %10703 = vst [vmem:[#allocation75_spill] sm:$0xff] %v8046_v39  ;;  %v8048_v46 = vld [vmem:[#allocation10 + $0x150] sm:$0xff]  ;;  %v8052_v45 = vld [vmem:[#allocation10 + $0x128] sm:$0xff] }
 0x576   :  { %3126 = vmatpush1.msra.mxu0 %v8034_v34  ;;  %3197 = vmatpush1.msra.mxu1 %v8036_v35  ;;  %10704 = vst [vmem:[#allocation76_spill] sm:$0xff] %v8048_v46  ;;  %10705 = vst [vmem:[#allocation77_spill] sm:$0xff] %v8052_v45  ;;  %v8054_v34 = vld [vmem:[#allocation10 + $0x138] sm:$0xff]  ;;  %v8058_v35 = vld [vmem:[#allocation10 + $0x120] sm:$0xff] }
 0x577   :  { %3127 = vmatprep.subr.mxu0 %v8040_v36  ;;  %3198 = vmatprep.subr.mxu1 %v8042_v38  ;;  %10706 = vst [vmem:[#allocation78_spill] sm:$0xff] %v8054_v34  ;;  %10707 = vst [vmem:[#allocation79_spill] sm:$0xff] %v8058_v35  ;;  %v8060_v36 = vld [vmem:[#allocation10 + $0x130] sm:$0xff]  ;;  %v8064_v38 = vld [vmem:[#allocation10 + $0x108] sm:$0xff] }
 0x578   :  { %3128 = vmatpush1.msra.mxu0 %v8046_v39  ;;  %3199 = vmatpush1.msra.mxu1 %v8048_v46  ;;  %10708 = vst [vmem:[#allocation80_spill] sm:$0xff] %v8060_v36  ;;  %10709 = vst [vmem:[#allocation81_spill] sm:$0xff] %v8064_v38  ;;  %v8066_v39 = vld [vmem:[#allocation10 + $0x118] sm:$0xff]  ;;  %v8070_v46 = vld [vmem:[#allocation10 + $0x100] sm:$0xff] }
 0x579   :  { %3129 = vmatprep.subr.mxu0 %v8052_v45  ;;  %3200 = vmatprep.subr.mxu1 %v8054_v34  ;;  %10710 = vst [vmem:[#allocation82_spill] sm:$0xff] %v8066_v39  ;;  %10711 = vst [vmem:[#allocation83_spill] sm:$0xff] %v8070_v46  ;;  %v8072_v45 = vld [vmem:[#allocation10 + $0x110] sm:$0xff]  ;;  %v8076_v34 = vld [vmem:[#allocation10 + $0xe8] sm:$0xff] }
 0x57a   :  { %3130 = vmatpush1.msra.mxu0 %v8058_v35  ;;  %3201 = vmatpush1.msra.mxu1 %v8060_v36  ;;  %10712 = vst [vmem:[#allocation84_spill] sm:$0xff] %v8072_v45  ;;  %10713 = vst [vmem:[#allocation85_spill] sm:$0xff] %v8076_v34  ;;  %v8078_v35 = vld [vmem:[#allocation10 + $0xf8] sm:$0xff]  ;;  %v8082_v36 = vld [vmem:[#allocation10 + $0xe0] sm:$0xff] }
 0x57b   :  { %3131 = vmatprep.subr.mxu0 %v8064_v38  ;;  %3202 = vmatprep.subr.mxu1 %v8066_v39  ;;  %10714 = vst [vmem:[#allocation86_spill] sm:$0xff] %v8078_v35  ;;  %10715 = vst [vmem:[#allocation87_spill] sm:$0xff] %v8082_v36  ;;  %v8084_v38 = vld [vmem:[#allocation10 + $0xf0] sm:$0xff]  ;;  %v8088_v39 = vld [vmem:[#allocation10 + $0xc8] sm:$0xff] }
 0x57c   :  { %3132 = vmatpush1.msra.mxu0 %v8070_v46  ;;  %3203 = vmatpush1.msra.mxu1 %v8072_v45  ;;  %10716 = vst [vmem:[#allocation88_spill] sm:$0xff] %v8084_v38  ;;  %10717 = vst [vmem:[#allocation89_spill] sm:$0xff] %v8088_v39  ;;  %v8090_v46 = vld [vmem:[#allocation10 + $0xd8] sm:$0xff]  ;;  %v8094_v45 = vld [vmem:[#allocation10 + $0xc0] sm:$0xff] }
 0x57d   :  { %3133 = vmatprep.subr.mxu0 %v8076_v34  ;;  %3204 = vmatprep.subr.mxu1 %v8078_v35  ;;  %10718 = vst [vmem:[#allocation90_spill] sm:$0xff] %v8090_v46  ;;  %10719 = vst [vmem:[#allocation91_spill] sm:$0xff] %v8094_v45  ;;  %v8096_v34 = vld [vmem:[#allocation10 + $0xd0] sm:$0xff]  ;;  %v8100_v35 = vld [vmem:[#allocation10 + $0xa8] sm:$0xff] }
 0x57e   :  { %3134 = vmatpush1.msra.mxu0 %v8082_v36  ;;  %3205 = vmatpush1.msra.mxu1 %v8084_v38  ;;  %10720 = vst [vmem:[#allocation92_spill] sm:$0xff] %v8096_v34  ;;  %10721 = vst [vmem:[#allocation93_spill] sm:$0xff] %v8100_v35  ;;  %v8102_v36 = vld [vmem:[#allocation10 + $0xb8] sm:$0xff]  ;;  %v8106_v38 = vld [vmem:[#allocation10 + $0xa0] sm:$0xff] }
 0x57f   :  { %3135 = vmatprep.subr.mxu0 %v8088_v39  ;;  %3206 = vmatprep.subr.mxu1 %v8090_v46  ;;  %10722 = vst [vmem:[#allocation94_spill] sm:$0xff] %v8102_v36  ;;  %10723 = vst [vmem:[#allocation95_spill] sm:$0xff] %v8106_v38  ;;  %v8108_v39 = vld [vmem:[#allocation10 + $0xb0] sm:$0xff]  ;;  %v8112_v46 = vld [vmem:[#allocation10 + $0x88] sm:$0xff] }
 0x580   :  { %3136 = vmatpush1.msra.mxu0 %v8094_v45  ;;  %3207 = vmatpush1.msra.mxu1 %v8096_v34  ;;  %10724 = vst [vmem:[#allocation96_spill] sm:$0xff] %v8108_v39  ;;  %10725 = vst [vmem:[#allocation97_spill] sm:$0xff] %v8112_v46  ;;  %v8114_v45 = vld [vmem:[#allocation10 + $0x98] sm:$0xff]  ;;  %v8118_v34 = vld [vmem:[#allocation10 + $0x80] sm:$0xff] }
 0x581   :  { %3137 = vmatprep.subr.mxu0 %v8100_v35  ;;  %3208 = vmatprep.subr.mxu1 %v8102_v36  ;;  %10726 = vst [vmem:[#allocation98_spill] sm:$0xff] %v8114_v45  ;;  %10727 = vst [vmem:[#allocation99_spill] sm:$0xff] %v8118_v34  ;;  %v8120_v35 = vld [vmem:[#allocation10 + $0x90] sm:$0xff]  ;;  %v8124_v36 = vld [vmem:[#allocation10 + $0x68] sm:$0xff] }
 0x582   :  { %3138 = vmatpush1.msra.mxu0 %v8106_v38  ;;  %3209 = vmatpush1.msra.mxu1 %v8108_v39  ;;  %10728 = vst [vmem:[#allocation100_spill] sm:$0xff] %v8120_v35  ;;  %10729 = vst [vmem:[#allocation101_spill] sm:$0xff] %v8124_v36  ;;  %v8126_v38 = vld [vmem:[#allocation10 + $0x78] sm:$0xff]  ;;  %v8130_v39 = vld [vmem:[#allocation10 + $0x60] sm:$0xff] }
 0x583   :  { %3139 = vmatprep.subr.mxu0 %v8112_v46  ;;  %3210 = vmatprep.subr.mxu1 %v8114_v45  ;;  %10730 = vst [vmem:[#allocation102_spill] sm:$0xff] %v8126_v38  ;;  %10731 = vst [vmem:[#allocation103_spill] sm:$0xff] %v8130_v39  ;;  %v8132_v46 = vld [vmem:[#allocation10 + $0x70] sm:$0xff]  ;;  %v8136_v45 = vld [vmem:[#allocation10 + $0x48] sm:$0xff] }
 0x584   :  { %3140 = vmatpush1.msra.mxu0 %v8118_v34  ;;  %3211 = vmatpush1.msra.mxu1 %v8120_v35  ;;  %10732 = vst [vmem:[#allocation104_spill] sm:$0xff] %v8132_v46  ;;  %10733 = vst [vmem:[#allocation105_spill] sm:$0xff] %v8136_v45  ;;  %v8138_v34 = vld [vmem:[#allocation10 + $0x58] sm:$0xff]  ;;  %v8142_v35 = vld [vmem:[#allocation10 + $0x40] sm:$0xff] }
 0x585   :  { %3141 = vmatprep.subr.mxu0 %v8124_v36  ;;  %3212 = vmatprep.subr.mxu1 %v8126_v38  ;;  %10734 = vst [vmem:[#allocation106_spill] sm:$0xff] %v8138_v34  ;;  %10735 = vst [vmem:[#allocation107_spill] sm:$0xff] %v8142_v35  ;;  %v8144_v36 = vld [vmem:[#allocation10 + $0x50] sm:$0xff]  ;;  %v8148_v38 = vld [vmem:[#allocation10 + $0x28] sm:$0xff] }
 0x586   :  { %3142 = vmatpush1.msra.mxu0 %v8130_v39  ;;  %3213 = vmatpush1.msra.mxu1 %v8132_v46  ;;  %10736 = vst [vmem:[#allocation108_spill] sm:$0xff] %v8144_v36  ;;  %10737 = vst [vmem:[#allocation109_spill] sm:$0xff] %v8148_v38  ;;  %v8150_v39 = vld [vmem:[#allocation10 + $0x38] sm:$0xff]  ;;  %v8154_v46 = vld [vmem:[#allocation10 + $0x20] sm:$0xff] }
 0x587   :  { %3143 = vmatprep.subr.mxu0 %v8136_v45  ;;  %3214 = vmatprep.subr.mxu1 %v8138_v34  ;;  %10738 = vst [vmem:[#allocation110_spill] sm:$0xff] %v8150_v39  ;;  %10739 = vst [vmem:[#allocation111_spill] sm:$0xff] %v8154_v46  ;;  %v8156_v45 = vld [vmem:[#allocation10 + $0x30] sm:$0xff]  ;;  %v8160_v34 = vld [vmem:[#allocation10 + $0x8] sm:$0xff] }
 0x588   :  { %3144 = vmatpush1.msra.mxu0 %v8142_v35  ;;  %3215 = vmatpush1.msra.mxu1 %v8144_v36  ;;  %10740 = vst [vmem:[#allocation112_spill] sm:$0xff] %v8156_v45  ;;  %10741 = vst [vmem:[#allocation113_spill] sm:$0xff] %v8160_v34  ;;  %v8162_v35 = vld [vmem:[#allocation10 + $0x18] sm:$0xff]  ;;  %v8166_v36 = vld [vmem:[#allocation10] sm:$0xff] }
 0x589   :  { %3145 = vmatprep.subr.mxu0 %v8148_v38  ;;  %3216 = vmatprep.subr.mxu1 %v8150_v39  ;;  %10742 = vst [vmem:[#allocation114_spill] sm:$0xff] %v8162_v35  ;;  %10743 = vst [vmem:[#allocation115_spill] sm:$0xff] %v8166_v36  ;;  %v8168_v38 = vld [vmem:[#allocation10 + $0x10] sm:$0xff]  ;;  %v8172_v39 = vld [vmem:[#allocation10 + $0x3e8] sm:$0xff] }
 0x58a   :  { %3146 = vmatpush1.msra.mxu0 %v8154_v46  ;;  %3217 = vmatpush1.msra.mxu1 %v8156_v45  ;;  %10744 = vst [vmem:[#allocation116_spill] sm:$0xff] %v8168_v38  ;;  %10745 = vst [vmem:[#allocation117_spill] sm:$0xff] %v8172_v39  ;;  %v8174_v46 = vld [vmem:[#allocation10 + $0x3f8] sm:$0xff]  ;;  %v8178_v45 = vld [vmem:[#allocation10 + $0x3e0] sm:$0xff] }
 0x58b   :  { %3147 = vmatprep.subr.mxu0 %v8160_v34  ;;  %3218 = vmatprep.subr.mxu1 %v8162_v35  ;;  %10746 = vst [vmem:[#allocation118_spill] sm:$0xff] %v8174_v46  ;;  %10747 = vst [vmem:[#allocation119_spill] sm:$0xff] %v8178_v45  ;;  %v8180_v34 = vld [vmem:[#allocation10 + $0x3f0] sm:$0xff]  ;;  %v8184_v35 = vld [vmem:[#allocation10 + $0x3c8] sm:$0xff] }
 0x58c   :  { %3148 = vmatpush1.msra.mxu0 %v8166_v36  ;;  %3219 = vmatpush1.msra.mxu1 %v8168_v38  ;;  %10748 = vst [vmem:[#allocation120_spill] sm:$0xff] %v8180_v34  ;;  %10749 = vst [vmem:[#allocation121_spill] sm:$0xff] %v8184_v35  ;;  %v8186_v36 = vld [vmem:[#allocation10 + $0x3d8] sm:$0xff]  ;;  %v8190_v38 = vld [vmem:[#allocation10 + $0x3c0] sm:$0xff] }
 0x58d   :  { %3149 = vmatprep.subr.mxu0 %v8172_v39  ;;  %3220 = vmatprep.subr.mxu1 %v8174_v46  ;;  %10750 = vst [vmem:[#allocation122_spill] sm:$0xff] %v8186_v36  ;;  %10751 = vst [vmem:[#allocation123_spill] sm:$0xff] %v8190_v38  ;;  %v8192_v39 = vld [vmem:[#allocation10 + $0x3d0] sm:$0xff]  ;;  %v8196_v46 = vld [vmem:[#allocation10 + $0x3a8] sm:$0xff] }
 0x58e   :  { %3150 = vmatpush2.msra.mxu0 %v8178_v45  ;;  %3221 = vmatpush2.msra.mxu1 %v8180_v34  ;;  %10752 = vst [vmem:[#allocation124_spill] sm:$0xff] %v8192_v39  ;;  %10753 = vst [vmem:[#allocation125_spill] sm:$0xff] %v8196_v46  ;;  %v8198_v45 = vld [vmem:[#allocation10 + $0x3b8] sm:$0xff]  ;;  %v8202_v34 = vld [vmem:[#allocation10 + $0x3a0] sm:$0xff] }
 0x58f   :  { %3151 = vmatprep.subr.mxu0 %v8184_v35  ;;  %3222 = vmatprep.subr.mxu1 %v8186_v36  ;;  %10754 = vst [vmem:[#allocation126_spill] sm:$0xff] %v8198_v45  ;;  %10755 = vst [vmem:[#allocation127_spill] sm:$0xff] %v8202_v34  ;;  %v8204_v35 = vld [vmem:[#allocation10 + $0x3b0] sm:$0xff]  ;;  %v8208_v36 = vld [vmem:[#allocation10 + $0x388] sm:$0xff] }
 0x590   :  { %3152 = vmatpush2.msra.mxu0 %v8190_v38  ;;  %3223 = vmatpush2.msra.mxu1 %v8192_v39  ;;  %10756 = vst [vmem:[#allocation128_spill] sm:$0xff] %v8204_v35  ;;  %10757 = vst [vmem:[#allocation129_spill] sm:$0xff] %v8208_v36  ;;  %v8210_v38 = vld [vmem:[#allocation10 + $0x398] sm:$0xff]  ;;  %v8214_v39 = vld [vmem:[#allocation10 + $0x380] sm:$0xff] }
 0x591   :  { %3153 = vmatprep.subr.mxu0 %v8196_v46  ;;  %3224 = vmatprep.subr.mxu1 %v8198_v45  ;;  %10758 = vst [vmem:[#allocation130_spill] sm:$0xff] %v8210_v38  ;;  %10759 = vst [vmem:[#allocation131_spill] sm:$0xff] %v8214_v39  ;;  %v8216_v46 = vld [vmem:[#allocation10 + $0x390] sm:$0xff]  ;;  %v8220_v45 = vld [vmem:[#allocation10 + $0x368] sm:$0xff] }
 0x592   :  { %3154 = vmatpush2.msra.mxu0 %v8202_v34  ;;  %3225 = vmatpush2.msra.mxu1 %v8204_v35  ;;  %10760 = vst [vmem:[#allocation132_spill] sm:$0xff] %v8216_v46  ;;  %10761 = vst [vmem:[#allocation133_spill] sm:$0xff] %v8220_v45  ;;  %v8222_v34 = vld [vmem:[#allocation10 + $0x378] sm:$0xff]  ;;  %v8226_v35 = vld [vmem:[#allocation10 + $0x360] sm:$0xff] }
 0x593   :  { %3155 = vmatprep.subr.mxu0 %v8208_v36  ;;  %3226 = vmatprep.subr.mxu1 %v8210_v38  ;;  %10762 = vst [vmem:[#allocation134_spill] sm:$0xff] %v8222_v34  ;;  %10763 = vst [vmem:[#allocation135_spill] sm:$0xff] %v8226_v35  ;;  %v8228_v36 = vld [vmem:[#allocation10 + $0x370] sm:$0xff]  ;;  %v8232_v38 = vld [vmem:[#allocation10 + $0x348] sm:$0xff] }
 0x594   :  { %3156 = vmatpush2.msra.mxu0 %v8214_v39  ;;  %3227 = vmatpush2.msra.mxu1 %v8216_v46  ;;  %10764 = vst [vmem:[#allocation136_spill] sm:$0xff] %v8228_v36  ;;  %10765 = vst [vmem:[#allocation137_spill] sm:$0xff] %v8232_v38  ;;  %v8234_v39 = vld [vmem:[#allocation10 + $0x358] sm:$0xff]  ;;  %v8238_v46 = vld [vmem:[#allocation10 + $0x340] sm:$0xff] }
 0x595   :  { %3157 = vmatprep.subr.mxu0 %v8220_v45  ;;  %3228 = vmatprep.subr.mxu1 %v8222_v34  ;;  %10766 = vst [vmem:[#allocation138_spill] sm:$0xff] %v8234_v39  ;;  %10767 = vst [vmem:[#allocation139_spill] sm:$0xff] %v8238_v46  ;;  %v8240_v45 = vld [vmem:[#allocation10 + $0x350] sm:$0xff]  ;;  %v8244_v34 = vld [vmem:[#allocation10 + $0x328] sm:$0xff] }
 0x596   :  { %3158 = vmatpush2.msra.mxu0 %v8226_v35  ;;  %3229 = vmatpush2.msra.mxu1 %v8228_v36  ;;  %10768 = vst [vmem:[#allocation140_spill] sm:$0xff] %v8240_v45  ;;  %10769 = vst [vmem:[#allocation141_spill] sm:$0xff] %v8244_v34  ;;  %v8246_v35 = vld [vmem:[#allocation10 + $0x338] sm:$0xff]  ;;  %v8250_v36 = vld [vmem:[#allocation10 + $0x320] sm:$0xff] }
 0x597   :  { %3159 = vmatprep.subr.mxu0 %v8232_v38  ;;  %3230 = vmatprep.subr.mxu1 %v8234_v39  ;;  %10770 = vst [vmem:[#allocation142_spill] sm:$0xff] %v8246_v35  ;;  %10771 = vst [vmem:[#allocation143_spill] sm:$0xff] %v8250_v36  ;;  %v8252_v38 = vld [vmem:[#allocation10 + $0x330] sm:$0xff]  ;;  %v8256_v39 = vld [vmem:[#allocation10 + $0x308] sm:$0xff] }
 0x598   :  { %3160 = vmatpush2.msra.mxu0 %v8238_v46  ;;  %3231 = vmatpush2.msra.mxu1 %v8240_v45  ;;  %10772 = vst [vmem:[#allocation144_spill] sm:$0xff] %v8252_v38  ;;  %10773 = vst [vmem:[#allocation145_spill] sm:$0xff] %v8256_v39  ;;  %v8258_v46 = vld [vmem:[#allocation10 + $0x318] sm:$0xff]  ;;  %v8262_v45 = vld [vmem:[#allocation10 + $0x300] sm:$0xff] }
 0x599   :  { %3161 = vmatprep.subr.mxu0 %v8244_v34  ;;  %3232 = vmatprep.subr.mxu1 %v8246_v35  ;;  %10774 = vst [vmem:[#allocation146_spill] sm:$0xff] %v8258_v46  ;;  %10775 = vst [vmem:[#allocation147_spill] sm:$0xff] %v8262_v45  ;;  %v8264_v34 = vld [vmem:[#allocation10 + $0x310] sm:$0xff]  ;;  %v8268_v35 = vld [vmem:[#allocation10 + $0x2e8] sm:$0xff] }
 0x59a   :  { %3162 = vmatpush2.msra.mxu0 %v8250_v36  ;;  %3233 = vmatpush2.msra.mxu1 %v8252_v38  ;;  %10776 = vst [vmem:[#allocation148_spill] sm:$0xff] %v8264_v34  ;;  %10777 = vst [vmem:[#allocation149_spill] sm:$0xff] %v8268_v35  ;;  %v8270_v36 = vld [vmem:[#allocation10 + $0x2f8] sm:$0xff]  ;;  %v8272_v38 = vld [vmem:[#allocation10 + $0x2e0] sm:$0xff] }
 0x59b   :  { %3163 = vmatprep.subr.mxu0 %v8256_v39  ;;  %3234 = vmatprep.subr.mxu1 %v8258_v46  ;;  %10778 = vst [vmem:[#allocation150_spill] sm:$0xff] %v8270_v36  ;;  %10779 = vst [vmem:[#allocation151_spill] sm:$0xff] %v8272_v38  ;;  %v8276_v39 = vld [vmem:[#allocation10 + $0x2f0] sm:$0xff]  ;;  %v8278_v46 = vld [vmem:[#allocation10 + $0x2c8] sm:$0xff] }
 0x59c   :  { %3164 = vmatpush2.msra.mxu0 %v8262_v45  ;;  %3235 = vmatpush2.msra.mxu1 %v8264_v34  ;;  %10780 = vst [vmem:[#allocation152_spill] sm:$0xff] %v8276_v39  ;;  %10781 = vst [vmem:[#allocation153_spill] sm:$0xff] %v8278_v46  ;;  %v8284_v34 = vld [vmem:[#allocation10 + $0x2c0] sm:$0xff]  ;;  %v8286_v45 = vld [vmem:[#allocation10 + $0x2d0] sm:$0xff] }
 0x59d   :  { %3165 = vmatprep.subr.mxu0 %v8268_v35  ;;  %3236 = vmatprep.subr.mxu1 %v8270_v36  ;;  %10783 = vst [vmem:[#allocation155_spill] sm:$0xff] %v8284_v34  ;;  %10784 = vst [vmem:[#allocation156_spill] sm:$0xff] %v8286_v45  ;;  %v8292_v36 = vld [vmem:[#allocation10 + $0x2b8] sm:$0xff]  ;;  %v8294_v35 = vld [vmem:[#allocation10 + $0x2a0] sm:$0xff] }
 0x59e   :  { %3166 = vmatpush2.msra.mxu0 %v8272_v38  ;;  %3237 = vmatpush2.msra.mxu1 %v8276_v39  ;;  %10786 = vst [vmem:[#allocation158_spill] sm:$0xff] %v8292_v36  ;;  %10787 = vst [vmem:[#allocation159_spill] sm:$0xff] %v8294_v35  ;;  %v8300_v39 = vld [vmem:[#allocation10 + $0x288] sm:$0xff]  ;;  %v8302_v38 = vld [vmem:[#allocation10 + $0x298] sm:$0xff] }
 0x59f   :  { %3167 = vmatprep.subr.mxu0 %v8278_v46  ;;  %3238 = vmatprep.subr.mxu1 %v8280_v30  ;;  %10789 = vst [vmem:[#allocation161_spill] sm:$0xff] %v8300_v39  ;;  %10790 = vst [vmem:[#allocation162_spill] sm:$0xff] %v8302_v38  ;;  %v8306_v46 = vld [vmem:[#allocation10 + $0x280] sm:$0xff]  ;;  %v8308_v30 = vld [vmem:[#allocation10 + $0x290] sm:$0xff] }
 0x5a0   :  { %3168 = vmatpush2.msra.mxu0 %v8284_v34  ;;  %3239 = vmatpush2.msra.mxu1 %v8286_v45  ;;  %10791 = vst [vmem:[#allocation163_spill] sm:$0xff] %v8306_v46  ;;  %10792 = vst [vmem:[#allocation164_spill] sm:$0xff] %v8308_v30  ;;  %v8314_v34 = vld [vmem:[#allocation10 + $0x278] sm:$0xff]  ;;  %v8318_v45 = vld [vmem:[#allocation10 + $0x260] sm:$0xff] }
 0x5a1   :  { %3169 = vmatprep.subr.mxu0 %v8288_v28  ;;  %3240 = vmatprep.subr.mxu1 %v8292_v36  ;;  %10794 = vst [vmem:[#allocation166_spill] sm:$0xff] %v8314_v34  ;;  %10795 = vst [vmem:[#allocation167_spill] sm:$0xff] %v8318_v45  ;;  %v8320_v28 = vld [vmem:[#allocation10 + $0x270] sm:$0xff]  ;;  %v8324_v36 = vld [vmem:[#allocation10 + $0x248] sm:$0xff] }
 0x5a2   :  { %3170 = vmatpush2.msra.mxu0 %v8294_v35  ;;  %3241 = vmatpush2.msra.mxu1 %v8296_v17  ;;  %10796 = vst [vmem:[#allocation168_spill] sm:$0xff] %v8320_v28  ;;  %10797 = vst [vmem:[#allocation169_spill] sm:$0xff] %v8324_v36  ;;  %v8326_v35 = vld [vmem:[#allocation10 + $0x258] sm:$0xff]  ;;  %v8330_v17 = vld [vmem:[#allocation10 + $0x240] sm:$0xff] }
 0x5a3   :  { %3171 = vmatprep.subr.mxu0 %v8300_v39  ;;  %3242 = vmatprep.subr.mxu1 %v8302_v38  ;;  %10798 = vst [vmem:[#allocation170_spill] sm:$0xff] %v8326_v35  ;;  %10799 = vst [vmem:[#allocation171_spill] sm:$0xff] %v8330_v17  ;;  %v8332_v39 = vld [vmem:[#allocation10 + $0x250] sm:$0xff]  ;;  %v8336_v38 = vld [vmem:[#allocation10 + $0x228] sm:$0xff] }
 0x5a4   :  { %3172 = vmatpush2.msra.mxu0 %v8306_v46  ;;  %3243 = vmatpush2.msra.mxu1 %v8308_v30  ;;  %10800 = vst [vmem:[#allocation172_spill] sm:$0xff] %v8332_v39  ;;  %10801 = vst [vmem:[#allocation173_spill] sm:$0xff] %v8336_v38  ;;  %v8338_v46 = vld [vmem:[#allocation10 + $0x238] sm:$0xff]  ;;  %v8342_v30 = vld [vmem:[#allocation10 + $0x220] sm:$0xff] }
 0x5a5   :  { %3173 = vmatprep.subr.mxu0 %v8312_v37  ;;  %3244 = vmatprep.subr.mxu1 %v8314_v34  ;;  %10802 = vst [vmem:[#allocation174_spill] sm:$0xff] %v8338_v46  ;;  %10803 = vst [vmem:[#allocation175_spill] sm:$0xff] %v8342_v30  ;;  %v8344_v37 = vld [vmem:[#allocation10 + $0x230] sm:$0xff]  ;;  %v8348_v34 = vld [vmem:[#allocation10 + $0x208] sm:$0xff] }
 0x5a6   :  { %3174 = vmatpush2.msra.mxu0 %v8318_v45  ;;  %3245 = vmatpush2.msra.mxu1 %v8320_v28  ;;  %10804 = vst [vmem:[#allocation176_spill] sm:$0xff] %v8344_v37  ;;  %10805 = vst [vmem:[#allocation34_spill] sm:$0xff] %v8348_v34  ;;  %v8350_v45 = vld [vmem:[#allocation10 + $0x218] sm:$0xff]  ;;  %v8354_v28 = vld [vmem:[#allocation10 + $0x200] sm:$0xff] }
 0x5a7   :  { %3175 = vmatprep.subr.mxu0 %v8324_v36  ;;  %3246 = vmatprep.subr.mxu1 %v8326_v35  ;;  %10806 = vst [vmem:[#allocation33_spill] sm:$0xff] %v8350_v45  ;;  %10807 = vst [vmem:[#allocation35_spill] sm:$0xff] %v8354_v28  ;;  %v8356_v36 = vld [vmem:[#allocation10 + $0x210] sm:$0xff] }
 0x5a8   :  { %3176 = vmatpush2.msra.mxu0 %v8330_v17  ;;  %3247 = vmatpush2.msra.mxu1 %v8332_v39  ;;  %10808 = vst [vmem:[#allocation31_spill] sm:$0xff] %v8356_v36 }
 0x5a9   :  { %3177 = vmatprep.subr.mxu0 %v8336_v38  ;;  %3248 = vmatprep.subr.mxu1 %v8338_v46  ;;  %v2550_v46 = vld [vmem:[%s9501_s9] sm:$0xf] }
 0x5aa   :  { %3178 = vmatpush2.msra.mxu0 %v8342_v30  ;;  %3249 = vmatpush2.msra.mxu1 %v8344_v37  ;;  %v2555_v30 = vrot.slane %v2550_v46, %v10664_v32 }
 0x5ab   :  { %3179 = vmatprep.subr.mxu0 %v8348_v34  ;;  %3250 = vmatprep.subr.mxu1 %v8350_v45  ;;  %v4926_v34 = vld [vmem:[%s9492_s0 + $0x20] sm:$0xff] }
 0x5ac   :  { %3180 = vmatpush2.msra.mxu0 %v8354_v28  ;;  %3251 = vmatpush2.msra.mxu1 %v8356_v36  ;;  %v2559_v36 = vrot.slane %v2550_v46, %v10665_v40 }
 0x5ad   :  { %3350 = vmatprep.subr.mxu0 %v7791_v29  ;;  %5545 = vmatprep.subr.mxu1 %v10238_v63 }
 0x5ae   :  { %4952 = vperm.xlu0 %5708, %v4926_v34   ;;  %v2567_v34 = vrot.slane %v2550_v46, %v10666_v6 }
 0x60b   :  { %v2638_v45 = vpop.f32.mrf.mxu0  ;;  %v2709_v26 = vpop.f32.mrf.mxu1 }
 0x60c   :  { %v2639_v37 = vadd.f32 %v2638_v45, %v2555_v30  ;;  %v2563_v30 = vrot.slane %v2550_v46, %v6254_v9  ;;  %v10810_v46 = vld [vmem:[#allocation46_spill] sm:$0xff] }
 0x60d   :  { %v2640_v38 = vpop.f32.mrf.mxu0  ;;  %v2711_v45 = vpop.f32.mrf.mxu1 }
 0x60e   :  { %v5165_v28 = vmul.f32 -1.442695, %v2639_v37  ;;  %v2641_v29 = vadd.f32 %v2640_v38, %v2559_v36  ;;  %v2793_v37 = vrot.slane %v2788_v24, %v10664_v32  ;;  %v2712_v36 = vadd.f32 %v2711_v45, %v2567_v34 }
 0x60f   :  { %v2710_v22 = vadd.f32 %v2709_v26, %v2563_v30 }
 0x610   :  { %5780 = vpow2.f32 %v5165_v28  ;;  %v5166_v39 = vmul.f32 -1.442695, %v2641_v29 }
 0x612   :  { %5782 = vpow2.f32 %v5166_v39 }
 0x61d   :  { %v5781_v17 = vpop.eup %5780 }
 0x61e   :  { %v2717_v35 = vadd.f32 1.0, %v5781_v17 }
 0x61f   :  { %v5783_v23 = vpop.eup %5782 }
 0x620   :  { %5784 = vrcp.f32 %v2717_v35  ;;  %v2723_v28 = vadd.f32 1.0, %v5783_v23  ;;  %v2797_v35 = vrot.slane %v2788_v24, %v10665_v40 }
 0x622   :  { %5786 = vrcp.f32 %v2723_v28 }
 0x62c   :  { %v2871_v38 = vpop.f32.mrf.mxu0  ;;  %v2942_v39 = vpop.f32.mrf.mxu1 }
 0x62d   :  { %v5785_v29 = vpop.eup %5784  ;;  %v2872_v17 = vadd.f32 %v2871_v38, %v2793_v37 }
 0x62e   :  { %v2726_v19 = vmul.f32 %v5785_v29, %v2712_v36  ;;  %v2873_v2 = vpop.f32.mrf.mxu0  ;;  %v5544_v60 = vpop.f32.mrf.mxu1 }
 0x62f   :  { %v2946_v6 = vadd.f32 %v2872_v17, %v10809_v51  ;;  %v2874_v32 = vadd.f32 %v2873_v2, %v2797_v35  ;;  %v5787_v45 = vpop.eup %5786 }
 0x630   :  { %v2727_v61 = vadd.f32 %v2726_v19, %v2710_v22  ;;  %v2729_v37 = vsub.f32 1.0, %v5787_v45  ;;  %v2731_v30 = vmul.f32 %v5787_v45, %v7812_v1  ;;  %v10812_v19 = vld [vmem:[#allocation42_spill] sm:$0xff]  ;;  %v10851_v45 = vld [vmem:[#allocation81_spill] sm:$0xff] }
 0x631   :  { %v5167_v33 = vmul.f32 -1.442695, %v2946_v6  ;;  %v2953_v23 = vadd.f32 %v2874_v32, %v10810_v46  ;;  %v2801_v32 = vrot.slane %v2788_v24, %v6254_v9  ;;  %v10847_v24 = vld [vmem:[#allocation77_spill] sm:$0xff] }
 0x632   :  { %5788 = vtanh.f32 %v2727_v61  ;;  %v8814_v1 = vld [vmem:[#allocation10 + $0x1a0] sm:$0xff] }
 0x633   :  { %5790 = vpow2.f32 %v5167_v33  ;;  %v5168_v34 = vmul.f32 -1.442695, %v2953_v23  ;;  %v2943_v61 = vadd.f32 %v2942_v39, %v2801_v32  ;;  %v10848_v39 = vld [vmem:[#allocation78_spill] sm:$0xff]  ;;  %v10849_v23 = vld [vmem:[#allocation79_spill] sm:$0xff]  ;;  %v10858_v32 = vld [vmem:[#allocation88_spill] sm:$0xff] }
 0x635   :  { %5792 = vpow2.f32 %v5168_v34  ;;  %v10850_v34 = vld [vmem:[#allocation80_spill] sm:$0xff] }
 0x63f   :  { %v5789_v38 = vpop.eup %5788 }
 0x640   :  { %v5791_v40 = vpop.eup %5790  ;;  %v2730_v26 = vmul.f32 %v5789_v38, %v2729_v37  ;;  %v10852_v37 = vld [vmem:[#allocation82_spill] sm:$0xff]  ;;  %v10853_v38 = vld [vmem:[#allocation83_spill] sm:$0xff] }
 0x641   :  { %v2950_v28 = vadd.f32 1.0, %v5791_v40 }
 0x642   :  { %v8384_v60 = vadd.f32 %v2731_v30, %v2730_v26  ;;  %v5793_v6 = vpop.eup %5792  ;;  %v10854_v26 = vld [vmem:[#allocation84_spill] sm:$0xff]  ;;  %v10855_v30 = vld [vmem:[#allocation85_spill] sm:$0xff] }
 0x643   :  { %5794 = vrcp.f32 %v2950_v28  ;;  %v2957_v33 = vadd.f32 1.0, %v5793_v6  ;;  %v10856_v28 = vld [vmem:[#allocation86_spill] sm:$0xff]  ;;  %v10857_v6 = vld [vmem:[#allocation87_spill] sm:$0xff] }
 0x644   :  { %10811 = vst [vmem:[#allocation178_spill] sm:$0xff] %v8384_v60  ;;  %3181 = vmatprep.mubr.f32.mxu0 %v8384_v60  ;;  %3252 = vmatprep.mubr.f32.mxu1 %v8384_v60 }
 0x645   :  { %5796 = vrcp.f32 %v2957_v33  ;;  %v10859_v33 = vld [vmem:[#allocation89_spill] sm:$0xff] }
 0x650   :  { %v5795_v51 = vpop.eup %5794 }
 0x651   :  { %v2960_v2 = vmul.f32 %v5795_v51, %v2943_v61  ;;  %v10860_v61 = vld [vmem:[#allocation90_spill] sm:$0xff]  ;;  %v10861_v51 = vld [vmem:[#allocation91_spill] sm:$0xff] }
 0x652   :  { %v5797_v36 = vpop.eup %5796 }
 0x653   :  { %v2961_v22 = vadd.f32 %v2960_v2, %v10812_v19  ;;  %v2963_v40 = vsub.f32 1.0, %v5797_v36  ;;  %v2965_v35 = vmul.f32 %v5797_v36, %v7819_v41  ;;  %v10813_v41 = vld [vmem:[#allocation38_spill] sm:$0xff]  ;;  %v10862_v2 = vld [vmem:[#allocation92_spill] sm:$0xff]  ;;  %v10863_v19 = vld [vmem:[#allocation93_spill] sm:$0xff] }
 0x654   :  { %v10865_v36 = vld [vmem:[#allocation95_spill] sm:$0xff] }
 0x655   :  { %5798 = vtanh.f32 %v2961_v22  ;;  %v10864_v22 = vld [vmem:[#allocation94_spill] sm:$0xff] }
 0x662   :  { %v5799_v29 = vpop.eup %5798 }
 0x663   :  { %v2964_v17 = vmul.f32 %v5799_v29, %v2963_v40  ;;  %v10866_v40 = vld [vmem:[#allocation96_spill] sm:$0xff]  ;;  %v10867_v29 = vld [vmem:[#allocation97_spill] sm:$0xff] }
 0x665   :  { %v8391_v46 = vadd.f32 %v2965_v35, %v2964_v17  ;;  %v10868_v17 = vld [vmem:[#allocation98_spill] sm:$0xff]  ;;  %v10869_v35 = vld [vmem:[#allocation99_spill] sm:$0xff] }
 0x667   :  { %3182 = vmatmul.mubr.f32.vlgmr.msra.gmra.mxu0 %v8391_v46  ;;  %3253 = vmatmul.mubr.f32.vlgmr.msra.gmra.mxu1 %v8391_v46 }
 0x668   :  { %3351 = vmatpush1.msra.mxu0 %v7821_v13  ;;  %5546 = vmatpush3.msra.mxu1 %v7823_v15  ;;  %v10814_v13 = vld [vmem:[#allocation47_spill] sm:$0xff]  ;;  %v10815_v15 = vld [vmem:[#allocation49_spill] sm:$0xff] }
 0x669   :  { %3352 = vmatprep.subr.mxu0 %v7825_v10  ;;  %5547 = vmatprep.subr.mxu1 %v10238_v63  ;;  %v8445_v10 = vld [vmem:[#allocation9 + $0x20] sm:$0xff] }
 0x66a   :  { %3353 = vmatpush1.msra.mxu0 %v7829_v62  ;;  %5548 = vmatpush3.msra.mxu1 %v7831_v18  ;;  %v10816_v62 = vld [vmem:[#allocation19_spill] sm:$0xff]  ;;  %v8449_v18 = vld [vmem:[#allocation9 + $0x18] sm:$0xff] }
 0x66b   :  { %3354 = vmatprep.subr.mxu0 %v7835_v53  ;;  %5549 = vmatprep.subr.mxu1 %v10238_v63  ;;  %v10817_v53 = vld [vmem:[#allocation20_spill] sm:$0xff] }
 0x66c   :  { %3355 = vmatpush1.msra.mxu0 %v7839_v0  ;;  %5550 = vmatpush3.msra.mxu1 %v7841_v16  ;;  %v10818_v0 = vld [vmem:[#allocation51_spill] sm:$0xff]  ;;  %v10819_v16 = vld [vmem:[#allocation21_spill] sm:$0xff] }
 0x66d   :  { %3356 = vmatprep.subr.mxu0 %v7845_v20  ;;  %5551 = vmatprep.subr.mxu1 %v10238_v63  ;;  %v10820_v20 = vld [vmem:[#allocation52_spill] sm:$0xff] }
 0x66e   :  { %3357 = vmatpush1.msra.mxu0 %v7849_v27  ;;  %5552 = vmatpush3.msra.mxu1 %v7851_v56  ;;  %v10821_v27 = vld [vmem:[#allocation22_spill] sm:$0xff] }
 0x66f   :  { %3358 = vmatprep.subr.mxu0 %v7855_v7  ;;  %5553 = vmatprep.subr.mxu1 %v10238_v63  ;;  %v10822_v56 = vld [vmem:[#allocation54_spill] sm:$0xff]  ;;  %v10823_v7 = vld [vmem:[#allocation23_spill] sm:$0xff] }
 0x670   :  { %3359 = vmatpush1.msra.mxu0 %v7859_v42  ;;  %5554 = vmatpush3.msra.mxu1 %v7861_v43  ;;  %v10824_v42 = vld [vmem:[#allocation55_spill] sm:$0xff]  ;;  %v10825_v43 = vld [vmem:[#allocation24_spill] sm:$0xff] }
 0x671   :  { %3360 = vmatprep.subr.mxu0 %v7865_v44  ;;  %5555 = vmatprep.subr.mxu1 %v10238_v63  ;;  %v10826_v44 = vld [vmem:[#allocation57_spill] sm:$0xff] }
 0x672   :  { %3361 = vmatpush1.msra.mxu0 %v7869_v47  ;;  %5556 = vmatpush3.msra.mxu1 %v7871_v48  ;;  %v10827_v47 = vld [vmem:[#allocation25_spill] sm:$0xff]  ;;  %v10828_v48 = vld [vmem:[#allocation58_spill] sm:$0xff] }
 0x673   :  { %3362 = vmatprep.subr.mxu0 %v7875_v50  ;;  %5557 = vmatprep.subr.mxu1 %v10238_v63  ;;  %v10829_v50 = vld [vmem:[#allocation26_spill] sm:$0xff]  ;;  %10977 = vst [vmem:[#allocation25_spill] sm:$0xff] %v8814_v1 }
 0x674   :  { %3363 = vmatpush1.msra.mxu0 %v7879_v12  ;;  %5558 = vmatpush3.msra.mxu1 %v7881_v3  ;;  %v10830_v12 = vld [vmem:[#allocation60_spill] sm:$0xff]  ;;  %v10831_v3 = vld [vmem:[#allocation61_spill] sm:$0xff] }
 0x675   :  { %3364 = vmatprep.subr.mxu0 %v7885_v49  ;;  %5559 = vmatprep.subr.mxu1 %v10238_v63  ;;  %v10832_v49 = vld [vmem:[#allocation62_spill] sm:$0xff] }
 0x676   :  { %3365 = vmatpush1.msra.mxu0 %v7889_v21  ;;  %5560 = vmatpush3.msra.mxu1 %v7891_v5  ;;  %v10833_v21 = vld [vmem:[#allocation63_spill] sm:$0xff]  ;;  %v10834_v5 = vld [vmem:[#allocation64_spill] sm:$0xff] }
 0x677   :  { %3366 = vmatprep.subr.mxu0 %v7895_v31  ;;  %5561 = vmatprep.subr.mxu1 %v10238_v63  ;;  %v10835_v31 = vld [vmem:[#allocation65_spill] sm:$0xff] }
 0x678   :  { %3367 = vmatpush1.msra.mxu0 %v7899_v8  ;;  %5562 = vmatpush3.msra.mxu1 %v7901_v52  ;;  %v10836_v8 = vld [vmem:[#allocation66_spill] sm:$0xff]  ;;  %v10837_v52 = vld [vmem:[#allocation67_spill] sm:$0xff] }
 0x679   :  { %3368 = vmatprep.subr.mxu0 %v7905_v11  ;;  %5563 = vmatprep.subr.mxu1 %v10238_v63  ;;  %v10838_v11 = vld [vmem:[#allocation68_spill] sm:$0xff] }
 0x67a   :  { %3369 = vmatpush1.msra.mxu0 %v7909_v59  ;;  %5564 = vmatpush3.msra.mxu1 %v7911_v54  ;;  %v10839_v59 = vld [vmem:[#allocation69_spill] sm:$0xff]  ;;  %v10840_v54 = vld [vmem:[#allocation70_spill] sm:$0xff] }
 0x67b   :  { %3370 = vmatprep.subr.mxu0 %v7915_v25  ;;  %5565 = vmatprep.subr.mxu1 %v10238_v63  ;;  %v10841_v25 = vld [vmem:[#allocation71_spill] sm:$0xff] }
 0x67c   :  { %3371 = vmatpush1.msra.mxu0 %v7919_v14  ;;  %5566 = vmatpush3.msra.mxu1 %v7921_v4  ;;  %v10842_v14 = vld [vmem:[#allocation72_spill] sm:$0xff]  ;;  %v10843_v4 = vld [vmem:[#allocation73_spill] sm:$0xff] }
 0x67d   :  { %3372 = vmatprep.subr.mxu0 %v7925_v58  ;;  %5567 = vmatprep.subr.mxu1 %v10238_v63  ;;  %v10844_v58 = vld [vmem:[#allocation74_spill] sm:$0xff] }
 0x67e   :  { %3373 = vmatpush1.msra.mxu0 %v7929_v55  ;;  %5568 = vmatpush3.msra.mxu1 %v7931_v57  ;;  %v10845_v55 = vld [vmem:[#allocation75_spill] sm:$0xff]  ;;  %v10846_v57 = vld [vmem:[#allocation76_spill] sm:$0xff] }
 0x67f   :  { %3374 = vmatprep.subr.mxu0 %v10813_v41  ;;  %5569 = vmatprep.subr.mxu1 %v10238_v63  ;;  %v10870_v41 = vld [vmem:[#allocation100_spill] sm:$0xff] }
 0x680   :  { %3375 = vmatpush1.msra.mxu0 %v10814_v13  ;;  %5570 = vmatpush3.msra.mxu1 %v10815_v15  ;;  %v10871_v13 = vld [vmem:[#allocation101_spill] sm:$0xff]  ;;  %v10872_v15 = vld [vmem:[#allocation102_spill] sm:$0xff] }
 0x681   :  { %3376 = vmatprep.subr.mxu0 %v10816_v62  ;;  %5571 = vmatprep.subr.mxu1 %v10238_v63  ;;  %v10873_v62 = vld [vmem:[#allocation103_spill] sm:$0xff] }
 0x682   :  { %3377 = vmatpush1.msra.mxu0 %v10817_v53  ;;  %5572 = vmatpush3.msra.mxu1 %v10818_v0  ;;  %v10874_v53 = vld [vmem:[#allocation104_spill] sm:$0xff]  ;;  %v10875_v0 = vld [vmem:[#allocation105_spill] sm:$0xff] }
 0x683   :  { %3378 = vmatprep.subr.mxu0 %v8445_v10  ;;  %5573 = vmatprep.subr.mxu1 %v10238_v63 }
 0x684   :  { %3379 = vmatpush1.msra.mxu0 %v8449_v18  ;;  %5574 = vmatpush3.msra.mxu1 %v10819_v16  ;;  %v10876_v16 = vld [vmem:[#allocation106_spill] sm:$0xff] }
 0x685   :  { %3380 = vmatprep.subr.mxu0 %v10820_v20  ;;  %5575 = vmatprep.subr.mxu1 %v10238_v63  ;;  %v10877_v20 = vld [vmem:[#allocation107_spill] sm:$0xff] }
 0x686   :  { %3381 = vmatpush1.msra.mxu0 %v10821_v27  ;;  %3414 = vmatprep.mubr.f32.mxu0 %v10238_v63  ;;  %v10878_v27 = vld [vmem:[#allocation108_spill] sm:$0xff] }
 0x687   :  { %5576 = vmatpush3.msra.mxu1 %v10822_v56  ;;  %5577 = vmatprep.mubr.msk.f32.mxu1 %vm5987_vm1, %v10238_v63  ;;  %v10879_v56 = vld [vmem:[#allocation109_spill] sm:$0xff] }
 0x688   :  { %3415 = vmatmul.mubr.f32.vlgmr.msra.gmra.mxu0 %v8391_v46  ;;  %5578 = vmatmul.mubr.f32.vlgmr.msra.gmra.mxu1 %v8391_v46 }
 0x689   :  { %3662 = vmatprep.subr.mxu0 %v10823_v7  ;;  %3733 = vmatprep.subr.mxu1 %v10824_v42  ;;  %v10880_v7 = vld [vmem:[#allocation110_spill] sm:$0xff]  ;;  %v10881_v42 = vld [vmem:[#allocation111_spill] sm:$0xff] }
 0x68a   :  { %3663 = vmatpush1.msra.mxu0 %v10825_v43  ;;  %3734 = vmatpush1.msra.mxu1 %v10826_v44  ;;  %v10882_v43 = vld [vmem:[#allocation112_spill] sm:$0xff]  ;;  %v10883_v44 = vld [vmem:[#allocation113_spill] sm:$0xff] }
 0x68b   :  { %3664 = vmatprep.subr.mxu0 %v10827_v47  ;;  %3735 = vmatprep.subr.mxu1 %v10828_v48  ;;  %v10884_v47 = vld [vmem:[#allocation114_spill] sm:$0xff]  ;;  %v10885_v48 = vld [vmem:[#allocation115_spill] sm:$0xff] }
 0x68c   :  { %3665 = vmatpush1.msra.mxu0 %v10829_v50  ;;  %3736 = vmatpush1.msra.mxu1 %v10830_v12  ;;  %v10886_v50 = vld [vmem:[#allocation116_spill] sm:$0xff]  ;;  %v10887_v12 = vld [vmem:[#allocation117_spill] sm:$0xff] }
 0x68d   :  { %3666 = vmatprep.subr.mxu0 %v10831_v3  ;;  %3737 = vmatprep.subr.mxu1 %v10832_v49  ;;  %v10888_v3 = vld [vmem:[#allocation118_spill] sm:$0xff]  ;;  %v10889_v49 = vld [vmem:[#allocation119_spill] sm:$0xff] }
 0x68e   :  { %3667 = vmatpush1.msra.mxu0 %v10833_v21  ;;  %3738 = vmatpush1.msra.mxu1 %v10834_v5  ;;  %v10890_v21 = vld [vmem:[#allocation120_spill] sm:$0xff]  ;;  %v10891_v5 = vld [vmem:[#allocation121_spill] sm:$0xff] }
 0x68f   :  { %3668 = vmatprep.subr.mxu0 %v10835_v31  ;;  %3739 = vmatprep.subr.mxu1 %v10836_v8  ;;  %v10892_v31 = vld [vmem:[#allocation122_spill] sm:$0xff]  ;;  %v10893_v8 = vld [vmem:[#allocation123_spill] sm:$0xff] }
 0x690   :  { %3669 = vmatpush1.msra.mxu0 %v10837_v52  ;;  %3740 = vmatpush1.msra.mxu1 %v10838_v11  ;;  %v10894_v52 = vld [vmem:[#allocation124_spill] sm:$0xff]  ;;  %v10895_v11 = vld [vmem:[#allocation125_spill] sm:$0xff] }
 0x691   :  { %3670 = vmatprep.subr.mxu0 %v10839_v59  ;;  %3741 = vmatprep.subr.mxu1 %v10840_v54  ;;  %v10896_v59 = vld [vmem:[#allocation126_spill] sm:$0xff]  ;;  %v10897_v54 = vld [vmem:[#allocation127_spill] sm:$0xff] }
 0x692   :  { %3671 = vmatpush1.msra.mxu0 %v10841_v25  ;;  %3742 = vmatpush1.msra.mxu1 %v10842_v14  ;;  %v10898_v25 = vld [vmem:[#allocation128_spill] sm:$0xff]  ;;  %v10899_v14 = vld [vmem:[#allocation129_spill] sm:$0xff] }
 0x693   :  { %3672 = vmatprep.subr.mxu0 %v10843_v4  ;;  %3743 = vmatprep.subr.mxu1 %v10844_v58  ;;  %v10900_v4 = vld [vmem:[#allocation130_spill] sm:$0xff]  ;;  %v10901_v58 = vld [vmem:[#allocation131_spill] sm:$0xff] }
 0x694   :  { %3673 = vmatpush1.msra.mxu0 %v10845_v55  ;;  %3744 = vmatpush1.msra.mxu1 %v10846_v57  ;;  %v10902_v55 = vld [vmem:[#allocation132_spill] sm:$0xff]  ;;  %v10903_v57 = vld [vmem:[#allocation133_spill] sm:$0xff] }
 0x695   :  { %3674 = vmatprep.subr.mxu0 %v10847_v24  ;;  %3745 = vmatprep.subr.mxu1 %v10848_v39  ;;  %v10904_v24 = vld [vmem:[#allocation134_spill] sm:$0xff]  ;;  %v10905_v39 = vld [vmem:[#allocation135_spill] sm:$0xff] }
 0x696   :  { %3675 = vmatpush1.msra.mxu0 %v10849_v23  ;;  %3746 = vmatpush1.msra.mxu1 %v10850_v34  ;;  %v10906_v23 = vld [vmem:[#allocation136_spill] sm:$0xff]  ;;  %v10907_v34 = vld [vmem:[#allocation137_spill] sm:$0xff] }
 0x697   :  { %3676 = vmatprep.subr.mxu0 %v10851_v45  ;;  %3747 = vmatprep.subr.mxu1 %v10852_v37  ;;  %v10908_v45 = vld [vmem:[#allocation138_spill] sm:$0xff]  ;;  %v10909_v37 = vld [vmem:[#allocation139_spill] sm:$0xff] }
 0x698   :  { %3677 = vmatpush1.msra.mxu0 %v10853_v38  ;;  %3748 = vmatpush1.msra.mxu1 %v10854_v26  ;;  %v10910_v38 = vld [vmem:[#allocation140_spill] sm:$0xff]  ;;  %v10911_v26 = vld [vmem:[#allocation141_spill] sm:$0xff] }
 0x699   :  { %3678 = vmatprep.subr.mxu0 %v10855_v30  ;;  %3749 = vmatprep.subr.mxu1 %v10856_v28  ;;  %v10912_v30 = vld [vmem:[#allocation142_spill] sm:$0xff]  ;;  %v10913_v28 = vld [vmem:[#allocation143_spill] sm:$0xff] }
 0x69a   :  { %3679 = vmatpush1.msra.mxu0 %v10857_v6  ;;  %3750 = vmatpush1.msra.mxu1 %v10858_v32  ;;  %v10914_v6 = vld [vmem:[#allocation144_spill] sm:$0xff]  ;;  %v10915_v32 = vld [vmem:[#allocation145_spill] sm:$0xff] }
 0x69b   :  { %3680 = vmatprep.subr.mxu0 %v10859_v33  ;;  %3751 = vmatprep.subr.mxu1 %v10860_v61  ;;  %v10916_v33 = vld [vmem:[#allocation146_spill] sm:$0xff]  ;;  %v10917_v61 = vld [vmem:[#allocation147_spill] sm:$0xff] }
 0x69c   :  { %3681 = vmatpush1.msra.mxu0 %v10861_v51  ;;  %3752 = vmatpush1.msra.mxu1 %v10862_v2  ;;  %v10918_v51 = vld [vmem:[#allocation148_spill] sm:$0xff]  ;;  %v10919_v2 = vld [vmem:[#allocation149_spill] sm:$0xff] }
 0x69d   :  { %3682 = vmatprep.subr.mxu0 %v10863_v19  ;;  %3753 = vmatprep.subr.mxu1 %v10864_v22  ;;  %v10920_v19 = vld [vmem:[#allocation150_spill] sm:$0xff]  ;;  %v10921_v22 = vld [vmem:[#allocation151_spill] sm:$0xff] }
 0x69e   :  { %3683 = vmatpush1.msra.mxu0 %v10865_v36  ;;  %3754 = vmatpush1.msra.mxu1 %v10866_v40  ;;  %v10922_v36 = vld [vmem:[#allocation152_spill] sm:$0xff]  ;;  %v10923_v40 = vld [vmem:[#allocation153_spill] sm:$0xff] }
 0x69f   :  { %3684 = vmatprep.subr.mxu0 %v10867_v29  ;;  %3755 = vmatprep.subr.mxu1 %v10868_v17  ;;  %v10924_v29 = vld [vmem:[#allocation154_spill] sm:$0xff]  ;;  %v10925_v17 = vld [vmem:[#allocation155_spill] sm:$0xff] }
 0x6a0   :  { %3685 = vmatpush1.msra.mxu0 %v10869_v35  ;;  %3756 = vmatpush1.msra.mxu1 %v10870_v41  ;;  %v10926_v35 = vld [vmem:[#allocation156_spill] sm:$0xff]  ;;  %v10927_v41 = vld [vmem:[#allocation157_spill] sm:$0xff] }
 0x6a1   :  { %3686 = vmatprep.subr.mxu0 %v10871_v13  ;;  %3757 = vmatprep.subr.mxu1 %v10872_v15  ;;  %v10928_v13 = vld [vmem:[#allocation158_spill] sm:$0xff]  ;;  %v10929_v15 = vld [vmem:[#allocation159_spill] sm:$0xff] }
 0x6a2   :  { %3687 = vmatpush1.msra.mxu0 %v10873_v62  ;;  %3758 = vmatpush1.msra.mxu1 %v10874_v53  ;;  %v10930_v62 = vld [vmem:[#allocation160_spill] sm:$0xff]  ;;  %v10931_v53 = vld [vmem:[#allocation161_spill] sm:$0xff] }
 0x6a3   :  { %3688 = vmatprep.subr.mxu0 %v10875_v0  ;;  %3759 = vmatprep.subr.mxu1 %v10876_v16  ;;  %v10932_v0 = vld [vmem:[#allocation162_spill] sm:$0xff]  ;;  %v10933_v16 = vld [vmem:[#allocation163_spill] sm:$0xff] }
 0x6a4   :  { %3689 = vmatpush1.msra.mxu0 %v10877_v20  ;;  %3760 = vmatpush1.msra.mxu1 %v10878_v27  ;;  %v10934_v20 = vld [vmem:[#allocation164_spill] sm:$0xff]  ;;  %v10935_v27 = vld [vmem:[#allocation165_spill] sm:$0xff] }
 0x6a5   :  { %3690 = vmatprep.subr.mxu0 %v10879_v56  ;;  %3761 = vmatprep.subr.mxu1 %v10880_v7  ;;  %v10936_v56 = vld [vmem:[#allocation166_spill] sm:$0xff]  ;;  %v10937_v7 = vld [vmem:[#allocation167_spill] sm:$0xff] }
 0x6a6   :  { %3691 = vmatpush1.msra.mxu0 %v10881_v42  ;;  %3762 = vmatpush1.msra.mxu1 %v10882_v43  ;;  %v10938_v42 = vld [vmem:[#allocation168_spill] sm:$0xff]  ;;  %v10939_v43 = vld [vmem:[#allocation169_spill] sm:$0xff] }
 0x6a7   :  { %3692 = vmatprep.subr.mxu0 %v10883_v44  ;;  %3763 = vmatprep.subr.mxu1 %v10884_v47  ;;  %v10940_v44 = vld [vmem:[#allocation170_spill] sm:$0xff]  ;;  %v10941_v47 = vld [vmem:[#allocation171_spill] sm:$0xff] }
 0x6a8   :  { %3693 = vmatpush1.msra.mxu0 %v10885_v48  ;;  %3764 = vmatpush1.msra.mxu1 %v10886_v50  ;;  %v10942_v48 = vld [vmem:[#allocation172_spill] sm:$0xff]  ;;  %v10943_v50 = vld [vmem:[#allocation173_spill] sm:$0xff] }
 0x6a9   :  { %3694 = vmatprep.subr.mxu0 %v10887_v12  ;;  %3765 = vmatprep.subr.mxu1 %v10888_v3  ;;  %v10944_v12 = vld [vmem:[#allocation174_spill] sm:$0xff]  ;;  %v10945_v3 = vld [vmem:[#allocation175_spill] sm:$0xff] }
 0x6aa   :  { %3695 = vmatpush2.msra.mxu0 %v10889_v49  ;;  %3766 = vmatpush2.msra.mxu1 %v10890_v21  ;;  %v10946_v49 = vld [vmem:[#allocation176_spill] sm:$0xff]  ;;  %v10947_v21 = vld [vmem:[#allocation34_spill] sm:$0xff] }
 0x6ab   :  { %3696 = vmatprep.subr.mxu0 %v10891_v5  ;;  %3767 = vmatprep.subr.mxu1 %v10892_v31  ;;  %v10948_v5 = vld [vmem:[#allocation33_spill] sm:$0xff]  ;;  %v10949_v31 = vld [vmem:[#allocation35_spill] sm:$0xff] }
 0x6ac   :  { %3697 = vmatpush2.msra.mxu0 %v10893_v8  ;;  %3768 = vmatpush2.msra.mxu1 %v10894_v52  ;;  %v10950_v8 = vld [vmem:[#allocation31_spill] sm:$0xff] }
 0x6ad   :  { %3698 = vmatprep.subr.mxu0 %v10895_v11  ;;  %3769 = vmatprep.subr.mxu1 %v10896_v59  ;;  %v8595_v52 = vld [vmem:[#allocation9 + $0x170] sm:$0xff] }
 0x6ae   :  { %3699 = vmatpush2.msra.mxu0 %v10897_v54  ;;  %3770 = vmatpush2.msra.mxu1 %v10898_v25  ;;  %v3095_v11 = vld [vmem:[%s9501_s9] sm:$0xf]  ;;  %v4927_v25 = vld [vmem:[%s9492_s0 + $0x28] sm:$0xff] }
 0x6af   :  { %3700 = vmatprep.subr.mxu0 %v10899_v14  ;;  %3771 = vmatprep.subr.mxu1 %v10900_v4  ;;  %v10951_v59 = vld [vmem:[#allocation27_spill] sm:$0xff] }
 0x6b0   :  { %3701 = vmatpush2.msra.mxu0 %v10901_v58  ;;  %3772 = vmatpush2.msra.mxu1 %v10902_v55  ;;  %v3100_v54 = vrot.slane %v3095_v11, %v10951_v59  ;;  %v10952_v55 = vld [vmem:[#allocation29_spill] sm:$0xff] }
 0x6b1   :  { %3702 = vmatprep.subr.mxu0 %v10903_v57  ;;  %3773 = vmatprep.subr.mxu1 %v10904_v24  ;;  %v3104_v57 = vrot.slane %v3095_v11, %v10952_v55 }
 0x6b2   :  { %3703 = vmatpush2.msra.mxu0 %v10905_v39  ;;  %3774 = vmatpush2.msra.mxu1 %v10906_v23 }
 0x6b3   :  { %3704 = vmatprep.subr.mxu0 %v10907_v34  ;;  %3775 = vmatprep.subr.mxu1 %v10908_v45 }
 0x6b4   :  { %3705 = vmatpush2.msra.mxu0 %v10909_v37  ;;  %3776 = vmatpush2.msra.mxu1 %v10910_v38  ;;  %v3333_v38 = vld [vmem:[%s9499_s7] sm:$0x7] }
 0x6b5   :  { %3706 = vmatprep.subr.mxu0 %v10911_v26  ;;  %3777 = vmatprep.subr.mxu1 %v10912_v30  ;;  %v10953_v30 = vld [vmem:[#allocation28_spill] sm:$0xff] }
 0x6b6   :  { %3707 = vmatpush2.msra.mxu0 %v10913_v28  ;;  %3778 = vmatpush2.msra.mxu1 %v10914_v6  ;;  %v3112_v28 = vrot.slane %v3095_v11, %v10953_v30 }
 0x6b7   :  { %3708 = vmatprep.subr.mxu0 %v10915_v32  ;;  %3779 = vmatprep.subr.mxu1 %v10916_v33  ;;  %v3338_v32 = vrot.slane %v3333_v38, %v10951_v59  ;;  %v3108_v33 = vrot.slane %v3095_v11, %v6254_v9 }
 0x6b8   :  { %3709 = vmatpush2.msra.mxu0 %v10917_v61  ;;  %3780 = vmatpush2.msra.mxu1 %v10918_v51 }
 0x6b9   :  { %3710 = vmatprep.subr.mxu0 %v10919_v2  ;;  %3781 = vmatprep.subr.mxu1 %v10920_v19 }
 0x6ba   :  { %3711 = vmatpush2.msra.mxu0 %v10921_v22  ;;  %3782 = vmatpush2.msra.mxu1 %v10922_v36 }
 0x6bb   :  { %3712 = vmatprep.subr.mxu0 %v10923_v40  ;;  %3783 = vmatprep.subr.mxu1 %v10924_v29  ;;  %v3342_v40 = vrot.slane %v3333_v38, %v10952_v55 }
 0x6bc   :  { %3713 = vmatpush2.msra.mxu0 %v10925_v17  ;;  %3784 = vmatpush2.msra.mxu1 %v10926_v35 }
 0x6bd   :  { %3714 = vmatprep.subr.mxu0 %v10927_v41  ;;  %3785 = vmatprep.subr.mxu1 %v10928_v13  ;;  %v10954_v13 = vld [vmem:[#allocation48_spill] sm:$0xff] }
 0x6be   :  { %3715 = vmatpush2.msra.mxu0 %v10929_v15  ;;  %3786 = vmatpush2.msra.mxu1 %v10930_v62 }
 0x6bf   :  { %3716 = vmatprep.subr.mxu0 %v10931_v53  ;;  %3787 = vmatprep.subr.mxu1 %v10932_v0 }
 0x6c0   :  { %3717 = vmatpush2.msra.mxu0 %v10933_v16  ;;  %3788 = vmatpush2.msra.mxu1 %v10934_v20  ;;  %v10955_v16 = vld [vmem:[#allocation50_spill] sm:$0xff] }
 0x6c1   :  { %3718 = vmatprep.subr.mxu0 %v10935_v27  ;;  %3789 = vmatprep.subr.mxu1 %v10936_v56 }
 0x6c2   :  { %3719 = vmatpush2.msra.mxu0 %v10937_v7  ;;  %3790 = vmatpush2.msra.mxu1 %v10938_v42 }
 0x6c3   :  { %3720 = vmatprep.subr.mxu0 %v10939_v43  ;;  %3791 = vmatprep.subr.mxu1 %v10940_v44 }
 0x6c4   :  { %3721 = vmatpush2.msra.mxu0 %v10941_v47  ;;  %3792 = vmatpush2.msra.mxu1 %v10942_v48 }
 0x6c5   :  { %3722 = vmatprep.subr.mxu0 %v10943_v50  ;;  %3793 = vmatprep.subr.mxu1 %v10944_v12 }
 0x6c6   :  { %3723 = vmatpush2.msra.mxu0 %v10945_v3  ;;  %3794 = vmatpush2.msra.mxu1 %v10946_v49  ;;  %v3346_v3 = vrot.slane %v3333_v38, %v6254_v9  ;;  %v8645_v38 = vld [vmem:[#allocation9 + $0x148] sm:$0xff] }
 0x6c7   :  { %3724 = vmatprep.subr.mxu0 %v10947_v21  ;;  %3795 = vmatprep.subr.mxu1 %v10948_v5 }
 0x6c8   :  { %3725 = vmatpush2.msra.mxu0 %v10949_v31  ;;  %3796 = vmatpush2.msra.mxu1 %v10950_v8  ;;  %v10956_v8 = vld [vmem:[#allocation40_spill] sm:$0xff] }
 0x6c9   :  { %5580 = vmatprep.subr.mxu1 %v10238_v63  ;;  %3895 = vmatprep.subr.mxu0 %v8595_v52 }
 0x6ca   :  { %4957 = vperm.xlu1 %5709, %v4927_v25  }
 0x727   :  { %v3183_v14 = vpop.f32.mrf.mxu0  ;;  %v3254_v37 = vpop.f32.mrf.mxu1 }
 0x728   :  { %v3184_v4 = vadd.f32 %v3183_v14, %v3100_v54  ;;  %v3255_v29 = vadd.f32 %v3254_v37, %v3108_v33  ;;  %v8643_v37 = vld [vmem:[#allocation9 + $0x138] sm:$0xff]  ;;  %v8663_v33 = vld [vmem:[#allocation9 + $0x108] sm:$0xff] }
 0x729   :  { %v3185_v24 = vpop.f32.mrf.mxu0  ;;  %v3256_v6 = vpop.f32.mrf.mxu1 }
 0x72a   :  { %v5169_v58 = vmul.f32 -1.442695, %v3184_v4  ;;  %v3186_v39 = vadd.f32 %v3185_v24, %v3104_v57  ;;  %v3257_v51 = vadd.f32 %v3256_v6, %v3112_v28  ;;  %v8625_v24 = vld [vmem:[#allocation9 + $0x168] sm:$0xff]  ;;  %v8653_v28 = vld [vmem:[#allocation9 + $0x120] sm:$0xff]  ;;  %v8655_v6 = vld [vmem:[#allocation9 + $0x130] sm:$0xff] }
 0x72c   :  { %5800 = vpow2.f32 %v5169_v58  ;;  %v5170_v23 = vmul.f32 -1.442695, %v3186_v39  ;;  %v8627_v39 = vld [vmem:[#allocation9 + $0x178] sm:$0xff] }
 0x72e   :  { %5802 = vpow2.f32 %v5170_v23  ;;  %v8629_v23 = vld [vmem:[#allocation9 + $0x158] sm:$0xff] }
 0x739   :  { %v5801_v34 = vpop.eup %5800 }
 0x73a   :  { %v3262_v45 = vadd.f32 1.0, %v5801_v34  ;;  %v8633_v34 = vld [vmem:[#allocation9 + $0x150] sm:$0xff] }
 0x73b   :  { %v5803_v26 = vpop.eup %5802 }
 0x73c   :  { %5804 = vrcp.f32 %v3262_v45  ;;  %v3268_v61 = vadd.f32 1.0, %v5803_v26  ;;  %v8635_v45 = vld [vmem:[#allocation9 + $0x160] sm:$0xff]  ;;  %v8649_v26 = vld [vmem:[#allocation9 + $0x128] sm:$0xff] }
 0x73e   :  { %5806 = vrcp.f32 %v3268_v61  ;;  %v8665_v61 = vld [vmem:[#allocation9 + $0x118] sm:$0xff] }
 0x748   :  { %v3416_v2 = vpop.f32.mrf.mxu0  ;;  %v3487_v19 = vpop.f32.mrf.mxu1 }
 0x749   :  { %v5805_v22 = vpop.eup %5804  ;;  %v3417_v36 = vadd.f32 %v3416_v2, %v3338_v32  ;;  %v3488_v21 = vadd.f32 %v3487_v19, %v3346_v3  ;;  %v8659_v32 = vld [vmem:[#allocation9 + $0x110] sm:$0xff]  ;;  %v8675_v19 = vld [vmem:[#allocation9 + $0x100] sm:$0xff] }
 0x74a   :  { %v3271_v17 = vmul.f32 %v5805_v22, %v3257_v51  ;;  %v3418_v35 = vpop.f32.mrf.mxu0  ;;  %v5579_v41 = vpop.f32.mrf.mxu1  ;;  %v8669_v51 = vld [vmem:[#allocation9 + $0xf8] sm:$0xff]  ;;  %v8673_v2 = vld [vmem:[#allocation9 + $0xf0] sm:$0xff]  ;;  %v8679_v22 = vld [vmem:[#allocation9 + $0xe0] sm:$0xff] }
 0x74b   :  { %v3491_v15 = vadd.f32 %v3417_v36, %v10954_v13  ;;  %v3419_v0 = vadd.f32 %v3418_v35, %v3342_v40  ;;  %v5807_v56 = vpop.eup %5806  ;;  %v8683_v36 = vld [vmem:[#allocation9 + $0xd8] sm:$0xff]  ;;  %v8685_v40 = vld [vmem:[#allocation9 + $0xe8] sm:$0xff]  ;;  %v8695_v35 = vld [vmem:[#allocation9 + $0xd0] sm:$0xff] }
 0x74c   :  { %v3272_v62 = vadd.f32 %v3271_v17, %v3255_v29  ;;  %v3274_v7 = vsub.f32 1.0, %v5807_v56  ;;  %v3276_v47 = vmul.f32 %v5807_v56, %v8384_v60  ;;  %v8689_v29 = vld [vmem:[#allocation9 + $0xc8] sm:$0xff]  ;;  %v8693_v17 = vld [vmem:[#allocation9 + $0xc0] sm:$0xff]  ;;  %v8699_v41 = vld [vmem:[#allocation9 + $0xb0] sm:$0xff] }
 0x74d   :  { %v5171_v53 = vmul.f32 -1.442695, %v3491_v15  ;;  %v3498_v20 = vadd.f32 %v3419_v0, %v10955_v16  ;;  %v8703_v13 = vld [vmem:[#allocation9 + $0xa8] sm:$0xff]  ;;  %v8705_v15 = vld [vmem:[#allocation9 + $0xb8] sm:$0xff]  ;;  %v8715_v0 = vld [vmem:[#allocation9 + $0xa0] sm:$0xff] }
 0x74e   :  { %5808 = vtanh.f32 %v3272_v62  ;;  %v8709_v62 = vld [vmem:[#allocation9 + $0x98] sm:$0xff]  ;;  %v8719_v16 = vld [vmem:[#allocation9 + $0x80] sm:$0xff]  ;;  %v8729_v56 = vld [vmem:[#allocation9 + $0x68] sm:$0xff] }
 0x74f   :  { %5810 = vpow2.f32 %v5171_v53  ;;  %v5172_v27 = vmul.f32 -1.442695, %v3498_v20  ;;  %v8713_v53 = vld [vmem:[#allocation9 + $0x90] sm:$0xff]  ;;  %v8723_v20 = vld [vmem:[#allocation9 + $0x78] sm:$0xff]  ;;  %v8755_v3 = vld [vmem:[#allocation9 + $0x40] sm:$0xff] }
 0x750   :  { %10962 = vst [vmem:[#allocation42_spill] sm:$0xff] %v8755_v3  ;;  %v8810_v60 = vld [vmem:[#allocation10 + $0x1b8] sm:$0xff] }
 0x751   :  { %5812 = vpow2.f32 %v5172_v27  ;;  %v8725_v27 = vld [vmem:[#allocation9 + $0x88] sm:$0xff]  ;;  %10976 = vst [vmem:[#allocation57_spill] sm:$0xff] %v8810_v60 }
 0x75b   :  { %v5809_v42 = vpop.eup %5808 }
 0x75c   :  { %v5811_v43 = vpop.eup %5810  ;;  %v3275_v44 = vmul.f32 %v5809_v42, %v3274_v7  ;;  %v8733_v7 = vld [vmem:[#allocation9 + $0x60] sm:$0xff]  ;;  %v8735_v42 = vld [vmem:[#allocation9 + $0x70] sm:$0xff] }
 0x75d   :  { %v3495_v48 = vadd.f32 1.0, %v5811_v43  ;;  %v8739_v43 = vld [vmem:[#allocation9 + $0x50] sm:$0xff] }
 0x75e   :  { %v8616_v50 = vadd.f32 %v3276_v47, %v3275_v44  ;;  %v5813_v12 = vpop.eup %5812  ;;  %10957 = vst [vmem:[#allocation41_spill] sm:$0xff] %v8739_v43  ;;  %v8743_v44 = vld [vmem:[#allocation9 + $0x48] sm:$0xff]  ;;  %v8745_v47 = vld [vmem:[#allocation9 + $0x58] sm:$0xff] }
 0x75f   :  { %5814 = vrcp.f32 %v3495_v48  ;;  %v3502_v49 = vadd.f32 1.0, %v5813_v12  ;;  %10958 = vst [vmem:[#allocation43_spill] sm:$0xff] %v8743_v44  ;;  %10959 = vst [vmem:[#allocation36_spill] sm:$0xff] %v8745_v47  ;;  %v8749_v48 = vld [vmem:[#allocation9 + $0x38] sm:$0xff]  ;;  %v8753_v12 = vld [vmem:[#allocation9 + $0x30] sm:$0xff] }
 0x760   :  { %3726 = vmatprep.mubr.f32.mxu0 %v8616_v50  ;;  %3797 = vmatprep.mubr.f32.mxu1 %v8616_v50  ;;  %10960 = vst [vmem:[#allocation45_spill] sm:$0xff] %v8749_v48  ;;  %10961 = vst [vmem:[#allocation46_spill] sm:$0xff] %v8753_v12 }
 0x761   :  { %5816 = vrcp.f32 %v3502_v49  ;;  %v8761_v49 = vld [vmem:[#allocation9 + $0x28] sm:$0xff] }
 0x762   :  { %10963 = vst [vmem:[#allocation38_spill] sm:$0xff] %v8761_v49 }
 0x76c   :  { %v5815_v5 = vpop.eup %5814 }
 0x76d   :  { %v3505_v31 = vmul.f32 %v5815_v5, %v3488_v21  ;;  %v8765_v21 = vld [vmem:[#allocation9 + $0x8] sm:$0xff]  ;;  %v8769_v5 = vld [vmem:[#allocation9] sm:$0xff] }
 0x76e   :  { %v5817_v54 = vpop.eup %5816  ;;  %10964 = vst [vmem:[#allocation47_spill] sm:$0xff] %v8765_v21  ;;  %10965 = vst [vmem:[#allocation49_spill] sm:$0xff] %v8769_v5 }
 0x76f   :  { %v3506_v11 = vadd.f32 %v3505_v31, %v10956_v8  ;;  %v3508_v25 = vsub.f32 1.0, %v5817_v54  ;;  %v3510_v58 = vmul.f32 %v5817_v54, %v8391_v46  ;;  %v8639_v46 = vld [vmem:[#allocation9 + $0x140] sm:$0xff]  ;;  %v8773_v31 = vld [vmem:[#allocation9 + $0x10] sm:$0xff]  ;;  %v8796_v54 = vld [vmem:[#allocation10 + $0x1c8] sm:$0xff] }
 0x770   :  { %10966 = vst [vmem:[#allocation19_spill] sm:$0xff] %v8773_v31  ;;  %v8790_v8 = vld [vmem:[#allocation10 + $0x1e0] sm:$0xff]  ;;  %10971 = vst [vmem:[#allocation22_spill] sm:$0xff] %v8796_v54 }
 0x771   :  { %5818 = vtanh.f32 %v3506_v11  ;;  %10969 = vst [vmem:[#allocation21_spill] sm:$0xff] %v8790_v8  ;;  %v8792_v11 = vld [vmem:[#allocation10 + $0x1f0] sm:$0xff] }
 0x772   :  { %10970 = vst [vmem:[#allocation52_spill] sm:$0xff] %v8792_v11 }
 0x77e   :  { %v5819_v14 = vpop.eup %5818 }
 0x77f   :  { %v3509_v4 = vmul.f32 %v5819_v14, %v3508_v25  ;;  %v8798_v25 = vld [vmem:[#allocation10 + $0x1d8] sm:$0xff]  ;;  %v8802_v14 = vld [vmem:[#allocation10 + $0x1c0] sm:$0xff] }
 0x780   :  { %10972 = vst [vmem:[#allocation54_spill] sm:$0xff] %v8798_v25  ;;  %10973 = vst [vmem:[#allocation23_spill] sm:$0xff] %v8802_v14 }
 0x781   :  { %v8623_v57 = vadd.f32 %v3510_v58, %v3509_v4  ;;  %v8804_v4 = vld [vmem:[#allocation10 + $0x1d0] sm:$0xff]  ;;  %v8808_v58 = vld [vmem:[#allocation10 + $0x1a8] sm:$0xff] }
 0x782   :  { %10974 = vst [vmem:[#allocation55_spill] sm:$0xff] %v8804_v4  ;;  %10975 = vst [vmem:[#allocation24_spill] sm:$0xff] %v8808_v58 }
 0x783   :  { %3727 = vmatmul.mubr.f32.vlgmr.msra.gmra.mxu0 %v8623_v57  ;;  %3798 = vmatmul.mubr.f32.vlgmr.msra.gmra.mxu1 %v8623_v57 }
 0x784   :  { %3896 = vmatpush1.msra.mxu0 %v8625_v24  ;;  %5581 = vmatpush3.msra.mxu1 %v8627_v39 }
 0x785   :  { %3897 = vmatprep.subr.mxu0 %v8629_v23  ;;  %5582 = vmatprep.subr.mxu1 %v10238_v63 }
 0x786   :  { %3898 = vmatpush1.msra.mxu0 %v8633_v34  ;;  %5583 = vmatpush3.msra.mxu1 %v8635_v45 }
 0x787   :  { %3899 = vmatprep.subr.mxu0 %v8639_v46  ;;  %5584 = vmatprep.subr.mxu1 %v10238_v63 }
 0x788   :  { %3900 = vmatpush1.msra.mxu0 %v8643_v37  ;;  %5585 = vmatpush3.msra.mxu1 %v8645_v38 }
 0x789   :  { %3901 = vmatprep.subr.mxu0 %v8649_v26  ;;  %5586 = vmatprep.subr.mxu1 %v10238_v63 }
 0x78a   :  { %3902 = vmatpush1.msra.mxu0 %v8653_v28  ;;  %5587 = vmatpush3.msra.mxu1 %v8655_v6 }
 0x78b   :  { %3903 = vmatprep.subr.mxu0 %v8659_v32  ;;  %5588 = vmatprep.subr.mxu1 %v10238_v63 }
 0x78c   :  { %3904 = vmatpush1.msra.mxu0 %v8663_v33  ;;  %5589 = vmatpush3.msra.mxu1 %v8665_v61 }
 0x78d   :  { %3905 = vmatprep.subr.mxu0 %v8669_v51  ;;  %5590 = vmatprep.subr.mxu1 %v10238_v63 }
 0x78e   :  { %3906 = vmatpush1.msra.mxu0 %v8673_v2  ;;  %5591 = vmatpush3.msra.mxu1 %v8675_v19 }
 0x78f   :  { %3907 = vmatprep.subr.mxu0 %v8679_v22  ;;  %5592 = vmatprep.subr.mxu1 %v10238_v63 }
 0x790   :  { %3908 = vmatpush1.msra.mxu0 %v8683_v36  ;;  %5593 = vmatpush3.msra.mxu1 %v8685_v40 }
 0x791   :  { %3909 = vmatprep.subr.mxu0 %v8689_v29  ;;  %5594 = vmatprep.subr.mxu1 %v10238_v63 }
 0x792   :  { %3910 = vmatpush1.msra.mxu0 %v8693_v17  ;;  %5595 = vmatpush3.msra.mxu1 %v8695_v35 }
 0x793   :  { %3911 = vmatprep.subr.mxu0 %v8699_v41  ;;  %5596 = vmatprep.subr.mxu1 %v10238_v63 }
 0x794   :  { %3912 = vmatpush1.msra.mxu0 %v8703_v13  ;;  %5597 = vmatpush3.msra.mxu1 %v8705_v15 }
 0x795   :  { %3913 = vmatprep.subr.mxu0 %v8709_v62  ;;  %5598 = vmatprep.subr.mxu1 %v10238_v63 }
 0x796   :  { %3914 = vmatpush1.msra.mxu0 %v8713_v53  ;;  %5599 = vmatpush3.msra.mxu1 %v8715_v0 }
 0x797   :  { %3915 = vmatprep.subr.mxu0 %v8719_v16  ;;  %5600 = vmatprep.subr.mxu1 %v10238_v63 }
 0x798   :  { %3916 = vmatpush1.msra.mxu0 %v8723_v20  ;;  %5601 = vmatpush3.msra.mxu1 %v8725_v27 }
 0x799   :  { %3917 = vmatprep.subr.mxu0 %v8729_v56  ;;  %5602 = vmatprep.subr.mxu1 %v10238_v63 }
 0x79a   :  { %3918 = vmatpush1.msra.mxu0 %v8733_v7  ;;  %5603 = vmatpush3.msra.mxu1 %v8735_v42 }
 0x79b   :  { %3919 = vmatprep.subr.mxu0 %v8739_v43  ;;  %5604 = vmatprep.subr.mxu1 %v10238_v63 }
 0x79c   :  { %3920 = vmatpush1.msra.mxu0 %v8743_v44  ;;  %5605 = vmatpush3.msra.mxu1 %v8745_v47  ;;  %v11095_v47 = vld [vmem:[#allocation53_spill] sm:$0xff] }
 0x79d   :  { %3921 = vmatprep.subr.mxu0 %v8749_v48  ;;  %5606 = vmatprep.subr.mxu1 %v10238_v63 }
 0x79e   :  { %3922 = vmatpush1.msra.mxu0 %v8753_v12  ;;  %5607 = vmatpush3.msra.mxu1 %v8755_v3 }
 0x79f   :  { %3923 = vmatprep.subr.mxu0 %v8445_v10  ;;  %5608 = vmatprep.subr.mxu1 %v10238_v63  ;;  %v8784_v10 = vld [vmem:[#allocation10 + $0x1e8] sm:$0xff] }
 0x7a0   :  { %3924 = vmatpush1.msra.mxu0 %v8449_v18  ;;  %5609 = vmatpush3.msra.mxu1 %v8761_v49  ;;  %10967 = vst [vmem:[#allocation20_spill] sm:$0xff] %v8784_v10  ;;  %v8786_v18 = vld [vmem:[#allocation10 + $0x1f8] sm:$0xff] }
 0x7a1   :  { %3925 = vmatprep.subr.mxu0 %v8765_v21  ;;  %5610 = vmatprep.subr.mxu1 %v10238_v63  ;;  %10968 = vst [vmem:[#allocation51_spill] sm:$0xff] %v8786_v18 }
 0x7a2   :  { %3926 = vmatpush1.msra.mxu0 %v8769_v5  ;;  %3959 = vmatprep.mubr.f32.mxu0 %v10238_v63  ;;  %v3878_v5 = vld [vmem:[%s9499_s7] sm:$0x7] }
 0x7a3   :  { %5611 = vmatpush3.msra.mxu1 %v8773_v31  ;;  %5612 = vmatprep.mubr.msk.f32.mxu1 %vm5987_vm1, %v10238_v63 }
 0x7a4   :  { %3960 = vmatmul.mubr.f32.vlgmr.msra.gmra.mxu0 %v8623_v57  ;;  %5613 = vmatmul.mubr.f32.vlgmr.msra.gmra.mxu1 %v8623_v57 }
 0x7a5   :  { %4207 = vmatprep.subr.mxu0 %v8784_v10  ;;  %4278 = vmatprep.subr.mxu1 %v8786_v18  ;;  %v9100_v18 = vld [vmem:[#allocation10 + $0x2b0] sm:$0xff]  ;;  %v9116_v10 = vld [vmem:[#allocation10 + $0x268] sm:$0xff] }
 0x7a6   :  { %4208 = vmatpush1.msra.mxu0 %v8790_v8  ;;  %4279 = vmatpush1.msra.mxu1 %v8792_v11  ;;  %v9084_v11 = vld [vmem:[#allocation10 + $0x2d8] sm:$0xff]  ;;  %v9092_v8 = vld [vmem:[#allocation10 + $0x2a8] sm:$0xff]  ;;  %11074 = vst [vmem:[#allocation154_spill] sm:$0xff] %v9100_v18  ;;  %11079 = vst [vmem:[#allocation159_spill] sm:$0xff] %v9116_v10 }
 0x7a7   :  { %4209 = vmatprep.subr.mxu0 %v8796_v54  ;;  %4280 = vmatprep.subr.mxu1 %v8798_v25  ;;  %v8816_v54 = vld [vmem:[#allocation10 + $0x1b0] sm:$0xff]  ;;  %v8820_v25 = vld [vmem:[#allocation10 + $0x188] sm:$0xff]  ;;  %11068 = vst [vmem:[#allocation148_spill] sm:$0xff] %v9084_v11  ;;  %11071 = vst [vmem:[#allocation151_spill] sm:$0xff] %v9092_v8 }
 0x7a8   :  { %4210 = vmatpush1.msra.mxu0 %v8802_v14  ;;  %4281 = vmatpush1.msra.mxu1 %v8804_v4  ;;  %10978 = vst [vmem:[#allocation58_spill] sm:$0xff] %v8816_v54  ;;  %10979 = vst [vmem:[#allocation26_spill] sm:$0xff] %v8820_v25  ;;  %v8822_v14 = vld [vmem:[#allocation10 + $0x198] sm:$0xff]  ;;  %v8826_v4 = vld [vmem:[#allocation10 + $0x180] sm:$0xff] }
 0x7a9   :  { %4211 = vmatprep.subr.mxu0 %v8808_v58  ;;  %4282 = vmatprep.subr.mxu1 %v8810_v60  ;;  %10980 = vst [vmem:[#allocation60_spill] sm:$0xff] %v8822_v14  ;;  %10981 = vst [vmem:[#allocation61_spill] sm:$0xff] %v8826_v4  ;;  %v8828_v58 = vld [vmem:[#allocation10 + $0x190] sm:$0xff]  ;;  %v8832_v60 = vld [vmem:[#allocation10 + $0x168] sm:$0xff] }
 0x7aa   :  { %4212 = vmatpush1.msra.mxu0 %v8814_v1  ;;  %4283 = vmatpush1.msra.mxu1 %v8816_v54  ;;  %10982 = vst [vmem:[#allocation62_spill] sm:$0xff] %v8828_v58  ;;  %10983 = vst [vmem:[#allocation63_spill] sm:$0xff] %v8832_v60  ;;  %v8834_v1 = vld [vmem:[#allocation10 + $0x178] sm:$0xff]  ;;  %v8838_v54 = vld [vmem:[#allocation10 + $0x160] sm:$0xff] }
 0x7ab   :  { %4213 = vmatprep.subr.mxu0 %v8820_v25  ;;  %4284 = vmatprep.subr.mxu1 %v8822_v14  ;;  %10984 = vst [vmem:[#allocation64_spill] sm:$0xff] %v8834_v1  ;;  %10985 = vst [vmem:[#allocation65_spill] sm:$0xff] %v8838_v54  ;;  %v8840_v25 = vld [vmem:[#allocation10 + $0x170] sm:$0xff]  ;;  %v8844_v14 = vld [vmem:[#allocation10 + $0x148] sm:$0xff] }
 0x7ac   :  { %4214 = vmatpush1.msra.mxu0 %v8826_v4  ;;  %4285 = vmatpush1.msra.mxu1 %v8828_v58  ;;  %10986 = vst [vmem:[#allocation66_spill] sm:$0xff] %v8840_v25  ;;  %10987 = vst [vmem:[#allocation67_spill] sm:$0xff] %v8844_v14  ;;  %v8846_v4 = vld [vmem:[#allocation10 + $0x158] sm:$0xff]  ;;  %v8850_v58 = vld [vmem:[#allocation10 + $0x140] sm:$0xff] }
 0x7ad   :  { %4215 = vmatprep.subr.mxu0 %v8832_v60  ;;  %4286 = vmatprep.subr.mxu1 %v8834_v1  ;;  %10988 = vst [vmem:[#allocation68_spill] sm:$0xff] %v8846_v4  ;;  %10989 = vst [vmem:[#allocation69_spill] sm:$0xff] %v8850_v58  ;;  %v8852_v60 = vld [vmem:[#allocation10 + $0x150] sm:$0xff]  ;;  %v8856_v1 = vld [vmem:[#allocation10 + $0x128] sm:$0xff] }
 0x7ae   :  { %4216 = vmatpush1.msra.mxu0 %v8838_v54  ;;  %4287 = vmatpush1.msra.mxu1 %v8840_v25  ;;  %10990 = vst [vmem:[#allocation70_spill] sm:$0xff] %v8852_v60  ;;  %10991 = vst [vmem:[#allocation71_spill] sm:$0xff] %v8856_v1  ;;  %v8858_v54 = vld [vmem:[#allocation10 + $0x138] sm:$0xff]  ;;  %v8862_v25 = vld [vmem:[#allocation10 + $0x120] sm:$0xff] }
 0x7af   :  { %4217 = vmatprep.subr.mxu0 %v8844_v14  ;;  %4288 = vmatprep.subr.mxu1 %v8846_v4  ;;  %10992 = vst [vmem:[#allocation72_spill] sm:$0xff] %v8858_v54  ;;  %10993 = vst [vmem:[#allocation73_spill] sm:$0xff] %v8862_v25  ;;  %v8864_v14 = vld [vmem:[#allocation10 + $0x130] sm:$0xff]  ;;  %v8868_v4 = vld [vmem:[#allocation10 + $0x108] sm:$0xff] }
 0x7b0   :  { %4218 = vmatpush1.msra.mxu0 %v8850_v58  ;;  %4289 = vmatpush1.msra.mxu1 %v8852_v60  ;;  %10994 = vst [vmem:[#allocation74_spill] sm:$0xff] %v8864_v14  ;;  %10995 = vst [vmem:[#allocation75_spill] sm:$0xff] %v8868_v4  ;;  %v8870_v58 = vld [vmem:[#allocation10 + $0x118] sm:$0xff]  ;;  %v8874_v60 = vld [vmem:[#allocation10 + $0x100] sm:$0xff] }
 0x7b1   :  { %4219 = vmatprep.subr.mxu0 %v8856_v1  ;;  %4290 = vmatprep.subr.mxu1 %v8858_v54  ;;  %10996 = vst [vmem:[#allocation76_spill] sm:$0xff] %v8870_v58  ;;  %10997 = vst [vmem:[#allocation77_spill] sm:$0xff] %v8874_v60  ;;  %v8876_v1 = vld [vmem:[#allocation10 + $0x110] sm:$0xff]  ;;  %v8880_v54 = vld [vmem:[#allocation10 + $0xe8] sm:$0xff] }
 0x7b2   :  { %4220 = vmatpush1.msra.mxu0 %v8862_v25  ;;  %4291 = vmatpush1.msra.mxu1 %v8864_v14  ;;  %10998 = vst [vmem:[#allocation78_spill] sm:$0xff] %v8876_v1  ;;  %10999 = vst [vmem:[#allocation79_spill] sm:$0xff] %v8880_v54  ;;  %v8882_v25 = vld [vmem:[#allocation10 + $0xf8] sm:$0xff]  ;;  %v8886_v14 = vld [vmem:[#allocation10 + $0xe0] sm:$0xff] }
 0x7b3   :  { %4221 = vmatprep.subr.mxu0 %v8868_v4  ;;  %4292 = vmatprep.subr.mxu1 %v8870_v58  ;;  %11000 = vst [vmem:[#allocation80_spill] sm:$0xff] %v8882_v25  ;;  %11001 = vst [vmem:[#allocation81_spill] sm:$0xff] %v8886_v14  ;;  %v8888_v4 = vld [vmem:[#allocation10 + $0xf0] sm:$0xff]  ;;  %v8892_v58 = vld [vmem:[#allocation10 + $0xc8] sm:$0xff] }
 0x7b4   :  { %4222 = vmatpush1.msra.mxu0 %v8874_v60  ;;  %4293 = vmatpush1.msra.mxu1 %v8876_v1  ;;  %11002 = vst [vmem:[#allocation82_spill] sm:$0xff] %v8888_v4  ;;  %11003 = vst [vmem:[#allocation83_spill] sm:$0xff] %v8892_v58  ;;  %v8894_v60 = vld [vmem:[#allocation10 + $0xd8] sm:$0xff]  ;;  %v8898_v1 = vld [vmem:[#allocation10 + $0xc0] sm:$0xff] }
 0x7b5   :  { %4223 = vmatprep.subr.mxu0 %v8880_v54  ;;  %4294 = vmatprep.subr.mxu1 %v8882_v25  ;;  %11004 = vst [vmem:[#allocation84_spill] sm:$0xff] %v8894_v60  ;;  %11005 = vst [vmem:[#allocation85_spill] sm:$0xff] %v8898_v1  ;;  %v8900_v54 = vld [vmem:[#allocation10 + $0xd0] sm:$0xff]  ;;  %v8904_v25 = vld [vmem:[#allocation10 + $0xa8] sm:$0xff] }
 0x7b6   :  { %4224 = vmatpush1.msra.mxu0 %v8886_v14  ;;  %4295 = vmatpush1.msra.mxu1 %v8888_v4  ;;  %11006 = vst [vmem:[#allocation86_spill] sm:$0xff] %v8900_v54  ;;  %11007 = vst [vmem:[#allocation87_spill] sm:$0xff] %v8904_v25  ;;  %v8906_v14 = vld [vmem:[#allocation10 + $0xb8] sm:$0xff]  ;;  %v8910_v4 = vld [vmem:[#allocation10 + $0xa0] sm:$0xff] }
 0x7b7   :  { %4225 = vmatprep.subr.mxu0 %v8892_v58  ;;  %4296 = vmatprep.subr.mxu1 %v8894_v60  ;;  %11008 = vst [vmem:[#allocation88_spill] sm:$0xff] %v8906_v14  ;;  %11009 = vst [vmem:[#allocation89_spill] sm:$0xff] %v8910_v4  ;;  %v8912_v58 = vld [vmem:[#allocation10 + $0xb0] sm:$0xff]  ;;  %v8916_v60 = vld [vmem:[#allocation10 + $0x88] sm:$0xff] }
 0x7b8   :  { %4226 = vmatpush1.msra.mxu0 %v8898_v1  ;;  %4297 = vmatpush1.msra.mxu1 %v8900_v54  ;;  %11010 = vst [vmem:[#allocation90_spill] sm:$0xff] %v8912_v58  ;;  %11011 = vst [vmem:[#allocation91_spill] sm:$0xff] %v8916_v60  ;;  %v8918_v1 = vld [vmem:[#allocation10 + $0x98] sm:$0xff]  ;;  %v8922_v54 = vld [vmem:[#allocation10 + $0x80] sm:$0xff] }
 0x7b9   :  { %4227 = vmatprep.subr.mxu0 %v8904_v25  ;;  %4298 = vmatprep.subr.mxu1 %v8906_v14  ;;  %11012 = vst [vmem:[#allocation92_spill] sm:$0xff] %v8918_v1  ;;  %11013 = vst [vmem:[#allocation93_spill] sm:$0xff] %v8922_v54  ;;  %v8924_v25 = vld [vmem:[#allocation10 + $0x90] sm:$0xff]  ;;  %v8928_v14 = vld [vmem:[#allocation10 + $0x68] sm:$0xff] }
 0x7ba   :  { %4228 = vmatpush1.msra.mxu0 %v8910_v4  ;;  %4299 = vmatpush1.msra.mxu1 %v8912_v58  ;;  %11014 = vst [vmem:[#allocation94_spill] sm:$0xff] %v8924_v25  ;;  %11015 = vst [vmem:[#allocation95_spill] sm:$0xff] %v8928_v14  ;;  %v8930_v4 = vld [vmem:[#allocation10 + $0x78] sm:$0xff]  ;;  %v8934_v58 = vld [vmem:[#allocation10 + $0x60] sm:$0xff] }
 0x7bb   :  { %4229 = vmatprep.subr.mxu0 %v8916_v60  ;;  %4300 = vmatprep.subr.mxu1 %v8918_v1  ;;  %11016 = vst [vmem:[#allocation96_spill] sm:$0xff] %v8930_v4  ;;  %11017 = vst [vmem:[#allocation97_spill] sm:$0xff] %v8934_v58  ;;  %v8936_v60 = vld [vmem:[#allocation10 + $0x70] sm:$0xff]  ;;  %v8940_v1 = vld [vmem:[#allocation10 + $0x48] sm:$0xff] }
 0x7bc   :  { %4230 = vmatpush1.msra.mxu0 %v8922_v54  ;;  %4301 = vmatpush1.msra.mxu1 %v8924_v25  ;;  %11018 = vst [vmem:[#allocation98_spill] sm:$0xff] %v8936_v60  ;;  %11019 = vst [vmem:[#allocation99_spill] sm:$0xff] %v8940_v1  ;;  %v8942_v54 = vld [vmem:[#allocation10 + $0x58] sm:$0xff]  ;;  %v8946_v25 = vld [vmem:[#allocation10 + $0x40] sm:$0xff] }
 0x7bd   :  { %4231 = vmatprep.subr.mxu0 %v8928_v14  ;;  %4302 = vmatprep.subr.mxu1 %v8930_v4  ;;  %11020 = vst [vmem:[#allocation100_spill] sm:$0xff] %v8942_v54  ;;  %11021 = vst [vmem:[#allocation101_spill] sm:$0xff] %v8946_v25  ;;  %v8948_v14 = vld [vmem:[#allocation10 + $0x50] sm:$0xff]  ;;  %v8952_v4 = vld [vmem:[#allocation10 + $0x28] sm:$0xff] }
 0x7be   :  { %4232 = vmatpush1.msra.mxu0 %v8934_v58  ;;  %4303 = vmatpush1.msra.mxu1 %v8936_v60  ;;  %11022 = vst [vmem:[#allocation102_spill] sm:$0xff] %v8948_v14  ;;  %11023 = vst [vmem:[#allocation103_spill] sm:$0xff] %v8952_v4  ;;  %v8954_v58 = vld [vmem:[#allocation10 + $0x38] sm:$0xff]  ;;  %v8958_v60 = vld [vmem:[#allocation10 + $0x20] sm:$0xff] }
 0x7bf   :  { %4233 = vmatprep.subr.mxu0 %v8940_v1  ;;  %4304 = vmatprep.subr.mxu1 %v8942_v54  ;;  %11024 = vst [vmem:[#allocation104_spill] sm:$0xff] %v8954_v58  ;;  %11025 = vst [vmem:[#allocation105_spill] sm:$0xff] %v8958_v60  ;;  %v8960_v1 = vld [vmem:[#allocation10 + $0x30] sm:$0xff]  ;;  %v8964_v54 = vld [vmem:[#allocation10 + $0x8] sm:$0xff] }
 0x7c0   :  { %4234 = vmatpush1.msra.mxu0 %v8946_v25  ;;  %4305 = vmatpush1.msra.mxu1 %v8948_v14  ;;  %11026 = vst [vmem:[#allocation106_spill] sm:$0xff] %v8960_v1  ;;  %11027 = vst [vmem:[#allocation107_spill] sm:$0xff] %v8964_v54  ;;  %v8966_v25 = vld [vmem:[#allocation10 + $0x18] sm:$0xff]  ;;  %v8970_v14 = vld [vmem:[#allocation10] sm:$0xff] }
 0x7c1   :  { %4235 = vmatprep.subr.mxu0 %v8952_v4  ;;  %4306 = vmatprep.subr.mxu1 %v8954_v58  ;;  %11028 = vst [vmem:[#allocation108_spill] sm:$0xff] %v8966_v25  ;;  %11029 = vst [vmem:[#allocation109_spill] sm:$0xff] %v8970_v14  ;;  %v8972_v4 = vld [vmem:[#allocation10 + $0x10] sm:$0xff]  ;;  %v8976_v58 = vld [vmem:[#allocation10 + $0x3e8] sm:$0xff] }
 0x7c2   :  { %4236 = vmatpush1.msra.mxu0 %v8958_v60  ;;  %4307 = vmatpush1.msra.mxu1 %v8960_v1  ;;  %11030 = vst [vmem:[#allocation110_spill] sm:$0xff] %v8972_v4  ;;  %11031 = vst [vmem:[#allocation111_spill] sm:$0xff] %v8976_v58  ;;  %v8978_v60 = vld [vmem:[#allocation10 + $0x3f8] sm:$0xff]  ;;  %v8982_v1 = vld [vmem:[#allocation10 + $0x3e0] sm:$0xff] }
 0x7c3   :  { %4237 = vmatprep.subr.mxu0 %v8964_v54  ;;  %4308 = vmatprep.subr.mxu1 %v8966_v25  ;;  %11032 = vst [vmem:[#allocation112_spill] sm:$0xff] %v8978_v60  ;;  %11033 = vst [vmem:[#allocation113_spill] sm:$0xff] %v8982_v1  ;;  %v8984_v54 = vld [vmem:[#allocation10 + $0x3f0] sm:$0xff]  ;;  %v8988_v25 = vld [vmem:[#allocation10 + $0x3c8] sm:$0xff] }
 0x7c4   :  { %4238 = vmatpush1.msra.mxu0 %v8970_v14  ;;  %4309 = vmatpush1.msra.mxu1 %v8972_v4  ;;  %11034 = vst [vmem:[#allocation114_spill] sm:$0xff] %v8984_v54  ;;  %11035 = vst [vmem:[#allocation115_spill] sm:$0xff] %v8988_v25  ;;  %v8990_v14 = vld [vmem:[#allocation10 + $0x3d8] sm:$0xff]  ;;  %v8994_v4 = vld [vmem:[#allocation10 + $0x3c0] sm:$0xff] }
 0x7c5   :  { %4239 = vmatprep.subr.mxu0 %v8976_v58  ;;  %4310 = vmatprep.subr.mxu1 %v8978_v60  ;;  %11036 = vst [vmem:[#allocation116_spill] sm:$0xff] %v8990_v14  ;;  %11037 = vst [vmem:[#allocation117_spill] sm:$0xff] %v8994_v4  ;;  %v8996_v58 = vld [vmem:[#allocation10 + $0x3d0] sm:$0xff]  ;;  %v9000_v60 = vld [vmem:[#allocation10 + $0x3a8] sm:$0xff] }
 0x7c6   :  { %4240 = vmatpush2.msra.mxu0 %v8982_v1  ;;  %4311 = vmatpush2.msra.mxu1 %v8984_v54  ;;  %11038 = vst [vmem:[#allocation118_spill] sm:$0xff] %v8996_v58  ;;  %11039 = vst [vmem:[#allocation119_spill] sm:$0xff] %v9000_v60  ;;  %v9002_v1 = vld [vmem:[#allocation10 + $0x3b8] sm:$0xff]  ;;  %v9006_v54 = vld [vmem:[#allocation10 + $0x3a0] sm:$0xff] }
 0x7c7   :  { %4241 = vmatprep.subr.mxu0 %v8988_v25  ;;  %4312 = vmatprep.subr.mxu1 %v8990_v14  ;;  %11040 = vst [vmem:[#allocation120_spill] sm:$0xff] %v9002_v1  ;;  %11041 = vst [vmem:[#allocation121_spill] sm:$0xff] %v9006_v54  ;;  %v9008_v25 = vld [vmem:[#allocation10 + $0x3b0] sm:$0xff]  ;;  %v9012_v14 = vld [vmem:[#allocation10 + $0x388] sm:$0xff] }
 0x7c8   :  { %4242 = vmatpush2.msra.mxu0 %v8994_v4  ;;  %4313 = vmatpush2.msra.mxu1 %v8996_v58  ;;  %11042 = vst [vmem:[#allocation122_spill] sm:$0xff] %v9008_v25  ;;  %11043 = vst [vmem:[#allocation123_spill] sm:$0xff] %v9012_v14  ;;  %v9014_v4 = vld [vmem:[#allocation10 + $0x398] sm:$0xff]  ;;  %v9018_v58 = vld [vmem:[#allocation10 + $0x380] sm:$0xff] }
 0x7c9   :  { %4243 = vmatprep.subr.mxu0 %v9000_v60  ;;  %4314 = vmatprep.subr.mxu1 %v9002_v1  ;;  %11044 = vst [vmem:[#allocation124_spill] sm:$0xff] %v9014_v4  ;;  %11045 = vst [vmem:[#allocation125_spill] sm:$0xff] %v9018_v58  ;;  %v9020_v60 = vld [vmem:[#allocation10 + $0x390] sm:$0xff]  ;;  %v9024_v1 = vld [vmem:[#allocation10 + $0x368] sm:$0xff] }
 0x7ca   :  { %4244 = vmatpush2.msra.mxu0 %v9006_v54  ;;  %4315 = vmatpush2.msra.mxu1 %v9008_v25  ;;  %11046 = vst [vmem:[#allocation126_spill] sm:$0xff] %v9020_v60  ;;  %11047 = vst [vmem:[#allocation127_spill] sm:$0xff] %v9024_v1  ;;  %v9026_v54 = vld [vmem:[#allocation10 + $0x378] sm:$0xff]  ;;  %v9030_v25 = vld [vmem:[#allocation10 + $0x360] sm:$0xff] }
 0x7cb   :  { %4245 = vmatprep.subr.mxu0 %v9012_v14  ;;  %4316 = vmatprep.subr.mxu1 %v9014_v4  ;;  %11048 = vst [vmem:[#allocation128_spill] sm:$0xff] %v9026_v54  ;;  %11049 = vst [vmem:[#allocation129_spill] sm:$0xff] %v9030_v25  ;;  %v9032_v14 = vld [vmem:[#allocation10 + $0x370] sm:$0xff]  ;;  %v9036_v4 = vld [vmem:[#allocation10 + $0x348] sm:$0xff] }
 0x7cc   :  { %4246 = vmatpush2.msra.mxu0 %v9018_v58  ;;  %4317 = vmatpush2.msra.mxu1 %v9020_v60  ;;  %11050 = vst [vmem:[#allocation130_spill] sm:$0xff] %v9032_v14  ;;  %11051 = vst [vmem:[#allocation131_spill] sm:$0xff] %v9036_v4  ;;  %v9038_v58 = vld [vmem:[#allocation10 + $0x358] sm:$0xff]  ;;  %v9042_v60 = vld [vmem:[#allocation10 + $0x340] sm:$0xff] }
 0x7cd   :  { %4247 = vmatprep.subr.mxu0 %v9024_v1  ;;  %4318 = vmatprep.subr.mxu1 %v9026_v54  ;;  %11052 = vst [vmem:[#allocation132_spill] sm:$0xff] %v9038_v58  ;;  %11053 = vst [vmem:[#allocation133_spill] sm:$0xff] %v9042_v60  ;;  %v9044_v1 = vld [vmem:[#allocation10 + $0x350] sm:$0xff]  ;;  %v9048_v54 = vld [vmem:[#allocation10 + $0x328] sm:$0xff] }
 0x7ce   :  { %4248 = vmatpush2.msra.mxu0 %v9030_v25  ;;  %4319 = vmatpush2.msra.mxu1 %v9032_v14  ;;  %11054 = vst [vmem:[#allocation134_spill] sm:$0xff] %v9044_v1  ;;  %11055 = vst [vmem:[#allocation135_spill] sm:$0xff] %v9048_v54  ;;  %v9050_v25 = vld [vmem:[#allocation10 + $0x338] sm:$0xff]  ;;  %v9054_v14 = vld [vmem:[#allocation10 + $0x320] sm:$0xff] }
 0x7cf   :  { %4249 = vmatprep.subr.mxu0 %v9036_v4  ;;  %4320 = vmatprep.subr.mxu1 %v9038_v58  ;;  %11056 = vst [vmem:[#allocation136_spill] sm:$0xff] %v9050_v25  ;;  %11057 = vst [vmem:[#allocation137_spill] sm:$0xff] %v9054_v14  ;;  %v9056_v4 = vld [vmem:[#allocation10 + $0x330] sm:$0xff]  ;;  %v9060_v58 = vld [vmem:[#allocation10 + $0x308] sm:$0xff] }
 0x7d0   :  { %4250 = vmatpush2.msra.mxu0 %v9042_v60  ;;  %4321 = vmatpush2.msra.mxu1 %v9044_v1  ;;  %11058 = vst [vmem:[#allocation138_spill] sm:$0xff] %v9056_v4  ;;  %11059 = vst [vmem:[#allocation139_spill] sm:$0xff] %v9060_v58  ;;  %v9062_v60 = vld [vmem:[#allocation10 + $0x318] sm:$0xff]  ;;  %v9066_v1 = vld [vmem:[#allocation10 + $0x300] sm:$0xff] }
 0x7d1   :  { %4251 = vmatprep.subr.mxu0 %v9048_v54  ;;  %4322 = vmatprep.subr.mxu1 %v9050_v25  ;;  %11060 = vst [vmem:[#allocation140_spill] sm:$0xff] %v9062_v60  ;;  %11061 = vst [vmem:[#allocation141_spill] sm:$0xff] %v9066_v1  ;;  %v9068_v54 = vld [vmem:[#allocation10 + $0x310] sm:$0xff]  ;;  %v9072_v25 = vld [vmem:[#allocation10 + $0x2e8] sm:$0xff] }
 0x7d2   :  { %4252 = vmatpush2.msra.mxu0 %v9054_v14  ;;  %4323 = vmatpush2.msra.mxu1 %v9056_v4  ;;  %11062 = vst [vmem:[#allocation142_spill] sm:$0xff] %v9068_v54  ;;  %11063 = vst [vmem:[#allocation143_spill] sm:$0xff] %v9072_v25  ;;  %v9074_v14 = vld [vmem:[#allocation10 + $0x2f8] sm:$0xff]  ;;  %v9076_v4 = vld [vmem:[#allocation10 + $0x2e0] sm:$0xff] }
 0x7d3   :  { %4253 = vmatprep.subr.mxu0 %v9060_v58  ;;  %4324 = vmatprep.subr.mxu1 %v9062_v60  ;;  %11064 = vst [vmem:[#allocation144_spill] sm:$0xff] %v9074_v14  ;;  %11065 = vst [vmem:[#allocation145_spill] sm:$0xff] %v9076_v4  ;;  %v9080_v58 = vld [vmem:[#allocation10 + $0x2f0] sm:$0xff]  ;;  %v9082_v60 = vld [vmem:[#allocation10 + $0x2c8] sm:$0xff] }
 0x7d4   :  { %4254 = vmatpush2.msra.mxu0 %v9066_v1  ;;  %4325 = vmatpush2.msra.mxu1 %v9068_v54  ;;  %11066 = vst [vmem:[#allocation146_spill] sm:$0xff] %v9080_v58  ;;  %11067 = vst [vmem:[#allocation147_spill] sm:$0xff] %v9082_v60  ;;  %v9088_v54 = vld [vmem:[#allocation10 + $0x2c0] sm:$0xff]  ;;  %v9090_v1 = vld [vmem:[#allocation10 + $0x2d0] sm:$0xff] }
 0x7d5   :  { %4255 = vmatprep.subr.mxu0 %v9072_v25  ;;  %4326 = vmatprep.subr.mxu1 %v9074_v14  ;;  %11069 = vst [vmem:[#allocation149_spill] sm:$0xff] %v9088_v54  ;;  %11070 = vst [vmem:[#allocation150_spill] sm:$0xff] %v9090_v1  ;;  %v9096_v14 = vld [vmem:[#allocation10 + $0x2b8] sm:$0xff]  ;;  %v9098_v25 = vld [vmem:[#allocation10 + $0x2a0] sm:$0xff] }
 0x7d6   :  { %4256 = vmatpush2.msra.mxu0 %v9076_v4  ;;  %4327 = vmatpush2.msra.mxu1 %v9080_v58  ;;  %11072 = vst [vmem:[#allocation152_spill] sm:$0xff] %v9096_v14  ;;  %11073 = vst [vmem:[#allocation153_spill] sm:$0xff] %v9098_v25  ;;  %v9104_v58 = vld [vmem:[#allocation10 + $0x288] sm:$0xff]  ;;  %v9106_v4 = vld [vmem:[#allocation10 + $0x298] sm:$0xff] }
 0x7d7   :  { %4257 = vmatprep.subr.mxu0 %v9082_v60  ;;  %4328 = vmatprep.subr.mxu1 %v9084_v11  ;;  %11075 = vst [vmem:[#allocation155_spill] sm:$0xff] %v9104_v58  ;;  %11076 = vst [vmem:[#allocation156_spill] sm:$0xff] %v9106_v4  ;;  %v9110_v60 = vld [vmem:[#allocation10 + $0x280] sm:$0xff]  ;;  %v9112_v11 = vld [vmem:[#allocation10 + $0x290] sm:$0xff] }
 0x7d8   :  { %4258 = vmatpush2.msra.mxu0 %v9088_v54  ;;  %4329 = vmatpush2.msra.mxu1 %v9090_v1  ;;  %11077 = vst [vmem:[#allocation157_spill] sm:$0xff] %v9110_v60  ;;  %11078 = vst [vmem:[#allocation158_spill] sm:$0xff] %v9112_v11  ;;  %v9118_v54 = vld [vmem:[#allocation10 + $0x278] sm:$0xff]  ;;  %v9122_v1 = vld [vmem:[#allocation10 + $0x260] sm:$0xff] }
 0x7d9   :  { %4259 = vmatprep.subr.mxu0 %v9092_v8  ;;  %4330 = vmatprep.subr.mxu1 %v9096_v14  ;;  %11080 = vst [vmem:[#allocation160_spill] sm:$0xff] %v9118_v54  ;;  %11081 = vst [vmem:[#allocation161_spill] sm:$0xff] %v9122_v1  ;;  %v9124_v8 = vld [vmem:[#allocation10 + $0x270] sm:$0xff]  ;;  %v9128_v14 = vld [vmem:[#allocation10 + $0x248] sm:$0xff] }
 0x7da   :  { %4260 = vmatpush2.msra.mxu0 %v9098_v25  ;;  %4331 = vmatpush2.msra.mxu1 %v9100_v18  ;;  %11082 = vst [vmem:[#allocation162_spill] sm:$0xff] %v9124_v8  ;;  %11083 = vst [vmem:[#allocation163_spill] sm:$0xff] %v9128_v14  ;;  %v9130_v25 = vld [vmem:[#allocation10 + $0x258] sm:$0xff]  ;;  %v9134_v18 = vld [vmem:[#allocation10 + $0x240] sm:$0xff] }
 0x7db   :  { %4261 = vmatprep.subr.mxu0 %v9104_v58  ;;  %4332 = vmatprep.subr.mxu1 %v9106_v4  ;;  %11084 = vst [vmem:[#allocation164_spill] sm:$0xff] %v9130_v25  ;;  %11085 = vst [vmem:[#allocation165_spill] sm:$0xff] %v9134_v18  ;;  %v9136_v58 = vld [vmem:[#allocation10 + $0x250] sm:$0xff]  ;;  %v9140_v4 = vld [vmem:[#allocation10 + $0x228] sm:$0xff] }
 0x7dc   :  { %4262 = vmatpush2.msra.mxu0 %v9110_v60  ;;  %4333 = vmatpush2.msra.mxu1 %v9112_v11  ;;  %11086 = vst [vmem:[#allocation166_spill] sm:$0xff] %v9136_v58  ;;  %11087 = vst [vmem:[#allocation167_spill] sm:$0xff] %v9140_v4  ;;  %v9142_v60 = vld [vmem:[#allocation10 + $0x238] sm:$0xff]  ;;  %v9146_v11 = vld [vmem:[#allocation10 + $0x220] sm:$0xff] }
 0x7dd   :  { %4263 = vmatprep.subr.mxu0 %v9116_v10  ;;  %4334 = vmatprep.subr.mxu1 %v9118_v54  ;;  %11088 = vst [vmem:[#allocation168_spill] sm:$0xff] %v9142_v60  ;;  %11089 = vst [vmem:[#allocation169_spill] sm:$0xff] %v9146_v11  ;;  %v9148_v10 = vld [vmem:[#allocation10 + $0x230] sm:$0xff]  ;;  %v9152_v54 = vld [vmem:[#allocation10 + $0x208] sm:$0xff] }
 0x7de   :  { %4264 = vmatpush2.msra.mxu0 %v9122_v1  ;;  %4335 = vmatpush2.msra.mxu1 %v9124_v8  ;;  %11090 = vst [vmem:[#allocation170_spill] sm:$0xff] %v9148_v10  ;;  %11091 = vst [vmem:[#allocation171_spill] sm:$0xff] %v9152_v54  ;;  %v9154_v1 = vld [vmem:[#allocation10 + $0x218] sm:$0xff]  ;;  %v9158_v8 = vld [vmem:[#allocation10 + $0x200] sm:$0xff] }
 0x7df   :  { %4265 = vmatprep.subr.mxu0 %v9128_v14  ;;  %4336 = vmatprep.subr.mxu1 %v9130_v25  ;;  %11092 = vst [vmem:[#allocation172_spill] sm:$0xff] %v9154_v1  ;;  %11093 = vst [vmem:[#allocation173_spill] sm:$0xff] %v9158_v8  ;;  %v9160_v14 = vld [vmem:[#allocation10 + $0x210] sm:$0xff] }
 0x7e0   :  { %4266 = vmatpush2.msra.mxu0 %v9134_v18  ;;  %4337 = vmatpush2.msra.mxu1 %v9136_v58  ;;  %11094 = vst [vmem:[#allocation174_spill] sm:$0xff] %v9160_v14 }
 0x7e1   :  { %4267 = vmatprep.subr.mxu0 %v9140_v4  ;;  %4338 = vmatprep.subr.mxu1 %v9142_v60  ;;  %v3640_v60 = vld [vmem:[%s9501_s9] sm:$0xf] }
 0x7e2   :  { %4268 = vmatpush2.msra.mxu0 %v9146_v11  ;;  %4339 = vmatpush2.msra.mxu1 %v9148_v10  ;;  %v3645_v11 = vrot.slane %v3640_v60, %v10951_v59 }
 0x7e3   :  { %4269 = vmatprep.subr.mxu0 %v9152_v54  ;;  %4340 = vmatprep.subr.mxu1 %v9154_v1  ;;  %v4928_v54 = vld [vmem:[%s9492_s0 + $0x30] sm:$0xff] }
 0x7e4   :  { %4270 = vmatpush2.msra.mxu0 %v9158_v8  ;;  %4341 = vmatpush2.msra.mxu1 %v9160_v14  ;;  %v3649_v14 = vrot.slane %v3640_v60, %v10952_v55 }
 0x7e5   :  { %4440 = vmatprep.subr.mxu0 %v8595_v52  ;;  %5615 = vmatprep.subr.mxu1 %v10238_v63 }
 0x7e6   :  { %4962 = vperm.xlu0 %5708, %v4928_v54   ;;  %v3657_v54 = vrot.slane %v3640_v60, %v10953_v30 }
 0x843   :  { %v3728_v1 = vpop.f32.mrf.mxu0  ;;  %v3799_v31 = vpop.f32.mrf.mxu1 }
 0x844   :  { %v3729_v10 = vadd.f32 %v3728_v1, %v3645_v11  ;;  %v3653_v11 = vrot.slane %v3640_v60, %v6254_v9  ;;  %v11096_v60 = vld [vmem:[#allocation56_spill] sm:$0xff] }
 0x845   :  { %v3730_v4 = vpop.f32.mrf.mxu0  ;;  %v3801_v1 = vpop.f32.mrf.mxu1 }
 0x846   :  { %v5173_v8 = vmul.f32 -1.442695, %v3729_v10  ;;  %v3731_v52 = vadd.f32 %v3730_v4, %v3649_v14  ;;  %v3883_v10 = vrot.slane %v3878_v5, %v10951_v59  ;;  %v3802_v14 = vadd.f32 %v3801_v1, %v3657_v54 }
 0x847   :  { %v3800_v49 = vadd.f32 %v3799_v31, %v3653_v11 }
 0x848   :  { %5820 = vpow2.f32 %v5173_v8  ;;  %v5174_v58 = vmul.f32 -1.442695, %v3731_v52 }
 0x84a   :  { %5822 = vpow2.f32 %v5174_v58 }
 0x855   :  { %v5821_v18 = vpop.eup %5820 }
 0x856   :  { %v3807_v25 = vadd.f32 1.0, %v5821_v18 }
 0x857   :  { %v5823_v21 = vpop.eup %5822 }
 0x858   :  { %5824 = vrcp.f32 %v3807_v25  ;;  %v3813_v8 = vadd.f32 1.0, %v5823_v21  ;;  %v3887_v25 = vrot.slane %v3878_v5, %v10952_v55 }
 0x85a   :  { %5826 = vrcp.f32 %v3813_v8 }
 0x864   :  { %v3961_v4 = vpop.f32.mrf.mxu0  ;;  %v4032_v58 = vpop.f32.mrf.mxu1 }
 0x865   :  { %v5825_v52 = vpop.eup %5824  ;;  %v3962_v18 = vadd.f32 %v3961_v4, %v3883_v10 }
 0x866   :  { %v3816_v3 = vmul.f32 %v5825_v52, %v3802_v14  ;;  %v3963_v12 = vpop.f32.mrf.mxu0  ;;  %v5614_v48 = vpop.f32.mrf.mxu1 }
 0x867   :  { %v4036_v30 = vadd.f32 %v3962_v18, %v11095_v47  ;;  %v3964_v59 = vadd.f32 %v3963_v12, %v3887_v25  ;;  %v5827_v1 = vpop.eup %5826  ;;  %v11097_v12 = vld [vmem:[#allocation30_spill] sm:$0xff] }
 0x868   :  { %v3817_v44 = vadd.f32 %v3816_v3, %v3800_v49  ;;  %v3819_v10 = vsub.f32 1.0, %v5827_v1  ;;  %v3821_v11 = vmul.f32 %v5827_v1, %v8616_v50  ;;  %v11098_v3 = vld [vmem:[#allocation177_spill] sm:$0xff]  ;;  %v11136_v1 = vld [vmem:[#allocation74_spill] sm:$0xff] }
 0x869   :  { %v5175_v43 = vmul.f32 -1.442695, %v4036_v30  ;;  %v4043_v21 = vadd.f32 %v3964_v59, %v11096_v60  ;;  %v3891_v59 = vrot.slane %v3878_v5, %v6254_v9  ;;  %v3829_v49 = vadd.f32 %v11098_v3, %v11097_v12  ;;  %v11134_v5 = vld [vmem:[#allocation72_spill] sm:$0xff]  ;;  %v11147_v12 = vld [vmem:[#allocation85_spill] sm:$0xff]  ;;  %v11148_v3 = vld [vmem:[#allocation86_spill] sm:$0xff] }
 0x86a   :  { %5828 = vtanh.f32 %v3817_v44 }
 0x86b   :  { %5830 = vpow2.f32 %v5175_v43  ;;  %v5176_v54 = vmul.f32 -1.442695, %v4043_v21  ;;  %v4033_v44 = vadd.f32 %v4032_v58, %v3891_v59  ;;  %v11135_v58 = vld [vmem:[#allocation73_spill] sm:$0xff] }
 0x86c   :  { %v11143_v59 = vld [vmem:[#allocation81_spill] sm:$0xff] }
 0x86d   :  { %5832 = vpow2.f32 %v5176_v54 }
 0x877   :  { %v5829_v4 = vpop.eup %5828 }
 0x878   :  { %v5831_v55 = vpop.eup %5830  ;;  %v3820_v31 = vmul.f32 %v5829_v4, %v3819_v10  ;;  %v11137_v10 = vld [vmem:[#allocation75_spill] sm:$0xff]  ;;  %v11138_v4 = vld [vmem:[#allocation76_spill] sm:$0xff] }
 0x879   :  { %v4040_v8 = vadd.f32 1.0, %v5831_v55 }
 0x87a   :  { %v9188_v48 = vadd.f32 %v3821_v11, %v3820_v31  ;;  %v5833_v30 = vpop.eup %5832  ;;  %v11139_v31 = vld [vmem:[#allocation77_spill] sm:$0xff]  ;;  %v11140_v11 = vld [vmem:[#allocation78_spill] sm:$0xff] }
 0x87b   :  { %5834 = vrcp.f32 %v4040_v8  ;;  %v4047_v43 = vadd.f32 1.0, %v5833_v30  ;;  %v11141_v8 = vld [vmem:[#allocation79_spill] sm:$0xff]  ;;  %v11142_v30 = vld [vmem:[#allocation80_spill] sm:$0xff] }
 0x87c   :  { %4271 = vmatprep.mubr.f32.mxu0 %v9188_v48  ;;  %4342 = vmatprep.mubr.f32.mxu1 %v9188_v48 }
 0x87d   :  { %5836 = vrcp.f32 %v4047_v43  ;;  %v11144_v43 = vld [vmem:[#allocation82_spill] sm:$0xff] }
 0x888   :  { %v5835_v47 = vpop.eup %5834 }
 0x889   :  { %v4050_v14 = vmul.f32 %v5835_v47, %v4033_v44  ;;  %v11145_v44 = vld [vmem:[#allocation83_spill] sm:$0xff]  ;;  %v11146_v47 = vld [vmem:[#allocation84_spill] sm:$0xff] }
 0x88a   :  { %v5837_v55 = vpop.eup %5836 }
 0x88b   :  { %v4051_v52 = vadd.f32 %v4050_v14, %v3829_v49  ;;  %v4053_v18 = vsub.f32 1.0, %v5837_v55  ;;  %v4055_v21 = vmul.f32 %v5837_v55, %v8623_v57  ;;  %v11099_v57 = vld [vmem:[#allocation41_spill] sm:$0xff]  ;;  %v11149_v49 = vld [vmem:[#allocation87_spill] sm:$0xff]  ;;  %v11150_v14 = vld [vmem:[#allocation88_spill] sm:$0xff] }
 0x88c   :  { %v11152_v55 = vld [vmem:[#allocation90_spill] sm:$0xff] }
 0x88d   :  { %5838 = vtanh.f32 %v4051_v52  ;;  %v11151_v52 = vld [vmem:[#allocation89_spill] sm:$0xff] }
 0x89a   :  { %v5839_v25 = vpop.eup %5838 }
 0x89b   :  { %v4054_v60 = vmul.f32 %v5839_v25, %v4053_v18  ;;  %v11153_v18 = vld [vmem:[#allocation91_spill] sm:$0xff]  ;;  %v11154_v25 = vld [vmem:[#allocation92_spill] sm:$0xff] }
 0x89d   :  { %v9196_v54 = vadd.f32 %v4055_v21, %v4054_v60  ;;  %v11155_v60 = vld [vmem:[#allocation93_spill] sm:$0xff]  ;;  %v11156_v21 = vld [vmem:[#allocation94_spill] sm:$0xff] }
 0x89f   :  { %4272 = vmatmul.mubr.f32.vlgmr.msra.gmra.mxu0 %v9196_v54  ;;  %4343 = vmatmul.mubr.f32.vlgmr.msra.gmra.mxu1 %v9196_v54 }
 0x8a0   :  { %4441 = vmatpush1.msra.mxu0 %v8625_v24  ;;  %5616 = vmatpush3.msra.mxu1 %v8627_v39  ;;  %v11100_v24 = vld [vmem:[#allocation43_spill] sm:$0xff]  ;;  %v11101_v39 = vld [vmem:[#allocation36_spill] sm:$0xff] }
 0x8a1   :  { %4442 = vmatprep.subr.mxu0 %v8629_v23  ;;  %5617 = vmatprep.subr.mxu1 %v10238_v63  ;;  %v4379_v23 = vld [vmem:[#allocation9 + $0x20] sm:$0xff] }
 0x8a2   :  { %4443 = vmatpush1.msra.mxu0 %v8633_v34  ;;  %5618 = vmatpush3.msra.mxu1 %v8635_v45  ;;  %v11102_v34 = vld [vmem:[#allocation45_spill] sm:$0xff]  ;;  %v4378_v45 = vld [vmem:[#allocation9 + $0x18] sm:$0xff] }
 0x8a3   :  { %4444 = vmatprep.subr.mxu0 %v8639_v46  ;;  %5619 = vmatprep.subr.mxu1 %v10238_v63  ;;  %v11103_v46 = vld [vmem:[#allocation46_spill] sm:$0xff] }
 0x8a4   :  { %4445 = vmatpush1.msra.mxu0 %v8643_v37  ;;  %5620 = vmatpush3.msra.mxu1 %v8645_v38  ;;  %v11104_v37 = vld [vmem:[#allocation42_spill] sm:$0xff] }
 0x8a5   :  { %4446 = vmatprep.subr.mxu0 %v8649_v26  ;;  %5621 = vmatprep.subr.mxu1 %v10238_v63  ;;  %v11105_v38 = vld [vmem:[#allocation38_spill] sm:$0xff]  ;;  %v11106_v26 = vld [vmem:[#allocation47_spill] sm:$0xff] }
 0x8a6   :  { %4447 = vmatpush1.msra.mxu0 %v8653_v28  ;;  %5622 = vmatpush3.msra.mxu1 %v8655_v6  ;;  %v11107_v28 = vld [vmem:[#allocation49_spill] sm:$0xff]  ;;  %v11108_v6 = vld [vmem:[#allocation19_spill] sm:$0xff] }
 0x8a7   :  { %4448 = vmatprep.subr.mxu0 %v8659_v32  ;;  %5623 = vmatprep.subr.mxu1 %v10238_v63  ;;  %v11109_v32 = vld [vmem:[#allocation20_spill] sm:$0xff] }
 0x8a8   :  { %4449 = vmatpush1.msra.mxu0 %v8663_v33  ;;  %5624 = vmatpush3.msra.mxu1 %v8665_v61  ;;  %v11110_v33 = vld [vmem:[#allocation51_spill] sm:$0xff]  ;;  %v11111_v61 = vld [vmem:[#allocation21_spill] sm:$0xff] }
 0x8a9   :  { %4450 = vmatprep.subr.mxu0 %v8669_v51  ;;  %5625 = vmatprep.subr.mxu1 %v10238_v63  ;;  %v11112_v51 = vld [vmem:[#allocation52_spill] sm:$0xff] }
 0x8aa   :  { %4451 = vmatpush1.msra.mxu0 %v8673_v2  ;;  %5626 = vmatpush3.msra.mxu1 %v8675_v19  ;;  %v11113_v2 = vld [vmem:[#allocation22_spill] sm:$0xff] }
 0x8ab   :  { %4452 = vmatprep.subr.mxu0 %v8679_v22  ;;  %5627 = vmatprep.subr.mxu1 %v10238_v63  ;;  %v11114_v19 = vld [vmem:[#allocation54_spill] sm:$0xff]  ;;  %v11115_v22 = vld [vmem:[#allocation23_spill] sm:$0xff] }
 0x8ac   :  { %4453 = vmatpush1.msra.mxu0 %v8683_v36  ;;  %5628 = vmatpush3.msra.mxu1 %v8685_v40  ;;  %v11116_v36 = vld [vmem:[#allocation55_spill] sm:$0xff]  ;;  %v11118_v40 = vld [vmem:[#allocation57_spill] sm:$0xff] }
 0x8ad   :  { %4454 = vmatprep.subr.mxu0 %v8689_v29  ;;  %5629 = vmatprep.subr.mxu1 %v10238_v63  ;;  %v11119_v29 = vld [vmem:[#allocation25_spill] sm:$0xff] }
 0x8ae   :  { %4455 = vmatpush1.msra.mxu0 %v8693_v17  ;;  %5630 = vmatpush3.msra.mxu1 %v8695_v35  ;;  %v11120_v17 = vld [vmem:[#allocation58_spill] sm:$0xff] }
 0x8af   :  { %4456 = vmatprep.subr.mxu0 %v8699_v41  ;;  %5631 = vmatprep.subr.mxu1 %v10238_v63  ;;  %v11121_v35 = vld [vmem:[#allocation26_spill] sm:$0xff]  ;;  %v11122_v41 = vld [vmem:[#allocation60_spill] sm:$0xff] }
 0x8b0   :  { %4457 = vmatpush1.msra.mxu0 %v8703_v13  ;;  %5632 = vmatpush3.msra.mxu1 %v8705_v15  ;;  %v11123_v13 = vld [vmem:[#allocation61_spill] sm:$0xff]  ;;  %v11124_v15 = vld [vmem:[#allocation62_spill] sm:$0xff] }
 0x8b1   :  { %4458 = vmatprep.subr.mxu0 %v8709_v62  ;;  %5633 = vmatprep.subr.mxu1 %v10238_v63  ;;  %v11125_v62 = vld [vmem:[#allocation63_spill] sm:$0xff] }
 0x8b2   :  { %4459 = vmatpush1.msra.mxu0 %v8713_v53  ;;  %5634 = vmatpush3.msra.mxu1 %v8715_v0  ;;  %v11126_v53 = vld [vmem:[#allocation64_spill] sm:$0xff]  ;;  %v11127_v0 = vld [vmem:[#allocation65_spill] sm:$0xff] }
 0x8b3   :  { %4460 = vmatprep.subr.mxu0 %v8719_v16  ;;  %5635 = vmatprep.subr.mxu1 %v10238_v63  ;;  %v11128_v16 = vld [vmem:[#allocation66_spill] sm:$0xff] }
 0x8b4   :  { %4461 = vmatpush1.msra.mxu0 %v8723_v20  ;;  %5636 = vmatpush3.msra.mxu1 %v8725_v27  ;;  %v11129_v20 = vld [vmem:[#allocation67_spill] sm:$0xff]  ;;  %v11130_v27 = vld [vmem:[#allocation68_spill] sm:$0xff] }
 0x8b5   :  { %4462 = vmatprep.subr.mxu0 %v8729_v56  ;;  %5637 = vmatprep.subr.mxu1 %v10238_v63  ;;  %v11131_v56 = vld [vmem:[#allocation69_spill] sm:$0xff] }
 0x8b6   :  { %4463 = vmatpush1.msra.mxu0 %v8733_v7  ;;  %5638 = vmatpush3.msra.mxu1 %v8735_v42  ;;  %v11132_v7 = vld [vmem:[#allocation70_spill] sm:$0xff]  ;;  %v11133_v42 = vld [vmem:[#allocation71_spill] sm:$0xff] }
 0x8b7   :  { %4464 = vmatprep.subr.mxu0 %v11099_v57  ;;  %5639 = vmatprep.subr.mxu1 %v10238_v63  ;;  %v11157_v57 = vld [vmem:[#allocation95_spill] sm:$0xff] }
 0x8b8   :  { %4465 = vmatpush1.msra.mxu0 %v11100_v24  ;;  %5640 = vmatpush3.msra.mxu1 %v11101_v39  ;;  %v11158_v24 = vld [vmem:[#allocation96_spill] sm:$0xff]  ;;  %v11159_v39 = vld [vmem:[#allocation97_spill] sm:$0xff] }
 0x8b9   :  { %4466 = vmatprep.subr.mxu0 %v11102_v34  ;;  %5641 = vmatprep.subr.mxu1 %v10238_v63  ;;  %v11161_v34 = vld [vmem:[#allocation99_spill] sm:$0xff] }
 0x8ba   :  { %4467 = vmatpush1.msra.mxu0 %v11103_v46  ;;  %5642 = vmatpush3.msra.mxu1 %v11104_v37  ;;  %v11163_v46 = vld [vmem:[#allocation101_spill] sm:$0xff]  ;;  %v11164_v37 = vld [vmem:[#allocation102_spill] sm:$0xff] }
 0x8bb   :  { %4468 = vmatprep.subr.mxu0 %v4379_v23  ;;  %5643 = vmatprep.subr.mxu1 %v10238_v63  ;;  %v11160_v23 = vld [vmem:[#allocation98_spill] sm:$0xff] }
 0x8bc   :  { %4469 = vmatpush1.msra.mxu0 %v4378_v45  ;;  %5644 = vmatpush3.msra.mxu1 %v11105_v38  ;;  %v11162_v45 = vld [vmem:[#allocation100_spill] sm:$0xff]  ;;  %v11165_v38 = vld [vmem:[#allocation103_spill] sm:$0xff] }
 0x8bd   :  { %4470 = vmatprep.subr.mxu0 %v11106_v26  ;;  %5645 = vmatprep.subr.mxu1 %v10238_v63  ;;  %v11166_v26 = vld [vmem:[#allocation104_spill] sm:$0xff] }
 0x8be   :  { %4471 = vmatpush1.msra.mxu0 %v11107_v28  ;;  %4504 = vmatprep.mubr.f32.mxu0 %v10238_v63  ;;  %v11167_v28 = vld [vmem:[#allocation105_spill] sm:$0xff] }
 0x8bf   :  { %5646 = vmatpush3.msra.mxu1 %v11108_v6  ;;  %5647 = vmatprep.mubr.msk.f32.mxu1 %vm5987_vm1, %v10238_v63  ;;  %v11117_v63 = vld [vmem:[#allocation24_spill] sm:$0xff]  ;;  %v11168_v6 = vld [vmem:[#allocation106_spill] sm:$0xff] }
 0x8c0   :  { %4505 = vmatmul.mubr.f32.vlgmr.msra.gmra.mxu0 %v9196_v54  ;;  %5648 = vmatmul.mubr.f32.vlgmr.msra.gmra.mxu1 %v9196_v54 }
 0x8c1   :  { %4752 = vmatprep.subr.mxu0 %v11109_v32  ;;  %4823 = vmatprep.subr.mxu1 %v11110_v33  ;;  %v11169_v32 = vld [vmem:[#allocation107_spill] sm:$0xff]  ;;  %v11170_v33 = vld [vmem:[#allocation108_spill] sm:$0xff] }
 0x8c2   :  { %4753 = vmatpush1.msra.mxu0 %v11111_v61  ;;  %4824 = vmatpush1.msra.mxu1 %v11112_v51  ;;  %v11171_v61 = vld [vmem:[#allocation109_spill] sm:$0xff]  ;;  %v11172_v51 = vld [vmem:[#allocation110_spill] sm:$0xff] }
 0x8c3   :  { %4754 = vmatprep.subr.mxu0 %v11113_v2  ;;  %4825 = vmatprep.subr.mxu1 %v11114_v19  ;;  %v11173_v2 = vld [vmem:[#allocation111_spill] sm:$0xff]  ;;  %v11174_v19 = vld [vmem:[#allocation112_spill] sm:$0xff] }
 0x8c4   :  { %4755 = vmatpush1.msra.mxu0 %v11115_v22  ;;  %4826 = vmatpush1.msra.mxu1 %v11116_v36  ;;  %v11175_v22 = vld [vmem:[#allocation113_spill] sm:$0xff]  ;;  %v11176_v36 = vld [vmem:[#allocation114_spill] sm:$0xff] }
 0x8c5   :  { %4756 = vmatprep.subr.mxu0 %v11117_v63  ;;  %4827 = vmatprep.subr.mxu1 %v11118_v40  ;;  %v11177_v63 = vld [vmem:[#allocation115_spill] sm:$0xff]  ;;  %v11178_v40 = vld [vmem:[#allocation116_spill] sm:$0xff] }
 0x8c6   :  { %4757 = vmatpush1.msra.mxu0 %v11119_v29  ;;  %4828 = vmatpush1.msra.mxu1 %v11120_v17  ;;  %v11179_v29 = vld [vmem:[#allocation117_spill] sm:$0xff]  ;;  %v11180_v17 = vld [vmem:[#allocation118_spill] sm:$0xff] }
 0x8c7   :  { %4758 = vmatprep.subr.mxu0 %v11121_v35  ;;  %4829 = vmatprep.subr.mxu1 %v11122_v41  ;;  %v11181_v35 = vld [vmem:[#allocation119_spill] sm:$0xff]  ;;  %v11182_v41 = vld [vmem:[#allocation120_spill] sm:$0xff] }
 0x8c8   :  { %4759 = vmatpush1.msra.mxu0 %v11123_v13  ;;  %4830 = vmatpush1.msra.mxu1 %v11124_v15  ;;  %v11183_v13 = vld [vmem:[#allocation121_spill] sm:$0xff]  ;;  %v11184_v15 = vld [vmem:[#allocation122_spill] sm:$0xff] }
 0x8c9   :  { %4760 = vmatprep.subr.mxu0 %v11125_v62  ;;  %4831 = vmatprep.subr.mxu1 %v11126_v53  ;;  %v11185_v62 = vld [vmem:[#allocation123_spill] sm:$0xff]  ;;  %v11186_v53 = vld [vmem:[#allocation124_spill] sm:$0xff] }
 0x8ca   :  { %4761 = vmatpush1.msra.mxu0 %v11127_v0  ;;  %4832 = vmatpush1.msra.mxu1 %v11128_v16  ;;  %v11187_v0 = vld [vmem:[#allocation125_spill] sm:$0xff]  ;;  %v11188_v16 = vld [vmem:[#allocation126_spill] sm:$0xff] }
 0x8cb   :  { %4762 = vmatprep.subr.mxu0 %v11129_v20  ;;  %4833 = vmatprep.subr.mxu1 %v11130_v27  ;;  %v11189_v20 = vld [vmem:[#allocation127_spill] sm:$0xff]  ;;  %v11190_v27 = vld [vmem:[#allocation128_spill] sm:$0xff] }
 0x8cc   :  { %4763 = vmatpush1.msra.mxu0 %v11131_v56  ;;  %4834 = vmatpush1.msra.mxu1 %v11132_v7  ;;  %v11191_v56 = vld [vmem:[#allocation129_spill] sm:$0xff]  ;;  %v11192_v7 = vld [vmem:[#allocation130_spill] sm:$0xff] }
 0x8cd   :  { %4764 = vmatprep.subr.mxu0 %v11133_v42  ;;  %4835 = vmatprep.subr.mxu1 %v11134_v5  ;;  %v11193_v42 = vld [vmem:[#allocation131_spill] sm:$0xff]  ;;  %v11194_v5 = vld [vmem:[#allocation132_spill] sm:$0xff] }
 0x8ce   :  { %4765 = vmatpush1.msra.mxu0 %v11135_v58  ;;  %4836 = vmatpush1.msra.mxu1 %v11136_v1  ;;  %v11195_v58 = vld [vmem:[#allocation133_spill] sm:$0xff]  ;;  %v11196_v1 = vld [vmem:[#allocation134_spill] sm:$0xff] }
 0x8cf   :  { %4766 = vmatprep.subr.mxu0 %v11137_v10  ;;  %4837 = vmatprep.subr.mxu1 %v11138_v4  ;;  %v11197_v10 = vld [vmem:[#allocation135_spill] sm:$0xff]  ;;  %v11198_v4 = vld [vmem:[#allocation136_spill] sm:$0xff] }
 0x8d0   :  { %4767 = vmatpush1.msra.mxu0 %v11139_v31  ;;  %4838 = vmatpush1.msra.mxu1 %v11140_v11  ;;  %v11199_v31 = vld [vmem:[#allocation137_spill] sm:$0xff]  ;;  %v11200_v11 = vld [vmem:[#allocation138_spill] sm:$0xff] }
 0x8d1   :  { %4768 = vmatprep.subr.mxu0 %v11141_v8  ;;  %4839 = vmatprep.subr.mxu1 %v11142_v30  ;;  %v11201_v8 = vld [vmem:[#allocation139_spill] sm:$0xff]  ;;  %v11202_v30 = vld [vmem:[#allocation140_spill] sm:$0xff] }
 0x8d2   :  { %4769 = vmatpush1.msra.mxu0 %v11143_v59  ;;  %4840 = vmatpush1.msra.mxu1 %v11144_v43  ;;  %v11203_v59 = vld [vmem:[#allocation141_spill] sm:$0xff]  ;;  %v11204_v43 = vld [vmem:[#allocation142_spill] sm:$0xff] }
 0x8d3   :  { %4770 = vmatprep.subr.mxu0 %v11145_v44  ;;  %4841 = vmatprep.subr.mxu1 %v11146_v47  ;;  %v11205_v44 = vld [vmem:[#allocation143_spill] sm:$0xff]  ;;  %v11206_v47 = vld [vmem:[#allocation144_spill] sm:$0xff] }
 0x8d4   :  { %4771 = vmatpush1.msra.mxu0 %v11147_v12  ;;  %4842 = vmatpush1.msra.mxu1 %v11148_v3  ;;  %v11207_v12 = vld [vmem:[#allocation145_spill] sm:$0xff]  ;;  %v11208_v3 = vld [vmem:[#allocation146_spill] sm:$0xff] }
 0x8d5   :  { %4772 = vmatprep.subr.mxu0 %v11149_v49  ;;  %4843 = vmatprep.subr.mxu1 %v11150_v14  ;;  %v11209_v49 = vld [vmem:[#allocation147_spill] sm:$0xff]  ;;  %v11210_v14 = vld [vmem:[#allocation148_spill] sm:$0xff] }
 0x8d6   :  { %4773 = vmatpush1.msra.mxu0 %v11151_v52  ;;  %4844 = vmatpush1.msra.mxu1 %v11152_v55  ;;  %v11211_v52 = vld [vmem:[#allocation149_spill] sm:$0xff]  ;;  %v11212_v55 = vld [vmem:[#allocation150_spill] sm:$0xff] }
 0x8d7   :  { %4774 = vmatprep.subr.mxu0 %v11153_v18  ;;  %4845 = vmatprep.subr.mxu1 %v11154_v25  ;;  %v11213_v18 = vld [vmem:[#allocation151_spill] sm:$0xff]  ;;  %v11214_v25 = vld [vmem:[#allocation152_spill] sm:$0xff] }
 0x8d8   :  { %4775 = vmatpush1.msra.mxu0 %v11155_v60  ;;  %4846 = vmatpush1.msra.mxu1 %v11156_v21  ;;  %v11215_v60 = vld [vmem:[#allocation153_spill] sm:$0xff]  ;;  %v11216_v21 = vld [vmem:[#allocation154_spill] sm:$0xff] }
 0x8d9   :  { %4776 = vmatprep.subr.mxu0 %v11157_v57  ;;  %4847 = vmatprep.subr.mxu1 %v11158_v24  ;;  %v11217_v57 = vld [vmem:[#allocation155_spill] sm:$0xff]  ;;  %v11218_v24 = vld [vmem:[#allocation156_spill] sm:$0xff] }
 0x8da   :  { %4777 = vmatpush1.msra.mxu0 %v11159_v39  ;;  %4848 = vmatpush1.msra.mxu1 %v11160_v23  ;;  %v11219_v39 = vld [vmem:[#allocation157_spill] sm:$0xff]  ;;  %v11220_v23 = vld [vmem:[#allocation158_spill] sm:$0xff] }
 0x8db   :  { %4778 = vmatprep.subr.mxu0 %v11161_v34  ;;  %4849 = vmatprep.subr.mxu1 %v11162_v45  ;;  %v11221_v34 = vld [vmem:[#allocation159_spill] sm:$0xff]  ;;  %v11222_v45 = vld [vmem:[#allocation160_spill] sm:$0xff] }
 0x8dc   :  { %4779 = vmatpush1.msra.mxu0 %v11163_v46  ;;  %4850 = vmatpush1.msra.mxu1 %v11164_v37  ;;  %v11223_v46 = vld [vmem:[#allocation161_spill] sm:$0xff]  ;;  %v11224_v37 = vld [vmem:[#allocation162_spill] sm:$0xff] }
 0x8dd   :  { %4780 = vmatprep.subr.mxu0 %v11165_v38  ;;  %4851 = vmatprep.subr.mxu1 %v11166_v26  ;;  %v11225_v38 = vld [vmem:[#allocation163_spill] sm:$0xff]  ;;  %v11226_v26 = vld [vmem:[#allocation164_spill] sm:$0xff] }
 0x8de   :  { %4781 = vmatpush1.msra.mxu0 %v11167_v28  ;;  %4852 = vmatpush1.msra.mxu1 %v11168_v6  ;;  %v11227_v28 = vld [vmem:[#allocation165_spill] sm:$0xff]  ;;  %v11228_v6 = vld [vmem:[#allocation166_spill] sm:$0xff] }
 0x8df   :  { %4782 = vmatprep.subr.mxu0 %v11169_v32  ;;  %4853 = vmatprep.subr.mxu1 %v11170_v33  ;;  %v11229_v32 = vld [vmem:[#allocation167_spill] sm:$0xff]  ;;  %v11230_v33 = vld [vmem:[#allocation168_spill] sm:$0xff] }
 0x8e0   :  { %4783 = vmatpush1.msra.mxu0 %v11171_v61  ;;  %4854 = vmatpush1.msra.mxu1 %v11172_v51  ;;  %v11231_v61 = vld [vmem:[#allocation169_spill] sm:$0xff]  ;;  %v11232_v51 = vld [vmem:[#allocation170_spill] sm:$0xff] }
 0x8e1   :  { %4784 = vmatprep.subr.mxu0 %v11173_v2  ;;  %4855 = vmatprep.subr.mxu1 %v11174_v19  ;;  %v11233_v2 = vld [vmem:[#allocation171_spill] sm:$0xff]  ;;  %v11234_v19 = vld [vmem:[#allocation172_spill] sm:$0xff] }
 0x8e2   :  { %4785 = vmatpush2.msra.mxu0 %v11175_v22  ;;  %4856 = vmatpush2.msra.mxu1 %v11176_v36  ;;  %v11235_v22 = vld [vmem:[#allocation173_spill] sm:$0xff]  ;;  %v11236_v36 = vld [vmem:[#allocation174_spill] sm:$0xff] }
 0x8e3   :  { %4786 = vmatprep.subr.mxu0 %v11177_v63  ;;  %4857 = vmatprep.subr.mxu1 %v11178_v40  ;;  %v9396_v63 = vld [vmem:[%s9502_s10 + $0x78] sm:$0xff]  ;;  %v4185_v40 = vld [vmem:[%s9501_s9] sm:$0xf] }
 0x8e4   :  { %4787 = vmatpush2.msra.mxu0 %v11179_v29  ;;  %4858 = vmatpush2.msra.mxu1 %v11180_v17  ;;  %v11237_v29 = vld [vmem:[#allocation27_spill] sm:$0xff] }
 0x8e5   :  { %4788 = vmatprep.subr.mxu0 %v11181_v35  ;;  %4859 = vmatprep.subr.mxu1 %v11182_v41  ;;  %v4190_v17 = vrot.slane %v4185_v40, %v11237_v29 }
 0x8e6   :  { %4789 = vmatpush2.msra.mxu0 %v11183_v13  ;;  %4860 = vmatpush2.msra.mxu1 %v11184_v15  ;;  %v11238_v15 = vld [vmem:[#allocation29_spill] sm:$0xff] }
 0x8e7   :  { %4790 = vmatprep.subr.mxu0 %v11185_v62  ;;  %4861 = vmatprep.subr.mxu1 %v11186_v53  ;;  %v4194_v62 = vrot.slane %v4185_v40, %v11238_v15 }
 0x8e8   :  { %4791 = vmatpush2.msra.mxu0 %v11187_v0  ;;  %4862 = vmatpush2.msra.mxu1 %v11188_v16  ;;  %v4929_v0 = vld [vmem:[%s9492_s0 + $0x38] sm:$0xff] }
 0x8e9   :  { %4792 = vmatprep.subr.mxu0 %v11189_v20  ;;  %4863 = vmatprep.subr.mxu1 %v11190_v27 }
 0x8ea   :  { %4793 = vmatpush2.msra.mxu0 %v11191_v56  ;;  %4864 = vmatpush2.msra.mxu1 %v11192_v7 }
 0x8eb   :  { %4794 = vmatprep.subr.mxu0 %v11193_v42  ;;  %4865 = vmatprep.subr.mxu1 %v11194_v5  ;;  %v4423_v42 = vld [vmem:[%s9499_s7] sm:$0x7] }
 0x8ec   :  { %4795 = vmatpush2.msra.mxu0 %v11195_v58  ;;  %4866 = vmatpush2.msra.mxu1 %v11196_v1  ;;  %v11239_v58 = vld [vmem:[#allocation28_spill] sm:$0xff] }
 0x8ed   :  { %4796 = vmatprep.subr.mxu0 %v11197_v10  ;;  %4867 = vmatprep.subr.mxu1 %v11198_v4  ;;  %v4202_v1 = vrot.slane %v4185_v40, %v11239_v58  ;;  %v4428_v4 = vrot.slane %v4423_v42, %v11237_v29 }
 0x8ee   :  { %4797 = vmatpush2.msra.mxu0 %v11199_v31  ;;  %4868 = vmatpush2.msra.mxu1 %v11200_v11  ;;  %v4198_v31 = vrot.slane %v4185_v40, %v6254_v9 }
 0x8ef   :  { %4798 = vmatprep.subr.mxu0 %v11201_v8  ;;  %4869 = vmatprep.subr.mxu1 %v11202_v30 }
 0x8f0   :  { %4799 = vmatpush2.msra.mxu0 %v11203_v59  ;;  %4870 = vmatpush2.msra.mxu1 %v11204_v43 }
 0x8f1   :  { %4800 = vmatprep.subr.mxu0 %v11205_v44  ;;  %4871 = vmatprep.subr.mxu1 %v11206_v47  ;;  %v4432_v47 = vrot.slane %v4423_v42, %v11238_v15 }
 0x8f2   :  { %4801 = vmatpush2.msra.mxu0 %v11207_v12  ;;  %4872 = vmatpush2.msra.mxu1 %v11208_v3 }
 0x8f3   :  { %4802 = vmatprep.subr.mxu0 %v11209_v49  ;;  %4873 = vmatprep.subr.mxu1 %v11210_v14 }
 0x8f4   :  { %4803 = vmatpush2.msra.mxu0 %v11211_v52  ;;  %4874 = vmatpush2.msra.mxu1 %v11212_v55  ;;  %v11240_v52 = vld [vmem:[#allocation59_spill] sm:$0xff] }
 0x8f5   :  { %4804 = vmatprep.subr.mxu0 %v11213_v18  ;;  %4875 = vmatprep.subr.mxu1 %v11214_v25 }
 0x8f6   :  { %4805 = vmatpush2.msra.mxu0 %v11215_v60  ;;  %4876 = vmatpush2.msra.mxu1 %v11216_v21  ;;  %v11241_v21 = vld [vmem:[#allocation32_spill] sm:$0xff] }
 0x8f7   :  { %4806 = vmatprep.subr.mxu0 %v11217_v57  ;;  %4877 = vmatprep.subr.mxu1 %v11218_v24  ;;  %v11242_v57 = vld [vmem:[#allocation17_spill] sm:$0xff] }
 0x8f8   :  { %4807 = vmatpush2.msra.mxu0 %v11219_v39  ;;  %4878 = vmatpush2.msra.mxu1 %v11220_v23  ;;  %v4373_v24 = vadd.f32 %v11242_v57, %v11241_v21 }
 0x8f9   :  { %4808 = vmatprep.subr.mxu0 %v11221_v34  ;;  %4879 = vmatprep.subr.mxu1 %v11222_v45 }
 0x8fa   :  { %4809 = vmatpush2.msra.mxu0 %v11223_v46  ;;  %4880 = vmatpush2.msra.mxu1 %v11224_v37 }
 0x8fb   :  { %4810 = vmatprep.subr.mxu0 %v11225_v38  ;;  %4881 = vmatprep.subr.mxu1 %v11226_v26 }
 0x8fc   :  { %4811 = vmatpush2.msra.mxu0 %v11227_v28  ;;  %4882 = vmatpush2.msra.mxu1 %v11228_v6 }
 0x8fd   :  { %4812 = vmatprep.subr.mxu0 %v11229_v32  ;;  %4883 = vmatprep.subr.mxu1 %v11230_v33  ;;  %v4436_v33 = vrot.slane %v4423_v42, %v6254_v9  ;;  %v4986_v42 = vld [vmem:[%s9502_s10 + $0x40] sm:$0xff] }
 0x8fe   :  { %4813 = vmatpush2.msra.mxu0 %v11231_v61  ;;  %4884 = vmatpush2.msra.mxu1 %v11232_v51 }
 0x8ff   :  { %4814 = vmatprep.subr.mxu0 %v11233_v2  ;;  %4885 = vmatprep.subr.mxu1 %v11234_v19 }
 0x900   :  { %4815 = vmatpush2.msra.mxu0 %v11235_v22  ;;  %4886 = vmatpush2.msra.mxu1 %v11236_v36  ;;  %v11243_v22 = vld [vmem:[#allocation44_spill] sm:$0xff] }
 0x901   :  { %5650 = vmatprep.subr.mxu0 %v9396_v63  ;;  %4967 = vperm.xlu1 %5709, %v4929_v0   ;;  %v11244_v0 = vld [vmem:[#allocation18_spill] sm:$0xff] }
 0x95f   :  { %v4273_v35 = vpop.f32.mrf.mxu0  ;;  %v4344_v7 = vpop.f32.mrf.mxu1 }
 0x960   :  { %v4274_v41 = vadd.f32 %v4273_v35, %v4190_v17  ;;  %v4345_v12 = vadd.f32 %v4344_v7, %v4198_v31  ;;  %v4987_v7 = vld [vmem:[%s9502_s10 + $0x48] sm:$0xff]  ;;  %v4981_v31 = vld [vmem:[%s9502_s10 + $0x18] sm:$0xff] }
 0x961   :  { %v4275_v53 = vpop.f32.mrf.mxu0  ;;  %v4346_v10 = vpop.f32.mrf.mxu1 }
 0x962   :  { %v5177_v13 = vmul.f32 -1.442695, %v4274_v41  ;;  %v4276_v16 = vadd.f32 %v4275_v53, %v4194_v62  ;;  %v4347_v8 = vadd.f32 %v4346_v10, %v4202_v1  ;;  %v4933_v41 = vpop.permute.xlu0 %4932  ;;  %v4984_v1 = vld [vmem:[%s9502_s10 + $0x30] sm:$0xff]  ;;  %v4983_v10 = vld [vmem:[%s9502_s10 + $0x28] sm:$0xff] }
 0x964   :  { %5840 = vpow2.f32 %v5177_v13  ;;  %v5178_v20 = vmul.f32 -1.442695, %v4276_v16  ;;  %v4970_v16 = vmul.f32 %v4933_v41, %v11244_v0 }
 0x966   :  { %5842 = vpow2.f32 %v5178_v20  ;;  %v4992_v20 = vld [vmem:[%s9502_s10 + $0x70] sm:$0xff] }
 0x971   :  { %v5841_v27 = vpop.eup %5840 }
 0x972   :  { %v4352_v56 = vadd.f32 1.0, %v5841_v27  ;;  %v4991_v27 = vld [vmem:[%s9502_s10 + $0x68] sm:$0xff] }
 0x973   :  { %v5843_v5 = vpop.eup %5842 }
 0x974   :  { %5844 = vrcp.f32 %v4352_v56  ;;  %v4358_v11 = vadd.f32 1.0, %v5843_v5  ;;  %v4989_v56 = vld [vmem:[%s9502_s10 + $0x58] sm:$0xff] }
 0x975   :  { %v4985_v5 = vld [vmem:[%s9502_s10 + $0x38] sm:$0xff] }
 0x976   :  { %5846 = vrcp.f32 %v4358_v11  ;;  %v4980_v11 = vld [vmem:[%s9502_s10 + $0x10] sm:$0xff] }
 0x980   :  { %v4506_v30 = vpop.f32.mrf.mxu0  ;;  %v4577_v59 = vpop.f32.mrf.mxu1 }
 0x981   :  { %v5845_v43 = vpop.eup %5844  ;;  %v4507_v44 = vadd.f32 %v4506_v30, %v4428_v4  ;;  %v4578_v51 = vadd.f32 %v4577_v59, %v4436_v33  ;;  %v4982_v4 = vld [vmem:[%s9502_s10 + $0x20] sm:$0xff]  ;;  %v4938_v30 = vpop.permute.xlu0 %4937 }
 0x982   :  { %v4361_v3 = vmul.f32 %v5845_v43, %v4347_v8  ;;  %v4508_v49 = vpop.f32.mrf.mxu0  ;;  %v5649_v14 = vpop.f32.mrf.mxu1  ;;  %v4979_v8 = vld [vmem:[%s9502_s10 + $0x8] sm:$0xff]  ;;  %v4978_v43 = vld [vmem:[%s9502_s10] sm:$0xff] }
 0x983   :  { %v4581_v55 = vadd.f32 %v4507_v44, %v11240_v52  ;;  %v4509_v60 = vadd.f32 %v4508_v49, %v4432_v47  ;;  %v5847_v34 = vpop.eup %5846  ;;  %v4943_v59 = vpop.permute.xlu1 %4942  ;;  %v11245_v44 = vld [vmem:[#allocation37_spill] sm:$0xff]  ;;  %v11247_v52 = vld [vmem:[#allocation178_spill] sm:$0xff] }
 0x984   :  { %v4362_v18 = vadd.f32 %v4361_v3, %v4345_v12  ;;  %v4364_v45 = vsub.f32 1.0, %v5847_v34  ;;  %v4366_v26 = vmul.f32 %v5847_v34, %v9188_v48  ;;  %v4971_v47 = vmul.f32 %v4938_v30, %v11245_v44  ;;  %v11246_v12 = vld [vmem:[#allocation39_spill] sm:$0xff] }
 0x985   :  { %v5179_v25 = vmul.f32 -1.442695, %v4581_v55  ;;  %v4588_v39 = vadd.f32 %v4509_v60, %v4373_v24  ;;  %v4972_v3 = vmul.f32 %v4943_v59, %v11246_v12  ;;  %v4953_v14 = vpop.permute.xlu0 %4952  ;;  %v4730_v24 = vld [vmem:[%s9501_s9] sm:$0xf] }
 0x986   :  { %5848 = vtanh.f32 %v4362_v18  ;;  %v4974_v18 = vmul.f32 %v4953_v14, %v8616_v50  ;;  %v4739_v50 = vrot.slane %v4730_v24, %v11238_v15  ;;  %v4747_v33 = vrot.slane %v4730_v24, %v11239_v58 }
 0x987   :  { %5850 = vpow2.f32 %v5179_v25  ;;  %v5180_v23 = vmul.f32 -1.442695, %v4588_v39  ;;  %v4948_v49 = vpop.permute.xlu1 %4947  ;;  %v4735_v39 = vrot.slane %v4730_v24, %v11237_v29  ;;  %v5183_v29 = vld [vmem:[%s9503_s11] ss:$0 sm:$0xff]  ;;  %s5989_s11 = smov [#allocation12]  }
 0x988   :  { %v4973_v55 = vmul.f32 %v4948_v49, %v11247_v52  ;;  %s5119_s22 = sshll.u32 %s5989_s11, 4  ;;  %s5120_s22 = int_to_ptr.vmem [resolvable:$true] %s5119_s22 }
 0x989   :  { %5852 = vpow2.f32 %v5180_v23  ;;  %v4963_v60 = vpop.permute.xlu0 %4962  ;;  %s5950_s3 = scalar_lea.vmem %s5120_s22, 1024  ;;  %p5955_p7 = scmp.lt.s32.totalorder %s5120_s22, %s5120_s22 }
 0x98a   :  { %p5951_p6 = scmp.ne.s32.totalorder %s5120_s22, %s5950_s3  ;;  %p5956_p8 = scmp.lt.s32.totalorder %s5950_s3, %s5950_s3 }
 0x98b   :  { %v4958_v25 = vpop.permute.xlu1 %4957 }
 0x98c   :  { %v4975_v21 = vmul.f32 %v4958_v25, %v9188_v48  ;;  %p5957_p9 = por %p5956_p8, %p5955_p7 }
 0x98e   :  { %p5958_p10 = pnand %p5957_p9, %p5951_p6 }
 0x993   :  { %v5849_v46 = vpop.eup %5848 }
 0x994   :  { %v5851_v37 = vpop.eup %5850  ;;  %v4365_v38 = vmul.f32 %v5849_v46, %v4364_v45 }
 0x995   :  { %v4585_v28 = vadd.f32 1.0, %v5851_v37 }
 0x996   :  { %v9418_v6 = vadd.f32 %v4366_v26, %v4365_v38  ;;  %v5853_v32 = vpop.eup %5852 }
 0x997   :  { %5854 = vrcp.f32 %v4585_v28  ;;  %v4592_v61 = vadd.f32 1.0, %v5853_v32 }
 0x998   :  { %4816 = vmatprep.mubr.f32.mxu0 %v9418_v6  ;;  %4887 = vmatprep.mubr.f32.mxu1 %v9418_v6  ;;  %v4976_v57 = vmul.f32 %v4963_v60, %v9418_v6 }
 0x999   :  { %5856 = vrcp.f32 %v4592_v61 }
 0x9a4   :  { %v5855_v2 = vpop.eup %5854 }
 0x9a5   :  { %v4595_v19 = vmul.f32 %v5855_v2, %v4578_v51  ;;  %v4743_v51 = vrot.slane %v4730_v24, %v6254_v9 }
 0x9a6   :  { %v5857_v40 = vpop.eup %5856 }
 0x9a7   :  { %v4596_v36 = vadd.f32 %v4595_v19, %v11243_v22  ;;  %v4598_v17 = vsub.f32 1.0, %v5857_v40  ;;  %v4600_v62 = vmul.f32 %v5857_v40, %v9196_v54  ;;  %v4990_v54 = vld [vmem:[%s9502_s10 + $0x60] sm:$0xff] }
 0x9a9   :  { %5858 = vtanh.f32 %v4596_v36 }
 0x9b6   :  { %v5859_v35 = vpop.eup %5858 }
 0x9b7   :  { %v4599_v13 = vmul.f32 %v5859_v35, %v4598_v17 }
 0x9b9   :  { %v4601_v53 = vadd.f32 %v4600_v62, %v4599_v13 }
 0x9bb   :  { %4817 = vmatmul.mubr.f32.vlgmr.msra.gmra.mxu0 %v4601_v53  ;;  %4888 = vmatmul.mubr.f32.vlgmr.msra.gmra.mxu1 %v4601_v53 }
 0x9bc   :  { %5651 = vmatpush3.msra.mxu0 %v9396_v63  ;;  %5682 = vmatprep.mubr.f32.mxu0 %v4970_v16  ;;  %v4988_v63 = vld [vmem:[%s9502_s10 + $0x50] sm:$0xff] }
 0x9bd   :  { %5652 = vmatprep.subr.mxu0 %v4992_v20 }
 0x9be   :  { %5653 = vmatpush3.msra.mxu0 %v4992_v20 }
 0x9bf   :  { %5654 = vmatprep.subr.mxu0 %v4991_v27 }
 0x9c0   :  { %5655 = vmatpush3.msra.mxu0 %v4991_v27 }
 0x9c1   :  { %5656 = vmatprep.subr.mxu0 %v4990_v54 }
 0x9c2   :  { %5657 = vmatpush3.msra.mxu0 %v4990_v54 }
 0x9c3   :  { %5658 = vmatprep.subr.mxu0 %v4989_v56 }
 0x9c4   :  { %5659 = vmatpush3.msra.mxu0 %v4989_v56 }
 0x9c5   :  { %5660 = vmatprep.subr.mxu0 %v4988_v63 }
 0x9c6   :  { %5661 = vmatpush3.msra.mxu0 %v4988_v63 }
 0x9c7   :  { %5662 = vmatprep.subr.mxu0 %v4987_v7 }
 0x9c8   :  { %5663 = vmatpush3.msra.mxu0 %v4987_v7 }
 0x9c9   :  { %5664 = vmatprep.subr.mxu0 %v4986_v42 }
 0x9ca   :  { %5665 = vmatpush3.msra.mxu0 %v4986_v42 }
 0x9cb   :  { %5666 = vmatprep.subr.mxu0 %v4985_v5 }
 0x9cc   :  { %5667 = vmatpush3.msra.mxu0 %v4985_v5 }
 0x9cd   :  { %5668 = vmatprep.subr.mxu0 %v4984_v1 }
 0x9ce   :  { %5669 = vmatpush3.msra.mxu0 %v4984_v1  ;;  %v4968_v1 = vpop.permute.xlu1 %4967 }
 0x9cf   :  { %5670 = vmatprep.subr.mxu0 %v4983_v10 }
 0x9d0   :  { %5671 = vmatpush3.msra.mxu0 %v4983_v10 }
 0x9d1   :  { %5672 = vmatprep.subr.mxu0 %v4982_v4 }
 0x9d2   :  { %5673 = vmatpush3.msra.mxu0 %v4982_v4 }
 0x9d3   :  { %5674 = vmatprep.subr.mxu0 %v4981_v31 }
 0x9d4   :  { %5675 = vmatpush3.msra.mxu0 %v4981_v31 }
 0x9d5   :  { %5676 = vmatprep.subr.mxu0 %v4980_v11 }
 0x9d6   :  { %5677 = vmatpush3.msra.mxu0 %v4980_v11 }
 0x9d7   :  { %5678 = vmatprep.subr.mxu0 %v4979_v8 }
 0x9d8   :  { %5679 = vmatpush3.msra.mxu0 %v4979_v8 }
 0x9d9   :  { %5680 = vmatprep.subr.mxu0 %v4978_v43 }
 0x9da   :  { %5681 = vmatpush3.msra.mxu0 %v4978_v43 }
 0x9db   :  { %5683 = vmatmul.mubr.f32.vlgmr.msra.gmra.mxu0 %v4971_v47 }
 0x9dc   :  { %5685 = vmatprep.mubr.f32.mxu0 %v4972_v3 }
 0x9df   :  { %5686 = vmatmul.mubr.f32.gmra.mxu0 %v4973_v55 }
 0x9e0   :  { %5688 = vmatprep.mubr.f32.mxu0 %v4974_v18 }
 0x9e3   :  { %5689 = vmatmul.mubr.f32.gmra.mxu0 %v4975_v21 }
 0x9e4   :  { %5691 = vmatprep.mubr.f32.mxu0 %v4976_v57 }
 0xa7b   :  { %v4818_v23 = vpop.f32.mrf.mxu0  ;;  %v4889_v28 = vpop.f32.mrf.mxu1 }
 0xa7c   :  { %v4819_v34 = vadd.f32 %v4818_v23, %v4735_v39  ;;  %v4890_v17 = vadd.f32 %v4889_v28, %v4743_v51 }
 0xa7d   :  { %v4820_v46 = vpop.f32.mrf.mxu0  ;;  %v4891_v61 = vpop.f32.mrf.mxu1 }
 0xa7e   :  { %v5181_v45 = vmul.f32 -1.442695, %v4819_v34  ;;  %v4821_v37 = vadd.f32 %v4820_v46, %v4739_v50  ;;  %v4892_v19 = vadd.f32 %v4891_v61, %v4747_v33 }
 0xa80   :  { %5860 = vpow2.f32 %v5181_v45  ;;  %v5182_v38 = vmul.f32 -1.442695, %v4821_v37 }
 0xa82   :  { %5862 = vpow2.f32 %v5182_v38 }
 0xa8d   :  { %v5861_v48 = vpop.eup %5860 }
 0xa8e   :  { %v4897_v26 = vadd.f32 1.0, %v5861_v48 }
 0xa8f   :  { %v5863_v32 = vpop.eup %5862 }
 0xa90   :  { %5864 = vrcp.f32 %v4897_v26  ;;  %v4903_v15 = vadd.f32 1.0, %v5863_v32 }
 0xa92   :  { %5866 = vrcp.f32 %v4903_v15 }
 0xa9b   :  { %v5684_v2 = vpop.f32.mrf.mxu0 }
 0xa9c   :  { %v5073_v22 = vadd.f32 %v5684_v2, %v5183_v29 }
 0xa9d   :  { %v5865_v36 = vpop.eup %5864  ;;  %v5067_v40 = vpop.f32.mrf.mxu0 }
 0xa9e   :  { %v4906_v35 = vmul.f32 %v5865_v36, %v4892_v19  ;;  %5107 = vst [vmem:[#allocation12 + $0x8] sm:$0xff] %v5073_v22  ;;  %v5068_v41 = vadd.f32 %v5183_v29, %v5067_v40 }
 0xa9f   :  { %v5687_v13 = vpop.f32.mrf.mxu0  ;;  %v5867_v54 = vpop.eup %5866 }
 0xaa0   :  { %v4907_v58 = vadd.f32 %v4906_v35, %v4890_v17  ;;  %5106 = vst [vmem:[#allocation12] sm:$0xff] %v5068_v41  ;;  %v5083_v62 = vadd.f32 %v5687_v13, %v5183_v29  ;;  %v4909_v56 = vsub.f32 1.0, %v5867_v54  ;;  %v4911_v42 = vmul.f32 %v5867_v54, %v9418_v6 }
 0xaa1   :  { %v5077_v53 = vpop.f32.mrf.mxu0 }
 0xaa2   :  { %5868 = vtanh.f32 %v4907_v58  ;;  %5109 = vst [vmem:[#allocation12 + $0x18] sm:$0xff] %v5083_v62  ;;  %v5078_v0 = vadd.f32 %v5183_v29, %v5077_v53 }
 0xaa3   :  { %v5690_v9 = vpop.f32.mrf.mxu0 }
 0xaa4   :  { %5108 = vst [vmem:[#allocation12 + $0x10] sm:$0xff] %v5078_v0  ;;  %v5093_v16 = vadd.f32 %v5690_v9, %v5183_v29 }
 0xaa5   :  { %v5087_v20 = vpop.f32.mrf.mxu0 }
 0xaa6   :  { %5111 = vst [vmem:[#allocation12 + $0x28] sm:$0xff] %v5093_v16  ;;  %v5088_v27 = vadd.f32 %v5183_v29, %v5087_v20 }
 0xaa8   :  { %5110 = vst [vmem:[#allocation12 + $0x20] sm:$0xff] %v5088_v27 }
 0xaaf   :  { %v5869_v63 = vpop.eup %5868 }
 0xab0   :  { %v4910_v7 = vmul.f32 %v5869_v63, %v4909_v56 }
 0xab2   :  { %v4912_v5 = vadd.f32 %v4911_v42, %v4910_v7 }
 0xab4   :  { %v4977_v10 = vmul.f32 %v4968_v1, %v4912_v5 }
 0xab6   :  { %5692 = vmatmul.mubr.f32.gmra.mxu0 %v4977_v10 }
 0xb76   :  { %v5693_v4 = vpop.f32.mrf.mxu0 }
 0xb77   :  { %v5103_v31 = vadd.f32 %v5693_v4, %v5183_v29 }
 0xb78   :  { %v5097_v11 = vpop.f32.mrf.mxu0 }
 0xb79   :  { %5113 = vst [vmem:[#allocation12 + $0x38] sm:$0xff] %v5103_v31  ;;  %v5098_v8 = vadd.f32 %v5183_v29, %v5097_v11 }
 0xb7b   :  { %5112 = vst [vmem:[#allocation12 + $0x30] sm:$0xff] %v5098_v8 }
 0xb7c   :  { %5961 = shalt.err (!%p5958_p10)
}
 0xb7d   :  { %s5990_s23 = smov 128   ;;  %s5991_s26 = smov 8  }
 0xb7e   :  { %5125 = dma.vmem_to_hbm [thread:$0]  %s5120_s22, 1024, %s9504_s12, [#allocation6], %s5990_s23, %s5990_s23, %s5991_s26  }
 0xb7f   :  { %5976 = dma.done.wait [#allocation6], 1024  }
 0xb80   :  { %5977 = vsyncadd [#allocation6], 4294966272 }
 0xb81   :  { %5129 = vsyncpa [#allocation5], 1 }
 0xb82   :  { %5130 = vsyncpa [#allocation8], 1 }
 0xb83   :  { %5131 = vsyncpa [#allocation11], 1 }
 0xb84   :  { %5132 = vsyncpa [#allocation6], 1 }

</bundles_post_ra>
